<compile_context>
chip_gen: v7x
topology: tpu7x:2x2x1
jax: 0.10.0
libtpu: 0.0.40
codegen_flags: <defaults>
</compile_context>

<pallas_src>
import functools

import jax
import jax.numpy as jnp
from jax.experimental import pallas as pl
from jax.experimental.pallas import tpu as pltpu

NUM_NODES = 41
D_MODEL = 4
N_LAYERS = 4
DIM_FF = 2048
FEAT = NUM_NODES * D_MODEL          # 164, flattened (node, feature) axis

VMEM = pltpu.MemorySpace.VMEM


# ----------------------------------------------------------------------------
# Conv branch: fused Conv2d(3x3, pad=1) + bias + ReLU + MaxPool2d(2,2)
# ----------------------------------------------------------------------------

def _conv_relu_pool_kernel(x_ref, w_ref, b_ref, o_ref, *, Wc, Wo):
    # x_ref: [1, Hp, Wp, Cin] padded image; w_ref: [9, Cin, Cout]; b_ref: [1, Cout]
    # o_ref: [1, Ho, Wo, Cout] pooled output (written one pooled row per step).
    cin = x_ref.shape[3]
    cout = o_ref.shape[3]
    n_rows = o_ref.shape[1]
    w_all = w_ref[...]
    bias = b_ref[...]
    # One-hot selector picking rows 0,2,4,... of the pairwise row-max: implements
    # the horizontal 2x max-pool as a tiny matmul (no strided / relayout ops).
    sel = (jax.lax.broadcasted_iota(jnp.int32, (Wo, 2 * Wo - 1), 1)
           == 2 * jax.lax.broadcasted_iota(jnp.int32, (Wo, 2 * Wo - 1), 0)
           ).astype(jnp.float32)

    def pooled_row(ho, carry):
        pooled = None
        for r in range(2):                                   # 2 conv rows per pooled row
            acc = jnp.zeros((Wc, cout), jnp.float32)
            for di in range(3):
                row = x_ref[0, 2 * ho + r + di]              # [Wp, Cin]
                for dj in range(3):
                    wk = w_all[3 * di + dj]                  # [Cin, Cout]
                    win = row[dj:dj + Wc, :]                 # [Wc, Cin]
                    if cin == 1:                             # conv1: K=1 -> VPU broadcast mul
                        acc = acc + win * wk
                    else:                                    # conv2: MXU matmul
                        acc = acc + jnp.dot(win, wk,
                                            preferred_element_type=jnp.float32)
            pair_max = jnp.maximum(acc[0:2 * Wo - 1, :], acc[1:2 * Wo, :])
            cur = jnp.dot(sel, pair_max, preferred_element_type=jnp.float32)  # [Wo, Cout]
            pooled = cur if pooled is None else jnp.maximum(pooled, cur)
        # bias/ReLU commute with max -> apply once on the pooled row.
        o_ref[0, ho, :, :] = jnp.maximum(pooled + bias, 0.0)
        return carry

    jax.lax.fori_loop(0, n_rows, pooled_row, 0)


def conv_relu_pool(x_nhwc, w9, b):
    """Fused conv(3x3,pad=1)+bias+ReLU+maxpool(2,2), NHWC, gridded over batch."""
    B, H, W, Cin = x_nhwc.shape
    Cout = w9.shape[2]
    Ho, Wo = H // 2, W // 2
    xp = jnp.pad(x_nhwc, ((0, 0), (1, 1), (1, 1), (0, 0)))   # halo padding only (no im2col)
    Hp, Wp = H + 2, W + 2
    kernel = functools.partial(_conv_relu_pool_kernel, Wc=W, Wo=Wo)
    return pl.pallas_call(
        kernel,
        out_shape=jax.ShapeDtypeStruct((B, Ho, Wo, Cout), jnp.float32),
        grid=(B,),
        in_specs=[pl.BlockSpec((1, Hp, Wp, Cin), lambda bi: (bi, 0, 0, 0)),
                  pl.BlockSpec((9, Cin, Cout), lambda bi: (0, 0, 0)),
                  pl.BlockSpec((1, Cout), lambda bi: (0, 0))],
        out_specs=pl.BlockSpec((1, Ho, Wo, Cout), lambda bi: (bi, 0, 0, 0)),
        compiler_params=pltpu.CompilerParams(
            dimension_semantics=("parallel",),
            vmem_limit_bytes=32 * 1024 * 1024),
    )(xp, w9, b)


# ----------------------------------------------------------------------------
# Transformer layer, kernel 1: fused self-attention + out-proj + add & LN1
# Layout: [B, 164] with f = node*4 + feature (lane-dense); projections and the
# per-node LayerNorm statistics use block-diagonal (kron) matrices so the whole
# block is plain 2-D matmuls / elementwise ops.
# ----------------------------------------------------------------------------

def _attn_layer_kernel(x_ref, xkv_ref, wq_ref, wk_ref, wv_ref, wo_ref,
                       bq_ref, bk_ref, bv_ref, bo_ref, gs_ref, g1_ref, b1_ref,
                       o_ref, m_scr, l_scr, acc_scr):
    j = pl.program_id(0)

    @pl.when(j == 0)
    def _():
        m_scr[...] = jnp.full(m_scr.shape, -jnp.inf, jnp.float32)
        l_scr[...] = jnp.zeros(l_scr.shape, jnp.float32)
        acc_scr[...] = jnp.zeros(acc_scr.shape, jnp.float32)

    x = x_ref[...]                                            # [B, 164]
    q = jnp.dot(x, wq_ref[...], preferred_element_type=jnp.float32) + bq_ref[...]
    xk = xkv_ref[...]                                         # [TJ, 164] current KV block
    kb = jnp.dot(xk, wk_ref[...], preferred_element_type=jnp.float32) + bk_ref[...]
    vb = jnp.dot(xk, wv_ref[...], preferred_element_type=jnp.float32) + bv_ref[...]

    # head_dim = d_model / nhead = 1 -> per-(node, head) scalar attention, scale 1.
    s = q[:, None, :] * kb[None, :, :]                        # [B, TJ, 164]
    m_new = jnp.maximum(m_scr[...], jnp.max(s, axis=1))       # online softmax
    alpha = jnp.exp(m_scr[...] - m_new)
    p = jnp.exp(s - m_new[:, None, :])
    l_scr[...] = alpha * l_scr[...] + jnp.sum(p, axis=1)
    acc_scr[...] = alpha * acc_scr[...] + jnp.sum(p * vb[None, :, :], axis=1)
    m_scr[...] = m_new

    @pl.when(j == pl.num_programs(0) - 1)
    def _():
        attn = acc_scr[...] * pl.reciprocal(l_scr[...], approx=True)
        z = x + jnp.dot(attn, wo_ref[...], preferred_element_type=jnp.float32) + bo_ref[...]
        # LayerNorm over each node's 4 features via the block-diag group-sum matrix.
        mu = jnp.dot(z, gs_ref[...], preferred_element_type=jnp.float32) * (1.0 / D_MODEL)
        zc = z - mu
        var = jnp.dot(zc * zc, gs_ref[...], preferred_element_type=jnp.float32) * (1.0 / D_MODEL)
        o_ref[...] = zc * jax.lax.rsqrt(var + 1e-5) * g1_ref[...] + b1_ref[...]


def attn_block(x_att, lp, g_sum):
    B, F = x_att.shape
    tj = 8 if B % 8 == 0 else B           # KV rows per grid step (always divides B)
    grid = (B // tj,)

    def full(shape):
        return pl.BlockSpec(shape, lambda j: (0,) * len(shape))

    return pl.pallas_call(
        _attn_layer_kernel,
        out_shape=jax.ShapeDtypeStruct((B, F), jnp.float32),
        grid=grid,
        in_specs=[full((B, F)),                              # queries / residual
                  pl.BlockSpec((tj, F), lambda j: (j, 0)),   # current KV block
                  full((F, F)), full((F, F)), full((F, F)), full((F, F)),
                  full((1, F)), full((1, F)), full((1, F)), full((1, F)),
                  full((F, F)),                              # per-node group-sum (LN)
                  full((1, F)), full((1, F))],
        out_specs=full((B, F)),
        scratch_shapes=[pltpu.VMEM((B, F), jnp.float32),     # running max
                        pltpu.VMEM((B, F), jnp.float32),     # running denominator
                        pltpu.VMEM((B, F), jnp.float32)],    # running numerator
        compiler_params=pltpu.CompilerParams(
            dimension_semantics=("arbitrary",),
            vmem_limit_bytes=32 * 1024 * 1024),
    )(x_att, x_att, lp["wq_bd"], lp["wk_bd"], lp["wv_bd"], lp["wo_bd"],
      lp["bq_t"], lp["bk_t"], lp["bv_t"], lp["bo_t"],
      g_sum, lp["ln1_g_t"], lp["ln1_b_t"])


# ----------------------------------------------------------------------------
# Transformer layer, kernel 2: fused FF(4->2048->4) + add & LN2, grid over batch.
# The [41, 2048] intermediate stays in VMEM; bf16 MXU matmuls, f32 accumulation.
# ----------------------------------------------------------------------------

def _ff_layer_kernel(x_ref, w1_ref, b1_ref, w2_ref, b2_ref, g_ref, bta_ref, o_ref):
    x = x_ref[0]                                              # [41, 4] f32
    h = jnp.dot(x.astype(jnp.bfloat16), w1_ref[...],
                preferred_element_type=jnp.float32) + b1_ref[...]
    h = jnp.maximum(h, 0.0)                                   # [41, 2048] lane-dense
    y = jnp.dot(h.astype(jnp.bfloat16), w2_ref[...],
                preferred_element_type=jnp.float32) + b2_ref[...]
    z = x + y
    mu = jnp.mean(z, axis=-1, keepdims=True)
    zc = z - mu
    var = jnp.mean(zc * zc, axis=-1, keepdims=True)
    o_ref[0] = zc * jax.lax.rsqrt(var + 1e-5) * g_ref[...] + bta_ref[...]


def ff_block(x3, lp):
    B = x3.shape[0]
    return pl.pallas_call(
        _ff_layer_kernel,
        out_shape=jax.ShapeDtypeStruct((B, NUM_NODES, D_MODEL), jnp.float32),
        grid=(B,),
        in_specs=[pl.BlockSpec((1, NUM_NODES, D_MODEL), lambda b: (b, 0, 0)),
                  pl.BlockSpec((D_MODEL, DIM_FF), lambda b: (0, 0)),
                  pl.BlockSpec((1, DIM_FF), lambda b: (0, 0)),
                  pl.BlockSpec((DIM_FF, D_MODEL), lambda b: (0, 0)),
                  pl.BlockSpec((1, D_MODEL), lambda b: (0, 0)),
                  pl.BlockSpec((1, D_MODEL), lambda b: (0, 0)),
                  pl.BlockSpec((1, D_MODEL), lambda b: (0, 0))],
        out_specs=pl.BlockSpec((1, NUM_NODES, D_MODEL), lambda b: (b, 0, 0)),
        compiler_params=pltpu.CompilerParams(
            dimension_semantics=("parallel",),
            vmem_limit_bytes=32 * 1024 * 1024),
    )(x3, lp["ff1_w"], lp["ff1_b"], lp["ff2_w"], lp["ff2_b"],
      lp["ln2_g"], lp["ln2_b"])


# ----------------------------------------------------------------------------
# Fused head: fc1+ReLU (+dropout=identity), fc2+ReLU, transformer mean, fc3, sigmoid
# ----------------------------------------------------------------------------

def _head_kernel(flat_ref, seq_ref, w1_ref, b1_ref, w2_ref, b2_ref,
                 w3a_ref, w3s_ref, b3_ref, gm_ref, o_ref):
    h = jnp.dot(flat_ref[...].astype(jnp.bfloat16), w1_ref[...],
                preferred_element_type=jnp.float32) + b1_ref[...]
    h = jnp.maximum(h, 0.0)
    # TODO(synk): Dropout(p=0.2) implemented as identity (eval-mode semantics).
    a = jnp.maximum(jnp.dot(h, w2_ref[...], preferred_element_type=jnp.float32)
                    + b2_ref[...], 0.0)                       # [B, 4]
    s = jnp.dot(seq_ref[...], gm_ref[...],
                preferred_element_type=jnp.float32)           # mean over 41 nodes -> [B, 4]
    z = (jnp.dot(a, w3a_ref[...], preferred_element_type=jnp.float32)
         + jnp.dot(s, w3s_ref[...], preferred_element_type=jnp.float32)
         + b3_ref[...])                                       # concat realized via split fc3
    o_ref[...] = jax.nn.sigmoid(z)


def head_block(flat, seq_att, p):
    B = flat.shape[0]
    return pl.pallas_call(
        _head_kernel,
        out_shape=jax.ShapeDtypeStruct((B, 1), jnp.float32),
        in_specs=[pl.BlockSpec(memory_space=VMEM) for _ in range(10)],
        out_specs=pl.BlockSpec(memory_space=VMEM),
    )(flat, seq_att, p["fc1_w"], p["fc1_b"], p["fc2_w"], p["fc2_b"],
      p["fc3_wa"], p["fc3_ws"], p["fc3_b"], p["g_mean"])


# ----------------------------------------------------------------------------
# Forward pass
# ----------------------------------------------------------------------------

def graph_cnn_forward(x, params, batch):
    adj_x = x[:, :, :NUM_NODES]                               # [B, 41, 41]
    seq_x = x[:, :, NUM_NODES:]                               # [B, 41, 4]

    # -------- adjacency / conv branch (2 fused kernels) --------
    a = adj_x.reshape(batch, NUM_NODES, NUM_NODES, 1)         # NHWC
    y = conv_relu_pool(a, params["conv1_w"], params["conv1_b"])      # [B, 20, 20, 16]
    y = conv_relu_pool(y, params["conv2_w"], params["conv2_b"])      # [B, 10, 10, 32]
    # NHWC-flat; fc1_w rows are stored in matching order (no runtime transpose).
    flat = y.reshape(batch, 8 * (NUM_NODES // 2) * (NUM_NODES // 2))

    # -------- transformer branch (2 fused kernels per layer) --------
    t = seq_x.reshape(batch, FEAT)                            # [B, 164], f = n*4 + e
    for lp in params["layers"]:
        t = attn_block(t, lp, params["g_sum"])                # attn + out-proj + add&LN1
        t = ff_block(t.reshape(batch, NUM_NODES, D_MODEL), lp)  # FF + add&LN2
        t = t.reshape(batch, FEAT)

    # -------- fused head --------
    return head_block(flat, t, params)                        # [B, 1]


# ----------------------------------------------------------------------------
# Parameters
# ----------------------------------------------------------------------------

def init_params(key):
    keys = jax.random.split(key, 48)
    it = iter(keys)

    def nrm(shape, scale=0.05):
        return scale * jax.random.normal(next(it), shape, dtype=jnp.float32)

    eye_n = jnp.eye(NUM_NODES, dtype=jnp.float32)

    def block_diag(w44):                 # [4, X] per-node weight -> [164, 41*X] block-diag
        return jnp.kron(eye_n, w44)

    def tiled(v4):                       # per-feature [4] vector -> [1, 164] per-node tiled
        return jnp.tile(v4, NUM_NODES).reshape(1, FEAT)

    p = {}
    # Conv weights in [9, Cin, Cout] layout (k = di*3 + dj): the once-at-init
    # permutation of torch's [Cout, Cin, 3, 3].
    p["conv1_w"] = nrm((9, 1, 16))
    p["conv1_b"] = nrm((1, 16))
    p["conv2_w"] = nrm((9, 16, 32))
    p["conv2_b"] = nrm((1, 32))
    # fc1 rows stored in NHWC-flat order (h*320 + w*32 + c): the once-at-init
    # row permutation of torch's NCHW-flat fc1 weight.  Stored bf16 for the MXU.
    p["fc1_w"] = nrm((8 * (NUM_NODES // 2) * (NUM_NODES // 2), 128), 0.02).astype(jnp.bfloat16)
    p["fc1_b"] = nrm((1, 128))
    p["fc2_w"] = nrm((128, 4))
    p["fc2_b"] = nrm((1, 4))
    # fc3 split into conv-feature rows and transformer-mean rows (concat-free head).
    p["fc3_wa"] = nrm((4, 1))
    p["fc3_ws"] = nrm((4, 1))
    p["fc3_b"] = nrm((1, 1))

    # Constant matrices for the [B, 164] layout.
    p["g_sum"] = jnp.kron(eye_n, jnp.ones((D_MODEL, D_MODEL), jnp.float32))   # per-node sum (LN stats)
    p["g_mean"] = jnp.kron(jnp.ones((NUM_NODES, 1), jnp.float32) / NUM_NODES,
                           jnp.eye(D_MODEL, dtype=jnp.float32))               # mean over nodes

    layers = []
    for _ in range(N_LAYERS):
        in_w = nrm((D_MODEL, 3 * D_MODEL))
        in_b = nrm((3 * D_MODEL,))
        out_w = nrm((D_MODEL, D_MODEL))
        out_b = nrm((D_MODEL,))
        layers.append(dict(
            wq_bd=block_diag(in_w[:, 0:4]),
            wk_bd=block_diag(in_w[:, 4:8]),
            wv_bd=block_diag(in_w[:, 8:12]),
            wo_bd=block_diag(out_w),
            bq_t=tiled(in_b[0:4]), bk_t=tiled(in_b[4:8]), bv_t=tiled(in_b[8:12]),
            bo_t=tiled(out_b),
            ln1_g_t=jnp.ones((1, FEAT), jnp.float32),
            ln1_b_t=jnp.zeros((1, FEAT), jnp.float32),
            ff1_w=nrm((D_MODEL, DIM_FF)).astype(jnp.bfloat16),
            ff1_b=nrm((1, DIM_FF)),
            ff2_w=nrm((DIM_FF, D_MODEL), 0.02).astype(jnp.bfloat16),
            ff2_b=nrm((1, D_MODEL)),
            ln2_g=jnp.ones((1, D_MODEL), jnp.float32),
            ln2_b=jnp.zeros((1, D_MODEL), jnp.float32),
        ))
    p["layers"] = layers
    return p


if __name__ == "__main__":
    batch = 2
    key = jax.random.PRNGKey(0)
    kx, kp = jax.random.split(key)
    # x: [batch, 41, 45] = [adjacency (41) | sequence features (4)] per node row
    x = jax.random.normal(kx, (batch, NUM_NODES, NUM_NODES + D_MODEL), dtype=jnp.float32)
    params = init_params(kp)

    fwd = jax.jit(functools.partial(graph_cnn_forward, batch=batch))
    out = fwd(x, params)
    jax.block_until_ready(out)
    assert out.shape == (batch, 1)
    assert bool(jnp.all(jnp.isfinite(out)))
    print("KERNEL_OK")
</pallas_src>

<mosaic_0001>
module attributes {stable_mosaic.version = 11 : i64} {
  func.func @_conv_relu_pool_kernel(%arg0: i32, %arg1: memref<1x43x43x1xf32, #tpu.memory_space<vmem>>, %arg2: memref<9x1x16xf32, #tpu.memory_space<vmem>>, %arg3: memref<1x16xf32, #tpu.memory_space<vmem>>, %arg4: memref<1x20x20x16xf32, #tpu.memory_space<vmem>>) attributes {dimension_semantics = [#tpu.dimension_semantics<parallel>], iteration_bounds = array<i64: 2>, scalar_prefetch = 0 : i64, scratch_operands = 0 : i64, tpu.core_type = #tpu.core_type<tc>, window_params = [{transform_indices = @transform_0, window_bounds = array<i64: 1, 43, 43, 1>}, {pipeline_mode = #tpu.pipeline_mode<synchronous>, transform_indices = @transform_1, window_bounds = array<i64: 9, 1, 16>}, {pipeline_mode = #tpu.pipeline_mode<synchronous>, transform_indices = @transform_2, window_bounds = array<i64: 1, 16>}, {transform_indices = @transform_3, window_bounds = array<i64: 1, 20, 20, 16>}]} {
    %c0 = arith.constant 0 : index
    %c0_0 = arith.constant 0 : index
    %c0_1 = arith.constant 0 : index
    %0 = vector.load %arg2[%c0, %c0_0, %c0_1] : memref<9x1x16xf32, #tpu.memory_space<vmem>>, vector<9x1x16xf32>
    %c0_2 = arith.constant 0 : index
    %c0_3 = arith.constant 0 : index
    %1 = vector.load %arg3[%c0_2, %c0_3] : memref<1x16xf32, #tpu.memory_space<vmem>>, vector<1x16xf32>
    %2 = tpu.iota {dimensions = array<i32: 1>} : vector<20x39xi32>
    %3 = tpu.iota {dimensions = array<i32: 0>} : vector<20x39xi32>
    %c2_i32 = arith.constant 2 : i32
    %4 = vector.broadcast %c2_i32 : i32 to vector<20x39xi32>
    %5 = arith.muli %4, %3 : vector<20x39xi32>
    %6 = arith.cmpi eq, %2, %5 : vector<20x39xi32>
    %7 = arith.extui %6 : vector<20x39xi1> to vector<20x39xi32>
    %8 = arith.sitofp %7 : vector<20x39xi32> to vector<20x39xf32>
    %c0_i32 = arith.constant 0 : i32
    %c20_i32 = arith.constant 20 : i32
    %9 = arith.addi %c0_i32, %c20_i32 : i32
    %c1_i32 = arith.constant 1 : i32
    scf.for %arg5 = %c0_i32 to %9 step %c1_i32  : i32 {
      %cst = arith.constant 0.000000e+00 : f32
      %10 = vector.broadcast %cst : f32 to vector<41x16xf32>
      %c2_i32_5 = arith.constant 2 : i32
      %11 = arith.muli %c2_i32_5, %arg5 : i32
      %c0_i32_6 = arith.constant 0 : i32
      %12 = arith.addi %11, %c0_i32_6 : i32
      %c0_i32_7 = arith.constant 0 : i32
      %13 = arith.addi %12, %c0_i32_7 : i32
      %c0_8 = arith.constant 0 : index
      %14 = arith.index_cast %13 : i32 to index
      %c0_9 = arith.constant 0 : index
      %c0_10 = arith.constant 0 : index
      %15 = vector.load %arg1[%c0_8, %14, %c0_9, %c0_10] : memref<1x43x43x1xf32, #tpu.memory_space<vmem>>, vector<1x1x43x1xf32>
      %16 = vector.shape_cast %15 : vector<1x1x43x1xf32> to vector<43x1xf32>
      %17 = vector.extract_strided_slice %0 {offsets = [0, 0, 0], sizes = [1, 1, 16], strides = [1, 1, 1]} : vector<9x1x16xf32> to vector<1x1x16xf32>
      %18 = vector.shape_cast %17 : vector<1x1x16xf32> to vector<1x16xf32>
      %19 = vector.extract_strided_slice %16 {offsets = [0, 0], sizes = [41, 1], strides = [1, 1]} : vector<43x1xf32> to vector<41x1xf32>
      %20 = vector.broadcast %19 : vector<41x1xf32> to vector<41x16xf32>
      %21 = vector.broadcast %18 : vector<1x16xf32> to vector<41x16xf32>
      %22 = arith.mulf %20, %21 : vector<41x16xf32>
      %23 = arith.addf %10, %22 : vector<41x16xf32>
      %24 = vector.extract_strided_slice %0 {offsets = [1, 0, 0], sizes = [1, 1, 16], strides = [1, 1, 1]} : vector<9x1x16xf32> to vector<1x1x16xf32>
      %25 = vector.shape_cast %24 : vector<1x1x16xf32> to vector<1x16xf32>
      %26 = vector.extract_strided_slice %16 {offsets = [1, 0], sizes = [41, 1], strides = [1, 1]} : vector<43x1xf32> to vector<41x1xf32>
      %27 = vector.broadcast %26 : vector<41x1xf32> to vector<41x16xf32>
      %28 = vector.broadcast %25 : vector<1x16xf32> to vector<41x16xf32>
      %29 = arith.mulf %27, %28 : vector<41x16xf32>
      %30 = arith.addf %23, %29 : vector<41x16xf32>
      %31 = vector.extract_strided_slice %0 {offsets = [2, 0, 0], sizes = [1, 1, 16], strides = [1, 1, 1]} : vector<9x1x16xf32> to vector<1x1x16xf32>
      %32 = vector.shape_cast %31 : vector<1x1x16xf32> to vector<1x16xf32>
      %33 = vector.extract_strided_slice %16 {offsets = [2, 0], sizes = [41, 1], strides = [1, 1]} : vector<43x1xf32> to vector<41x1xf32>
      %34 = vector.broadcast %33 : vector<41x1xf32> to vector<41x16xf32>
      %35 = vector.broadcast %32 : vector<1x16xf32> to vector<41x16xf32>
      %36 = arith.mulf %34, %35 : vector<41x16xf32>
      %37 = arith.addf %30, %36 : vector<41x16xf32>
      %c2_i32_11 = arith.constant 2 : i32
      %38 = arith.muli %c2_i32_11, %arg5 : i32
      %c0_i32_12 = arith.constant 0 : i32
      %39 = arith.addi %38, %c0_i32_12 : i32
      %c1_i32_13 = arith.constant 1 : i32
      %40 = arith.addi %39, %c1_i32_13 : i32
      %c0_14 = arith.constant 0 : index
      %41 = arith.index_cast %40 : i32 to index
      %c0_15 = arith.constant 0 : index
      %c0_16 = arith.constant 0 : index
      %42 = vector.load %arg1[%c0_14, %41, %c0_15, %c0_16] : memref<1x43x43x1xf32, #tpu.memory_space<vmem>>, vector<1x1x43x1xf32>
      %43 = vector.shape_cast %42 : vector<1x1x43x1xf32> to vector<43x1xf32>
      %44 = vector.extract_strided_slice %0 {offsets = [3, 0, 0], sizes = [1, 1, 16], strides = [1, 1, 1]} : vector<9x1x16xf32> to vector<1x1x16xf32>
      %45 = vector.shape_cast %44 : vector<1x1x16xf32> to vector<1x16xf32>
      %46 = vector.extract_strided_slice %43 {offsets = [0, 0], sizes = [41, 1], strides = [1, 1]} : vector<43x1xf32> to vector<41x1xf32>
      %47 = vector.broadcast %46 : vector<41x1xf32> to vector<41x16xf32>
      %48 = vector.broadcast %45 : vector<1x16xf32> to vector<41x16xf32>
      %49 = arith.mulf %47, %48 : vector<41x16xf32>
      %50 = arith.addf %37, %49 : vector<41x16xf32>
      %51 = vector.extract_strided_slice %0 {offsets = [4, 0, 0], sizes = [1, 1, 16], strides = [1, 1, 1]} : vector<9x1x16xf32> to vector<1x1x16xf32>
      %52 = vector.shape_cast %51 : vector<1x1x16xf32> to vector<1x16xf32>
      %53 = vector.extract_strided_slice %43 {offsets = [1, 0], sizes = [41, 1], strides = [1, 1]} : vector<43x1xf32> to vector<41x1xf32>
      %54 = vector.broadcast %53 : vector<41x1xf32> to vector<41x16xf32>
      %55 = vector.broadcast %52 : vector<1x16xf32> to vector<41x16xf32>
      %56 = arith.mulf %54, %55 : vector<41x16xf32>
      %57 = arith.addf %50, %56 : vector<41x16xf32>
      %58 = vector.extract_strided_slice %0 {offsets = [5, 0, 0], sizes = [1, 1, 16], strides = [1, 1, 1]} : vector<9x1x16xf32> to vector<1x1x16xf32>
      %59 = vector.shape_cast %58 : vector<1x1x16xf32> to vector<1x16xf32>
      %60 = vector.extract_strided_slice %43 {offsets = [2, 0], sizes = [41, 1], strides = [1, 1]} : vector<43x1xf32> to vector<41x1xf32>
      %61 = vector.broadcast %60 : vector<41x1xf32> to vector<41x16xf32>
      %62 = vector.broadcast %59 : vector<1x16xf32> to vector<41x16xf32>
      %63 = arith.mulf %61, %62 : vector<41x16xf32>
      %64 = arith.addf %57, %63 : vector<41x16xf32>
      %c2_i32_17 = arith.constant 2 : i32
      %65 = arith.muli %c2_i32_17, %arg5 : i32
      %c0_i32_18 = arith.constant 0 : i32
      %66 = arith.addi %65, %c0_i32_18 : i32
      %c2_i32_19 = arith.constant 2 : i32
      %67 = arith.addi %66, %c2_i32_19 : i32
      %c0_20 = arith.constant 0 : index
      %68 = arith.index_cast %67 : i32 to index
      %c0_21 = arith.constant 0 : index
      %c0_22 = arith.constant 0 : index
      %69 = vector.load %arg1[%c0_20, %68, %c0_21, %c0_22] : memref<1x43x43x1xf32, #tpu.memory_space<vmem>>, vector<1x1x43x1xf32>
      %70 = vector.shape_cast %69 : vector<1x1x43x1xf32> to vector<43x1xf32>
      %71 = vector.extract_strided_slice %0 {offsets = [6, 0, 0], sizes = [1, 1, 16], strides = [1, 1, 1]} : vector<9x1x16xf32> to vector<1x1x16xf32>
      %72 = vector.shape_cast %71 : vector<1x1x16xf32> to vector<1x16xf32>
      %73 = vector.extract_strided_slice %70 {offsets = [0, 0], sizes = [41, 1], strides = [1, 1]} : vector<43x1xf32> to vector<41x1xf32>
      %74 = vector.broadcast %73 : vector<41x1xf32> to vector<41x16xf32>
      %75 = vector.broadcast %72 : vector<1x16xf32> to vector<41x16xf32>
      %76 = arith.mulf %74, %75 : vector<41x16xf32>
      %77 = arith.addf %64, %76 : vector<41x16xf32>
      %78 = vector.extract_strided_slice %0 {offsets = [7, 0, 0], sizes = [1, 1, 16], strides = [1, 1, 1]} : vector<9x1x16xf32> to vector<1x1x16xf32>
      %79 = vector.shape_cast %78 : vector<1x1x16xf32> to vector<1x16xf32>
      %80 = vector.extract_strided_slice %70 {offsets = [1, 0], sizes = [41, 1], strides = [1, 1]} : vector<43x1xf32> to vector<41x1xf32>
      %81 = vector.broadcast %80 : vector<41x1xf32> to vector<41x16xf32>
      %82 = vector.broadcast %79 : vector<1x16xf32> to vector<41x16xf32>
      %83 = arith.mulf %81, %82 : vector<41x16xf32>
      %84 = arith.addf %77, %83 : vector<41x16xf32>
      %85 = vector.extract_strided_slice %0 {offsets = [8, 0, 0], sizes = [1, 1, 16], strides = [1, 1, 1]} : vector<9x1x16xf32> to vector<1x1x16xf32>
      %86 = vector.shape_cast %85 : vector<1x1x16xf32> to vector<1x16xf32>
      %87 = vector.extract_strided_slice %70 {offsets = [2, 0], sizes = [41, 1], strides = [1, 1]} : vector<43x1xf32> to vector<41x1xf32>
      %88 = vector.broadcast %87 : vector<41x1xf32> to vector<41x16xf32>
      %89 = vector.broadcast %86 : vector<1x16xf32> to vector<41x16xf32>
      %90 = arith.mulf %88, %89 : vector<41x16xf32>
      %91 = arith.addf %84, %90 : vector<41x16xf32>
      %92 = vector.extract_strided_slice %91 {offsets = [0, 0], sizes = [39, 16], strides = [1, 1]} : vector<41x16xf32> to vector<39x16xf32>
      %93 = vector.extract_strided_slice %91 {offsets = [1, 0], sizes = [39, 16], strides = [1, 1]} : vector<41x16xf32> to vector<39x16xf32>
      %94 = arith.maximumf %92, %93 : vector<39x16xf32>
      %cst_23 = arith.constant dense<0.000000e+00> : vector<20x16xf32>
      %95 = tpu.matmul %8, %94, %cst_23 {dimension_numbers = #tpu.dot_dimension_numbers<[1], [0], [0], [1], [0, 0, 1, 1], [], []>} : vector<20x39xf32>, vector<39x16xf32>, vector<20x16xf32> -> vector<20x16xf32>
      %cst_24 = arith.constant 0.000000e+00 : f32
      %96 = vector.broadcast %cst_24 : f32 to vector<41x16xf32>
      %c2_i32_25 = arith.constant 2 : i32
      %97 = arith.muli %c2_i32_25, %arg5 : i32
      %c1_i32_26 = arith.constant 1 : i32
      %98 = arith.addi %97, %c1_i32_26 : i32
      %c0_i32_27 = arith.constant 0 : i32
      %99 = arith.addi %98, %c0_i32_27 : i32
      %c0_28 = arith.constant 0 : index
      %100 = arith.index_cast %99 : i32 to index
      %c0_29 = arith.constant 0 : index
      %c0_30 = arith.constant 0 : index
      %101 = vector.load %arg1[%c0_28, %100, %c0_29, %c0_30] : memref<1x43x43x1xf32, #tpu.memory_space<vmem>>, vector<1x1x43x1xf32>
      %102 = vector.shape_cast %101 : vector<1x1x43x1xf32> to vector<43x1xf32>
      %103 = vector.extract_strided_slice %0 {offsets = [0, 0, 0], sizes = [1, 1, 16], strides = [1, 1, 1]} : vector<9x1x16xf32> to vector<1x1x16xf32>
      %104 = vector.shape_cast %103 : vector<1x1x16xf32> to vector<1x16xf32>
      %105 = vector.extract_strided_slice %102 {offsets = [0, 0], sizes = [41, 1], strides = [1, 1]} : vector<43x1xf32> to vector<41x1xf32>
      %106 = vector.broadcast %105 : vector<41x1xf32> to vector<41x16xf32>
      %107 = vector.broadcast %104 : vector<1x16xf32> to vector<41x16xf32>
      %108 = arith.mulf %106, %107 : vector<41x16xf32>
      %109 = arith.addf %96, %108 : vector<41x16xf32>
      %110 = vector.extract_strided_slice %0 {offsets = [1, 0, 0], sizes = [1, 1, 16], strides = [1, 1, 1]} : vector<9x1x16xf32> to vector<1x1x16xf32>
      %111 = vector.shape_cast %110 : vector<1x1x16xf32> to vector<1x16xf32>
      %112 = vector.extract_strided_slice %102 {offsets = [1, 0], sizes = [41, 1], strides = [1, 1]} : vector<43x1xf32> to vector<41x1xf32>
      %113 = vector.broadcast %112 : vector<41x1xf32> to vector<41x16xf32>
      %114 = vector.broadcast %111 : vector<1x16xf32> to vector<41x16xf32>
      %115 = arith.mulf %113, %114 : vector<41x16xf32>
      %116 = arith.addf %109, %115 : vector<41x16xf32>
      %117 = vector.extract_strided_slice %0 {offsets = [2, 0, 0], sizes = [1, 1, 16], strides = [1, 1, 1]} : vector<9x1x16xf32> to vector<1x1x16xf32>
      %118 = vector.shape_cast %117 : vector<1x1x16xf32> to vector<1x16xf32>
      %119 = vector.extract_strided_slice %102 {offsets = [2, 0], sizes = [41, 1], strides = [1, 1]} : vector<43x1xf32> to vector<41x1xf32>
      %120 = vector.broadcast %119 : vector<41x1xf32> to vector<41x16xf32>
      %121 = vector.broadcast %118 : vector<1x16xf32> to vector<41x16xf32>
      %122 = arith.mulf %120, %121 : vector<41x16xf32>
      %123 = arith.addf %116, %122 : vector<41x16xf32>
      %c2_i32_31 = arith.constant 2 : i32
      %124 = arith.muli %c2_i32_31, %arg5 : i32
      %c1_i32_32 = arith.constant 1 : i32
      %125 = arith.addi %124, %c1_i32_32 : i32
      %c1_i32_33 = arith.constant 1 : i32
      %126 = arith.addi %125, %c1_i32_33 : i32
      %c0_34 = arith.constant 0 : index
      %127 = arith.index_cast %126 : i32 to index
      %c0_35 = arith.constant 0 : index
      %c0_36 = arith.constant 0 : index
      %128 = vector.load %arg1[%c0_34, %127, %c0_35, %c0_36] : memref<1x43x43x1xf32, #tpu.memory_space<vmem>>, vector<1x1x43x1xf32>
      %129 = vector.shape_cast %128 : vector<1x1x43x1xf32> to vector<43x1xf32>
      %130 = vector.extract_strided_slice %0 {offsets = [3, 0, 0], sizes = [1, 1, 16], strides = [1, 1, 1]} : vector<9x1x16xf32> to vector<1x1x16xf32>
      %131 = vector.shape_cast %130 : vector<1x1x16xf32> to vector<1x16xf32>
      %132 = vector.extract_strided_slice %129 {offsets = [0, 0], sizes = [41, 1], strides = [1, 1]} : vector<43x1xf32> to vector<41x1xf32>
      %133 = vector.broadcast %132 : vector<41x1xf32> to vector<41x16xf32>
      %134 = vector.broadcast %131 : vector<1x16xf32> to vector<41x16xf32>
      %135 = arith.mulf %133, %134 : vector<41x16xf32>
      %136 = arith.addf %123, %135 : vector<41x16xf32>
      %137 = vector.extract_strided_slice %0 {offsets = [4, 0, 0], sizes = [1, 1, 16], strides = [1, 1, 1]} : vector<9x1x16xf32> to vector<1x1x16xf32>
      %138 = vector.shape_cast %137 : vector<1x1x16xf32> to vector<1x16xf32>
      %139 = vector.extract_strided_slice %129 {offsets = [1, 0], sizes = [41, 1], strides = [1, 1]} : vector<43x1xf32> to vector<41x1xf32>
      %140 = vector.broadcast %139 : vector<41x1xf32> to vector<41x16xf32>
      %141 = vector.broadcast %138 : vector<1x16xf32> to vector<41x16xf32>
      %142 = arith.mulf %140, %141 : vector<41x16xf32>
      %143 = arith.addf %136, %142 : vector<41x16xf32>
      %144 = vector.extract_strided_slice %0 {offsets = [5, 0, 0], sizes = [1, 1, 16], strides = [1, 1, 1]} : vector<9x1x16xf32> to vector<1x1x16xf32>
      %145 = vector.shape_cast %144 : vector<1x1x16xf32> to vector<1x16xf32>
      %146 = vector.extract_strided_slice %129 {offsets = [2, 0], sizes = [41, 1], strides = [1, 1]} : vector<43x1xf32> to vector<41x1xf32>
      %147 = vector.broadcast %146 : vector<41x1xf32> to vector<41x16xf32>
      %148 = vector.broadcast %145 : vector<1x16xf32> to vector<41x16xf32>
      %149 = arith.mulf %147, %148 : vector<41x16xf32>
      %150 = arith.addf %143, %149 : vector<41x16xf32>
      %c2_i32_37 = arith.constant 2 : i32
      %151 = arith.muli %c2_i32_37, %arg5 : i32
      %c1_i32_38 = arith.constant 1 : i32
      %152 = arith.addi %151, %c1_i32_38 : i32
      %c2_i32_39 = arith.constant 2 : i32
      %153 = arith.addi %152, %c2_i32_39 : i32
      %c0_40 = arith.constant 0 : index
      %154 = arith.index_cast %153 : i32 to index
      %c0_41 = arith.constant 0 : index
      %c0_42 = arith.constant 0 : index
      %155 = vector.load %arg1[%c0_40, %154, %c0_41, %c0_42] : memref<1x43x43x1xf32, #tpu.memory_space<vmem>>, vector<1x1x43x1xf32>
      %156 = vector.shape_cast %155 : vector<1x1x43x1xf32> to vector<43x1xf32>
      %157 = vector.extract_strided_slice %0 {offsets = [6, 0, 0], sizes = [1, 1, 16], strides = [1, 1, 1]} : vector<9x1x16xf32> to vector<1x1x16xf32>
      %158 = vector.shape_cast %157 : vector<1x1x16xf32> to vector<1x16xf32>
      %159 = vector.extract_strided_slice %156 {offsets = [0, 0], sizes = [41, 1], strides = [1, 1]} : vector<43x1xf32> to vector<41x1xf32>
      %160 = vector.broadcast %159 : vector<41x1xf32> to vector<41x16xf32>
      %161 = vector.broadcast %158 : vector<1x16xf32> to vector<41x16xf32>
      %162 = arith.mulf %160, %161 : vector<41x16xf32>
      %163 = arith.addf %150, %162 : vector<41x16xf32>
      %164 = vector.extract_strided_slice %0 {offsets = [7, 0, 0], sizes = [1, 1, 16], strides = [1, 1, 1]} : vector<9x1x16xf32> to vector<1x1x16xf32>
      %165 = vector.shape_cast %164 : vector<1x1x16xf32> to vector<1x16xf32>
      %166 = vector.extract_strided_slice %156 {offsets = [1, 0], sizes = [41, 1], strides = [1, 1]} : vector<43x1xf32> to vector<41x1xf32>
      %167 = vector.broadcast %166 : vector<41x1xf32> to vector<41x16xf32>
      %168 = vector.broadcast %165 : vector<1x16xf32> to vector<41x16xf32>
      %169 = arith.mulf %167, %168 : vector<41x16xf32>
      %170 = arith.addf %163, %169 : vector<41x16xf32>
      %171 = vector.extract_strided_slice %0 {offsets = [8, 0, 0], sizes = [1, 1, 16], strides = [1, 1, 1]} : vector<9x1x16xf32> to vector<1x1x16xf32>
      %172 = vector.shape_cast %171 : vector<1x1x16xf32> to vector<1x16xf32>
      %173 = vector.extract_strided_slice %156 {offsets = [2, 0], sizes = [41, 1], strides = [1, 1]} : vector<43x1xf32> to vector<41x1xf32>
      %174 = vector.broadcast %173 : vector<41x1xf32> to vector<41x16xf32>
      %175 = vector.broadcast %172 : vector<1x16xf32> to vector<41x16xf32>
      %176 = arith.mulf %174, %175 : vector<41x16xf32>
      %177 = arith.addf %170, %176 : vector<41x16xf32>
      %178 = vector.extract_strided_slice %177 {offsets = [0, 0], sizes = [39, 16], strides = [1, 1]} : vector<41x16xf32> to vector<39x16xf32>
      %179 = vector.extract_strided_slice %177 {offsets = [1, 0], sizes = [39, 16], strides = [1, 1]} : vector<41x16xf32> to vector<39x16xf32>
      %180 = arith.maximumf %178, %179 : vector<39x16xf32>
      %cst_43 = arith.constant dense<0.000000e+00> : vector<20x16xf32>
      %181 = tpu.matmul %8, %180, %cst_43 {dimension_numbers = #tpu.dot_dimension_numbers<[1], [0], [0], [1], [0, 0, 1, 1], [], []>} : vector<20x39xf32>, vector<39x16xf32>, vector<20x16xf32> -> vector<20x16xf32>
      %182 = arith.maximumf %95, %181 : vector<20x16xf32>
      %183 = vector.broadcast %1 : vector<1x16xf32> to vector<20x16xf32>
      %184 = arith.addf %182, %183 : vector<20x16xf32>
      %cst_44 = arith.constant 0.000000e+00 : f32
      %185 = vector.broadcast %cst_44 : f32 to vector<20x16xf32>
      %186 = arith.maximumf %184, %185 : vector<20x16xf32>
      %c0_45 = arith.constant 0 : index
      %187 = arith.index_cast %arg5 : i32 to index
      %c0_46 = arith.constant 0 : index
      %c0_47 = arith.constant 0 : index
      %188 = vector.load %arg4[%c0_45, %187, %c0_46, %c0_47] : memref<1x20x20x16xf32, #tpu.memory_space<vmem>>, vector<1x1x20x16xf32>
      %189 = vector.shape_cast %188 : vector<1x1x20x16xf32> to vector<20x16xf32>
      %190 = vector.shape_cast %186 : vector<20x16xf32> to vector<1x1x20x16xf32>
      tpu.vector_store %arg4[%c0_45, %187, %c0_46, %c0_47], %190 {strides = array<i32>} : memref<1x20x20x16xf32, #tpu.memory_space<vmem>>, vector<1x1x20x16xf32>,
    }
    %c20_i32_4 = arith.constant 20 : i32
    return
  }
  func.func @transform_0(%arg0: i32) -> (i32, i32, i32, i32) {
    %c0_i32 = arith.constant 0 : i32
    %c0_i32_0 = arith.constant 0 : i32
    %c0_i32_1 = arith.constant 0 : i32
    %c0_i32_2 = arith.constant 0 : i32
    return %arg0, %c0_i32, %c0_i32_0, %c0_i32_1 : i32, i32, i32, i32
  }
  func.func @transform_1(%arg0: i32) -> (i32, i32, i32) {
    %c0_i32 = arith.constant 0 : i32
    %c0_i32_0 = arith.constant 0 : i32
    %c0_i32_1 = arith.constant 0 : i32
    %c0_i32_2 = arith.constant 0 : i32
    return %c0_i32, %c0_i32_0, %c0_i32_1 : i32, i32, i32
  }
  func.func @transform_2(%arg0: i32) -> (i32, i32) {
    %c0_i32 = arith.constant 0 : i32
    %c0_i32_0 = arith.constant 0 : i32
    %c0_i32_1 = arith.constant 0 : i32
    return %c0_i32, %c0_i32_0 : i32, i32
  }
  func.func @transform_3(%arg0: i32) -> (i32, i32, i32, i32) {
    %c0_i32 = arith.constant 0 : i32
    %c0_i32_0 = arith.constant 0 : i32
    %c0_i32_1 = arith.constant 0 : i32
    %c0_i32_2 = arith.constant 0 : i32
    return %arg0, %c0_i32, %c0_i32_0, %c0_i32_1 : i32, i32, i32, i32
  }
}

module attributes {stable_mosaic.version = 11 : i64} {
  func.func @_conv_relu_pool_kernel(%arg0: i32, %arg1: memref<1x22x22x16xf32, #tpu.memory_space<vmem>>, %arg2: memref<9x16x32xf32, #tpu.memory_space<vmem>>, %arg3: memref<1x32xf32, #tpu.memory_space<vmem>>, %arg4: memref<1x10x10x32xf32, #tpu.memory_space<vmem>>) attributes {dimension_semantics = [#tpu.dimension_semantics<parallel>], iteration_bounds = array<i64: 2>, scalar_prefetch = 0 : i64, scratch_operands = 0 : i64, tpu.core_type = #tpu.core_type<tc>, window_params = [{transform_indices = @transform_0, window_bounds = array<i64: 1, 22, 22, 16>}, {pipeline_mode = #tpu.pipeline_mode<synchronous>, transform_indices = @transform_1, window_bounds = array<i64: 9, 16, 32>}, {pipeline_mode = #tpu.pipeline_mode<synchronous>, transform_indices = @transform_2, window_bounds = array<i64: 1, 32>}, {transform_indices = @transform_3, window_bounds = array<i64: 1, 10, 10, 32>}]} {
    %c0 = arith.constant 0 : index
    %c0_0 = arith.constant 0 : index
    %c0_1 = arith.constant 0 : index
    %0 = vector.load %arg2[%c0, %c0_0, %c0_1] : memref<9x16x32xf32, #tpu.memory_space<vmem>>, vector<9x16x32xf32>
    %c0_2 = arith.constant 0 : index
    %c0_3 = arith.constant 0 : index
    %1 = vector.load %arg3[%c0_2, %c0_3] : memref<1x32xf32, #tpu.memory_space<vmem>>, vector<1x32xf32>
    %2 = tpu.iota {dimensions = array<i32: 1>} : vector<10x19xi32>
    %3 = tpu.iota {dimensions = array<i32: 0>} : vector<10x19xi32>
    %c2_i32 = arith.constant 2 : i32
    %4 = vector.broadcast %c2_i32 : i32 to vector<10x19xi32>
    %5 = arith.muli %4, %3 : vector<10x19xi32>
    %6 = arith.cmpi eq, %2, %5 : vector<10x19xi32>
    %7 = arith.extui %6 : vector<10x19xi1> to vector<10x19xi32>
    %8 = arith.sitofp %7 : vector<10x19xi32> to vector<10x19xf32>
    %c0_i32 = arith.constant 0 : i32
    %c10_i32 = arith.constant 10 : i32
    %9 = arith.addi %c0_i32, %c10_i32 : i32
    %c1_i32 = arith.constant 1 : i32
    scf.for %arg5 = %c0_i32 to %9 step %c1_i32  : i32 {
      %cst = arith.constant 0.000000e+00 : f32
      %10 = vector.broadcast %cst : f32 to vector<20x32xf32>
      %c2_i32_5 = arith.constant 2 : i32
      %11 = arith.muli %c2_i32_5, %arg5 : i32
      %c0_i32_6 = arith.constant 0 : i32
      %12 = arith.addi %11, %c0_i32_6 : i32
      %c0_i32_7 = arith.constant 0 : i32
      %13 = arith.addi %12, %c0_i32_7 : i32
      %c0_8 = arith.constant 0 : index
      %14 = arith.index_cast %13 : i32 to index
      %c0_9 = arith.constant 0 : index
      %c0_10 = arith.constant 0 : index
      %15 = vector.load %arg1[%c0_8, %14, %c0_9, %c0_10] : memref<1x22x22x16xf32, #tpu.memory_space<vmem>>, vector<1x1x22x16xf32>
      %16 = vector.shape_cast %15 : vector<1x1x22x16xf32> to vector<22x16xf32>
      %17 = vector.extract_strided_slice %0 {offsets = [0, 0, 0], sizes = [1, 16, 32], strides = [1, 1, 1]} : vector<9x16x32xf32> to vector<1x16x32xf32>
      %18 = vector.shape_cast %17 : vector<1x16x32xf32> to vector<16x32xf32>
      %19 = vector.extract_strided_slice %16 {offsets = [0, 0], sizes = [20, 16], strides = [1, 1]} : vector<22x16xf32> to vector<20x16xf32>
      %cst_11 = arith.constant dense<0.000000e+00> : vector<20x32xf32>
      %20 = tpu.matmul %19, %18, %cst_11 {dimension_numbers = #tpu.dot_dimension_numbers<[1], [0], [0], [1], [0, 0, 1, 1], [], []>} : vector<20x16xf32>, vector<16x32xf32>, vector<20x32xf32> -> vector<20x32xf32>
      %21 = arith.addf %10, %20 : vector<20x32xf32>
      %22 = vector.extract_strided_slice %0 {offsets = [1, 0, 0], sizes = [1, 16, 32], strides = [1, 1, 1]} : vector<9x16x32xf32> to vector<1x16x32xf32>
      %23 = vector.shape_cast %22 : vector<1x16x32xf32> to vector<16x32xf32>
      %24 = vector.extract_strided_slice %16 {offsets = [1, 0], sizes = [20, 16], strides = [1, 1]} : vector<22x16xf32> to vector<20x16xf32>
      %cst_12 = arith.constant dense<0.000000e+00> : vector<20x32xf32>
      %25 = tpu.matmul %24, %23, %cst_12 {dimension_numbers = #tpu.dot_dimension_numbers<[1], [0], [0], [1], [0, 0, 1, 1], [], []>} : vector<20x16xf32>, vector<16x32xf32>, vector<20x32xf32> -> vector<20x32xf32>
      %26 = arith.addf %21, %25 : vector<20x32xf32>
      %27 = vector.extract_strided_slice %0 {offsets = [2, 0, 0], sizes = [1, 16, 32], strides = [1, 1, 1]} : vector<9x16x32xf32> to vector<1x16x32xf32>
      %28 = vector.shape_cast %27 : vector<1x16x32xf32> to vector<16x32xf32>
      %29 = vector.extract_strided_slice %16 {offsets = [2, 0], sizes = [20, 16], strides = [1, 1]} : vector<22x16xf32> to vector<20x16xf32>
      %cst_13 = arith.constant dense<0.000000e+00> : vector<20x32xf32>
      %30 = tpu.matmul %29, %28, %cst_13 {dimension_numbers = #tpu.dot_dimension_numbers<[1], [0], [0], [1], [0, 0, 1, 1], [], []>} : vector<20x16xf32>, vector<16x32xf32>, vector<20x32xf32> -> vector<20x32xf32>
      %31 = arith.addf %26, %30 : vector<20x32xf32>
      %c2_i32_14 = arith.constant 2 : i32
      %32 = arith.muli %c2_i32_14, %arg5 : i32
      %c0_i32_15 = arith.constant 0 : i32
      %33 = arith.addi %32, %c0_i32_15 : i32
      %c1_i32_16 = arith.constant 1 : i32
      %34 = arith.addi %33, %c1_i32_16 : i32
      %c0_17 = arith.constant 0 : index
      %35 = arith.index_cast %34 : i32 to index
      %c0_18 = arith.constant 0 : index
      %c0_19 = arith.constant 0 : index
      %36 = vector.load %arg1[%c0_17, %35, %c0_18, %c0_19] : memref<1x22x22x16xf32, #tpu.memory_space<vmem>>, vector<1x1x22x16xf32>
      %37 = vector.shape_cast %36 : vector<1x1x22x16xf32> to vector<22x16xf32>
      %38 = vector.extract_strided_slice %0 {offsets = [3, 0, 0], sizes = [1, 16, 32], strides = [1, 1, 1]} : vector<9x16x32xf32> to vector<1x16x32xf32>
      %39 = vector.shape_cast %38 : vector<1x16x32xf32> to vector<16x32xf32>
      %40 = vector.extract_strided_slice %37 {offsets = [0, 0], sizes = [20, 16], strides = [1, 1]} : vector<22x16xf32> to vector<20x16xf32>
      %cst_20 = arith.constant dense<0.000000e+00> : vector<20x32xf32>
      %41 = tpu.matmul %40, %39, %cst_20 {dimension_numbers = #tpu.dot_dimension_numbers<[1], [0], [0], [1], [0, 0, 1, 1], [], []>} : vector<20x16xf32>, vector<16x32xf32>, vector<20x32xf32> -> vector<20x32xf32>
      %42 = arith.addf %31, %41 : vector<20x32xf32>
      %43 = vector.extract_strided_slice %0 {offsets = [4, 0, 0], sizes = [1, 16, 32], strides = [1, 1, 1]} : vector<9x16x32xf32> to vector<1x16x32xf32>
      %44 = vector.shape_cast %43 : vector<1x16x32xf32> to vector<16x32xf32>
      %45 = vector.extract_strided_slice %37 {offsets = [1, 0], sizes = [20, 16], strides = [1, 1]} : vector<22x16xf32> to vector<20x16xf32>
      %cst_21 = arith.constant dense<0.000000e+00> : vector<20x32xf32>
      %46 = tpu.matmul %45, %44, %cst_21 {dimension_numbers = #tpu.dot_dimension_numbers<[1], [0], [0], [1], [0, 0, 1, 1], [], []>} : vector<20x16xf32>, vector<16x32xf32>, vector<20x32xf32> -> vector<20x32xf32>
      %47 = arith.addf %42, %46 : vector<20x32xf32>
      %48 = vector.extract_strided_slice %0 {offsets = [5, 0, 0], sizes = [1, 16, 32], strides = [1, 1, 1]} : vector<9x16x32xf32> to vector<1x16x32xf32>
      %49 = vector.shape_cast %48 : vector<1x16x32xf32> to vector<16x32xf32>
      %50 = vector.extract_strided_slice %37 {offsets = [2, 0], sizes = [20, 16], strides = [1, 1]} : vector<22x16xf32> to vector<20x16xf32>
      %cst_22 = arith.constant dense<0.000000e+00> : vector<20x32xf32>
      %51 = tpu.matmul %50, %49, %cst_22 {dimension_numbers = #tpu.dot_dimension_numbers<[1], [0], [0], [1], [0, 0, 1, 1], [], []>} : vector<20x16xf32>, vector<16x32xf32>, vector<20x32xf32> -> vector<20x32xf32>
      %52 = arith.addf %47, %51 : vector<20x32xf32>
      %c2_i32_23 = arith.constant 2 : i32
      %53 = arith.muli %c2_i32_23, %arg5 : i32
      %c0_i32_24 = arith.constant 0 : i32
      %54 = arith.addi %53, %c0_i32_24 : i32
      %c2_i32_25 = arith.constant 2 : i32
      %55 = arith.addi %54, %c2_i32_25 : i32
      %c0_26 = arith.constant 0 : index
      %56 = arith.index_cast %55 : i32 to index
      %c0_27 = arith.constant 0 : index
      %c0_28 = arith.constant 0 : index
      %57 = vector.load %arg1[%c0_26, %56, %c0_27, %c0_28] : memref<1x22x22x16xf32, #tpu.memory_space<vmem>>, vector<1x1x22x16xf32>
      %58 = vector.shape_cast %57 : vector<1x1x22x16xf32> to vector<22x16xf32>
      %59 = vector.extract_strided_slice %0 {offsets = [6, 0, 0], sizes = [1, 16, 32], strides = [1, 1, 1]} : vector<9x16x32xf32> to vector<1x16x32xf32>
      %60 = vector.shape_cast %59 : vector<1x16x32xf32> to vector<16x32xf32>
      %61 = vector.extract_strided_slice %58 {offsets = [0, 0], sizes = [20, 16], strides = [1, 1]} : vector<22x16xf32> to vector<20x16xf32>
      %cst_29 = arith.constant dense<0.000000e+00> : vector<20x32xf32>
      %62 = tpu.matmul %61, %60, %cst_29 {dimension_numbers = #tpu.dot_dimension_numbers<[1], [0], [0], [1], [0, 0, 1, 1], [], []>} : vector<20x16xf32>, vector<16x32xf32>, vector<20x32xf32> -> vector<20x32xf32>
      %63 = arith.addf %52, %62 : vector<20x32xf32>
      %64 = vector.extract_strided_slice %0 {offsets = [7, 0, 0], sizes = [1, 16, 32], strides = [1, 1, 1]} : vector<9x16x32xf32> to vector<1x16x32xf32>
      %65 = vector.shape_cast %64 : vector<1x16x32xf32> to vector<16x32xf32>
      %66 = vector.extract_strided_slice %58 {offsets = [1, 0], sizes = [20, 16], strides = [1, 1]} : vector<22x16xf32> to vector<20x16xf32>
      %cst_30 = arith.constant dense<0.000000e+00> : vector<20x32xf32>
      %67 = tpu.matmul %66, %65, %cst_30 {dimension_numbers = #tpu.dot_dimension_numbers<[1], [0], [0], [1], [0, 0, 1, 1], [], []>} : vector<20x16xf32>, vector<16x32xf32>, vector<20x32xf32> -> vector<20x32xf32>
      %68 = arith.addf %63, %67 : vector<20x32xf32>
      %69 = vector.extract_strided_slice %0 {offsets = [8, 0, 0], sizes = [1, 16, 32], strides = [1, 1, 1]} : vector<9x16x32xf32> to vector<1x16x32xf32>
      %70 = vector.shape_cast %69 : vector<1x16x32xf32> to vector<16x32xf32>
      %71 = vector.extract_strided_slice %58 {offsets = [2, 0], sizes = [20, 16], strides = [1, 1]} : vector<22x16xf32> to vector<20x16xf32>
      %cst_31 = arith.constant dense<0.000000e+00> : vector<20x32xf32>
      %72 = tpu.matmul %71, %70, %cst_31 {dimension_numbers = #tpu.dot_dimension_numbers<[1], [0], [0], [1], [0, 0, 1, 1], [], []>} : vector<20x16xf32>, vector<16x32xf32>, vector<20x32xf32> -> vector<20x32xf32>
      %73 = arith.addf %68, %72 : vector<20x32xf32>
      %74 = vector.extract_strided_slice %73 {offsets = [0, 0], sizes = [19, 32], strides = [1, 1]} : vector<20x32xf32> to vector<19x32xf32>
      %75 = vector.extract_strided_slice %73 {offsets = [1, 0], sizes = [19, 32], strides = [1, 1]} : vector<20x32xf32> to vector<19x32xf32>
      %76 = arith.maximumf %74, %75 : vector<19x32xf32>
      %cst_32 = arith.constant dense<0.000000e+00> : vector<10x32xf32>
      %77 = tpu.matmul %8, %76, %cst_32 {dimension_numbers = #tpu.dot_dimension_numbers<[1], [0], [0], [1], [0, 0, 1, 1], [], []>} : vector<10x19xf32>, vector<19x32xf32>, vector<10x32xf32> -> vector<10x32xf32>
      %cst_33 = arith.constant 0.000000e+00 : f32
      %78 = vector.broadcast %cst_33 : f32 to vector<20x32xf32>
      %c2_i32_34 = arith.constant 2 : i32
      %79 = arith.muli %c2_i32_34, %arg5 : i32
      %c1_i32_35 = arith.constant 1 : i32
      %80 = arith.addi %79, %c1_i32_35 : i32
      %c0_i32_36 = arith.constant 0 : i32
      %81 = arith.addi %80, %c0_i32_36 : i32
      %c0_37 = arith.constant 0 : index
      %82 = arith.index_cast %81 : i32 to index
      %c0_38 = arith.constant 0 : index
      %c0_39 = arith.constant 0 : index
      %83 = vector.load %arg1[%c0_37, %82, %c0_38, %c0_39] : memref<1x22x22x16xf32, #tpu.memory_space<vmem>>, vector<1x1x22x16xf32>
      %84 = vector.shape_cast %83 : vector<1x1x22x16xf32> to vector<22x16xf32>
      %85 = vector.extract_strided_slice %0 {offsets = [0, 0, 0], sizes = [1, 16, 32], strides = [1, 1, 1]} : vector<9x16x32xf32> to vector<1x16x32xf32>
      %86 = vector.shape_cast %85 : vector<1x16x32xf32> to vector<16x32xf32>
      %87 = vector.extract_strided_slice %84 {offsets = [0, 0], sizes = [20, 16], strides = [1, 1]} : vector<22x16xf32> to vector<20x16xf32>
      %cst_40 = arith.constant dense<0.000000e+00> : vector<20x32xf32>
      %88 = tpu.matmul %87, %86, %cst_40 {dimension_numbers = #tpu.dot_dimension_numbers<[1], [0], [0], [1], [0, 0, 1, 1], [], []>} : vector<20x16xf32>, vector<16x32xf32>, vector<20x32xf32> -> vector<20x32xf32>
      %89 = arith.addf %78, %88 : vector<20x32xf32>
      %90 = vector.extract_strided_slice %0 {offsets = [1, 0, 0], sizes = [1, 16, 32], strides = [1, 1, 1]} : vector<9x16x32xf32> to vector<1x16x32xf32>
      %91 = vector.shape_cast %90 : vector<1x16x32xf32> to vector<16x32xf32>
      %92 = vector.extract_strided_slice %84 {offsets = [1, 0], sizes = [20, 16], strides = [1, 1]} : vector<22x16xf32> to vector<20x16xf32>
      %cst_41 = arith.constant dense<0.000000e+00> : vector<20x32xf32>
      %93 = tpu.matmul %92, %91, %cst_41 {dimension_numbers = #tpu.dot_dimension_numbers<[1], [0], [0], [1], [0, 0, 1, 1], [], []>} : vector<20x16xf32>, vector<16x32xf32>, vector<20x32xf32> -> vector<20x32xf32>
      %94 = arith.addf %89, %93 : vector<20x32xf32>
      %95 = vector.extract_strided_slice %0 {offsets = [2, 0, 0], sizes = [1, 16, 32], strides = [1, 1, 1]} : vector<9x16x32xf32> to vector<1x16x32xf32>
      %96 = vector.shape_cast %95 : vector<1x16x32xf32> to vector<16x32xf32>
      %97 = vector.extract_strided_slice %84 {offsets = [2, 0], sizes = [20, 16], strides = [1, 1]} : vector<22x16xf32> to vector<20x16xf32>
      %cst_42 = arith.constant dense<0.000000e+00> : vector<20x32xf32>
      %98 = tpu.matmul %97, %96, %cst_42 {dimension_numbers = #tpu.dot_dimension_numbers<[1], [0], [0], [1], [0, 0, 1, 1], [], []>} : vector<20x16xf32>, vector<16x32xf32>, vector<20x32xf32> -> vector<20x32xf32>
      %99 = arith.addf %94, %98 : vector<20x32xf32>
      %c2_i32_43 = arith.constant 2 : i32
      %100 = arith.muli %c2_i32_43, %arg5 : i32
      %c1_i32_44 = arith.constant 1 : i32
      %101 = arith.addi %100, %c1_i32_44 : i32
      %c1_i32_45 = arith.constant 1 : i32
      %102 = arith.addi %101, %c1_i32_45 : i32
      %c0_46 = arith.constant 0 : index
      %103 = arith.index_cast %102 : i32 to index
      %c0_47 = arith.constant 0 : index
      %c0_48 = arith.constant 0 : index
      %104 = vector.load %arg1[%c0_46, %103, %c0_47, %c0_48] : memref<1x22x22x16xf32, #tpu.memory_space<vmem>>, vector<1x1x22x16xf32>
      %105 = vector.shape_cast %104 : vector<1x1x22x16xf32> to vector<22x16xf32>
      %106 = vector.extract_strided_slice %0 {offsets = [3, 0, 0], sizes = [1, 16, 32], strides = [1, 1, 1]} : vector<9x16x32xf32> to vector<1x16x32xf32>
      %107 = vector.shape_cast %106 : vector<1x16x32xf32> to vector<16x32xf32>
      %108 = vector.extract_strided_slice %105 {offsets = [0, 0], sizes = [20, 16], strides = [1, 1]} : vector<22x16xf32> to vector<20x16xf32>
      %cst_49 = arith.constant dense<0.000000e+00> : vector<20x32xf32>
      %109 = tpu.matmul %108, %107, %cst_49 {dimension_numbers = #tpu.dot_dimension_numbers<[1], [0], [0], [1], [0, 0, 1, 1], [], []>} : vector<20x16xf32>, vector<16x32xf32>, vector<20x32xf32> -> vector<20x32xf32>
      %110 = arith.addf %99, %109 : vector<20x32xf32>
      %111 = vector.extract_strided_slice %0 {offsets = [4, 0, 0], sizes = [1, 16, 32], strides = [1, 1, 1]} : vector<9x16x32xf32> to vector<1x16x32xf32>
      %112 = vector.shape_cast %111 : vector<1x16x32xf32> to vector<16x32xf32>
      %113 = vector.extract_strided_slice %105 {offsets = [1, 0], sizes = [20, 16], strides = [1, 1]} : vector<22x16xf32> to vector<20x16xf32>
      %cst_50 = arith.constant dense<0.000000e+00> : vector<20x32xf32>
      %114 = tpu.matmul %113, %112, %cst_50 {dimension_numbers = #tpu.dot_dimension_numbers<[1], [0], [0], [1], [0, 0, 1, 1], [], []>} : vector<20x16xf32>, vector<16x32xf32>, vector<20x32xf32> -> vector<20x32xf32>
      %115 = arith.addf %110, %114 : vector<20x32xf32>
      %116 = vector.extract_strided_slice %0 {offsets = [5, 0, 0], sizes = [1, 16, 32], strides = [1, 1, 1]} : vector<9x16x32xf32> to vector<1x16x32xf32>
      %117 = vector.shape_cast %116 : vector<1x16x32xf32> to vector<16x32xf32>
      %118 = vector.extract_strided_slice %105 {offsets = [2, 0], sizes = [20, 16], strides = [1, 1]} : vector<22x16xf32> to vector<20x16xf32>
      %cst_51 = arith.constant dense<0.000000e+00> : vector<20x32xf32>
      %119 = tpu.matmul %118, %117, %cst_51 {dimension_numbers = #tpu.dot_dimension_numbers<[1], [0], [0], [1], [0, 0, 1, 1], [], []>} : vector<20x16xf32>, vector<16x32xf32>, vector<20x32xf32> -> vector<20x32xf32>
      %120 = arith.addf %115, %119 : vector<20x32xf32>
      %c2_i32_52 = arith.constant 2 : i32
      %121 = arith.muli %c2_i32_52, %arg5 : i32
      %c1_i32_53 = arith.constant 1 : i32
      %122 = arith.addi %121, %c1_i32_53 : i32
      %c2_i32_54 = arith.constant 2 : i32
      %123 = arith.addi %122, %c2_i32_54 : i32
      %c0_55 = arith.constant 0 : index
      %124 = arith.index_cast %123 : i32 to index
      %c0_56 = arith.constant 0 : index
      %c0_57 = arith.constant 0 : index
      %125 = vector.load %arg1[%c0_55, %124, %c0_56, %c0_57] : memref<1x22x22x16xf32, #tpu.memory_space<vmem>>, vector<1x1x22x16xf32>
      %126 = vector.shape_cast %125 : vector<1x1x22x16xf32> to vector<22x16xf32>
      %127 = vector.extract_strided_slice %0 {offsets = [6, 0, 0], sizes = [1, 16, 32], strides = [1, 1, 1]} : vector<9x16x32xf32> to vector<1x16x32xf32>
      %128 = vector.shape_cast %127 : vector<1x16x32xf32> to vector<16x32xf32>
      %129 = vector.extract_strided_slice %126 {offsets = [0, 0], sizes = [20, 16], strides = [1, 1]} : vector<22x16xf32> to vector<20x16xf32>
      %cst_58 = arith.constant dense<0.000000e+00> : vector<20x32xf32>
      %130 = tpu.matmul %129, %128, %cst_58 {dimension_numbers = #tpu.dot_dimension_numbers<[1], [0], [0], [1], [0, 0, 1, 1], [], []>} : vector<20x16xf32>, vector<16x32xf32>, vector<20x32xf32> -> vector<20x32xf32>
      %131 = arith.addf %120, %130 : vector<20x32xf32>
      %132 = vector.extract_strided_slice %0 {offsets = [7, 0, 0], sizes = [1, 16, 32], strides = [1, 1, 1]} : vector<9x16x32xf32> to vector<1x16x32xf32>
      %133 = vector.shape_cast %132 : vector<1x16x32xf32> to vector<16x32xf32>
      %134 = vector.extract_strided_slice %126 {offsets = [1, 0], sizes = [20, 16], strides = [1, 1]} : vector<22x16xf32> to vector<20x16xf32>
      %cst_59 = arith.constant dense<0.000000e+00> : vector<20x32xf32>
      %135 = tpu.matmul %134, %133, %cst_59 {dimension_numbers = #tpu.dot_dimension_numbers<[1], [0], [0], [1], [0, 0, 1, 1], [], []>} : vector<20x16xf32>, vector<16x32xf32>, vector<20x32xf32> -> vector<20x32xf32>
      %136 = arith.addf %131, %135 : vector<20x32xf32>
      %137 = vector.extract_strided_slice %0 {offsets = [8, 0, 0], sizes = [1, 16, 32], strides = [1, 1, 1]} : vector<9x16x32xf32> to vector<1x16x32xf32>
      %138 = vector.shape_cast %137 : vector<1x16x32xf32> to vector<16x32xf32>
      %139 = vector.extract_strided_slice %126 {offsets = [2, 0], sizes = [20, 16], strides = [1, 1]} : vector<22x16xf32> to vector<20x16xf32>
      %cst_60 = arith.constant dense<0.000000e+00> : vector<20x32xf32>
      %140 = tpu.matmul %139, %138, %cst_60 {dimension_numbers = #tpu.dot_dimension_numbers<[1], [0], [0], [1], [0, 0, 1, 1], [], []>} : vector<20x16xf32>, vector<16x32xf32>, vector<20x32xf32> -> vector<20x32xf32>
      %141 = arith.addf %136, %140 : vector<20x32xf32>
      %142 = vector.extract_strided_slice %141 {offsets = [0, 0], sizes = [19, 32], strides = [1, 1]} : vector<20x32xf32> to vector<19x32xf32>
      %143 = vector.extract_strided_slice %141 {offsets = [1, 0], sizes = [19, 32], strides = [1, 1]} : vector<20x32xf32> to vector<19x32xf32>
      %144 = arith.maximumf %142, %143 : vector<19x32xf32>
      %cst_61 = arith.constant dense<0.000000e+00> : vector<10x32xf32>
      %145 = tpu.matmul %8, %144, %cst_61 {dimension_numbers = #tpu.dot_dimension_numbers<[1], [0], [0], [1], [0, 0, 1, 1], [], []>} : vector<10x19xf32>, vector<19x32xf32>, vector<10x32xf32> -> vector<10x32xf32>
      %146 = arith.maximumf %77, %145 : vector<10x32xf32>
      %147 = vector.broadcast %1 : vector<1x32xf32> to vector<10x32xf32>
      %148 = arith.addf %146, %147 : vector<10x32xf32>
      %cst_62 = arith.constant 0.000000e+00 : f32
      %149 = vector.broadcast %cst_62 : f32 to vector<10x32xf32>
      %150 = arith.maximumf %148, %149 : vector<10x32xf32>
      %c0_63 = arith.constant 0 : index
      %151 = arith.index_cast %arg5 : i32 to index
      %c0_64 = arith.constant 0 : index
      %c0_65 = arith.constant 0 : index
      %152 = vector.load %arg4[%c0_63, %151, %c0_64, %c0_65] : memref<1x10x10x32xf32, #tpu.memory_space<vmem>>, vector<1x1x10x32xf32>
      %153 = vector.shape_cast %152 : vector<1x1x10x32xf32> to vector<10x32xf32>
      %154 = vector.shape_cast %150 : vector<10x32xf32> to vector<1x1x10x32xf32>
      tpu.vector_store %arg4[%c0_63, %151, %c0_64, %c0_65], %154 {strides = array<i32>} : memref<1x10x10x32xf32, #tpu.memory_space<vmem>>, vector<1x1x10x32xf32>,
    }
    %c10_i32_4 = arith.constant 10 : i32
    return
  }
  func.func @transform_0(%arg0: i32) -> (i32, i32, i32, i32) {
    %c0_i32 = arith.constant 0 : i32
    %c0_i32_0 = arith.constant 0 : i32
    %c0_i32_1 = arith.constant 0 : i32
    %c0_i32_2 = arith.constant 0 : i32
    return %arg0, %c0_i32, %c0_i32_0, %c0_i32_1 : i32, i32, i32, i32
  }
  func.func @transform_1(%arg0: i32) -> (i32, i32, i32) {
    %c0_i32 = arith.constant 0 : i32
    %c0_i32_0 = arith.constant 0 : i32
    %c0_i32_1 = arith.constant 0 : i32
    %c0_i32_2 = arith.constant 0 : i32
    return %c0_i32, %c0_i32_0, %c0_i32_1 : i32, i32, i32
  }
  func.func @transform_2(%arg0: i32) -> (i32, i32) {
    %c0_i32 = arith.constant 0 : i32
    %c0_i32_0 = arith.constant 0 : i32
    %c0_i32_1 = arith.constant 0 : i32
    return %c0_i32, %c0_i32_0 : i32, i32
  }
  func.func @transform_3(%arg0: i32) -> (i32, i32, i32, i32) {
    %c0_i32 = arith.constant 0 : i32
    %c0_i32_0 = arith.constant 0 : i32
    %c0_i32_1 = arith.constant 0 : i32
    %c0_i32_2 = arith.constant 0 : i32
    return %arg0, %c0_i32, %c0_i32_0, %c0_i32_1 : i32, i32, i32, i32
  }
}

module attributes {stable_mosaic.version = 11 : i64} {
  func.func @_attn_layer_kernel(%arg0: i32, %arg1: memref<2x164xf32, #tpu.memory_space<vmem>>, %arg2: memref<2x164xf32, #tpu.memory_space<vmem>>, %arg3: memref<164x164xf32, #tpu.memory_space<vmem>>, %arg4: memref<164x164xf32, #tpu.memory_space<vmem>>, %arg5: memref<164x164xf32, #tpu.memory_space<vmem>>, %arg6: memref<164x164xf32, #tpu.memory_space<vmem>>, %arg7: memref<1x164xf32, #tpu.memory_space<vmem>>, %arg8: memref<1x164xf32, #tpu.memory_space<vmem>>, %arg9: memref<1x164xf32, #tpu.memory_space<vmem>>, %arg10: memref<1x164xf32, #tpu.memory_space<vmem>>, %arg11: memref<164x164xf32, #tpu.memory_space<vmem>>, %arg12: memref<1x164xf32, #tpu.memory_space<vmem>>, %arg13: memref<1x164xf32, #tpu.memory_space<vmem>>, %arg14: memref<2x164xf32, #tpu.memory_space<vmem>>, %arg15: memref<2x164xf32, #tpu.memory_space<vmem>>, %arg16: memref<2x164xf32, #tpu.memory_space<vmem>>, %arg17: memref<2x164xf32, #tpu.memory_space<vmem>>) attributes {dimension_semantics = [#tpu.dimension_semantics<arbitrary>], iteration_bounds = array<i64: 1>, scalar_prefetch = 0 : i64, scratch_operands = 3 : i64, tpu.core_type = #tpu.core_type<tc>, window_params = [{pipeline_mode = #tpu.pipeline_mode<synchronous>, transform_indices = @transform_0, window_bounds = array<i64: 2, 164>}, {transform_indices = @transform_1, window_bounds = array<i64: 2, 164>}, {pipeline_mode = #tpu.pipeline_mode<synchronous>, transform_indices = @transform_2, window_bounds = array<i64: 164, 164>}, {pipeline_mode = #tpu.pipeline_mode<synchronous>, transform_indices = @transform_3, window_bounds = array<i64: 164, 164>}, {pipeline_mode = #tpu.pipeline_mode<synchronous>, transform_indices = @transform_4, window_bounds = array<i64: 164, 164>}, {pipeline_mode = #tpu.pipeline_mode<synchronous>, transform_indices = @transform_5, window_bounds = array<i64: 164, 164>}, {pipeline_mode = #tpu.pipeline_mode<synchronous>, transform_indices = @transform_6, window_bounds = array<i64: 1, 164>}, {pipeline_mode = #tpu.pipeline_mode<synchronous>, transform_indices = @transform_7, window_bounds = array<i64: 1, 164>}, {pipeline_mode = #tpu.pipeline_mode<synchronous>, transform_indices = @transform_8, window_bounds = array<i64: 1, 164>}, {pipeline_mode = #tpu.pipeline_mode<synchronous>, transform_indices = @transform_9, window_bounds = array<i64: 1, 164>}, {pipeline_mode = #tpu.pipeline_mode<synchronous>, transform_indices = @transform_10, window_bounds = array<i64: 164, 164>}, {pipeline_mode = #tpu.pipeline_mode<synchronous>, transform_indices = @transform_11, window_bounds = array<i64: 1, 164>}, {pipeline_mode = #tpu.pipeline_mode<synchronous>, transform_indices = @transform_12, window_bounds = array<i64: 1, 164>}, {pipeline_mode = #tpu.pipeline_mode<synchronous>, transform_indices = @transform_13, window_bounds = array<i64: 2, 164>}]} {
    %c0_i32 = arith.constant 0 : i32
    %0 = arith.cmpi eq, %arg0, %c0_i32 : i32
    %1 = arith.extui %0 : i1 to i32
    %c0_i32_0 = arith.constant 0 : i32
    %2 = arith.cmpi ne, %1, %c0_i32_0 : i32
    scf.if %2 {
      %cst_37 = arith.constant 0xFF800000 : f32
      %52 = vector.broadcast %cst_37 : f32 to vector<2x164xf32>
      %c0_38 = arith.constant 0 : index
      %c0_39 = arith.constant 0 : index
      %53 = vector.load %arg15[%c0_38, %c0_39] : memref<2x164xf32, #tpu.memory_space<vmem>>, vector<2x164xf32>
      tpu.vector_store %arg15[%c0_38, %c0_39], %52 {strides = array<i32>} : memref<2x164xf32, #tpu.memory_space<vmem>>, vector<2x164xf32>,
      %cst_40 = arith.constant 0.000000e+00 : f32
      %54 = vector.broadcast %cst_40 : f32 to vector<2x164xf32>
      %c0_41 = arith.constant 0 : index
      %c0_42 = arith.constant 0 : index
      %55 = vector.load %arg16[%c0_41, %c0_42] : memref<2x164xf32, #tpu.memory_space<vmem>>, vector<2x164xf32>
      tpu.vector_store %arg16[%c0_41, %c0_42], %54 {strides = array<i32>} : memref<2x164xf32, #tpu.memory_space<vmem>>, vector<2x164xf32>,
      %cst_43 = arith.constant 0.000000e+00 : f32
      %56 = vector.broadcast %cst_43 : f32 to vector<2x164xf32>
      %c0_44 = arith.constant 0 : index
      %c0_45 = arith.constant 0 : index
      %57 = vector.load %arg17[%c0_44, %c0_45] : memref<2x164xf32, #tpu.memory_space<vmem>>, vector<2x164xf32>
      tpu.vector_store %arg17[%c0_44, %c0_45], %56 {strides = array<i32>} : memref<2x164xf32, #tpu.memory_space<vmem>>, vector<2x164xf32>,
    } else {
    }
    %c0 = arith.constant 0 : index
    %c0_1 = arith.constant 0 : index
    %3 = vector.load %arg1[%c0, %c0_1] : memref<2x164xf32, #tpu.memory_space<vmem>>, vector<2x164xf32>
    %c0_2 = arith.constant 0 : index
    %c0_3 = arith.constant 0 : index
    %4 = vector.load %arg3[%c0_2, %c0_3] : memref<164x164xf32, #tpu.memory_space<vmem>>, vector<164x164xf32>
    %cst = arith.constant dense<0.000000e+00> : vector<2x164xf32>
    %5 = tpu.matmul %3, %4, %cst {dimension_numbers = #tpu.dot_dimension_numbers<[1], [0], [0], [1], [0, 0, 1, 1], [], []>} : vector<2x164xf32>, vector<164x164xf32>, vector<2x164xf32> -> vector<2x164xf32>
    %c0_4 = arith.constant 0 : index
    %c0_5 = arith.constant 0 : index
    %6 = vector.load %arg7[%c0_4, %c0_5] : memref<1x164xf32, #tpu.memory_space<vmem>>, vector<1x164xf32>
    %7 = vector.broadcast %6 : vector<1x164xf32> to vector<2x164xf32>
    %8 = arith.addf %5, %7 : vector<2x164xf32>
    %c0_6 = arith.constant 0 : index
    %c0_7 = arith.constant 0 : index
    %9 = vector.load %arg2[%c0_6, %c0_7] : memref<2x164xf32, #tpu.memory_space<vmem>>, vector<2x164xf32>
    %c0_8 = arith.constant 0 : index
    %c0_9 = arith.constant 0 : index
    %10 = vector.load %arg4[%c0_8, %c0_9] : memref<164x164xf32, #tpu.memory_space<vmem>>, vector<164x164xf32>
    %cst_10 = arith.constant dense<0.000000e+00> : vector<2x164xf32>
    %11 = tpu.matmul %9, %10, %cst_10 {dimension_numbers = #tpu.dot_dimension_numbers<[1], [0], [0], [1], [0, 0, 1, 1], [], []>} : vector<2x164xf32>, vector<164x164xf32>, vector<2x164xf32> -> vector<2x164xf32>
    %c0_11 = arith.constant 0 : index
    %c0_12 = arith.constant 0 : index
    %12 = vector.load %arg8[%c0_11, %c0_12] : memref<1x164xf32, #tpu.memory_space<vmem>>, vector<1x164xf32>
    %13 = vector.broadcast %12 : vector<1x164xf32> to vector<2x164xf32>
    %14 = arith.addf %11, %13 : vector<2x164xf32>
    %c0_13 = arith.constant 0 : index
    %c0_14 = arith.constant 0 : index
    %15 = vector.load %arg5[%c0_13, %c0_14] : memref<164x164xf32, #tpu.memory_space<vmem>>, vector<164x164xf32>
    %cst_15 = arith.constant dense<0.000000e+00> : vector<2x164xf32>
    %16 = tpu.matmul %9, %15, %cst_15 {dimension_numbers = #tpu.dot_dimension_numbers<[1], [0], [0], [1], [0, 0, 1, 1], [], []>} : vector<2x164xf32>, vector<164x164xf32>, vector<2x164xf32> -> vector<2x164xf32>
    %c0_16 = arith.constant 0 : index
    %c0_17 = arith.constant 0 : index
    %17 = vector.load %arg9[%c0_16, %c0_17] : memref<1x164xf32, #tpu.memory_space<vmem>>, vector<1x164xf32>
    %18 = vector.broadcast %17 : vector<1x164xf32> to vector<2x164xf32>
    %19 = arith.addf %16, %18 : vector<2x164xf32>
    %20 = vector.shape_cast %8 : vector<2x164xf32> to vector<2x1x164xf32>
    %21 = vector.shape_cast %14 : vector<2x164xf32> to vector<1x2x164xf32>
    %22 = vector.broadcast %20 : vector<2x1x164xf32> to vector<2x2x164xf32>
    %23 = vector.broadcast %21 : vector<1x2x164xf32> to vector<2x2x164xf32>
    %24 = arith.mulf %22, %23 : vector<2x2x164xf32>
    %c0_18 = arith.constant 0 : index
    %c0_19 = arith.constant 0 : index
    %25 = vector.load %arg15[%c0_18, %c0_19] : memref<2x164xf32, #tpu.memory_space<vmem>>, vector<2x164xf32>
    %cst_20 = arith.constant dense<0xFF800000> : vector<2x164xf32>
    %26 = vector.multi_reduction <maximumf>, %24, %cst_20 [1] : vector<2x2x164xf32> to vector<2x164xf32>
    %27 = arith.maximumf %25, %26 : vector<2x164xf32>
    %c0_21 = arith.constant 0 : index
    %c0_22 = arith.constant 0 : index
    %28 = vector.load %arg15[%c0_21, %c0_22] : memref<2x164xf32, #tpu.memory_space<vmem>>, vector<2x164xf32>
    %29 = arith.subf %28, %27 : vector<2x164xf32>
    %30 = math.exp %29 : vector<2x164xf32>
    %31 = vector.shape_cast %27 : vector<2x164xf32> to vector<2x1x164xf32>
    %32 = vector.broadcast %31 : vector<2x1x164xf32> to vector<2x2x164xf32>
    %33 = arith.subf %24, %32 : vector<2x2x164xf32>
    %34 = math.exp %33 : vector<2x2x164xf32>
    %c0_23 = arith.constant 0 : index
    %c0_24 = arith.constant 0 : index
    %35 = vector.load %arg16[%c0_23, %c0_24] : memref<2x164xf32, #tpu.memory_space<vmem>>, vector<2x164xf32>
    %36 = arith.mulf %30, %35 : vector<2x164xf32>
    %cst_25 = arith.constant dense<0.000000e+00> : vector<2x164xf32>
    %37 = vector.multi_reduction <add>, %34, %cst_25 [1] : vector<2x2x164xf32> to vector<2x164xf32>
    %38 = arith.addf %36, %37 : vector<2x164xf32>
    %c0_26 = arith.constant 0 : index
    %c0_27 = arith.constant 0 : index
    %39 = vector.load %arg16[%c0_26, %c0_27] : memref<2x164xf32, #tpu.memory_space<vmem>>, vector<2x164xf32>
    tpu.vector_store %arg16[%c0_26, %c0_27], %38 {strides = array<i32>} : memref<2x164xf32, #tpu.memory_space<vmem>>, vector<2x164xf32>,
    %c0_28 = arith.constant 0 : index
    %c0_29 = arith.constant 0 : index
    %40 = vector.load %arg17[%c0_28, %c0_29] : memref<2x164xf32, #tpu.memory_space<vmem>>, vector<2x164xf32>
    %41 = arith.mulf %30, %40 : vector<2x164xf32>
    %42 = vector.shape_cast %19 : vector<2x164xf32> to vector<1x2x164xf32>
    %43 = vector.broadcast %42 : vector<1x2x164xf32> to vector<2x2x164xf32>
    %44 = arith.mulf %34, %43 : vector<2x2x164xf32>
    %cst_30 = arith.constant dense<0.000000e+00> : vector<2x164xf32>
    %45 = vector.multi_reduction <add>, %44, %cst_30 [1] : vector<2x2x164xf32> to vector<2x164xf32>
    %46 = arith.addf %41, %45 : vector<2x164xf32>
    %c0_31 = arith.constant 0 : index
    %c0_32 = arith.constant 0 : index
    %47 = vector.load %arg17[%c0_31, %c0_32] : memref<2x164xf32, #tpu.memory_space<vmem>>, vector<2x164xf32>
    tpu.vector_store %arg17[%c0_31, %c0_32], %46 {strides = array<i32>} : memref<2x164xf32, #tpu.memory_space<vmem>>, vector<2x164xf32>,
    %c0_33 = arith.constant 0 : index
    %c0_34 = arith.constant 0 : index
    %48 = vector.load %arg15[%c0_33, %c0_34] : memref<2x164xf32, #tpu.memory_space<vmem>>, vector<2x164xf32>
    tpu.vector_store %arg15[%c0_33, %c0_34], %27 {strides = array<i32>} : memref<2x164xf32, #tpu.memory_space<vmem>>, vector<2x164xf32>,
    %c0_i32_35 = arith.constant 0 : i32
    %49 = arith.cmpi eq, %arg0, %c0_i32_35 : i32
    %50 = arith.extui %49 : i1 to i32
    %c0_i32_36 = arith.constant 0 : i32
    %51 = arith.cmpi ne, %50, %c0_i32_36 : i32
    scf.if %51 {
      %c0_37 = arith.constant 0 : index
      %c0_38 = arith.constant 0 : index
      %52 = vector.load %arg17[%c0_37, %c0_38] : memref<2x164xf32, #tpu.memory_space<vmem>>, vector<2x164xf32>
      %c0_39 = arith.constant 0 : index
      %c0_40 = arith.constant 0 : index
      %53 = vector.load %arg16[%c0_39, %c0_40] : memref<2x164xf32, #tpu.memory_space<vmem>>, vector<2x164xf32>
      %54 = tpu.reciprocal %53 {approx = true} : vector<2x164xf32> -> vector<2x164xf32>
      %55 = arith.mulf %52, %54 : vector<2x164xf32>
      %c0_41 = arith.constant 0 : index
      %c0_42 = arith.constant 0 : index
      %56 = vector.load %arg6[%c0_41, %c0_42] : memref<164x164xf32, #tpu.memory_space<vmem>>, vector<164x164xf32>
      %cst_43 = arith.constant dense<0.000000e+00> : vector<2x164xf32>
      %57 = tpu.matmul %55, %56, %cst_43 {dimension_numbers = #tpu.dot_dimension_numbers<[1], [0], [0], [1], [0, 0, 1, 1], [], []>} : vector<2x164xf32>, vector<164x164xf32>, vector<2x164xf32> -> vector<2x164xf32>
      %58 = arith.addf %3, %57 : vector<2x164xf32>
      %c0_44 = arith.constant 0 : index
      %c0_45 = arith.constant 0 : index
      %59 = vector.load %arg10[%c0_44, %c0_45] : memref<1x164xf32, #tpu.memory_space<vmem>>, vector<1x164xf32>
      %60 = vector.broadcast %59 : vector<1x164xf32> to vector<2x164xf32>
      %61 = arith.addf %58, %60 : vector<2x164xf32>
      %c0_46 = arith.constant 0 : index
      %c0_47 = arith.constant 0 : index
      %62 = vector.load %arg11[%c0_46, %c0_47] : memref<164x164xf32, #tpu.memory_space<vmem>>, vector<164x164xf32>
      %cst_48 = arith.constant dense<0.000000e+00> : vector<2x164xf32>
      %63 = tpu.matmul %61, %62, %cst_48 {dimension_numbers = #tpu.dot_dimension_numbers<[1], [0], [0], [1], [0, 0, 1, 1], [], []>} : vector<2x164xf32>, vector<164x164xf32>, vector<2x164xf32> -> vector<2x164xf32>
      %cst_49 = arith.constant 2.500000e-01 : f32
      %64 = vector.broadcast %cst_49 : f32 to vector<2x164xf32>
      %65 = arith.mulf %63, %64 : vector<2x164xf32>
      %66 = arith.subf %61, %65 : vector<2x164xf32>
      %67 = arith.mulf %66, %66 : vector<2x164xf32>
      %c0_50 = arith.constant 0 : index
      %c0_51 = arith.constant 0 : index
      %68 = vector.load %arg11[%c0_50, %c0_51] : memref<164x164xf32, #tpu.memory_space<vmem>>, vector<164x164xf32>
      %cst_52 = arith.constant dense<0.000000e+00> : vector<2x164xf32>
      %69 = tpu.matmul %67, %68, %cst_52 {dimension_numbers = #tpu.dot_dimension_numbers<[1], [0], [0], [1], [0, 0, 1, 1], [], []>} : vector<2x164xf32>, vector<164x164xf32>, vector<2x164xf32> -> vector<2x164xf32>
      %cst_53 = arith.constant 2.500000e-01 : f32
      %70 = vector.broadcast %cst_53 : f32 to vector<2x164xf32>
      %71 = arith.mulf %69, %70 : vector<2x164xf32>
      %cst_54 = arith.constant 9.99999974E-6 : f32
      %72 = vector.broadcast %cst_54 : f32 to vector<2x164xf32>
      %73 = arith.addf %71, %72 : vector<2x164xf32>
      %74 = math.rsqrt %73 : vector<2x164xf32>
      %75 = arith.mulf %66, %74 : vector<2x164xf32>
      %c0_55 = arith.constant 0 : index
      %c0_56 = arith.constant 0 : index
      %76 = vector.load %arg12[%c0_55, %c0_56] : memref<1x164xf32, #tpu.memory_space<vmem>>, vector<1x164xf32>
      %77 = vector.broadcast %76 : vector<1x164xf32> to vector<2x164xf32>
      %78 = arith.mulf %75, %77 : vector<2x164xf32>
      %c0_57 = arith.constant 0 : index
      %c0_58 = arith.constant 0 : index
      %79 = vector.load %arg13[%c0_57, %c0_58] : memref<1x164xf32, #tpu.memory_space<vmem>>, vector<1x164xf32>
      %80 = vector.broadcast %79 : vector<1x164xf32> to vector<2x164xf32>
      %81 = arith.addf %78, %80 : vector<2x164xf32>
      %c0_59 = arith.constant 0 : index
      %c0_60 = arith.constant 0 : index
      %82 = vector.load %arg14[%c0_59, %c0_60] : memref<2x164xf32, #tpu.memory_space<vmem>>, vector<2x164xf32>
      tpu.vector_store %arg14[%c0_59, %c0_60], %81 {strides = array<i32>} : memref<2x164xf32, #tpu.memory_space<vmem>>, vector<2x164xf32>,
    } else {
    }
    return
  }
  func.func @transform_0(%arg0: i32) -> (i32, i32) {
    %c0_i32 = arith.constant 0 : i32
    %c0_i32_0 = arith.constant 0 : i32
    %c0_i32_1 = arith.constant 0 : i32
    return %c0_i32, %c0_i32_0 : i32, i32
  }
  func.func @transform_1(%arg0: i32) -> (i32, i32) {
    %c0_i32 = arith.constant 0 : i32
    %c0_i32_0 = arith.constant 0 : i32
    return %arg0, %c0_i32 : i32, i32
  }
  func.func @transform_2(%arg0: i32) -> (i32, i32) {
    %c0_i32 = arith.constant 0 : i32
    %c0_i32_0 = arith.constant 0 : i32
    %c0_i32_1 = arith.constant 0 : i32
    return %c0_i32, %c0_i32_0 : i32, i32
  }
  func.func @transform_3(%arg0: i32) -> (i32, i32) {
    %c0_i32 = arith.constant 0 : i32
    %c0_i32_0 = arith.constant 0 : i32
    %c0_i32_1 = arith.constant 0 : i32
    return %c0_i32, %c0_i32_0 : i32, i32
  }
  func.func @transform_4(%arg0: i32) -> (i32, i32) {
    %c0_i32 = arith.constant 0 : i32
    %c0_i32_0 = arith.constant 0 : i32
    %c0_i32_1 = arith.constant 0 : i32
    return %c0_i32, %c0_i32_0 : i32, i32
  }
  func.func @transform_5(%arg0: i32) -> (i32, i32) {
    %c0_i32 = arith.constant 0 : i32
    %c0_i32_0 = arith.constant 0 : i32
    %c0_i32_1 = arith.constant 0 : i32
    return %c0_i32, %c0_i32_0 : i32, i32
  }
  func.func @transform_6(%arg0: i32) -> (i32, i32) {
    %c0_i32 = arith.constant 0 : i32
    %c0_i32_0 = arith.constant 0 : i32
    %c0_i32_1 = arith.constant 0 : i32
    return %c0_i32, %c0_i32_0 : i32, i32
  }
  func.func @transform_7(%arg0: i32) -> (i32, i32) {
    %c0_i32 = arith.constant 0 : i32
    %c0_i32_0 = arith.constant 0 : i32
    %c0_i32_1 = arith.constant 0 : i32
    return %c0_i32, %c0_i32_0 : i32, i32
  }
  func.func @transform_8(%arg0: i32) -> (i32, i32) {
    %c0_i32 = arith.constant 0 : i32
    %c0_i32_0 = arith.constant 0 : i32
    %c0_i32_1 = arith.constant 0 : i32
    return %c0_i32, %c0_i32_0 : i32, i32
  }
  func.func @transform_9(%arg0: i32) -> (i32, i32) {
    %c0_i32 = arith.constant 0 : i32
    %c0_i32_0 = arith.constant 0 : i32
    %c0_i32_1 = arith.constant 0 : i32
    return %c0_i32, %c0_i32_0 : i32, i32
  }
  func.func @transform_10(%arg0: i32) -> (i32, i32) {
    %c0_i32 = arith.constant 0 : i32
    %c0_i32_0 = arith.constant 0 : i32
    %c0_i32_1 = arith.constant 0 : i32
    return %c0_i32, %c0_i32_0 : i32, i32
  }
  func.func @transform_11(%arg0: i32) -> (i32, i32) {
    %c0_i32 = arith.constant 0 : i32
    %c0_i32_0 = arith.constant 0 : i32
    %c0_i32_1 = arith.constant 0 : i32
    return %c0_i32, %c0_i32_0 : i32, i32
  }
  func.func @transform_12(%arg0: i32) -> (i32, i32) {
    %c0_i32 = arith.constant 0 : i32
    %c0_i32_0 = arith.constant 0 : i32
    %c0_i32_1 = arith.constant 0 : i32
    return %c0_i32, %c0_i32_0 : i32, i32
  }
  func.func @transform_13(%arg0: i32) -> (i32, i32) {
    %c0_i32 = arith.constant 0 : i32
    %c0_i32_0 = arith.constant 0 : i32
    %c0_i32_1 = arith.constant 0 : i32
    return %c0_i32, %c0_i32_0 : i32, i32
  }
}

module attributes {stable_mosaic.version = 11 : i64} {
  func.func @_ff_layer_kernel(%arg0: i32, %arg1: memref<1x41x4xf32, #tpu.memory_space<vmem>>, %arg2: memref<4x2048xbf16, #tpu.memory_space<vmem>>, %arg3: memref<1x2048xf32, #tpu.memory_space<vmem>>, %arg4: memref<2048x4xbf16, #tpu.memory_space<vmem>>, %arg5: memref<1x4xf32, #tpu.memory_space<vmem>>, %arg6: memref<1x4xf32, #tpu.memory_space<vmem>>, %arg7: memref<1x4xf32, #tpu.memory_space<vmem>>, %arg8: memref<1x41x4xf32, #tpu.memory_space<vmem>>) attributes {dimension_semantics = [#tpu.dimension_semantics<parallel>], iteration_bounds = array<i64: 2>, scalar_prefetch = 0 : i64, scratch_operands = 0 : i64, tpu.core_type = #tpu.core_type<tc>, window_params = [{transform_indices = @transform_0, window_bounds = array<i64: 1, 41, 4>}, {pipeline_mode = #tpu.pipeline_mode<synchronous>, transform_indices = @transform_1, window_bounds = array<i64: 4, 2048>}, {pipeline_mode = #tpu.pipeline_mode<synchronous>, transform_indices = @transform_2, window_bounds = array<i64: 1, 2048>}, {pipeline_mode = #tpu.pipeline_mode<synchronous>, transform_indices = @transform_3, window_bounds = array<i64: 2048, 4>}, {pipeline_mode = #tpu.pipeline_mode<synchronous>, transform_indices = @transform_4, window_bounds = array<i64: 1, 4>}, {pipeline_mode = #tpu.pipeline_mode<synchronous>, transform_indices = @transform_5, window_bounds = array<i64: 1, 4>}, {pipeline_mode = #tpu.pipeline_mode<synchronous>, transform_indices = @transform_6, window_bounds = array<i64: 1, 4>}, {transform_indices = @transform_7, window_bounds = array<i64: 1, 41, 4>}]} {
    %c0 = arith.constant 0 : index
    %c0_0 = arith.constant 0 : index
    %c0_1 = arith.constant 0 : index
    %0 = vector.load %arg1[%c0, %c0_0, %c0_1] : memref<1x41x4xf32, #tpu.memory_space<vmem>>, vector<1x41x4xf32>
    %1 = vector.shape_cast %0 : vector<1x41x4xf32> to vector<41x4xf32>
    %2 = arith.truncf %1 : vector<41x4xf32> to vector<41x4xbf16>
    %c0_2 = arith.constant 0 : index
    %c0_3 = arith.constant 0 : index
    %3 = vector.load %arg2[%c0_2, %c0_3] : memref<4x2048xbf16, #tpu.memory_space<vmem>>, vector<4x2048xbf16>
    %cst = arith.constant dense<0.000000e+00> : vector<41x2048xf32>
    %4 = tpu.matmul %2, %3, %cst {dimension_numbers = #tpu.dot_dimension_numbers<[1], [0], [0], [1], [0, 0, 1, 1], [], []>} : vector<41x4xbf16>, vector<4x2048xbf16>, vector<41x2048xf32> -> vector<41x2048xf32>
    %c0_4 = arith.constant 0 : index
    %c0_5 = arith.constant 0 : index
    %5 = vector.load %arg3[%c0_4, %c0_5] : memref<1x2048xf32, #tpu.memory_space<vmem>>, vector<1x2048xf32>
    %6 = vector.broadcast %5 : vector<1x2048xf32> to vector<41x2048xf32>
    %7 = arith.addf %4, %6 : vector<41x2048xf32>
    %cst_6 = arith.constant 0.000000e+00 : f32
    %8 = vector.broadcast %cst_6 : f32 to vector<41x2048xf32>
    %9 = arith.maximumf %7, %8 : vector<41x2048xf32>
    %10 = arith.truncf %9 : vector<41x2048xf32> to vector<41x2048xbf16>
    %c0_7 = arith.constant 0 : index
    %c0_8 = arith.constant 0 : index
    %11 = vector.load %arg4[%c0_7, %c0_8] : memref<2048x4xbf16, #tpu.memory_space<vmem>>, vector<2048x4xbf16>
    %cst_9 = arith.constant dense<0.000000e+00> : vector<41x4xf32>
    %12 = tpu.matmul %10, %11, %cst_9 {dimension_numbers = #tpu.dot_dimension_numbers<[1], [0], [0], [1], [0, 0, 1, 1], [], []>} : vector<41x2048xbf16>, vector<2048x4xbf16>, vector<41x4xf32> -> vector<41x4xf32>
    %c0_10 = arith.constant 0 : index
    %c0_11 = arith.constant 0 : index
    %13 = vector.load %arg5[%c0_10, %c0_11] : memref<1x4xf32, #tpu.memory_space<vmem>>, vector<1x4xf32>
    %14 = vector.broadcast %13 : vector<1x4xf32> to vector<41x4xf32>
    %15 = arith.addf %12, %14 : vector<41x4xf32>
    %16 = arith.addf %1, %15 : vector<41x4xf32>
    %cst_12 = arith.constant dense<0.000000e+00> : vector<41xf32>
    %17 = vector.multi_reduction <add>, %16, %cst_12 [1] : vector<41x4xf32> to vector<41xf32>
    %18 = vector.shape_cast %17 : vector<41xf32> to vector<41x1xf32>
    %cst_13 = arith.constant 4.000000e+00 : f32
    %19 = vector.broadcast %cst_13 : f32 to vector<41x1xf32>
    %20 = arith.divf %18, %19 : vector<41x1xf32>
    %21 = vector.broadcast %20 : vector<41x1xf32> to vector<41x4xf32>
    %22 = arith.subf %16, %21 : vector<41x4xf32>
    %23 = arith.mulf %22, %22 : vector<41x4xf32>
    %cst_14 = arith.constant dense<0.000000e+00> : vector<41xf32>
    %24 = vector.multi_reduction <add>, %23, %cst_14 [1] : vector<41x4xf32> to vector<41xf32>
    %25 = vector.shape_cast %24 : vector<41xf32> to vector<41x1xf32>
    %cst_15 = arith.constant 4.000000e+00 : f32
    %26 = vector.broadcast %cst_15 : f32 to vector<41x1xf32>
    %27 = arith.divf %25, %26 : vector<41x1xf32>
    %cst_16 = arith.constant 9.99999974E-6 : f32
    %28 = vector.broadcast %cst_16 : f32 to vector<41x1xf32>
    %29 = arith.addf %27, %28 : vector<41x1xf32>
    %30 = math.rsqrt %29 : vector<41x1xf32>
    %31 = vector.broadcast %30 : vector<41x1xf32> to vector<41x4xf32>
    %32 = arith.mulf %22, %31 : vector<41x4xf32>
    %c0_17 = arith.constant 0 : index
    %c0_18 = arith.constant 0 : index
    %33 = vector.load %arg6[%c0_17, %c0_18] : memref<1x4xf32, #tpu.memory_space<vmem>>, vector<1x4xf32>
    %34 = vector.broadcast %33 : vector<1x4xf32> to vector<41x4xf32>
    %35 = arith.mulf %32, %34 : vector<41x4xf32>
    %c0_19 = arith.constant 0 : index
    %c0_20 = arith.constant 0 : index
    %36 = vector.load %arg7[%c0_19, %c0_20] : memref<1x4xf32, #tpu.memory_space<vmem>>, vector<1x4xf32>
    %37 = vector.broadcast %36 : vector<1x4xf32> to vector<41x4xf32>
    %38 = arith.addf %35, %37 : vector<41x4xf32>
    %c0_21 = arith.constant 0 : index
    %c0_22 = arith.constant 0 : index
    %c0_23 = arith.constant 0 : index
    %39 = vector.load %arg8[%c0_21, %c0_22, %c0_23] : memref<1x41x4xf32, #tpu.memory_space<vmem>>, vector<1x41x4xf32>
    %40 = vector.shape_cast %39 : vector<1x41x4xf32> to vector<41x4xf32>
    %41 = vector.shape_cast %38 : vector<41x4xf32> to vector<1x41x4xf32>
    tpu.vector_store %arg8[%c0_21, %c0_22, %c0_23], %41 {strides = array<i32>} : memref<1x41x4xf32, #tpu.memory_space<vmem>>, vector<1x41x4xf32>,
    return
  }
  func.func @transform_0(%arg0: i32) -> (i32, i32, i32) {
    %c0_i32 = arith.constant 0 : i32
    %c0_i32_0 = arith.constant 0 : i32
    %c0_i32_1 = arith.constant 0 : i32
    return %arg0, %c0_i32, %c0_i32_0 : i32, i32, i32
  }
  func.func @transform_1(%arg0: i32) -> (i32, i32) {
    %c0_i32 = arith.constant 0 : i32
    %c0_i32_0 = arith.constant 0 : i32
    %c0_i32_1 = arith.constant 0 : i32
    return %c0_i32, %c0_i32_0 : i32, i32
  }
  func.func @transform_2(%arg0: i32) -> (i32, i32) {
    %c0_i32 = arith.constant 0 : i32
    %c0_i32_0 = arith.constant 0 : i32
    %c0_i32_1 = arith.constant 0 : i32
    return %c0_i32, %c0_i32_0 : i32, i32
  }
  func.func @transform_3(%arg0: i32) -> (i32, i32) {
    %c0_i32 = arith.constant 0 : i32
    %c0_i32_0 = arith.constant 0 : i32
    %c0_i32_1 = arith.constant 0 : i32
    return %c0_i32, %c0_i32_0 : i32, i32
  }
  func.func @transform_4(%arg0: i32) -> (i32, i32) {
    %c0_i32 = arith.constant 0 : i32
    %c0_i32_0 = arith.constant 0 : i32
    %c0_i32_1 = arith.constant 0 : i32
    return %c0_i32, %c0_i32_0 : i32, i32
  }
  func.func @transform_5(%arg0: i32) -> (i32, i32) {
    %c0_i32 = arith.constant 0 : i32
    %c0_i32_0 = arith.constant 0 : i32
    %c0_i32_1 = arith.constant 0 : i32
    return %c0_i32, %c0_i32_0 : i32, i32
  }
  func.func @transform_6(%arg0: i32) -> (i32, i32) {
    %c0_i32 = arith.constant 0 : i32
    %c0_i32_0 = arith.constant 0 : i32
    %c0_i32_1 = arith.constant 0 : i32
    return %c0_i32, %c0_i32_0 : i32, i32
  }
  func.func @transform_7(%arg0: i32) -> (i32, i32, i32) {
    %c0_i32 = arith.constant 0 : i32
    %c0_i32_0 = arith.constant 0 : i32
    %c0_i32_1 = arith.constant 0 : i32
    return %arg0, %c0_i32, %c0_i32_0 : i32, i32, i32
  }
}

module attributes {stable_mosaic.version = 11 : i64} {
  func.func @_ff_layer_kernel(%arg0: i32, %arg1: memref<1x41x4xf32, #tpu.memory_space<vmem>>, %arg2: memref<4x2048xbf16, #tpu.memory_space<vmem>>, %arg3: memref<1x2048xf32, #tpu.memory_space<vmem>>, %arg4: memref<2048x4xbf16, #tpu.memory_space<vmem>>, %arg5: memref<1x4xf32, #tpu.memory_space<vmem>>, %arg6: memref<1x4xf32, #tpu.memory_space<vmem>>, %arg7: memref<1x4xf32, #tpu.memory_space<vmem>>, %arg8: memref<1x41x4xf32, #tpu.memory_space<vmem>>) attributes {dimension_semantics = [#tpu.dimension_semantics<parallel>], iteration_bounds = array<i64: 2>, scalar_prefetch = 0 : i64, scratch_operands = 0 : i64, tpu.core_type = #tpu.core_type<tc>, window_params = [{transform_indices = @transform_0, window_bounds = array<i64: 1, 41, 4>}, {pipeline_mode = #tpu.pipeline_mode<synchronous>, transform_indices = @transform_1, window_bounds = array<i64: 4, 2048>}, {pipeline_mode = #tpu.pipeline_mode<synchronous>, transform_indices = @transform_2, window_bounds = array<i64: 1, 2048>}, {pipeline_mode = #tpu.pipeline_mode<synchronous>, transform_indices = @transform_3, window_bounds = array<i64: 2048, 4>}, {pipeline_mode = #tpu.pipeline_mode<synchronous>, transform_indices = @transform_4, window_bounds = array<i64: 1, 4>}, {pipeline_mode = #tpu.pipeline_mode<synchronous>, transform_indices = @transform_5, window_bounds = array<i64: 1, 4>}, {pipeline_mode = #tpu.pipeline_mode<synchronous>, transform_indices = @transform_6, window_bounds = array<i64: 1, 4>}, {transform_indices = @transform_7, window_bounds = array<i64: 1, 41, 4>}]} {
    %c0 = arith.constant 0 : index
    %c0_0 = arith.constant 0 : index
    %c0_1 = arith.constant 0 : index
    %0 = vector.load %arg1[%c0, %c0_0, %c0_1] : memref<1x41x4xf32, #tpu.memory_space<vmem>>, vector<1x41x4xf32>
    %1 = vector.shape_cast %0 : vector<1x41x4xf32> to vector<41x4xf32>
    %2 = arith.truncf %1 : vector<41x4xf32> to vector<41x4xbf16>
    %c0_2 = arith.constant 0 : index
    %c0_3 = arith.constant 0 : index
    %3 = vector.load %arg2[%c0_2, %c0_3] : memref<4x2048xbf16, #tpu.memory_space<vmem>>, vector<4x2048xbf16>
    %cst = arith.constant dense<0.000000e+00> : vector<41x2048xf32>
    %4 = tpu.matmul %2, %3, %cst {dimension_numbers = #tpu.dot_dimension_numbers<[1], [0], [0], [1], [0, 0, 1, 1], [], []>} : vector<41x4xbf16>, vector<4x2048xbf16>, vector<41x2048xf32> -> vector<41x2048xf32>
    %c0_4 = arith.constant 0 : index
    %c0_5 = arith.constant 0 : index
    %5 = vector.load %arg3[%c0_4, %c0_5] : memref<1x2048xf32, #tpu.memory_space<vmem>>, vector<1x2048xf32>
    %6 = vector.broadcast %5 : vector<1x2048xf32> to vector<41x2048xf32>
    %7 = arith.addf %4, %6 : vector<41x2048xf32>
    %cst_6 = arith.constant 0.000000e+00 : f32
    %8 = vector.broadcast %cst_6 : f32 to vector<41x2048xf32>
    %9 = arith.maximumf %7, %8 : vector<41x2048xf32>
    %10 = arith.truncf %9 : vector<41x2048xf32> to vector<41x2048xbf16>
    %c0_7 = arith.constant 0 : index
    %c0_8 = arith.constant 0 : index
    %11 = vector.load %arg4[%c0_7, %c0_8] : memref<2048x4xbf16, #tpu.memory_space<vmem>>, vector<2048x4xbf16>
    %cst_9 = arith.constant dense<0.000000e+00> : vector<41x4xf32>
    %12 = tpu.matmul %10, %11, %cst_9 {dimension_numbers = #tpu.dot_dimension_numbers<[1], [0], [0], [1], [0, 0, 1, 1], [], []>} : vector<41x2048xbf16>, vector<2048x4xbf16>, vector<41x4xf32> -> vector<41x4xf32>
    %c0_10 = arith.constant 0 : index
    %c0_11 = arith.constant 0 : index
    %13 = vector.load %arg5[%c0_10, %c0_11] : memref<1x4xf32, #tpu.memory_space<vmem>>, vector<1x4xf32>
    %14 = vector.broadcast %13 : vector<1x4xf32> to vector<41x4xf32>
    %15 = arith.addf %12, %14 : vector<41x4xf32>
    %16 = arith.addf %1, %15 : vector<41x4xf32>
    %cst_12 = arith.constant dense<0.000000e+00> : vector<41xf32>
    %17 = vector.multi_reduction <add>, %16, %cst_12 [1] : vector<41x4xf32> to vector<41xf32>
    %18 = vector.shape_cast %17 : vector<41xf32> to vector<41x1xf32>
    %cst_13 = arith.constant 4.000000e+00 : f32
    %19 = vector.broadcast %cst_13 : f32 to vector<41x1xf32>
    %20 = arith.divf %18, %19 : vector<41x1xf32>
    %21 = vector.broadcast %20 : vector<41x1xf32> to vector<41x4xf32>
    %22 = arith.subf %16, %21 : vector<41x4xf32>
    %23 = arith.mulf %22, %22 : vector<41x4xf32>
    %cst_14 = arith.constant dense<0.000000e+00> : vector<41xf32>
    %24 = vector.multi_reduction <add>, %23, %cst_14 [1] : vector<41x4xf32> to vector<41xf32>
    %25 = vector.shape_cast %24 : vector<41xf32> to vector<41x1xf32>
    %cst_15 = arith.constant 4.000000e+00 : f32
    %26 = vector.broadcast %cst_15 : f32 to vector<41x1xf32>
    %27 = arith.divf %25, %26 : vector<41x1xf32>
    %cst_16 = arith.constant 9.99999974E-6 : f32
    %28 = vector.broadcast %cst_16 : f32 to vector<41x1xf32>
    %29 = arith.addf %27, %28 : vector<41x1xf32>
    %30 = math.rsqrt %29 : vector<41x1xf32>
    %31 = vector.broadcast %30 : vector<41x1xf32> to vector<41x4xf32>
    %32 = arith.mulf %22, %31 : vector<41x4xf32>
    %c0_17 = arith.constant 0 : index
    %c0_18 = arith.constant 0 : index
    %33 = vector.load %arg6[%c0_17, %c0_18] : memref<1x4xf32, #tpu.memory_space<vmem>>, vector<1x4xf32>
    %34 = vector.broadcast %33 : vector<1x4xf32> to vector<41x4xf32>
    %35 = arith.mulf %32, %34 : vector<41x4xf32>
    %c0_19 = arith.constant 0 : index
    %c0_20 = arith.constant 0 : index
    %36 = vector.load %arg7[%c0_19, %c0_20] : memref<1x4xf32, #tpu.memory_space<vmem>>, vector<1x4xf32>
    %37 = vector.broadcast %36 : vector<1x4xf32> to vector<41x4xf32>
    %38 = arith.addf %35, %37 : vector<41x4xf32>
    %c0_21 = arith.constant 0 : index
    %c0_22 = arith.constant 0 : index
    %c0_23 = arith.constant 0 : index
    %39 = vector.load %arg8[%c0_21, %c0_22, %c0_23] : memref<1x41x4xf32, #tpu.memory_space<vmem>>, vector<1x41x4xf32>
    %40 = vector.shape_cast %39 : vector<1x41x4xf32> to vector<41x4xf32>
    %41 = vector.shape_cast %38 : vector<41x4xf32> to vector<1x41x4xf32>
    tpu.vector_store %arg8[%c0_21, %c0_22, %c0_23], %41 {strides = array<i32>} : memref<1x41x4xf32, #tpu.memory_space<vmem>>, vector<1x41x4xf32>,
    return
  }
  func.func @transform_0(%arg0: i32) -> (i32, i32, i32) {
    %c0_i32 = arith.constant 0 : i32
    %c0_i32_0 = arith.constant 0 : i32
    %c0_i32_1 = arith.constant 0 : i32
    return %arg0, %c0_i32, %c0_i32_0 : i32, i32, i32
  }
  func.func @transform_1(%arg0: i32) -> (i32, i32) {
    %c0_i32 = arith.constant 0 : i32
    %c0_i32_0 = arith.constant 0 : i32
    %c0_i32_1 = arith.constant 0 : i32
    return %c0_i32, %c0_i32_0 : i32, i32
  }
  func.func @transform_2(%arg0: i32) -> (i32, i32) {
    %c0_i32 = arith.constant 0 : i32
    %c0_i32_0 = arith.constant 0 : i32
    %c0_i32_1 = arith.constant 0 : i32
    return %c0_i32, %c0_i32_0 : i32, i32
  }
  func.func @transform_3(%arg0: i32) -> (i32, i32) {
    %c0_i32 = arith.constant 0 : i32
    %c0_i32_0 = arith.constant 0 : i32
    %c0_i32_1 = arith.constant 0 : i32
    return %c0_i32, %c0_i32_0 : i32, i32
  }
  func.func @transform_4(%arg0: i32) -> (i32, i32) {
    %c0_i32 = arith.constant 0 : i32
    %c0_i32_0 = arith.constant 0 : i32
    %c0_i32_1 = arith.constant 0 : i32
    return %c0_i32, %c0_i32_0 : i32, i32
  }
  func.func @transform_5(%arg0: i32) -> (i32, i32) {
    %c0_i32 = arith.constant 0 : i32
    %c0_i32_0 = arith.constant 0 : i32
    %c0_i32_1 = arith.constant 0 : i32
    return %c0_i32, %c0_i32_0 : i32, i32
  }
  func.func @transform_6(%arg0: i32) -> (i32, i32) {
    %c0_i32 = arith.constant 0 : i32
    %c0_i32_0 = arith.constant 0 : i32
    %c0_i32_1 = arith.constant 0 : i32
    return %c0_i32, %c0_i32_0 : i32, i32
  }
  func.func @transform_7(%arg0: i32) -> (i32, i32, i32) {
    %c0_i32 = arith.constant 0 : i32
    %c0_i32_0 = arith.constant 0 : i32
    %c0_i32_1 = arith.constant 0 : i32
    return %arg0, %c0_i32, %c0_i32_0 : i32, i32, i32
  }
}

module attributes {stable_mosaic.version = 11 : i64} {
  func.func @_head_kernel(%arg0: memref<2x3200xf32, #tpu.memory_space<vmem>>, %arg1: memref<2x164xf32, #tpu.memory_space<vmem>>, %arg2: memref<3200x128xbf16, #tpu.memory_space<vmem>>, %arg3: memref<1x128xf32, #tpu.memory_space<vmem>>, %arg4: memref<128x4xf32, #tpu.memory_space<vmem>>, %arg5: memref<1x4xf32, #tpu.memory_space<vmem>>, %arg6: memref<4x1xf32, #tpu.memory_space<vmem>>, %arg7: memref<4x1xf32, #tpu.memory_space<vmem>>, %arg8: memref<1x1xf32, #tpu.memory_space<vmem>>, %arg9: memref<164x4xf32, #tpu.memory_space<vmem>>, %arg10: memref<2x1xf32, #tpu.memory_space<vmem>>) attributes {dimension_semantics = [], scalar_prefetch = 0 : i64, scratch_operands = 0 : i64, tpu.core_type = #tpu.core_type<tc>} {
    %c0 = arith.constant 0 : index
    %c0_0 = arith.constant 0 : index
    %0 = vector.load %arg0[%c0, %c0_0] : memref<2x3200xf32, #tpu.memory_space<vmem>>, vector<2x3200xf32>
    %1 = arith.truncf %0 : vector<2x3200xf32> to vector<2x3200xbf16>
    %c0_1 = arith.constant 0 : index
    %c0_2 = arith.constant 0 : index
    %2 = vector.load %arg2[%c0_1, %c0_2] : memref<3200x128xbf16, #tpu.memory_space<vmem>>, vector<3200x128xbf16>
    %cst = arith.constant dense<0.000000e+00> : vector<2x128xf32>
    %3 = tpu.matmul %1, %2, %cst {dimension_numbers = #tpu.dot_dimension_numbers<[1], [0], [0], [1], [0, 0, 1, 1], [], []>} : vector<2x3200xbf16>, vector<3200x128xbf16>, vector<2x128xf32> -> vector<2x128xf32>
    %c0_3 = arith.constant 0 : index
    %c0_4 = arith.constant 0 : index
    %4 = vector.load %arg3[%c0_3, %c0_4] : memref<1x128xf32, #tpu.memory_space<vmem>>, vector<1x128xf32>
    %5 = vector.broadcast %4 : vector<1x128xf32> to vector<2x128xf32>
    %6 = arith.addf %3, %5 : vector<2x128xf32>
    %cst_5 = arith.constant 0.000000e+00 : f32
    %7 = vector.broadcast %cst_5 : f32 to vector<2x128xf32>
    %8 = arith.maximumf %6, %7 : vector<2x128xf32>
    %c0_6 = arith.constant 0 : index
    %c0_7 = arith.constant 0 : index
    %9 = vector.load %arg4[%c0_6, %c0_7] : memref<128x4xf32, #tpu.memory_space<vmem>>, vector<128x4xf32>
    %cst_8 = arith.constant dense<0.000000e+00> : vector<2x4xf32>
    %10 = tpu.matmul %8, %9, %cst_8 {dimension_numbers = #tpu.dot_dimension_numbers<[1], [0], [0], [1], [0, 0, 1, 1], [], []>} : vector<2x128xf32>, vector<128x4xf32>, vector<2x4xf32> -> vector<2x4xf32>
    %c0_9 = arith.constant 0 : index
    %c0_10 = arith.constant 0 : index
    %11 = vector.load %arg5[%c0_9, %c0_10] : memref<1x4xf32, #tpu.memory_space<vmem>>, vector<1x4xf32>
    %12 = vector.broadcast %11 : vector<1x4xf32> to vector<2x4xf32>
    %13 = arith.addf %10, %12 : vector<2x4xf32>
    %cst_11 = arith.constant 0.000000e+00 : f32
    %14 = vector.broadcast %cst_11 : f32 to vector<2x4xf32>
    %15 = arith.maximumf %13, %14 : vector<2x4xf32>
    %c0_12 = arith.constant 0 : index
    %c0_13 = arith.constant 0 : index
    %16 = vector.load %arg1[%c0_12, %c0_13] : memref<2x164xf32, #tpu.memory_space<vmem>>, vector<2x164xf32>
    %c0_14 = arith.constant 0 : index
    %c0_15 = arith.constant 0 : index
    %17 = vector.load %arg9[%c0_14, %c0_15] : memref<164x4xf32, #tpu.memory_space<vmem>>, vector<164x4xf32>
    %cst_16 = arith.constant dense<0.000000e+00> : vector<2x4xf32>
    %18 = tpu.matmul %16, %17, %cst_16 {dimension_numbers = #tpu.dot_dimension_numbers<[1], [0], [0], [1], [0, 0, 1, 1], [], []>} : vector<2x164xf32>, vector<164x4xf32>, vector<2x4xf32> -> vector<2x4xf32>
    %c0_17 = arith.constant 0 : index
    %c0_18 = arith.constant 0 : index
    %19 = vector.load %arg6[%c0_17, %c0_18] : memref<4x1xf32, #tpu.memory_space<vmem>>, vector<4x1xf32>
    %cst_19 = arith.constant dense<0.000000e+00> : vector<2x1xf32>
    %20 = tpu.matmul %15, %19, %cst_19 {dimension_numbers = #tpu.dot_dimension_numbers<[1], [0], [0], [1], [0, 0, 1, 1], [], []>} : vector<2x4xf32>, vector<4x1xf32>, vector<2x1xf32> -> vector<2x1xf32>
    %c0_20 = arith.constant 0 : index
    %c0_21 = arith.constant 0 : index
    %21 = vector.load %arg7[%c0_20, %c0_21] : memref<4x1xf32, #tpu.memory_space<vmem>>, vector<4x1xf32>
    %cst_22 = arith.constant dense<0.000000e+00> : vector<2x1xf32>
    %22 = tpu.matmul %18, %21, %cst_22 {dimension_numbers = #tpu.dot_dimension_numbers<[1], [0], [0], [1], [0, 0, 1, 1], [], []>} : vector<2x4xf32>, vector<4x1xf32>, vector<2x1xf32> -> vector<2x1xf32>
    %23 = arith.addf %20, %22 : vector<2x1xf32>
    %c0_23 = arith.constant 0 : index
    %c0_24 = arith.constant 0 : index
    %24 = vector.load %arg8[%c0_23, %c0_24] : memref<1x1xf32, #tpu.memory_space<vmem>>, vector<1x1xf32>
    %25 = vector.broadcast %24 : vector<1x1xf32> to vector<2x1xf32>
    %26 = arith.addf %23, %25 : vector<2x1xf32>
    %27 = arith.negf %26 : vector<2x1xf32>
    %28 = math.exp %27 : vector<2x1xf32>
    %cst_25 = arith.constant 1.000000e+00 : f32
    %29 = vector.broadcast %cst_25 : f32 to vector<2x1xf32>
    %30 = arith.addf %29, %28 : vector<2x1xf32>
    %31 = arith.divf %29, %30 : vector<2x1xf32>
    %c0_26 = arith.constant 0 : index
    %c0_27 = arith.constant 0 : index
    %32 = vector.load %arg10[%c0_26, %c0_27] : memref<2x1xf32, #tpu.memory_space<vmem>>, vector<2x1xf32>
    tpu.vector_store %arg10[%c0_26, %c0_27], %31 {strides = array<i32>} : memref<2x1xf32, #tpu.memory_space<vmem>>, vector<2x1xf32>,
    return
  }
}

</mosaic_0001>

<bundles_post_ra>
// kernel: graph_cnn_forward.11
= control target key start
LH: loop header
LB: loop body
LE: loop exit
PB: predicated region body
PF: predicated region fallthrough
CT: control target
= control target key end

     0   :  { %s1383_s12 = smov 0   ;;  %s2112_s0 = inlined_call_operand.vmem [shape: f32[2,43,43,1], index: 0, kind: input, shape index: {}]   ;;  %s2113_s1 = inlined_call_operand.vmem [shape: f32[9,1,16], index: 1, kind: input, shape index: {}]   ;;  %s2114_s2 = inlined_call_operand.vmem [shape: f32[1,16], index: 2, kind: input, shape index: {}]   ;;  %s2115_s3 = inlined_call_operand.vmem [shape: f32[2,20,20,16], index: 3, kind: output, shape index: {}]  }
   0x1 LB: > { %s1195_s13 = sadd.s32 4294967295, %s1352_s12   ;;  %p1199_p0 = scmp.ge.s32.totalorder %s1352_s12, 1  ;;  %s1352_s12 = sphi %s1383_s12, %s13_s12  }
   0x2   : > { %p137_p1 = scmp.lt.s32.totalorder %s1352_s12, 3 }
   0x4   : > { %p138_p2 = pnand %p1199_p0, %p137_p1 }
   0x5   : > { %p161_p3 = scmp.lt.s32.totalorder (!%p138_p2), %s1195_s13, 1  ;;  %v1394_v0 = vld [vmem:[%s2113_s1] ss:$0 sm:$0xff] (!%p138_p2)  ;;  %v1399_v1 = vld [vmem:[%s2113_s1 + $0x1] ss:$0 sm:$0xff] (!%p138_p2)  ;;  %v181_v2 = vlaneseq (!%p138_p2)  ;;  %v1358_v18 = vmov (!%p138_p2), 0.0  }
   0x6   : > { %141 = sbr.rel (%p138_p2) target bundleno = 486 (0x1e6), region = 32  ;;  %2148 = vst [vmem:[#allocation2_spill] sm:$0xff] (!%p138_p2), %v1394_v0  ;;  %2149 = vst [vmem:[#allocation3_spill] sm:$0xff] (!%p138_p2), %v1399_v1  ;;  %v1404_v3 = vld [vmem:[%s2113_s1 + $0x2] ss:$0 sm:$0xff] (!%p138_p2) }
   0x7   : > { %2150 = vst [vmem:[#allocation4_spill] sm:$0xff] (!%p138_p2), %v1404_v3  ;;  %v1409_v4 = vld [vmem:[%s2113_s1 + $0x3] ss:$0 sm:$0xff] (!%p138_p2)  ;;  %v1414_v5 = vld [vmem:[%s2113_s1 + $0x4] ss:$0 sm:$0xff] (!%p138_p2)  ;;  %v182_v11 = vand.u32 (!%p138_p2), 127, %v181_v2 }
   0x8   : > { %2151 = vst [vmem:[#allocation5_spill] sm:$0xff] (!%p138_p2), %v1414_v5  ;;  %v1419_v6 = vld [vmem:[%s2113_s1 + $0x5] ss:$0 sm:$0xff] (!%p138_p2)  ;;  %v1424_v7 = vld [vmem:[%s2113_s1 + $0x6] ss:$0 sm:$0xff] (!%p138_p2)  ;;  %v184_v12 = vshrl.u32 (!%p138_p2), %v181_v2, 7 }
   0x9   : > { %2152 = vst [vmem:[#allocation6_spill] sm:$0xff] (!%p138_p2), %v1419_v6  ;;  %v1429_v8 = vld [vmem:[%s2113_s1 + $0x7] ss:$0 sm:$0xff] (!%p138_p2)  ;;  %v1434_v9 = vld [vmem:[%s2113_s1 + $0x8] ss:$0 sm:$0xff] (!%p138_p2) }
   0xa   : > { %v1439_v10 = vld [vmem:[%s2114_s2] ss:$0 sm:$0xff] (!%p138_p2)  ;;  %v185_v13 = vadd.s32 (!%p138_p2), 8, %v184_v12  ;;  %v186_v14 = vadd.s32 (!%p138_p2), 16, %v184_v12  ;;  %v187_v15 = vmul.u32 (!%p138_p2), 2, %v184_v12 }
   0xb   : > { %2153 = vst [vmem:[#allocation7_spill] sm:$0xff] (!%p138_p2), %v1439_v10 }
   0xc   : > { %v188_v16 = vmul.u32 (!%p138_p2), 2, %v185_v13  ;;  %v189_v17 = vmul.u32 (!%p138_p2), 2, %v186_v14  ;;  %vm190_vm0 = vcmp.eq.s32.totalorder (!%p138_p2), %v182_v11, %v187_v15 }
   0xd   : > { %s2264_s13 = smov (!%p161_p3, %s1195_s13), 1  ;;  %v1451_v19 = vsel %vm190_vm0, 1.0, %v1358_v18 }
   0xe   : > { %s1317_s7 = smul.u32 2064, %s2264_s13  ;;  %2154 = vst [vmem:[#allocation8_spill] sm:$0xff] %v1451_v19  ;;  %vm191_vm1 = vcmp.eq.s32.totalorder %v182_v11, %v188_v16  ;;  %vm192_vm2 = vcmp.eq.s32.totalorder %v182_v11, %v189_v17 }
   0xf   : > { %s1318_s8 = smul.u32 480, %s2264_s13  ;;  %v1453_v20 = vsel %vm191_vm1, 1.0, %v1358_v18  ;;  %v1455_v21 = vsel %vm192_vm2, 1.0, %v1358_v18  ;;  %s1457_s13 = smov 0  }
  0x10   : > { %s1444_s11 = scalar_lea.vmem %s2112_s0, %s1317_s7  ;;  %2155 = vst [vmem:[#allocation9_spill] sm:$0xff] %v1453_v20  ;;  %2156 = vst [vmem:[#allocation10_spill] sm:$0xff] %v1455_v21 }
  0x11   : > { %s1449_s16 = scalar_lea.vmem %s2115_s3, %s1318_s8 }
  0x12 LB: >> { %v2157_v6 = vld [vmem:[#allocation6_spill] sm:$0xff]  ;;  %v2158_v5 = vld [vmem:[#allocation5_spill] sm:$0xff]  ;;  %v2159_v3 = vld [vmem:[#allocation4_spill] sm:$0xff]  ;;  %v1359_v22 = vmov 0   ;;  %s1206_s17 = smul.u32 96, %s1356_s13  ;;  %v2118_v47 = vmov 0.0|0.0   ;;  %s1356_s13 = sphi %s1457_s13, %s204_s13  }
  0x13   : >> { %v2160_v1 = vld [vmem:[#allocation3_spill] sm:$0xff]  ;;  %v2161_v0 = vld [vmem:[#allocation2_spill] sm:$0xff]  ;;  %1341 = vset.pattern.permute.xlu1 %v1359_v22  ;;  %1340 = vset.pattern.permute.xlu0 %v1359_v22  ;;  %vm1361_vm3 = vmmov 0   ;;  %v2116_v48 = vmov 0.0   ;;  %vm278_vm4 = vcmask 1046528   ;;  %vm318_vm5 = vcmask 1045504  }
  0x14   : >> { %s1464_s18 = scalar_lea.vmem %s1444_s11, %s1206_s17  ;;  %1305 = vmatprep.subr.bf16.mxu0 %v2118_v47  ;;  %1311 = vmatprep.subr.bf16.mxu1 %v2118_v47  ;;  %vm630_vm6 = vcmask 318464   ;;  %s1112_s19 = smul.u32 24, %s1356_s13  ;;  %vm1114_vm7 = vcmask 130048   ;;  %vm1117_vm8 = vcmask 125952  }
  0x15   : >> { %v210_v23 = vld [vmem:[%s1464_s18 + $0x10] sm:$0xff]  ;;  %v208_v24 = vld [vmem:[%s1464_s18] sm:$0xff]  ;;  %v211_v25 = vld [vmem:[%s1464_s18 + $0x18] sm:$0xff]  ;;  %1277 = vmatprep.mubr.msk.f32.mxu0 %vm1361_vm3, %v2116_v48  ;;  %1296 = vmatprep.mubr.msk.f32.mxu1 %vm1361_vm3, %v2116_v48  ;;  %s204_s13 = sadd.s32 1, %s1356_s13  }
  0x16   : >> { %226 = vperm.xlu1 %1341, %v210_v23   ;;  %216 = vperm.xlu0 %1340, %v208_v24   ;;  %v209_v26 = vld [vmem:[%s1464_s18 + $0x8] sm:$0xff]  ;;  %v1213_v27 = vld [vmem:[%s1464_s18 + $0x38] sm:$0xff]  ;;  %v1212_v28 = vld [vmem:[%s1464_s18 + $0x30] sm:$0xff]  ;;  %s1113_s20 = scalar_lea.vmem %s1449_s16, %s1112_s19  ;;  %p201_p4 = scmp.ge.s32.totalorder %s204_s13, 20  }
  0x17   : >> { %v1215_v29 = vld [vmem:[%s1464_s18 + $0x48] sm:$0xff]  ;;  %v1214_v30 = vld [vmem:[%s1464_s18 + $0x40] sm:$0xff]  ;;  %v1217_v33 = vld [vmem:[%s1464_s18 + $0x58] sm:$0x7] }
  0x18   : >> { %v213_v31 = vld [vmem:[%s1464_s18 + $0x28] sm:$0x7]  ;;  %v212_v32 = vld [vmem:[%s1464_s18 + $0x20] sm:$0xff]  ;;  %v1216_v34 = vld [vmem:[%s1464_s18 + $0x50] sm:$0xff] }
  0x19   : >> { %v1224_v35 = vld [vmem:[%s1464_s18 + $0x68] sm:$0xff]  ;;  %v1223_v36 = vld [vmem:[%s1464_s18 + $0x60] sm:$0xff]  ;;  %v1226_v37 = vld [vmem:[%s1464_s18 + $0x78] sm:$0xff] }
  0x1a   : >> { %231 = vperm.xlu1 %1341, %v211_v25   ;;  %221 = vperm.xlu0 %1340, %v209_v26   ;;  %v1225_v38 = vld [vmem:[%s1464_s18 + $0x70] sm:$0xff]  ;;  %v1228_v39 = vld [vmem:[%s1464_s18 + $0x88] sm:$0x7]  ;;  %v1227_v40 = vld [vmem:[%s1464_s18 + $0x80] sm:$0xff] }
  0x1b   : >> { %v1239_v41 = vld [vmem:[%s1464_s18 + $0x98] sm:$0xff]  ;;  %v1238_v42 = vld [vmem:[%s1464_s18 + $0x90] sm:$0xff]  ;;  %v1241_v43 = vld [vmem:[%s1464_s18 + $0xa8] sm:$0xff] }
  0x1c   : >> { %v1240_v44 = vld [vmem:[%s1464_s18 + $0xa0] sm:$0xff]  ;;  %v1243_v45 = vld [vmem:[%s1464_s18 + $0xb8] sm:$0x7]  ;;  %v1242_v46 = vld [vmem:[%s1464_s18 + $0xb0] sm:$0xff] }
  0x1e   : >> { %356 = vperm.xlu1 %1341, %v1213_v27   ;;  %351 = vperm.xlu0 %1340, %v1212_v28  }
  0x22   : >> { %366 = vperm.xlu1 %1341, %v1215_v29   ;;  %361 = vperm.xlu0 %1340, %v1214_v30  }
  0x26   : >> { %257 = vperm.xlu1 %1341, %v213_v31   ;;  %236 = vperm.xlu0 %1340, %v212_v32  }
  0x2a   : >> { %392 = vperm.xlu1 %1341, %v1217_v33   ;;  %371 = vperm.xlu0 %1340, %v1216_v34  }
  0x2e   : >> { %489 = vperm.xlu1 %1341, %v1224_v35   ;;  %484 = vperm.xlu0 %1340, %v1223_v36  }
  0x32   : >> { %499 = vperm.xlu1 %1341, %v1226_v37   ;;  %494 = vperm.xlu0 %1340, %v1225_v38  }
  0x36   : >> { %525 = vperm.xlu1 %1341, %v1228_v39   ;;  %504 = vperm.xlu0 %1340, %v1227_v40  }
  0x3a   : >> { %891 = vperm.xlu1 %1341, %v1239_v41   ;;  %886 = vperm.xlu0 %1340, %v1238_v42  }
  0x3e   : >> { %901 = vperm.xlu1 %1341, %v1241_v43   ;;  %896 = vperm.xlu0 %1340, %v1240_v44  }
  0x42   : >> { %921 = vperm.xlu1 %1341, %v1243_v45   ;;  %906 = vperm.xlu0 %1340, %v1242_v46  }
  0x95   : >> { %v227_v49 = vpop.permute.xlu1 %226  ;;  %v217_v50 = vpop.permute.xlu0 %216 }
  0x96   : >> { %v268_v51 = vmul.f32 %v2160_v1, %v227_v49  ;;  %v308_v52 = vmul.f32 %v2159_v3, %v227_v49  ;;  %v266_v53 = vmul.f32 %v2160_v1, %v217_v50  ;;  %v306_v54 = vmul.f32 %v2159_v3, %v217_v50 }
  0x97   : >> { %v247_v57 = vmul.f32 %v2161_v0, %v227_v49  ;;  %v245_v58 = vmul.f32 %v2161_v0, %v217_v50 }
  0x98   : >> { %v282_v61 = vrot.slane %v268_v51, 1  ;;  %v322_v62 = vrot.slane %v308_v52, 2  ;;  %v279_v11 = vrot.slane %v266_v53, 1  ;;  %v319_v12 = vrot.slane %v306_v54, 2 }
  0x99   : >> { %v232_v55 = vpop.permute.xlu1 %231  ;;  %v222_v56 = vpop.permute.xlu0 %221 }
  0x9a   : >> { %v1503_v59 = vmul.f32 %v2160_v1, %v232_v55  ;;  %v1506_v60 = vmul.f32 %v2159_v3, %v232_v55  ;;  %v267_v63 = vmul.f32 %v2160_v1, %v222_v56  ;;  %v307_v2 = vmul.f32 %v2159_v3, %v222_v56 }
  0x9b   : >> { %v1513_v15 = vmul.f32 %v2161_v0, %v232_v55  ;;  %v246_v16 = vmul.f32 %v2161_v0, %v222_v56 }
  0x9c   : >> { %v284_v13 = vrot.slane %v1503_v59, 1  ;;  %v324_v14 = vrot.slane %v1506_v60, 2  ;;  %v280_v17 = vrot.slane %v267_v63, 1  ;;  %v320_v18 = vrot.slane %v307_v2, 2 }
  0x9d   : >> { %v357_v22 = vpop.permute.xlu1 %356  ;;  %v352_v23 = vpop.permute.xlu0 %351 }
  0x9e   : >> { %v285_v24 = vsel %vm278_vm4, %v282_v61, %v284_v13  ;;  %v325_v25 = vsel %vm318_vm5, %v322_v62, %v324_v14  ;;  %v381_v26 = vmul.f32 %v1409_v4, %v357_v22  ;;  %v1524_v27 = vmul.f32 %v2158_v5, %v357_v22 }
  0x9f   : >> { %v297_v28 = vadd.f32 %v285_v24, %v247_v57  ;;  %v281_v29 = vsel %vm278_vm4, %v279_v11, %v280_v17  ;;  %v283_v30 = vsel %vm278_vm4, %v280_v17, %v282_v61  ;;  %v321_v31 = vsel %vm318_vm5, %v319_v12, %v320_v18 }
  0xa0   : >> { %v295_v32 = vadd.f32 %v281_v29, %v245_v58  ;;  %v296_v33 = vadd.f32 %v283_v30, %v246_v16  ;;  %v323_v34 = vsel %vm318_vm5, %v320_v18, %v322_v62  ;;  %v1532_v37 = vmul.f32 %v2157_v6, %v357_v22 }
  0xa1   : >> { %v337_v36 = vadd.f32 %v325_v25, %v297_v28  ;;  %v1535_v38 = vmul.f32 %v2161_v0, %v357_v22  ;;  %v1538_v39 = vmul.f32 %v2160_v1, %v357_v22  ;;  %v367_v40 = vpop.permute.xlu1 %366  ;;  %v362_v41 = vpop.permute.xlu0 %361  ;;  %v1541_v44 = vmul.f32 %v2159_v3, %v357_v22 }
  0xa2   : >> { %v335_v42 = vadd.f32 %v321_v31, %v295_v32  ;;  %v336_v43 = vadd.f32 %v323_v34, %v296_v33  ;;  %v380_v45 = vmul.f32 %v1409_v4, %v352_v23  ;;  %v1547_v50 = vmul.f32 %v2158_v5, %v352_v23 }
  0xa3   : >> { %v2122_v49 = vrot.slane %v1538_v39, 1  ;;  %v1550_v51 = vmul.f32 %v2157_v6, %v352_v23  ;;  %v723_v55 = vmul.f32 %v2161_v0, %v352_v23  ;;  %v733_v58 = vmul.f32 %v2160_v1, %v352_v23 }
  0xa4   : >> { %v1552_v52 = vadd.f32 %v381_v26, %v336_v43  ;;  %v1555_v54 = vadd.f32 %v380_v45, %v335_v42  ;;  %v1562_v61 = vmul.f32 %v2159_v3, %v352_v23  ;;  %v1565_v63 = vmul.f32 %v1409_v4, %v367_v40 }
  0xa5   : >> { %v258_v62 = vpop.permute.xlu1 %257  ;;  %v1568_v2 = vmul.f32 %v2158_v5, %v367_v40  ;;  %v1571_v11 = vmul.f32 %v2157_v6, %v367_v40  ;;  %v1574_v12 = vmul.f32 %v2161_v0, %v367_v40  ;;  %v237_v16 = vpop.permute.xlu0 %236  ;;  %v745_v17 = vrot.slane %v733_v58, 1 }
  0xa6   : >> { %v1578_v22 = vmul.f32 %v2160_v1, %v367_v40  ;;  %v1581_v23 = vmul.f32 %v2159_v3, %v367_v40  ;;  %v382_v26 = vmul.f32 %v1409_v4, %v362_v41  ;;  %v1587_v28 = vmul.f32 %v2158_v5, %v362_v41 }
  0xa7   : >> { %2162 = vst [vmem:[#allocation11_spill] sm:$0xff] %v1571_v11  ;;  %v418_v24 = vrot.slane %v1568_v2, 1  ;;  %v747_v29 = vsel %vm278_vm4, %v745_v17, %v2122_v49  ;;  %v1595_v32 = vmul.f32 %v2157_v6, %v362_v41  ;;  %v725_v42 = vmul.f32 %v2161_v0, %v362_v41 }
  0xa8   : >> { %v2121_v30 = vrot.slane %v1578_v22, 1  ;;  %v1597_v33 = vadd.f32 %v747_v29, %v723_v55  ;;  %v387_v34 = vadd.f32 %v382_v26, %v337_v36  ;;  %v2120_v40 = vrot.slane %v1587_v28, 1 }
  0xa9   : >> { %v393_v43 = vpop.permute.xlu1 %392  ;;  %v1603_v58 = vmul.f32 %v2160_v1, %v362_v41  ;;  %v1606_v17 = vmul.f32 %v2159_v3, %v362_v41  ;;  %v271_v48 = vmul.f32 %v2160_v1, %v258_v62  ;;  %v311_v55 = vmul.f32 %v2159_v3, %v258_v62  ;;  %v372_v47 = vpop.permute.xlu0 %371 }
  0xaa   : >> { %v419_v36 = vsel %vm278_vm4, %v2120_v40, %v418_v24  ;;  %v249_v26 = vmul.f32 %v2161_v0, %v237_v16  ;;  %v270_v29 = vmul.f32 %v2160_v1, %v237_v16  ;;  %v310_v18 = vmul.f32 %v2159_v3, %v237_v16 }
  0xab   : >> { %v1617_v57 = vadd.f32 %v419_v36, %v387_v34  ;;  %v2123_v41 = vrot.slane %v1603_v58, 1  ;;  %v288_v56 = vrot.slane %v271_v48, 1  ;;  %v328_v35 = vrot.slane %v311_v55, 2 }
  0xac   : >> { %v286_v31 = vrot.slane %v270_v29, 1  ;;  %v406_v40 = vmul.f32 %v2158_v5, %v393_v43  ;;  %v1629_v34 = vmul.f32 %v2157_v6, %v393_v43  ;;  %v1632_v36 = vmul.f32 %v2160_v1, %v393_v43 }
  0xad   : >> { %v751_v62 = vsel %vm278_vm4, %v2123_v41, %v2121_v30  ;;  %v1635_v48 = vmul.f32 %v2159_v3, %v393_v43  ;;  %v326_v53 = vrot.slane %v310_v18, 2  ;;  %v1643_v46 = vpop.permute.xlu1 %489  ;;  %v1661_v60 = vmul.f32 %v2161_v0, %v372_v47 }
  0xae   : >> { %v1637_v55 = vadd.f32 %v751_v62, %v725_v42  ;;  %v287_v16 = vsel %vm278_vm4, %v284_v13, %v286_v31  ;;  %v289_v29 = vsel %vm278_vm4, %v286_v31, %v288_v56  ;;  %v422_v41 = vrot.slane %v406_v40, 1  ;;  %v1653_v56 = vpop.permute.xlu0 %484 }
  0xaf   : >> { %v298_v30 = vadd.f32 %v287_v16, %v1513_v15  ;;  %v299_v49 = vadd.f32 %v289_v29, %v249_v26  ;;  %v327_v42 = vsel %vm318_vm5, %v324_v14, %v326_v53  ;;  %v329_v43 = vsel %vm318_vm5, %v326_v53, %v328_v35 }
  0xb0   : >> { %v384_v15 = vmul.f32 %v1409_v4, %v372_v47  ;;  %v405_v40 = vmul.f32 %v2158_v5, %v372_v47  ;;  %v1658_v26 = vmul.f32 %v2157_v6, %v372_v47  ;;  %v1664_v14 = vmul.f32 %v2160_v1, %v372_v47 }
  0xb1   : >> { %v338_v18 = vadd.f32 %v327_v42, %v298_v30  ;;  %v339_v31 = vadd.f32 %v329_v43, %v299_v49  ;;  %v1667_v35 = vmul.f32 %v2159_v3, %v372_v47  ;;  %v1674_v62 = vmul.f32 %v1429_v8, %v1643_v46  ;;  %v500_v47 = vpop.permute.xlu1 %499 }
  0xb2   : >> { %2163 = vst [vmem:[#allocation12_spill] sm:$0xff] %v1658_v26  ;;  %v420_v30 = vrot.slane %v405_v40, 1  ;;  %v1681_v43 = vmul.f32 %v1409_v4, %v1643_v46  ;;  %v1696_v13 = vmul.f32 %v2157_v6, %v1643_v46  ;;  %v1700_v59 = vmul.f32 %v1429_v8, %v1653_v56 }
  0xb3   : >> { %v1670_v53 = vadd.f32 %v1565_v63, %v338_v18  ;;  %v389_v49 = vadd.f32 %v384_v15, %v339_v31  ;;  %v1692_v15 = vmul.f32 %v2158_v5, %v1643_v46  ;;  %v1704_v2 = vmul.f32 %v1409_v4, %v1653_v56 }
  0xb4   : >> { %v1686_v63 = vsel %vm278_vm4, %v418_v24, %v420_v30  ;;  %v423_v18 = vsel %vm278_vm4, %v420_v30, %v422_v41  ;;  %v1706_v24 = vpop.permute.xlu0 %494  ;;  %v1711_v30 = vmul.f32 %v2158_v5, %v1653_v56  ;;  %v855_v31 = vrot.slane %v1696_v13, 2 }
  0xb5   : >> { %2164 = vst [vmem:[#allocation13_spill] sm:$0xff] %v1670_v53  ;;  %2165 = vst [vmem:[#allocation14_spill] sm:$0xff] %v1686_v63  ;;  %v433_v40 = vadd.f32 %v423_v18, %v389_v49  ;;  %v1715_v49 = vmul.f32 %v2157_v6, %v1653_v56  ;;  %v1718_v18 = vmul.f32 %v1424_v7, %v500_v47  ;;  %v2170_v3 = vrot.slane %v1571_v11, 2 }
  0xb6   : >> { %2166 = vst [vmem:[#allocation15_spill] sm:$0xff] %v1706_v24  ;;  %v1723_v29 = vmul.f32 %v1429_v8, %v500_v47  ;;  %v1726_v41 = vmul.f32 %v1434_v9, %v500_v47  ;;  %v821_v16 = vrot.slane %v1711_v30, 1  ;;  %v1731_v25 = vmul.f32 %v1409_v4, %v500_v47 }
  0xb7   : >> { %2167 = vst [vmem:[#allocation16_spill] sm:$0xff] %v1718_v18  ;;  %v854_v45 = vrot.slane %v1715_v49, 2  ;;  %v1734_v0 = vmul.f32 %v2158_v5, %v500_v47  ;;  %v1739_v1 = vmul.f32 %v2157_v6, %v500_v47  ;;  %v2171_v10 = vrot.slane %v1595_v32, 2  ;;  %v526_v49 = vpop.permute.xlu1 %525 }
  0xb8   : >> { %2168 = vst [vmem:[#allocation17_spill] sm:$0xff] %v1723_v29  ;;  %2169 = vst [vmem:[#allocation18_spill] sm:$0xff] %v1726_v41  ;;  %v515_v19 = vmul.f32 %v1424_v7, %v1706_v24  ;;  %v1752_v42 = vmul.f32 %v1429_v8, %v1706_v24  ;;  %v1757_v13 = vmul.f32 %v1409_v4, %v1706_v24  ;;  %v2176_v21 = vrot.slane %v1629_v34, 2 }
  0xb9   : >> { %v458_v30 = vsel %vm318_vm5, %v2171_v10, %v2170_v3  ;;  %v1761_v3 = vmul.f32 %v2158_v5, %v1706_v24  ;;  %v1765_v10 = vmul.f32 %v2157_v6, %v1706_v24  ;;  %v1773_v47 = vmul.f32 %v1429_v8, %v526_v49 }
  0xba   : >> { %v470_v20 = vadd.f32 %v458_v30, %v1617_v57  ;;  %2172 = vst [vmem:[#allocation19_spill] sm:$0xff] %v1752_v42  ;;  %v1767_v57 = vpop.permute.xlu0 %504  ;;  %v1776_v18 = vmul.f32 %v1434_v9, %v526_v49  ;;  %v1781_v63 = vmul.f32 %v2158_v5, %v526_v49  ;;  %v1784_v53 = vmul.f32 %v2157_v6, %v526_v49 }
  0xbb   : >> { %2174 = vst [vmem:[#allocation21_spill] sm:$0xff] %v1773_v47  ;;  %v824_v41 = vrot.slane %v1761_v3, 1  ;;  %v2177_v24 = vrot.slane %v1658_v26, 2  ;;  %v517_v3 = vmul.f32 %v1424_v7, %v1767_v57  ;;  %v1799_v49 = vmul.f32 %v1429_v8, %v1767_v57 }
  0xbc   : >> { %v1769_v30 = vadd.f32 %v515_v19, %v470_v20  ;;  %2175 = vst [vmem:[#allocation22_spill] sm:$0xff] %v1776_v18  ;;  %v892_v19 = vpop.permute.xlu1 %891  ;;  %v1803_v34 = vmul.f32 %v1434_v9, %v1767_v57  ;;  %v2180_v20 = vrot.slane %v1603_v58, 1  ;;  %v2183_v47 = vrot.slane %v1606_v17, 2 }
  0xbd   : >> { %2178 = vst [vmem:[#allocation23_spill] sm:$0xff] %v1799_v49  ;;  %v910_v11 = vmul.f32 %v1424_v7, %v892_v19 }
  0xbe   : >> { %2173 = vst [vmem:[#allocation20_spill] sm:$0xff] %v1769_v30  ;;  %v462_v30 = vsel %vm318_vm5, %v2177_v24, %v2176_v21  ;;  %2179 = vst [vmem:[#allocation24_spill] sm:$0xff] %v1803_v34  ;;  %v1807_v21 = vmul.f32 %v2158_v5, %v1767_v57  ;;  %v1811_v24 = vmul.f32 %v2157_v6, %v1767_v57  ;;  %v2184_v5 = vrot.slane %v1541_v44, 2 }
  0xbf   : >> { %v472_v42 = vadd.f32 %v462_v30, %v433_v40  ;;  %v2181_v40 = vrot.slane %v1538_v39, 1  ;;  %v2187_v6 = vrot.slane %v1541_v44, 2  ;;  %v2188_v39 = vrot.slane %v1562_v61, 2 }
  0xc0   : >> { %v782_v26 = vsel %vm318_vm5, %v2184_v5, %v2183_v47  ;;  %v1838_v5 = vmul.f32 %v1429_v8, %v892_v19  ;;  %v1841_v47 = vmul.f32 %v1434_v9, %v892_v19  ;;  %v902_v49 = vpop.permute.xlu1 %901  ;;  %v2194_v44 = vrot.slane %v1807_v21, 1 }
  0xc1   : >> { %v749_v30 = vsel %vm278_vm4, %v2181_v40, %v2180_v20  ;;  %v1818_v29 = vadd.f32 %v517_v3, %v472_v42  ;;  %v2185_v20 = vrot.slane %v1692_v15, 1  ;;  %v887_v3 = vpop.permute.xlu0 %886 }
  0xc2   : >> { %v762_v18 = vadd.f32 %v749_v30, %v1535_v38  ;;  %v2186_v38 = vrot.slane %v1765_v10, 2  ;;  %v909_v19 = vmul.f32 %v1424_v7, %v887_v3  ;;  %v1858_v61 = vmul.f32 %v1429_v8, %v887_v3 }
  0xc3   : >> { %2182 = vst [vmem:[#allocation25_spill] sm:$0xff] %v1818_v29  ;;  %v825_v42 = vsel %vm278_vm4, %v2185_v20, %v824_v41  ;;  %v780_v20 = vsel %vm318_vm5, %v2188_v39, %v2187_v6  ;;  %v1861_v6 = vmul.f32 %v1434_v9, %v887_v3  ;;  %v2192_v39 = vrot.slane %v1667_v35, 2 }
  0xc4   : >> { %v795_v40 = vadd.f32 %v782_v26, %v762_v18  ;;  %v858_v30 = vsel %vm318_vm5, %v855_v31, %v2186_v38  ;;  %v2189_v26 = vrot.slane %v1692_v15, 1  ;;  %v856_v38 = vsel %vm318_vm5, %v854_v45, %v855_v31 }
  0xc5   : >> { %v794_v34 = vadd.f32 %v780_v20, %v1597_v33  ;;  %v2191_v45 = vrot.slane %v1578_v22, 1  ;;  %v2195_v22 = vrot.slane %v1734_v0, 1  ;;  %v2198_v3 = vrot.slane %v1581_v23, 2 }
  0xc6   : >> { %v823_v18 = vsel %vm278_vm4, %v821_v16, %v2189_v26  ;;  %v805_v58 = vadd.f32 %v1681_v43, %v795_v40  ;;  %v2190_v16 = vrot.slane %v1664_v14, 1  ;;  %v2193_v40 = vrot.slane %v1581_v23, 2 }
  0xc7   : >> { %v804_v33 = vadd.f32 %v1704_v2, %v794_v34  ;;  %v2196_v2 = vrot.slane %v1811_v24, 2  ;;  %v960_v26 = vmul.f32 %v1434_v9, %v902_v49  ;;  %v2200_v29 = vrot.slane %v1734_v0, 1 }
  0xc8   : >> { %v753_v43 = vsel %vm278_vm4, %v2191_v45, %v2190_v16  ;;  %v838_v31 = vadd.f32 %v825_v42, %v805_v58  ;;  %v786_v20 = vsel %vm318_vm5, %v2193_v40, %v2192_v39  ;;  %v829_v58 = vsel %vm278_vm4, %v2195_v22, %v2194_v44  ;;  %v897_v39 = vpop.permute.xlu0 %896 }
  0xc9   : >> { %v764_v15 = vadd.f32 %v753_v43, %v1574_v12  ;;  %v2197_v12 = vrot.slane %v1739_v1, 2  ;;  %v837_v16 = vadd.f32 %v823_v18, %v804_v33  ;;  %v912_v43 = vmul.f32 %v1424_v7, %v902_v49 }
  0xca   : >> { %v871_v42 = vadd.f32 %v858_v30, %v838_v31  ;;  %v927_v40 = vmul.f32 %v1429_v8, %v902_v49  ;;  %v2199_v44 = vrot.slane %v1606_v17, 2  ;;  %v974_v49 = vrot.slane %v960_v26, 2 }
  0xcb   : >> { %v862_v34 = vsel %vm318_vm5, %v2197_v12, %v2196_v2  ;;  %v797_v45 = vadd.f32 %v786_v20, %v764_v15  ;;  %v827_v2 = vsel %vm278_vm4, %v824_v41, %v2200_v29  ;;  %v870_v18 = vadd.f32 %v856_v38, %v837_v16  ;;  %v922_v15 = vpop.permute.xlu1 %921 }
  0xcc   : >> { %v784_v22 = vsel %vm318_vm5, %v2199_v44, %v2198_v3  ;;  %v1898_v30 = vadd.f32 %v910_v11, %v871_v42  ;;  %v941_v20 = vrot.slane %v927_v40, 1  ;;  %v2201_v23 = vmov %v2197_v12 }
  0xcd   : >> { %v807_v31 = vadd.f32 %v1731_v25, %v797_v45  ;;  %v796_v33 = vadd.f32 %v784_v22, %v1637_v55  ;;  %v2202_v17 = vrot.slane %v1765_v10, 2  ;;  %v911_v0 = vmul.f32 %v1424_v7, %v897_v39  ;;  %v907_v22 = vpop.permute.xlu0 %906 }
  0xce   : >> { %v1908_v12 = vadd.f32 %v909_v19, %v870_v18  ;;  %v1912_v25 = vmul.f32 %v1429_v8, %v897_v39  ;;  %v1915_v55 = vmul.f32 %v1434_v9, %v897_v39  ;;  %v929_v41 = vmul.f32 %v1429_v8, %v922_v15 }
  0xcf   : >> { %v860_v3 = vsel %vm318_vm5, %v2202_v17, %v2201_v23  ;;  %v840_v11 = vadd.f32 %v829_v58, %v807_v31  ;;  %v806_v29 = vadd.f32 %v1757_v13, %v796_v33  ;;  %v962_v1 = vmul.f32 %v1434_v9, %v922_v15 }
  0xd0   : >> { %v2203_v10 = vrot.slane %v1632_v36, 1  ;;  %v2204_v38 = vrot.slane %v1664_v14, 1  ;;  %v939_v13 = vrot.slane %v1912_v25, 1  ;;  %v972_v16 = vrot.slane %v1915_v55, 2 }
  0xd1   : >> { %v873_v26 = vadd.f32 %v862_v34, %v840_v11  ;;  %v839_v58 = vadd.f32 %v827_v2, %v806_v29  ;;  %v945_v45 = vrot.slane %v929_v41, 1  ;;  %v978_v39 = vrot.slane %v962_v1, 2 }
  0xd2   : >> { %v755_v19 = vsel %vm278_vm4, %v2204_v38, %v2203_v10  ;;  %v2205_v40 = vrot.slane %v1635_v48, 2  ;;  %v2206_v44 = vrot.slane %v1667_v35, 2  ;;  %v942_v34 = vsel %vm278_vm4, %v939_v13, %v941_v20 }
  0xd3   : >> { %v765_v42 = vadd.f32 %v755_v19, %v1661_v60  ;;  %v917_v14 = vadd.f32 %v912_v43, %v873_v26  ;;  %v872_v18 = vadd.f32 %v860_v3, %v839_v58  ;;  %v975_v60 = vsel %vm318_vm5, %v972_v16, %v974_v49 }
  0xd4   : >> { %v788_v36 = vsel %vm318_vm5, %v2206_v44, %v2205_v40  ;;  %v803_v31 = vmul.f32 %v1409_v4, %v1767_v57  ;;  %v2207_v48 = vrot.slane %v1781_v63, 1  ;;  %v2208_v35 = vrot.slane %v1807_v21, 1 }
  0xd5   : >> { %v798_v2 = vadd.f32 %v788_v36, %v765_v42  ;;  %v2209_v43 = vrot.slane %v1784_v53, 2  ;;  %v2210_v15 = vrot.slane %v1811_v24, 2  ;;  %v916_v17 = vadd.f32 %v911_v0, %v872_v18 }
  0xd6   : >> { %v831_v33 = vsel %vm278_vm4, %v2208_v35, %v2207_v48  ;;  %v913_v3 = vmul.f32 %v1424_v7, %v907_v22  ;;  %v928_v11 = vmul.f32 %v1429_v8, %v907_v22  ;;  %v961_v29 = vmul.f32 %v1434_v9, %v907_v22 }
  0xd7   : >> { %v864_v23 = vsel %vm318_vm5, %v2210_v15, %v2209_v43  ;;  %v808_v57 = vadd.f32 %v803_v31, %v798_v2  ;;  %v2211_v63 = vrot.slane %v1524_v27, 1  ;;  %v2212_v21 = vrot.slane %v1547_v50, 1  ;;  %v2224_v15 = vld [vmem:[#allocation17_spill] sm:$0xff] }
  0xd8   : >> { %v2213_v53 = vrot.slane %v1587_v28, 1  ;;  %v2215_v0 = vrot.slane %v1532_v37, 2  ;;  %v2216_v10 = vrot.slane %v1550_v51, 2  ;;  %v954_v19 = vadd.f32 %v942_v34, %v916_v17 }
  0xd9   : >> { %v415_v41 = vsel %vm278_vm4, %v2212_v21, %v2211_v63  ;;  %v2214_v24 = vmov %v2211_v63  ;;  %v943_v26 = vrot.slane %v928_v11, 1  ;;  %v976_v58 = vrot.slane %v961_v29, 2 }
  0xda   : >> { %v417_v1 = vsel %vm278_vm4, %v2214_v24, %v2213_v53  ;;  %v454_v38 = vsel %vm318_vm5, %v2216_v10, %v2215_v0  ;;  %v429_v42 = vadd.f32 %v415_v41, %v1555_v54  ;;  %v841_v50 = vadd.f32 %v831_v33, %v808_v57  ;;  %v2228_v53 = vld [vmem:[#allocation15_spill] sm:$0xff] }
  0xdb   : >> { %v430_v40 = vadd.f32 %v417_v1, %v1552_v52  ;;  %v2217_v28 = vrot.slane %v1595_v32, 2  ;;  %v2218_v27 = vmov %v2215_v0  ;;  %v513_v36 = vmul.f32 %v1424_v7, %v1653_v56 }
  0xdc   : >> { %v1977_v51 = vadd.f32 %v975_v60, %v954_v19  ;;  %v944_v22 = vsel %vm278_vm4, %v941_v20, %v943_v26  ;;  %v946_v18 = vsel %vm278_vm4, %v943_v26, %v945_v45  ;;  %v977_v54 = vsel %vm318_vm5, %v974_v49, %v976_v58  ;;  %v2221_v20 = vld [vmem:[#allocation19_spill] sm:$0xff]  ;;  %v2230_v19 = vld [vmem:[#allocation14_spill] sm:$0xff] }
  0xdd   : >> { %v456_v44 = vsel %vm318_vm5, %v2218_v27, %v2217_v28  ;;  %v874_v34 = vadd.f32 %v864_v23, %v841_v50  ;;  %v955_v2 = vadd.f32 %v944_v22, %v917_v14  ;;  %v979_v52 = vsel %vm318_vm5, %v976_v58, %v978_v39  ;;  %v2235_v27 = vld [vmem:[#allocation23_spill] sm:$0xff] }
  0xde   : >> { %v468_v32 = vadd.f32 %v454_v38, %v429_v42  ;;  %v469_v31 = vadd.f32 %v456_v44, %v430_v40  ;;  %v514_v37 = vmul.f32 %v1424_v7, %v1643_v46  ;;  %v2219_v48 = vrot.slane %v1674_v62, 1  ;;  %v2229_v38 = vld [vmem:[#allocation13_spill] sm:$0xff]  ;;  %v2233_v40 = vld [vmem:[#allocation11_spill] sm:$0xff] }
  0xdf   : >> { %v2220_v60 = vrot.slane %v1700_v59, 1  ;;  %v2222_v33 = vrot.slane %v2221_v20, 1  ;;  %v918_v14 = vadd.f32 %v913_v3, %v874_v34  ;;  %v1995_v43 = vadd.f32 %v977_v54, %v955_v2  ;;  %v2227_v59 = vld [vmem:[#allocation20_spill] sm:$0xff]  ;;  %v2238_v34 = vld [vmem:[#allocation21_spill] sm:$0xff] }
  0xe0   : >> { %v2223_v45 = vmov %v2219_v48  ;;  %v518_v39 = vadd.f32 %v513_v36, %v468_v32  ;;  %v2225_v23 = vrot.slane %v2224_v15, 1  ;;  %v519_v29 = vadd.f32 %v514_v37, %v469_v31  ;;  %v2241_v31 = vld [vmem:[#allocation24_spill] sm:$0xff] }
  0xe1   : >> { %v548_v35 = vsel %vm278_vm4, %v2220_v60, %v2219_v48  ;;  %v550_v49 = vsel %vm278_vm4, %v2223_v45, %v2222_v33  ;;  %v2226_v17 = vmov %v2222_v33  ;;  %v573_v63 = vmul.f32 %v1434_v9, %v1653_v56  ;;  %v2231_v56 = vld [vmem:[#allocation12_spill] sm:$0xff]  ;;  %v2243_v48 = vld [vmem:[#allocation18_spill] sm:$0xff] }
  0xe2   : >> { %v552_v11 = vsel %vm278_vm4, %v2226_v17, %v2225_v23  ;;  %v574_v62 = vmul.f32 %v1434_v9, %v1643_v46  ;;  %v956_v21 = vadd.f32 %v946_v18, %v918_v14  ;;  %v1000_v3 = vrot.slane %v1995_v43, 1 }
  0xe3   : >> { %v564_v57 = vadd.f32 %v552_v11, %v2227_v59  ;;  %v562_v41 = vadd.f32 %v548_v35, %v518_v39  ;;  %v575_v24 = vmul.f32 %v1434_v9, %v2228_v53  ;;  %v563_v1 = vadd.f32 %v550_v49, %v519_v29  ;;  %v2247_v11 = vld [vmem:[#allocation25_spill] sm:$0xff] }
  0xe4   : >> { %v585_v0 = vrot.slane %v573_v63, 2  ;;  %v586_v10 = vrot.slane %v574_v62, 2  ;;  %v432_v26 = vadd.f32 %v2230_v19, %v2229_v38  ;;  %v2012_v58 = vadd.f32 %v979_v52, %v956_v21  ;;  %v2248_v63 = vld [vmem:[#allocation22_spill] sm:$0xff] }
  0xe5   : >> { %v588_v42 = vrot.slane %v575_v24, 2  ;;  %v2232_v50 = vrot.slane %v2231_v56, 2  ;;  %v2234_v46 = vrot.slane %v2233_v40, 2  ;;  %v2236_v44 = vrot.slane %v2235_v27, 1 }
  0xe6   : >> { %v2237_v36 = vmov %v2225_v23  ;;  %v587_v18 = vsel %vm318_vm5, %v585_v0, %v586_v10  ;;  %v2239_v2 = vrot.slane %v2238_v34, 1  ;;  %v2242_v37 = vrot.slane %v2241_v31, 2  ;;  %v2246_v23 = vld [vmem:[#allocation16_spill] sm:$0xff] }
  0xe7   : >> { %v460_v28 = vsel %vm318_vm5, %v2234_v46, %v2232_v50  ;;  %v554_v22 = vsel %vm278_vm4, %v2237_v36, %v2236_v44  ;;  %v2240_v52 = vmov %v2236_v44  ;;  %v2244_v60 = vrot.slane %v2243_v48, 2 }
  0xe8   : >> { %v471_v54 = vadd.f32 %v460_v28, %v432_v26  ;;  %v556_v32 = vsel %vm278_vm4, %v2240_v52, %v2239_v2  ;;  %v1002_v20 = vrot.slane %v2012_v58, 1  ;;  %v589_v33 = vsel %vm318_vm5, %v586_v10, %v588_v42 }
  0xe9   : >> { %v593_v35 = vsel %vm318_vm5, %v2244_v60, %v2242_v37  ;;  %v2245_v45 = vmov %v2244_v60  ;;  %v601_v14 = vadd.f32 %v587_v18, %v562_v41  ;;  %v602_v39 = vadd.f32 %v589_v33, %v563_v1 }
  0xea   : >> { %v591_v49 = vsel %vm318_vm5, %v588_v42, %v2245_v45  ;;  %v521_v17 = vadd.f32 %v2246_v23, %v471_v54  ;;  %v566_v29 = vadd.f32 %v556_v32, %v2247_v11  ;;  %v2249_v62 = vrot.slane %v2248_v63, 2  ;;  %v2259_v23 = vld [vmem:[#allocation8_spill] sm:$0xff] }
  0xeb   : >> { %v603_v15 = vadd.f32 %v591_v49, %v564_v57  ;;  %v611_v59 = vrot.slane %v601_v14, 1  ;;  %v2250_v21 = vmov %v2242_v37  ;;  %v2251_v24 = vrot.slane %v1838_v5, 1 }
  0xec   : >> { %v595_v53 = vsel %vm318_vm5, %v2250_v21, %v2249_v62  ;;  %v2252_v0 = vrot.slane %v1858_v61, 1  ;;  %v612_v1 = vrot.slane %v602_v39, 1  ;;  %v565_v19 = vadd.f32 %v554_v22, %v521_v17  ;;  %v2261_v17 = vld [vmem:[#allocation10_spill] sm:$0xff]  ;;  %v2262_v21 = vld [vmem:[#allocation7_spill] sm:$0xff] }
  0xed   : >> { %v2253_v57 = vmov %v2251_v24  ;;  %v614_v38 = vrot.slane %v603_v15, 1  ;;  %v605_v26 = vadd.f32 %v595_v53, %v566_v29  ;;  %v2254_v50 = vrot.slane %v1841_v47, 2 }
  0xee   : >> { %v938_v10 = vsel %vm278_vm4, %v2252_v0, %v2251_v24  ;;  %v940_v41 = vsel %vm278_vm4, %v2253_v57, %v939_v13  ;;  %v2255_v61 = vrot.slane %v1861_v6, 2  ;;  %v613_v13 = vsel %vm278_vm4, %v611_v59, %v612_v1 }
  0xef   : >> { %v952_v42 = vadd.f32 %v938_v10, %v1908_v12  ;;  %v953_v56 = vadd.f32 %v940_v41, %v1898_v30  ;;  %v2256_v5 = vmov %v2254_v50  ;;  %v615_v46 = vsel %vm278_vm4, %v612_v1, %v614_v38 }
  0xf0   : >> { %v971_v40 = vsel %vm318_vm5, %v2255_v61, %v2254_v50  ;;  %v973_v25 = vsel %vm318_vm5, %v2256_v5, %v972_v16  ;;  %v604_v28 = vadd.f32 %v593_v35, %v565_v19  ;;  %v618_v12 = vrot.slane %v605_v26, 1 }
  0xf1   : >> { %v625_v27 = vmax.f32 %v601_v14, %v613_v13  ;;  %v626_v30 = vmax.f32 %v602_v39, %v615_v46  ;;  %v985_v44 = vadd.f32 %v971_v40, %v952_v42  ;;  %v986_v36 = vadd.f32 %v973_v25, %v953_v56 }
  0xf2   : >> { %v616_v22 = vrot.slane %v604_v28, 1  ;;  %v998_v6 = vrot.slane %v1977_v51, 1  ;;  %v1003_v47 = vsel %vm278_vm4, %v1000_v3, %v1002_v20  ;;  %v2257_v48 = vmov 0.0|0.0  }
  0xf3   : >> { %v1306_v18 = vpack.c.bf16 %v626_v30, %v625_v27  ;;  %v995_v54 = vrot.slane %v985_v44, 1  ;;  %v996_v55 = vrot.slane %v986_v36, 1  ;;  %v1012_v45 = vmax.f32 %v1995_v43, %v1003_v47  ;;  %v2260_v43 = vld [vmem:[#allocation9_spill] sm:$0xff] }
  0xf4   : >> { %v617_v16 = vsel %vm278_vm4, %v614_v38, %v616_v22  ;;  %v619_v34 = vsel %vm278_vm4, %v616_v22, %v618_v12  ;;  %v1001_v2 = vsel %vm278_vm4, %v998_v6, %v1000_v3  ;;  %v2258_v39 = vmov 0.0  }
  0xf5   : >> { %1307 = vmatpush3.bf16.msra.mxu0 %v1306_v18  ;;  %v627_v52 = vmax.f32 %v603_v15, %v617_v16  ;;  %v628_v32 = vmax.f32 %v604_v28, %v619_v34  ;;  %v997_v31 = vsel %vm278_vm4, %v995_v54, %v996_v55  ;;  %v999_v37 = vsel %vm278_vm4, %v996_v55, %v998_v6 }
  0xf6   : >> { %1308 = vmatprep.subr.bf16.mxu0 %v2257_v48  ;;  %v1009_v60 = vmax.f32 %v985_v44, %v997_v31  ;;  %v1010_v35 = vmax.f32 %v986_v36, %v999_v37  ;;  %v1011_v33 = vmax.f32 %v1977_v51, %v1001_v2  ;;  %v629_v15 = vmax.f32 %v605_v26, %v618_v12 }
  0xf7   : >> { %v1309_v49 = vpack.c.bf16 %v628_v32, %v627_v52  ;;  %v1013_v51 = vmax.f32 %v2012_v58, %v1002_v20 }
  0xf8   : >> { %v1312_v14 = vpack.c.bf16 %v1010_v35, %v1009_v60  ;;  %v1315_v3 = vpack.c.bf16 %v1012_v45, %v1011_v33 }
  0xf9   : >> { %1310 = vmatpush3.bf16.msra.mxu0 %v1309_v49 }
  0xfa   : >> { %1275 = vmatprep.subr.mxu0 %v2258_v39  ;;  %1313 = vmatpush3.bf16.msra.mxu1 %v1312_v14 }
  0xfb   : >> { %1314 = vmatprep.subr.bf16.mxu1 %v2257_v48 }
  0xfd   : >> { %1276 = vmatpush3.msk.msra.mxu0 %vm278_vm4, %v629_v15 }
  0xfe   : >> { %1316 = vmatpush3.bf16.msra.mxu1 %v1315_v3  ;;  %1278 = vmatmul.mubr.msk.f32.vlgmr.msra.gmra.mrb[0].mxu0 %vm630_vm6, %v2259_v23 }
  0xff   : >> { %1294 = vmatprep.subr.mxu1 %v2258_v39  ;;  %1280 = vmatprep.mubr.msk.f32.mxu0 %vm1361_vm3, %v2258_v39 }
 0x102   : >> { %1295 = vmatpush3.msk.msra.mxu1 %vm278_vm4, %v1013_v51  ;;  %1281 = vmatmul.mubr.msk.f32.gmra.mrb[2].mxu0 %vm630_vm6, %v2260_v43 }
 0x103   : >> { %1297 = vmatmul.mubr.msk.f32.vlgmr.msra.gmra.mrb[0].mxu1 %vm630_vm6, %v2259_v23  ;;  %1283 = vmatprep.mubr.msk.f32.mxu0 %vm1361_vm3, %v2258_v39 }
 0x104   : >> { %1299 = vmatprep.mubr.msk.f32.mxu1 %vm1361_vm3, %v2258_v39 }
 0x106   : >> { %1284 = vmatmul.mubr.msk.f32.gmra.mrb[4].mxu0 %vm630_vm6, %v2261_v17 }
 0x107   : >> { %1300 = vmatmul.mubr.msk.f32.gmra.mrb[2].mxu1 %vm630_vm6, %v2260_v43 }
 0x108   : >> { %1302 = vmatprep.mubr.msk.f32.mxu1 %vm1361_vm3, %v2258_v39 }
 0x10b   : >> { %1303 = vmatmul.mubr.msk.f32.gmra.mrb[4].mxu1 %vm630_vm6, %v2261_v17 }
 0x1d1   : >> { %v709_v58 = vpop.f32.mrb[0].mxu0 }
 0x1d2   : >> { %v1279_v20 = vpop.f32.mrb[1].mxu0 }
 0x1d5   : >> { %v714_v11 = vpop.f32.mrb[2].mxu0 }
 0x1d6   : >> { %v1083_v29 = vpop.f32.mrb[0].mxu1  ;;  %v1282_v59 = vpop.f32.mrb[3].mxu0 }
 0x1d7   : >> { %v1097_v63 = vmax.f32 %v709_v58, %v1083_v29  ;;  %v1298_v62 = vpop.f32.mrb[1].mxu1 }
 0x1d9   : >> { %v1106_v53 = vadd.f32 %v2262_v21, %v1097_v63  ;;  %v719_v24 = vpop.f32.mrb[4].mxu0 }
 0x1da   : >> { %v1088_v0 = vpop.f32.mrb[2].mxu1  ;;  %v1285_v10 = vpop.f32.mrb[5].mxu0 }
 0x1db   : >> { %v1109_v57 = vmax.f32 %v1106_v53, 0.0  ;;  %v1098_v41 = vmax.f32 %v714_v11, %v1088_v0  ;;  %v1301_v1 = vpop.f32.mrb[3].mxu1 }
 0x1dd   : >> { %1115 = vst.msk [vmem:[%s1113_s20] sm:$0xff] %vm1114_vm7, %v1109_v57  ;;  %v1107_v38 = vadd.f32 %v2262_v21, %v1098_v41 }
 0x1de   : >> { %v1093_v19 = vpop.f32.mrb[4].mxu1 }
 0x1df   : >> { %v1110_v26 = vmax.f32 %v1107_v38, 0.0  ;;  %v1099_v42 = vmax.f32 %v719_v24, %v1093_v19  ;;  %v1304_v56 = vpop.f32.mrb[5].mxu1  ;;  %203 = sbr.rel (!%p201_p4) target bundleno = 18 (0x12), region = 74 }
 0x1e1   : >> { %1116 = vst.msk [vmem:[%s1113_s20 + $0x8] sm:$0xff] %vm1114_vm7, %v1110_v26  ;;  %v1108_v50 = vadd.f32 %v2262_v21, %v1099_v42 }
 0x1e3   : >> { %v1111_v61 = vmax.f32 %v1108_v50, 0.0 }
 0x1e5   : >> { %1118 = vst.msk [vmem:[%s1113_s20 + $0x10] sm:$0xf] %vm1117_vm8, %v1111_v61 }
 0x1e6 PF: > { %s13_s12 = sadd.s32 1, %s1352_s12  }
 0x1e7   : > { %p10_p5 = scmp.ge.s32.totalorder %s13_s12, 4  }
 0x1e9   :  { %12 = sbr.rel (!%p10_p5) target bundleno = 1 (0x1), region = 85 }

// kernel: graph_cnn_forward.12
= control target key start
LH: loop header
LB: loop body
LE: loop exit
PB: predicated region body
PF: predicated region fallthrough
CT: control target
= control target key end

     0   :  { %s2790_s12 = smov 0   ;;  %s3292_s0 = inlined_call_operand.vmem [shape: f32[2,22,22,16], index: 0, kind: input, shape index: {}]   ;;  %s3293_s1 = inlined_call_operand.vmem [shape: f32[9,16,32], index: 1, kind: input, shape index: {}]   ;;  %s3294_s2 = inlined_call_operand.vmem [shape: f32[1,32], index: 2, kind: input, shape index: {}]   ;;  %s3295_s3 = inlined_call_operand.vmem [shape: f32[2,10,10,32], index: 3, kind: output, shape index: {}]  }
   0x1 LB: > { %s2128_s13 = sadd.s32 4294967295, %s2760_s12   ;;  %p2132_p0 = scmp.ge.s32.totalorder %s2760_s12, 1  ;;  %s2760_s12 = sphi %s2790_s12, %s13_s12  }
   0x2   : > { %p137_p1 = scmp.lt.s32.totalorder %s2760_s12, 3 }
   0x4   : > { %p138_p2 = pnand %p2132_p0, %p137_p1 }
   0x5   : > { %p161_p3 = scmp.lt.s32.totalorder (!%p138_p2), %s2128_s13, 1  ;;  %v2801_v0 = vld [vmem:[%s3293_s1] sm:$0xff] (!%p138_p2)  ;;  %v2806_v1 = vld [vmem:[%s3293_s1 + $0x8] sm:$0xff] (!%p138_p2)  ;;  %v2811_v2 = vld [vmem:[%s3293_s1 + $0x10] sm:$0xff] (!%p138_p2)  ;;  %v190_v3 = vlaneseq (!%p138_p2)  ;;  %v2766_v25 = vmov (!%p138_p2), 0.0   ;;  %s2907_s7 = smov (!%p138_p2), 0  }
   0x6   : > { %141 = sbr.rel (%p138_p2) target bundleno = 907 (0x38b), region = 32  ;;  %v2816_v4 = vld [vmem:[%s3293_s1 + $0x18] sm:$0xff] (!%p138_p2)  ;;  %v2821_v5 = vld [vmem:[%s3293_s1 + $0x20] sm:$0xff] (!%p138_p2)  ;;  %v2826_v6 = vld [vmem:[%s3293_s1 + $0x28] sm:$0xff] (!%p138_p2) }
   0x7   : > { %v2831_v7 = vld [vmem:[%s3293_s1 + $0x30] sm:$0xff] (!%p138_p2)  ;;  %v2836_v8 = vld [vmem:[%s3293_s1 + $0x38] sm:$0xff] (!%p138_p2)  ;;  %v2841_v9 = vld [vmem:[%s3293_s1 + $0x40] sm:$0xff] (!%p138_p2)  ;;  %v191_v10 = vand.u32 (!%p138_p2), 127, %v190_v3  ;;  %v193_v11 = vshrl.u32 (!%p138_p2), %v190_v3, 7 }
   0x8   : > { %v2846_v12 = vld [vmem:[%s3293_s1 + $0x48] sm:$0xff] (!%p138_p2)  ;;  %v2851_v13 = vld [vmem:[%s3293_s1 + $0x50] sm:$0xff] (!%p138_p2)  ;;  %v2856_v14 = vld [vmem:[%s3293_s1 + $0x58] sm:$0xff] (!%p138_p2) }
   0x9   : > { %v2861_v15 = vld [vmem:[%s3293_s1 + $0x60] sm:$0xff] (!%p138_p2)  ;;  %v2866_v16 = vld [vmem:[%s3293_s1 + $0x68] sm:$0xff] (!%p138_p2)  ;;  %v2871_v17 = vld [vmem:[%s3293_s1 + $0x70] sm:$0xff] (!%p138_p2)  ;;  %v194_v18 = vadd.s32 (!%p138_p2), 8, %v193_v11  ;;  %v195_v19 = vmul.u32 (!%p138_p2), 2, %v193_v11 }
   0xa   : > { %v2876_v20 = vld [vmem:[%s3293_s1 + $0x78] sm:$0xff] (!%p138_p2)  ;;  %v2881_v21 = vld [vmem:[%s3293_s1 + $0x80] sm:$0xff] (!%p138_p2)  ;;  %v2886_v22 = vld [vmem:[%s3293_s1 + $0x88] sm:$0xff] (!%p138_p2) }
   0xb   : > { %v2896_v23 = vld [vmem:[%s3294_s2] ss:$0 sm:$0xff] (!%p138_p2)  ;;  %v196_v24 = vmul.u32 (!%p138_p2), 2, %v194_v18  ;;  %vm197_vm0 = vcmp.eq.s32.totalorder (!%p138_p2), %v191_v10, %v195_v19 }
   0xc   : > { %v2903_v26 = vsel (!%p138_p2), %vm197_vm0, 1.0, %v2766_v25 }
   0xd   : > { %s3300_s13 = smov (!%p161_p3, %s2128_s13), 1  ;;  %vm198_vm1 = vcmp.eq.s32.totalorder %v191_v10, %v196_v24 }
   0xe   : > { %s2728_s11 = smul.u32 528, %s3300_s13  ;;  %v2905_v27 = vsel %vm198_vm1, 1.0, %v2766_v25 }
   0xf   : > { %s2729_s20 = smul.u32 160, %s3300_s13 }
  0x10   : > { %s2891_s29 = scalar_lea.vmem %s3292_s0, %s2728_s11 }
  0x11   : > { %s2901_s6 = scalar_lea.vmem %s3295_s3, %s2729_s20 }
  0x12 LB: >> { %v2914_v28 = vpack.c.bf16 %v2816_v4, %v2811_v2  ;;  %v2767_v29 = vmov 0.0|0.0   ;;  %vm2768_vm2 = vmmov 0   ;;  %v3296_v30 = vmov 0.0   ;;  %s2138_s8 = smul.u32 48, %s2764_s7  ;;  %s2215_s10 = sshll.u32 %s2764_s7, 4  ;;  %s2764_s7 = sphi %s2907_s7, %s208_s7  }
  0x13   : >> { %2570 = vmatprep.subr.bf16.mxu0 %v2767_v29  ;;  %2322 = vmatprep.mubr.msk.f32.mxu0 %vm2768_vm2, %v3296_v30  ;;  %vm218_vm3 = vcmask 1046528   ;;  %vm224_vm4 = vcmask 130048   ;;  %v2930_v36 = vpack.c.bf16 %v2806_v1, %v2801_v0  ;;  %v2947_v40 = vpack.c.bf16 %v2826_v6, %v2821_v5  ;;  %s2047_s11 = scalar_lea.vmem %s2901_s6, %s2215_s10  ;;  %s208_s7 = sadd.s32 1, %s2764_s7  }
  0x14   : >> { %2572 = vmatpush3.bf16.msra.mxu0 %v2914_v28  ;;  %s2923_s9 = scalar_lea.vmem %s2891_s29, %s2138_s8  ;;  %vm397_vm5 = vcmask 1045504   ;;  %v2963_v45 = vpack.c.bf16 %v2836_v8, %v2831_v7  ;;  %v2982_v48 = vpack.c.bf16 %v2846_v12, %v2841_v9  ;;  %v3014_v55 = vpack.c.bf16 %v2856_v14, %v2851_v13  ;;  %p205_p4 = scmp.ge.s32.totalorder %s208_s7, 10  }
  0x15   : >> { %2573 = vmatprep.subr.bf16.mxu0 %v2767_v29  ;;  %v212_v31 = vld [vmem:[%s2923_s9] sm:$0xff]  ;;  %v213_v32 = vld [vmem:[%s2923_s9 + $0x8] sm:$0xff]  ;;  %v214_v33 = vld [vmem:[%s2923_s9 + $0x10] sm:$0x3f]  ;;  %v3044_v61 = vpack.c.bf16 %v2866_v16, %v2861_v15  ;;  %v3069_v3 = vpack.c.bf16 %v2876_v20, %v2871_v17  ;;  %vm1078_vm6 = vcmask 154624   ;;  %vm1085_vm7 = vcmask 1042432  }
  0x16   : >> { %v219_v34 = vrot.slane %v212_v31, 1  ;;  %v220_v35 = vrot.slane %v213_v32, 1  ;;  %v222_v37 = vrot.slane %v214_v33, 1  ;;  %v398_v41 = vrot.slane %v212_v31, 2  ;;  %v2978_v47 = vld [vmem:[%s2923_s9 + $0x18] sm:$0xff]  ;;  %v2989_v49 = vld [vmem:[%s2923_s9 + $0x20] sm:$0xff]  ;;  %2441 = vmatprep.mubr.msk.f32.mxu1 %vm1078_vm6, %v2903_v26 }
  0x17   : >> { %v399_v42 = vrot.slane %v213_v32, 2  ;;  %v401_v44 = vrot.slane %v214_v33, 2  ;;  %v590_v50 = vrot.slane %v2978_v47, 1  ;;  %v591_v51 = vrot.slane %v2989_v49, 1  ;;  %v3000_v52 = vld [vmem:[%s2923_s9 + $0x28] sm:$0x3f] }
  0x18   : >> { %v221_v38 = vsel %vm218_vm3, %v219_v34, %v220_v35  ;;  %v223_v39 = vsel %vm218_vm3, %v220_v35, %v222_v37  ;;  %v3005_v53 = vrot.slane %v3000_v52, 1  ;;  %v684_v57 = vrot.slane %v2978_v47, 2  ;;  %v3065_v63 = vld [vmem:[%s2923_s9 + $0x30] sm:$0xff]  ;;  %v3076_v10 = vld [vmem:[%s2923_s9 + $0x38] sm:$0xff]  ;;  %v3087_v19 = vld [vmem:[%s2923_s9 + $0x40] sm:$0x3f] }
  0x19   : >> { %2323 = vmatmul.mubr.msk.f32.vlgmr.msra.gmra.mrb[0].mxu0 %vm224_vm4, %v221_v38  ;;  %v400_v43 = vsel %vm397_vm5, %v398_v41, %v399_v42  ;;  %v402_v46 = vsel %vm397_vm5, %v399_v42, %v401_v44  ;;  %v3010_v54 = vsel %vm218_vm3, %v590_v50, %v591_v51  ;;  %v685_v58 = vrot.slane %v2989_v49, 2 }
  0x1a   : >> { %2325 = vmatprep.mubr.msk.f32.mxu0 %vm2768_vm2, %v3296_v30  ;;  %2575 = vmatpush3.bf16.msra.mxu0 %v2930_v36  ;;  %v3022_v56 = vsel %vm218_vm3, %v591_v51, %v3005_v53  ;;  %v3035_v59 = vrot.slane %v3000_v52, 2  ;;  %v876_v11 = vrot.slane %v3065_v63, 1  ;;  %v877_v18 = vrot.slane %v3076_v10, 1 }
  0x1b   : >> { %2576 = vmatprep.subr.bf16.mxu0 %v2767_v29  ;;  %v3040_v60 = vsel %vm397_vm5, %v684_v57, %v685_v58  ;;  %v3092_v24 = vrot.slane %v3087_v19, 1  ;;  %v971_v34 = vrot.slane %v3076_v10, 2  ;;  %v3121_v35 = vrot.slane %v3087_v19, 2 }
  0x1c   : >> { %v3052_v62 = vsel %vm397_vm5, %v685_v58, %v3035_v59  ;;  %v3097_v25 = vsel %vm218_vm3, %v876_v11, %v877_v18  ;;  %vm2050_vm8 = vcmask 254976   ;;  %vm2048_vm9 = vcmask 261120  }
  0x1d   : >> { %2326 = vmatmul.mubr.msk.f32.gmra.mrb[2].mxu0 %vm224_vm4, %v223_v39  ;;  %v3134_v38 = vsel %vm397_vm5, %v971_v34, %v3121_v35 }
  0x1e   : >> { %2328 = vmatprep.mubr.msk.f32.mxu0 %vm2768_vm2, %v3296_v30 }
  0x21   : >> { %2329 = vmatmul.mubr.msk.f32.gmra.mrb[4].mxu0 %vm224_vm4, %v222_v37 }
  0x22   : >> { %2335 = vmatprep.mubr.msk.f32.mxu0 %vm2768_vm2, %v3296_v30 }
  0x25   : >> { %2336 = vmatmul.mubr.msk.f32.vlgmr.msra.gmra.mrb[0].mxu0 %vm224_vm4, %v212_v31  ;;  %v3101_v31 = vpack.c.bf16 %v2886_v22, %v2881_v21 }
  0x26   : >> { %2338 = vmatprep.mubr.msk.f32.mxu0 %vm2768_vm2, %v3296_v30  ;;  %2578 = vmatpush3.bf16.msra.mxu0 %v2947_v40 }
  0x27   : >> { %2579 = vmatprep.subr.bf16.mxu0 %v2767_v29 }
  0x29   : >> { %2339 = vmatmul.mubr.msk.f32.gmra.mrb[2].mxu0 %vm224_vm4, %v213_v32  ;;  %v3109_v32 = vsel %vm218_vm3, %v877_v18, %v3092_v24 }
  0x2a   : >> { %2341 = vmatprep.mubr.msk.f32.mxu0 %vm2768_vm2, %v3296_v30 }
  0x2d   : >> { %2342 = vmatmul.mubr.msk.f32.gmra.mrb[4].mxu0 %vm224_vm4, %v214_v33  ;;  %v970_v33 = vrot.slane %v3065_v63, 2 }
  0x2e   : >> { %2348 = vmatprep.mubr.msk.f32.mxu0 %vm2768_vm2, %v3296_v30 }
  0x2f   : >> { %v3126_v37 = vsel %vm397_vm5, %v970_v33, %v971_v34 }
  0x31   : >> { %2349 = vmatmul.mubr.msk.f32.vlgmr.msra.gmra.mrb[0].mxu0 %vm224_vm4, %v400_v43 }
  0x32   : >> { %2351 = vmatprep.mubr.msk.f32.mxu0 %vm2768_vm2, %v3296_v30  ;;  %2581 = vmatpush3.bf16.msra.mxu0 %v2963_v45 }
  0x33   : >> { %2582 = vmatprep.subr.bf16.mxu0 %v2767_v29 }
  0x35   : >> { %2352 = vmatmul.mubr.msk.f32.gmra.mrb[2].mxu0 %vm224_vm4, %v402_v46 }
  0x36   : >> { %2354 = vmatprep.mubr.msk.f32.mxu0 %vm2768_vm2, %v3296_v30 }
  0x39   : >> { %2355 = vmatmul.mubr.msk.f32.gmra.mrb[4].mxu0 %vm224_vm4, %v401_v44 }
  0x3a   : >> { %2361 = vmatprep.mubr.msk.f32.mxu0 %vm2768_vm2, %v3296_v30 }
  0x3d   : >> { %2362 = vmatmul.mubr.msk.f32.vlgmr.msra.gmra.mrb[0].mxu0 %vm224_vm4, %v2978_v47 }
  0x3e   : >> { %2364 = vmatprep.mubr.msk.f32.mxu0 %vm2768_vm2, %v3296_v30  ;;  %2584 = vmatpush3.bf16.msra.mxu0 %v2982_v48 }
  0x3f   : >> { %2585 = vmatprep.subr.bf16.mxu0 %v2767_v29 }
  0x41   : >> { %2365 = vmatmul.mubr.msk.f32.gmra.mrb[2].mxu0 %vm224_vm4, %v2989_v49 }
  0x42   : >> { %2367 = vmatprep.mubr.msk.f32.mxu0 %vm2768_vm2, %v3296_v30 }
  0x45   : >> { %2368 = vmatmul.mubr.msk.f32.gmra.mrb[4].mxu0 %vm224_vm4, %v3000_v52 }
  0x46   : >> { %2374 = vmatprep.mubr.msk.f32.mxu0 %vm2768_vm2, %v3296_v30 }
  0x49   : >> { %2375 = vmatmul.mubr.msk.f32.vlgmr.msra.gmra.mrb[0].mxu0 %vm224_vm4, %v3010_v54 }
  0x4a   : >> { %2377 = vmatprep.mubr.msk.f32.mxu0 %vm2768_vm2, %v3296_v30  ;;  %2587 = vmatpush3.bf16.msra.mxu0 %v3014_v55 }
  0x4b   : >> { %2588 = vmatprep.subr.bf16.mxu0 %v2767_v29 }
  0x4d   : >> { %2378 = vmatmul.mubr.msk.f32.gmra.mrb[2].mxu0 %vm224_vm4, %v3022_v56 }
  0x4e   : >> { %2380 = vmatprep.mubr.msk.f32.mxu0 %vm2768_vm2, %v3296_v30 }
  0x51   : >> { %2381 = vmatmul.mubr.msk.f32.gmra.mrb[4].mxu0 %vm224_vm4, %v3005_v53 }
  0x52   : >> { %2387 = vmatprep.mubr.msk.f32.mxu0 %vm2768_vm2, %v3296_v30 }
  0x55   : >> { %2388 = vmatmul.mubr.msk.f32.vlgmr.msra.gmra.mrb[0].mxu0 %vm224_vm4, %v3040_v60 }
  0x56   : >> { %2390 = vmatprep.mubr.msk.f32.mxu0 %vm2768_vm2, %v3296_v30  ;;  %2590 = vmatpush3.bf16.msra.mxu0 %v3044_v61 }
  0x57   : >> { %2591 = vmatprep.subr.bf16.mxu0 %v2767_v29 }
  0x59   : >> { %2391 = vmatmul.mubr.msk.f32.gmra.mrb[2].mxu0 %vm224_vm4, %v3052_v62 }
  0x5a   : >> { %2393 = vmatprep.mubr.msk.f32.mxu0 %vm2768_vm2, %v3296_v30 }
  0x5d   : >> { %2394 = vmatmul.mubr.msk.f32.gmra.mrb[4].mxu0 %vm224_vm4, %v3035_v59 }
  0x5e   : >> { %2400 = vmatprep.mubr.msk.f32.mxu0 %vm2768_vm2, %v3296_v30 }
  0x61   : >> { %2401 = vmatmul.mubr.msk.f32.vlgmr.msra.gmra.mrb[0].mxu0 %vm224_vm4, %v3065_v63 }
  0x62   : >> { %2403 = vmatprep.mubr.msk.f32.mxu0 %vm2768_vm2, %v3296_v30  ;;  %2593 = vmatpush3.bf16.msra.mxu0 %v3069_v3 }
  0x63   : >> { %2594 = vmatprep.subr.bf16.mxu0 %v2767_v29 }
  0x65   : >> { %2404 = vmatmul.mubr.msk.f32.gmra.mrb[2].mxu0 %vm224_vm4, %v3076_v10 }
  0x66   : >> { %2406 = vmatprep.mubr.msk.f32.mxu0 %vm2768_vm2, %v3296_v30 }
  0x69   : >> { %2407 = vmatmul.mubr.msk.f32.gmra.mrb[4].mxu0 %vm224_vm4, %v3087_v19 }
  0x6a   : >> { %2413 = vmatprep.mubr.msk.f32.mxu0 %vm2768_vm2, %v3296_v30 }
  0x6d   : >> { %2414 = vmatmul.mubr.msk.f32.vlgmr.msra.gmra.mrb[0].mxu0 %vm224_vm4, %v3097_v25 }
  0x6e   : >> { %2416 = vmatprep.mubr.msk.f32.mxu0 %vm2768_vm2, %v3296_v30  ;;  %2596 = vmatpush3.bf16.msra.mxu0 %v3101_v31 }
  0x71   : >> { %2417 = vmatmul.mubr.msk.f32.gmra.mrb[2].mxu0 %vm224_vm4, %v3109_v32 }
  0x72   : >> { %2419 = vmatprep.mubr.msk.f32.mxu0 %vm2768_vm2, %v3296_v30 }
  0x75   : >> { %2420 = vmatmul.mubr.msk.f32.gmra.mrb[4].mxu0 %vm224_vm4, %v3092_v24 }
  0x76   : >> { %2426 = vmatprep.mubr.msk.f32.mxu0 %vm2768_vm2, %v3296_v30 }
  0x79   : >> { %2427 = vmatmul.mubr.msk.f32.vlgmr.msra.gmra.mrb[0].mxu0 %vm224_vm4, %v3126_v37 }
  0x7a   : >> { %2429 = vmatprep.mubr.msk.f32.mxu0 %vm2768_vm2, %v3296_v30 }
  0x7d   : >> { %2430 = vmatmul.mubr.msk.f32.gmra.mrb[2].mxu0 %vm224_vm4, %v3134_v38 }
  0x7e   : >> { %2432 = vmatprep.mubr.msk.f32.mxu0 %vm2768_vm2, %v3296_v30 }
  0x81   : >> { %2433 = vmatmul.mubr.msk.f32.gmra.mrb[4].mxu0 %vm224_vm4, %v3121_v35 }
  0x82   : >> { %2567 = vmatprep.mubr.msk.f32.mxu0 %vm1078_vm6, %v2903_v26 }
 0x14c   : >> { %v1047_v39 = vpop.f32.mrb[0].mxu0 }
 0x14d   : >> { %v2428_v41 = vpop.f32.mrb[1].mxu0  ;;  %v1067_v43 = vrot.slane %v1047_v39, 1 }
 0x150   : >> { %v1052_v42 = vpop.f32.mrb[2].mxu0 }
 0x151   : >> { %v1068_v44 = vrot.slane %v1052_v42, 1  ;;  %v2431_v46 = vpop.f32.mrb[3].mxu0 }
 0x153   : >> { %v1069_v50 = vsel %vm218_vm3, %v1067_v43, %v1068_v44 }
 0x154   : >> { %v1057_v51 = vpop.f32.mrb[4].mxu0  ;;  %v1075_v57 = vmax.f32 %v1047_v39, %v1069_v50  ;;  %v3298_v39 = vmov 0.0  }
 0x155   : >> { %v1070_v58 = vrot.slane %v1057_v51, 1  ;;  %v2434_v11 = vpop.f32.mrb[5].mxu0 }
 0x157   : >> { %v1071_v18 = vsel %vm218_vm3, %v1068_v44, %v1070_v58  ;;  %v1077_v30 = vmax.f32 %v1057_v51, %v1070_v58 }
 0x158   : >> { %v1076_v33 = vmax.f32 %v1052_v42, %v1071_v18 }
 0x15a   : >> { %v2597_v34 = vpack.c.bf16 %v1076_v33, %v1075_v57 }
 0x15c   : >> { %2598 = vmatprep.subr.bf16.mxu1 %v2597_v34 }
 0x15d   : >> { %2600 = vmatpush3.bf16.msra.mxu1 %v2597_v34 }
 0x15e   : >> { %2439 = vmatprep.subr.msk.mxu1 %vm1085_vm7, %v1077_v30 }
 0x161   : >> { %2440 = vmatpush3.msk.msra.mxu1 %vm1085_vm7, %v1077_v30  ;;  %v2200_v30 = vld [vmem:[%s2923_s9 + $0x50] sm:$0xff] }
 0x162   : >> { %2442 = vmatmul.mubr.msk.f32.vlgmr.msra.gmra.mrb[0].mxu1 %vm1078_vm6, %v2905_v27  ;;  %2601 = vmatprep.subr.bf16.mxu1 %v2767_v29 }
 0x163   : >> { %2603 = vmatpush3.bf16.msra.mxu1 %v2914_v28  ;;  %2448 = vmatprep.mubr.msk.f32.mxu1 %vm2768_vm2, %v3298_v39  ;;  %v2199_v28 = vld [vmem:[%s2923_s9 + $0x48] sm:$0xff] }
 0x164   : >> { %2604 = vmatprep.subr.bf16.mxu1 %v2767_v29 }
 0x166   : >> { %2449 = vmatmul.mubr.msk.f32.vlgmr.msra.gmra.mrb[2].mxu1 %vm224_vm4, %v3010_v54 }
 0x167   : >> { %2451 = vmatprep.mubr.msk.f32.mxu1 %vm2768_vm2, %v3298_v39  ;;  %2606 = vmatpush3.bf16.msra.mxu1 %v2930_v36  ;;  %v1754_v36 = vrot.slane %v2199_v28, 1 }
 0x168   : >> { %2607 = vmatprep.subr.bf16.mxu1 %v2767_v29 }
 0x16a   : >> { %2452 = vmatmul.mubr.msk.f32.gmra.mrb[4].mxu1 %vm224_vm4, %v3022_v56 }
 0x16b   : >> { %2454 = vmatprep.mubr.msk.f32.mxu1 %vm2768_vm2, %v3298_v39 }
 0x16e   : >> { %2455 = vmatmul.mubr.msk.f32.gmra.mrb[6].mxu1 %vm224_vm4, %v3005_v53 }
 0x16f   : >> { %2461 = vmatprep.mubr.msk.f32.mxu1 %vm2768_vm2, %v3298_v39 }
 0x172   : >> { %2462 = vmatmul.mubr.msk.f32.vlgmr.msra.gmra.mrb[2].mxu1 %vm224_vm4, %v2978_v47 }
 0x173   : >> { %2464 = vmatprep.mubr.msk.f32.mxu1 %vm2768_vm2, %v3298_v39  ;;  %2609 = vmatpush3.bf16.msra.mxu1 %v2947_v40  ;;  %v1755_v40 = vrot.slane %v2200_v30, 1 }
 0x174   : >> { %2610 = vmatprep.subr.bf16.mxu1 %v2767_v29 }
 0x176   : >> { %2465 = vmatmul.mubr.msk.f32.gmra.mrb[4].mxu1 %vm224_vm4, %v2989_v49  ;;  %v1848_v49 = vrot.slane %v2199_v28, 2 }
 0x177   : >> { %2467 = vmatprep.mubr.msk.f32.mxu1 %vm2768_vm2, %v3298_v39 }
 0x17a   : >> { %2468 = vmatmul.mubr.msk.f32.gmra.mrb[6].mxu1 %vm224_vm4, %v3000_v52  ;;  %v1849_v52 = vrot.slane %v2200_v30, 2 }
 0x17b   : >> { %2474 = vmatprep.mubr.msk.f32.mxu1 %vm2768_vm2, %v3298_v39 }
 0x17c   : >> { %v1850_v54 = vsel %vm397_vm5, %v1848_v49, %v1849_v52 }
 0x17e   : >> { %2475 = vmatmul.mubr.msk.f32.vlgmr.msra.gmra.mrb[2].mxu1 %vm224_vm4, %v3040_v60 }
 0x17f   : >> { %2477 = vmatprep.mubr.msk.f32.mxu1 %vm2768_vm2, %v3298_v39  ;;  %2612 = vmatpush3.bf16.msra.mxu1 %v2963_v45  ;;  %v2201_v45 = vld [vmem:[%s2923_s9 + $0x58] sm:$0x3f] }
 0x180   : >> { %2613 = vmatprep.subr.bf16.mxu1 %v2767_v29  ;;  %v1757_v47 = vrot.slane %v2201_v45, 1  ;;  %v1851_v53 = vrot.slane %v2201_v45, 2 }
 0x182   : >> { %2478 = vmatmul.mubr.msk.f32.gmra.mrb[4].mxu1 %vm224_vm4, %v3052_v62 }
 0x183   : >> { %2480 = vmatprep.mubr.msk.f32.mxu1 %vm2768_vm2, %v3298_v39 }
 0x186   : >> { %2481 = vmatmul.mubr.msk.f32.gmra.mrb[6].mxu1 %vm224_vm4, %v3035_v59 }
 0x187   : >> { %2487 = vmatprep.mubr.msk.f32.mxu1 %vm2768_vm2, %v3298_v39 }
 0x18a   : >> { %2488 = vmatmul.mubr.msk.f32.vlgmr.msra.gmra.mrb[2].mxu1 %vm224_vm4, %v3065_v63 }
 0x18b   : >> { %2490 = vmatprep.mubr.msk.f32.mxu1 %vm2768_vm2, %v3298_v39  ;;  %2615 = vmatpush3.bf16.msra.mxu1 %v2982_v48  ;;  %v1756_v48 = vsel %vm218_vm3, %v1754_v36, %v1755_v40 }
 0x18c   : >> { %2616 = vmatprep.subr.bf16.mxu1 %v2767_v29 }
 0x18e   : >> { %2491 = vmatmul.mubr.msk.f32.gmra.mrb[4].mxu1 %vm224_vm4, %v3076_v10 }
 0x18f   : >> { %2493 = vmatprep.mubr.msk.f32.mxu1 %vm2768_vm2, %v3298_v39 }
 0x192   : >> { %2494 = vmatmul.mubr.msk.f32.gmra.mrb[6].mxu1 %vm224_vm4, %v3087_v19 }
 0x193   : >> { %2500 = vmatprep.mubr.msk.f32.mxu1 %vm2768_vm2, %v3298_v39 }
 0x196   : >> { %2501 = vmatmul.mubr.msk.f32.vlgmr.msra.gmra.mrb[2].mxu1 %vm224_vm4, %v3097_v25 }
 0x197   : >> { %2503 = vmatprep.mubr.msk.f32.mxu1 %vm2768_vm2, %v3298_v39  ;;  %2618 = vmatpush3.bf16.msra.mxu1 %v3014_v55  ;;  %v1852_v55 = vsel %vm397_vm5, %v1849_v52, %v1851_v53 }
 0x198   : >> { %2619 = vmatprep.subr.bf16.mxu1 %v2767_v29 }
 0x19a   : >> { %2504 = vmatmul.mubr.msk.f32.gmra.mrb[4].mxu1 %vm224_vm4, %v3109_v32 }
 0x19b   : >> { %2506 = vmatprep.mubr.msk.f32.mxu1 %vm2768_vm2, %v3298_v39 }
 0x19e   : >> { %2507 = vmatmul.mubr.msk.f32.gmra.mrb[6].mxu1 %vm224_vm4, %v3092_v24 }
 0x19f   : >> { %2513 = vmatprep.mubr.msk.f32.mxu1 %vm2768_vm2, %v3298_v39 }
 0x1a2   : >> { %2514 = vmatmul.mubr.msk.f32.vlgmr.msra.gmra.mrb[2].mxu1 %vm224_vm4, %v3126_v37 }
 0x1a3   : >> { %2516 = vmatprep.mubr.msk.f32.mxu1 %vm2768_vm2, %v3298_v39  ;;  %2621 = vmatpush3.bf16.msra.mxu1 %v3044_v61 }
 0x1a4   : >> { %2622 = vmatprep.subr.bf16.mxu1 %v2767_v29 }
 0x1a6   : >> { %2517 = vmatmul.mubr.msk.f32.gmra.mrb[4].mxu1 %vm224_vm4, %v3134_v38 }
 0x1a7   : >> { %2519 = vmatprep.mubr.msk.f32.mxu1 %vm2768_vm2, %v3298_v39 }
 0x1aa   : >> { %2520 = vmatmul.mubr.msk.f32.gmra.mrb[6].mxu1 %vm224_vm4, %v3121_v35 }
 0x1ab   : >> { %2526 = vmatprep.mubr.msk.f32.mxu1 %vm2768_vm2, %v3298_v39 }
 0x1ae   : >> { %2527 = vmatmul.mubr.msk.f32.vlgmr.msra.gmra.mrb[2].mxu1 %vm224_vm4, %v2199_v28 }
 0x1af   : >> { %2529 = vmatprep.mubr.msk.f32.mxu1 %vm2768_vm2, %v3298_v39  ;;  %2624 = vmatpush3.bf16.msra.mxu1 %v3069_v3 }
 0x1b0   : >> { %2625 = vmatprep.subr.bf16.mxu1 %v2767_v29  ;;  %v1758_v29 = vsel %vm218_vm3, %v1755_v40, %v1757_v47 }
 0x1b2   : >> { %2530 = vmatmul.mubr.msk.f32.gmra.mrb[4].mxu1 %vm224_vm4, %v2200_v30 }
 0x1b3   : >> { %2532 = vmatprep.mubr.msk.f32.mxu1 %vm2768_vm2, %v3298_v39 }
 0x1b6   : >> { %2533 = vmatmul.mubr.msk.f32.gmra.mrb[6].mxu1 %vm224_vm4, %v2201_v45 }
 0x1b7   : >> { %2539 = vmatprep.mubr.msk.f32.mxu1 %vm2768_vm2, %v3298_v39 }
 0x1ba   : >> { %2540 = vmatmul.mubr.msk.f32.vlgmr.msra.gmra.mrb[2].mxu1 %vm224_vm4, %v1756_v48 }
 0x1bb   : >> { %2542 = vmatprep.mubr.msk.f32.mxu1 %vm2768_vm2, %v3298_v39  ;;  %2627 = vmatpush3.bf16.msra.mxu1 %v3101_v31 }
 0x1be   : >> { %2543 = vmatmul.mubr.msk.f32.gmra.mrb[4].mxu1 %vm224_vm4, %v1758_v29 }
 0x1bf   : >> { %2545 = vmatprep.mubr.msk.f32.mxu1 %vm2768_vm2, %v3298_v39 }
 0x1c2   : >> { %2546 = vmatmul.mubr.msk.f32.gmra.mrb[6].mxu1 %vm224_vm4, %v1757_v47 }
 0x1c3   : >> { %2552 = vmatprep.mubr.msk.f32.mxu1 %vm2768_vm2, %v3298_v39 }
 0x1c6   : >> { %2553 = vmatmul.mubr.msk.f32.vlgmr.msra.gmra.mrb[2].mxu1 %vm224_vm4, %v1850_v54 }
 0x1c7   : >> { %2555 = vmatprep.mubr.msk.f32.mxu1 %vm2768_vm2, %v3298_v39 }
 0x1ca   : >> { %2556 = vmatmul.mubr.msk.f32.gmra.mrb[4].mxu1 %vm224_vm4, %v1852_v55 }
 0x1cb   : >> { %2558 = vmatprep.mubr.msk.f32.mxu1 %vm2768_vm2, %v3298_v39 }
 0x1ce   : >> { %2559 = vmatmul.mubr.msk.f32.gmra.mrb[6].mxu1 %vm224_vm4, %v1851_v53 }
 0x235   : >> { %v2443_v56 = vpop.f32.mrb[0].mxu1 }
 0x236   : >> { %v1155_v59 = vpop.f32.mrb[1].mxu1 }
 0x299   : >> { %v1925_v60 = vpop.f32.mrb[2].mxu1 }
 0x29a   : >> { %v2554_v61 = vpop.f32.mrb[3].mxu1  ;;  %v1945_v63 = vrot.slane %v1925_v60, 1 }
 0x29d   : >> { %v1930_v62 = vpop.f32.mrb[4].mxu1 }
 0x29e   : >> { %v1946_v3 = vrot.slane %v1930_v62, 1  ;;  %v2557_v10 = vpop.f32.mrb[5].mxu1 }
 0x2a0   : >> { %v1947_v19 = vsel %vm218_vm3, %v1945_v63, %v1946_v3 }
 0x2a1   : >> { %v1935_v24 = vpop.f32.mrb[6].mxu1  ;;  %v1953_v25 = vmax.f32 %v1925_v60, %v1947_v19 }
 0x2a2   : >> { %v1948_v31 = vrot.slane %v1935_v24, 1  ;;  %v2560_v32 = vpop.f32.mrb[7].mxu1 }
 0x2a4   : >> { %v1949_v35 = vsel %vm218_vm3, %v1946_v3, %v1948_v31  ;;  %v1955_v41 = vmax.f32 %v1935_v24, %v1948_v31 }
 0x2a5   : >> { %v1954_v37 = vmax.f32 %v1930_v62, %v1949_v35 }
 0x2a7   : >> { %v2628_v38 = vpack.c.bf16 %v1954_v37, %v1953_v25 }
 0x2a9   : >> { %2629 = vmatprep.subr.bf16.mxu0 %v2628_v38 }
 0x2aa   : >> { %2631 = vmatpush3.bf16.msra.mxu0 %v2628_v38 }
 0x2ab   : >> { %2565 = vmatprep.subr.msk.mxu0 %vm1085_vm7, %v1955_v41 }
 0x2ae   : >> { %2566 = vmatpush3.msk.msra.mxu0 %vm1085_vm7, %v1955_v41 }
 0x2af   : >> { %2568 = vmatmul.mubr.msk.f32.vlgmr.msra.gmra.mrb[6].mxu0 %vm1078_vm6, %v2905_v27 }
 0x382   : >> { %v2569_v42 = vpop.f32.mrb[6].mxu0 }
 0x383   : >> { %v2035_v43 = vmax.f32 %v2443_v56, %v2569_v42  ;;  %v2025_v44 = vpop.f32.mrb[7].mxu0 }
 0x384   : >> { %v2034_v46 = vmax.f32 %v1155_v59, %v2025_v44  ;;  %207 = sbr.rel (!%p205_p4) target bundleno = 18 (0x12), region = 74 }
 0x385   : >> { %v2043_v50 = vadd.f32 %v2896_v23, %v2035_v43 }
 0x386   : >> { %v2042_v51 = vadd.f32 %v2896_v23, %v2034_v46 }
 0x387   : >> { %v2045_v57 = vmax.f32 %v2043_v50, 0.0 }
 0x388   : >> { %v2044_v58 = vmax.f32 %v2042_v51, 0.0 }
 0x389   : >> { %2051 = vst.msk [vmem:[%s2047_s11 + $0x8] sm:$0x3] %vm2050_vm8, %v2045_v57 }
 0x38a   : >> { %2049 = vst.msk [vmem:[%s2047_s11] sm:$0xff] %vm2048_vm9, %v2044_v58 }
 0x38b PF: > { %s13_s12 = sadd.s32 1, %s2760_s12  }
 0x38c   : > { %p10_p5 = scmp.ge.s32.totalorder %s13_s12, 4  }
 0x38e   :  { %12 = sbr.rel (!%p10_p5) target bundleno = 1 (0x1), region = 85 }

// kernel: graph_cnn_forward.13
= control target key start
LH: loop header
LB: loop body
LE: loop exit
PB: predicated region body
PF: predicated region fallthrough
CT: control target
= control target key end

     0   :  { %v99_v56 = vlaneseq  ;;  %v1504_v57 = vmov 1983009808   ;;  %vm119_vm0 = vcmask 293888   ;;  %vm122_vm1 = vcmask 1043456   ;;  %s2415_s2 = inlined_call_operand.vmem [shape: f32[164,164], index: 2, kind: input, shape index: {}]   ;;  %s2416_s3 = inlined_call_operand.vmem [shape: f32[164,164], index: 3, kind: input, shape index: {}]   ;;  %s2417_s0 = inlined_call_operand.vmem [shape: f32[2,164], index: 0, kind: input, shape index: {}, may-alias: {0,1}]   ;;  %s2418_s1 = inlined_call_operand.vmem [shape: f32[2,164], index: 1, kind: input, shape index: {}, may-alias: {0,1}]   ;;  %s2419_s4 = inlined_call_operand.vmem [shape: f32[164,164], index: 4, kind: input, shape index: {}]   ;;  %s2420_s5 = inlined_call_operand.vmem [shape: f32[164,164], index: 5, kind: input, shape index: {}]   ;;  %s2421_s10 = inlined_call_operand.vmem [shape: f32[164,164], index: 10, kind: input, shape index: {}]   ;;  %s2422_s6 = inlined_call_operand.vmem [shape: f32[1,164], index: 6, kind: input, shape index: {}]   ;;  %s2423_s7 = inlined_call_operand.vmem [shape: f32[1,164], index: 7, kind: input, shape index: {}]   ;;  %s2424_s8 = inlined_call_operand.vmem [shape: f32[1,164], index: 8, kind: input, shape index: {}]   ;;  %s2425_s9 = inlined_call_operand.vmem [shape: f32[1,164], index: 9, kind: input, shape index: {}]   ;;  %s2426_s11 = inlined_call_operand.vmem [shape: f32[1,164], index: 11, kind: input, shape index: {}]   ;;  %s2427_s12 = inlined_call_operand.vmem [shape: f32[1,164], index: 12, kind: input, shape index: {}]   ;;  %s2428_s13 = inlined_call_operand.vmem [shape: f32[2,164], index: 13, kind: output, shape index: {}]  }
   0x1   :  { %v56_v0 = vld [vmem:[%s2415_s2 + $0x8] sm:$0xff]  ;;  %v58_v1 = vld [vmem:[%s2415_s2 + $0x18] sm:$0xff]  ;;  %v55_v2 = vld [vmem:[%s2415_s2] sm:$0xff]  ;;  %v111_v58 = vunpack.c.l.s4 %v1504_v57  ;;  %vm49_vm2 = vcmask 289794   ;;  %vm48_vm3 = vcmask 1041408   ;;  %vm533_vm5 = vcmask 287744  }
   0x2   :  { %v1242_v3 = vpack.c.bf16 %v58_v1, %v56_v0  ;;  %v57_v4 = vld [vmem:[%s2415_s2 + $0x10] sm:$0xff]  ;;  %v60_v5 = vld [vmem:[%s2415_s2 + $0x28] sm:$0xff]  ;;  %v62_v6 = vld [vmem:[%s2415_s2 + $0x38] sm:$0xff]  ;;  %vm580_vm6 = vcmask 1041409   ;;  %vm582_vm7 = vcmask 1043459   ;;  %vm584_vm8 = vcmask 1045509  }
   0x3   :  { %v1244_v7 = vpack.c.bf16 %v57_v4, %v55_v2  ;;  %v1246_v8 = vpack.c.bf16 %v62_v6, %v60_v5  ;;  %v59_v9 = vld [vmem:[%s2415_s2 + $0x20] sm:$0xff]  ;;  %v61_v10 = vld [vmem:[%s2415_s2 + $0x30] sm:$0xff]  ;;  %v64_v11 = vld [vmem:[%s2415_s2 + $0x48] sm:$0xff]  ;;  %vm586_vm9 = vcmask 1047559  }
   0x4   :  { %1243 = vmatprep.subr.bf16.mxu0 %v1242_v3  ;;  %v66_v12 = vld [vmem:[%s2415_s2 + $0x58] sm:$0xff]  ;;  %v202_v13 = vld [vmem:[%s2416_s3 + $0x8] sm:$0xff]  ;;  %v1248_v15 = vpack.c.bf16 %v61_v10, %v59_v9  ;;  %v63_v17 = vld [vmem:[%s2415_s2 + $0x40] sm:$0xff] }
   0x5   :  { %v204_v14 = vld [vmem:[%s2416_s3 + $0x18] sm:$0xff]  ;;  %1245 = vmatpush1.bf16.msra.mxu0 %v1244_v7  ;;  %v201_v18 = vld [vmem:[%s2416_s3] sm:$0xff]  ;;  %v1250_v19 = vpack.c.bf16 %v66_v12, %v64_v11  ;;  %v65_v20 = vld [vmem:[%s2415_s2 + $0x50] sm:$0xff]  ;;  %v1722_v7 = vshrl.u32 %v99_v56, 7 }
   0x6   :  { %v1282_v16 = vpack.c.bf16 %v204_v14, %v202_v13  ;;  %1247 = vmatprep.subr.bf16.mxu0 %v1246_v8  ;;  %v203_v21 = vld [vmem:[%s2416_s3 + $0x10] sm:$0xff]  ;;  %v68_v22 = vld [vmem:[%s2415_s2 + $0x68] sm:$0xff]  ;;  %v70_v24 = vld [vmem:[%s2415_s2 + $0x78] sm:$0xff]  ;;  %v1252_v30 = vpack.c.bf16 %v65_v20, %v63_v17  ;;  %v112_v8 = vunpack.c.0.s8 %v111_v58 }
   0x7   :  { %v1284_v23 = vpack.c.bf16 %v203_v21, %v201_v18  ;;  %v206_v25 = vld [vmem:[%s2416_s3 + $0x28] sm:$0xff]  ;;  %v208_v26 = vld [vmem:[%s2416_s3 + $0x38] sm:$0xff]  ;;  %v205_v28 = vld [vmem:[%s2416_s3 + $0x20] sm:$0xff]  ;;  %v1254_v34 = vpack.c.bf16 %v70_v24, %v68_v22 }
   0x8   :  { %1283 = vmatprep.subr.bf16.mxu1 %v1282_v16  ;;  %v1286_v27 = vpack.c.bf16 %v208_v26, %v206_v25  ;;  %v207_v29 = vld [vmem:[%s2416_s3 + $0x30] sm:$0xff]  ;;  %v67_v31 = vld [vmem:[%s2415_s2 + $0x60] sm:$0xff]  ;;  %v210_v33 = vld [vmem:[%s2416_s3 + $0x48] sm:$0xff]  ;;  %v1749_v21 = vsub.s32 %v112_v8, %v1722_v7 }
   0x9   :  { %1249 = vmatpush1.bf16.msra.mxu0 %v1248_v15  ;;  %1285 = vmatpush1.bf16.msra.mxu1 %v1284_v23  ;;  %v1288_v32 = vpack.c.bf16 %v207_v29, %v205_v28  ;;  %v69_v35 = vld [vmem:[%s2415_s2 + $0x70] sm:$0xff]  ;;  %v72_v36 = vld [vmem:[%s2415_s2 + $0x88] sm:$0xff]  ;;  %v212_v37 = vld [vmem:[%s2416_s3 + $0x58] sm:$0xff] }
   0xa   :  { %1251 = vmatprep.subr.bf16.mxu0 %v1250_v19  ;;  %1287 = vmatprep.subr.bf16.mxu1 %v1286_v27  ;;  %v74_v38 = vld [vmem:[%s2415_s2 + $0x98] sm:$0xff]  ;;  %v1290_v39 = vpack.c.bf16 %v212_v37, %v210_v33  ;;  %v209_v40 = vld [vmem:[%s2416_s3 + $0x40] sm:$0xff]  ;;  %v211_v41 = vld [vmem:[%s2416_s3 + $0x50] sm:$0xff]  ;;  %v1256_v44 = vpack.c.bf16 %v69_v35, %v67_v31 }
   0xb   :  { %v214_v42 = vld [vmem:[%s2416_s3 + $0x68] sm:$0xff]  ;;  %v216_v43 = vld [vmem:[%s2416_s3 + $0x78] sm:$0xff]  ;;  %v71_v45 = vld [vmem:[%s2415_s2 + $0x80] sm:$0xff]  ;;  %v1292_v47 = vpack.c.bf16 %v211_v41, %v209_v40  ;;  %v1258_v48 = vpack.c.bf16 %v74_v38, %v72_v36 }
   0xc   :  { %v73_v46 = vld [vmem:[%s2415_s2 + $0x90] sm:$0xff]  ;;  %v76_v49 = vld [vmem:[%s2415_s2 + $0xa8] sm:$0xff]  ;;  %v1294_v50 = vpack.c.bf16 %v216_v43, %v214_v42  ;;  %v213_v51 = vld [vmem:[%s2416_s3 + $0x60] sm:$0xff] }
   0xd   :  { %1253 = vmatpush1.bf16.msra.mxu0 %v1252_v30  ;;  %1289 = vmatpush1.bf16.msra.mxu1 %v1288_v32  ;;  %v215_v52 = vld [vmem:[%s2416_s3 + $0x70] sm:$0xff]  ;;  %v78_v53 = vld [vmem:[%s2415_s2 + $0xb8] sm:$0xff]  ;;  %v218_v54 = vld [vmem:[%s2416_s3 + $0x88] sm:$0xff]  ;;  %v1260_v59 = vpack.c.bf16 %v73_v46, %v71_v45 }
   0xe   :  { %1255 = vmatprep.subr.bf16.mxu0 %v1254_v34  ;;  %1291 = vmatprep.subr.bf16.mxu1 %v1290_v39  ;;  %v220_v55 = vld [vmem:[%s2416_s3 + $0x98] sm:$0xff]  ;;  %v75_v60 = vld [vmem:[%s2415_s2 + $0xa0] sm:$0xff]  ;;  %v77_v61 = vld [vmem:[%s2415_s2 + $0xb0] sm:$0xff]  ;;  %v1296_v62 = vpack.c.bf16 %v215_v52, %v213_v51  ;;  %v1262_v63 = vpack.c.bf16 %v78_v53, %v76_v49 }
   0xf   :  { %v80_v0 = vld [vmem:[%s2415_s2 + $0xc8] sm:$0xff]  ;;  %v1298_v1 = vpack.c.bf16 %v220_v55, %v218_v54  ;;  %v217_v2 = vld [vmem:[%s2416_s3 + $0x80] sm:$0xff]  ;;  %v219_v3 = vld [vmem:[%s2416_s3 + $0x90] sm:$0xff]  ;;  %v1264_v9 = vpack.c.bf16 %v77_v61, %v75_v60 }
  0x10   :  { %v82_v4 = vld [vmem:[%s2415_s2 + $0xd8] sm:$0xff]  ;;  %v222_v5 = vld [vmem:[%s2416_s3 + $0xa8] sm:$0xff]  ;;  %v79_v10 = vld [vmem:[%s2415_s2 + $0xc0] sm:$0xff]  ;;  %v1300_v12 = vpack.c.bf16 %v219_v3, %v217_v2 }
  0x11   :  { %1257 = vmatpush1.bf16.msra.mxu0 %v1256_v44  ;;  %1293 = vmatpush1.bf16.msra.mxu1 %v1292_v47  ;;  %v224_v6 = vld [vmem:[%s2416_s3 + $0xb8] sm:$0xff]  ;;  %v81_v11 = vld [vmem:[%s2415_s2 + $0xd0] sm:$0xff]  ;;  %v1266_v13 = vpack.c.bf16 %v82_v4, %v80_v0  ;;  %v84_v14 = vld [vmem:[%s2415_s2 + $0xe8] sm:$0xff] }
  0x12   :  { %1259 = vmatprep.subr.bf16.mxu0 %v1258_v48  ;;  %1295 = vmatprep.subr.bf16.mxu1 %v1294_v50  ;;  %v1302_v15 = vpack.c.bf16 %v224_v6, %v222_v5  ;;  %v221_v16 = vld [vmem:[%s2416_s3 + $0xa0] sm:$0xff]  ;;  %v223_v17 = vld [vmem:[%s2416_s3 + $0xb0] sm:$0xff]  ;;  %v86_v18 = vld [vmem:[%s2415_s2 + $0xf8] sm:$0xff]  ;;  %v1268_v22 = vpack.c.bf16 %v81_v11, %v79_v10 }
  0x13   :  { %v226_v19 = vld [vmem:[%s2416_s3 + $0xc8] sm:$0xff]  ;;  %v228_v20 = vld [vmem:[%s2416_s3 + $0xd8] sm:$0xff]  ;;  %v83_v23 = vld [vmem:[%s2415_s2 + $0xe0] sm:$0xff]  ;;  %v1304_v25 = vpack.c.bf16 %v223_v17, %v221_v16  ;;  %v1270_v27 = vpack.c.bf16 %v86_v18, %v84_v14 }
  0x14   :  { %v85_v24 = vld [vmem:[%s2415_s2 + $0xf0] sm:$0xff]  ;;  %v88_v26 = vld [vmem:[%s2415_s2 + $0x108] sm:$0xff]  ;;  %v1306_v28 = vpack.c.bf16 %v228_v20, %v226_v19  ;;  %v225_v29 = vld [vmem:[%s2416_s3 + $0xc0] sm:$0xff] }
  0x15   :  { %1261 = vmatpush1.bf16.msra.mxu0 %v1260_v59  ;;  %1297 = vmatpush1.bf16.msra.mxu1 %v1296_v62  ;;  %v227_v30 = vld [vmem:[%s2416_s3 + $0xd0] sm:$0xff]  ;;  %v1769_v31 = vld.sshfl [vmem:[%s2417_s0] sm:$0x33 pattern:$0x76325410]  ;;  %v90_v32 = vld [vmem:[%s2415_s2 + $0x118] sm:$0xff]  ;;  %v1272_v35 = vpack.c.bf16 %v85_v24, %v83_v23 }
  0x16   :  { %1263 = vmatprep.subr.bf16.mxu0 %v1262_v63  ;;  %1299 = vmatprep.subr.bf16.mxu1 %v1298_v1  ;;  %v230_v33 = vld [vmem:[%s2416_s3 + $0xe8] sm:$0xff]  ;;  %v232_v34 = vld [vmem:[%s2416_s3 + $0xf8] sm:$0xff]  ;;  %v87_v36 = vld [vmem:[%s2415_s2 + $0x100] sm:$0xff]  ;;  %v1308_v38 = vpack.c.bf16 %v227_v30, %v225_v29  ;;  %v117_v39 = vcombine.high %v1769_v31, %v1769_v31  ;;  %v1274_v41 = vpack.c.bf16 %v90_v32, %v88_v26 }
  0x17   :  { %v89_v37 = vld [vmem:[%s2415_s2 + $0x110] sm:$0xff]  ;;  %v1791_v40 = vld.sshfl [vmem:[%s2418_s1] sm:$0x33 pattern:$0x76325410]  ;;  %v92_v42 = vld [vmem:[%s2415_s2 + $0x128] sm:$0xff]  ;;  %v1310_v43 = vpack.c.bf16 %v232_v34, %v230_v33 }
  0x18   :  { %v229_v44 = vld [vmem:[%s2416_s3 + $0xe0] sm:$0xff]  ;;  %v231_v45 = vld [vmem:[%s2416_s3 + $0xf0] sm:$0xff]  ;;  %v263_v46 = vcombine.high %v1791_v40, %v1791_v40  ;;  %v94_v47 = vld [vmem:[%s2415_s2 + $0x138] sm:$0xff]  ;;  %1225 = vmatprep.mubr.msk.f32.mxu0 %vm119_vm0, %v117_v39  ;;  %v1276_v50 = vpack.c.bf16 %v89_v37, %v87_v36 }
  0x19   :  { %1265 = vmatpush1.bf16.msra.mxu0 %v1264_v9  ;;  %1301 = vmatpush1.bf16.msra.mxu1 %v1300_v12  ;;  %v234_v48 = vld [vmem:[%s2416_s3 + $0x108] sm:$0xff]  ;;  %v236_v49 = vld [vmem:[%s2416_s3 + $0x118] sm:$0xff]  ;;  %v91_v51 = vld [vmem:[%s2415_s2 + $0x120] sm:$0xff]  ;;  %v1312_v52 = vpack.c.bf16 %v231_v45, %v229_v44  ;;  %v1278_v53 = vpack.c.bf16 %v94_v47, %v92_v42 }
  0x1a   :  { %1267 = vmatprep.subr.bf16.mxu0 %v1266_v13  ;;  %1303 = vmatprep.subr.bf16.mxu1 %v1302_v15  ;;  %v93_v54 = vld [vmem:[%s2415_s2 + $0x130] sm:$0xff]  ;;  %v1314_v55 = vpack.c.bf16 %v236_v49, %v234_v48  ;;  %v233_v56 = vld [vmem:[%s2416_s3 + $0x100] sm:$0xff]  ;;  %v238_v58 = vld [vmem:[%s2416_s3 + $0x128] sm:$0xff] }
  0x1b   :  { %1229 = vmatprep.mubr.msk.f32.mxu1 %vm119_vm0, %v263_v46  ;;  %v235_v57 = vld [vmem:[%s2416_s3 + $0x110] sm:$0xff]  ;;  %v240_v59 = vld [vmem:[%s2416_s3 + $0x138] sm:$0xff]  ;;  %v1280_v60 = vpack.c.bf16 %v93_v54, %v91_v51  ;;  %v237_v63 = vld [vmem:[%s2416_s3 + $0x120] sm:$0xff] }
  0x1c   :  { %v1316_v61 = vpack.c.bf16 %v235_v57, %v233_v56  ;;  %v1318_v62 = vpack.c.bf16 %v240_v59, %v238_v58  ;;  %v239_v0 = vld [vmem:[%s2416_s3 + $0x130] sm:$0xff]  ;;  %v96_v1 = vld [vmem:[%s2415_s2 + $0x148] sm:$0xf]  ;;  %v347_v3 = vld [vmem:[%s2419_s4 + $0x18] sm:$0xff] }
  0x1d   :  { %1269 = vmatpush1.bf16.msra.mxu0 %v1268_v22  ;;  %1305 = vmatpush1.bf16.msra.mxu1 %v1304_v25  ;;  %v345_v2 = vld [vmem:[%s2419_s4 + $0x8] sm:$0xff]  ;;  %v1320_v4 = vpack.c.bf16 %v239_v0, %v237_v63  ;;  %v344_v5 = vld [vmem:[%s2419_s4] sm:$0xff]  ;;  %v346_v6 = vld [vmem:[%s2419_s4 + $0x10] sm:$0xff] }
  0x1e   :  { %1271 = vmatprep.subr.bf16.mxu0 %v1270_v27  ;;  %1307 = vmatprep.subr.bf16.mxu1 %v1306_v28  ;;  %v95_v8 = vld [vmem:[%s2415_s2 + $0x140] sm:$0xf]  ;;  %v349_v9 = vld [vmem:[%s2419_s4 + $0x28] sm:$0xff]  ;;  %v351_v10 = vld [vmem:[%s2419_s4 + $0x38] sm:$0xff]  ;;  %v1322_v12 = vpack.c.bf16 %v347_v3, %v345_v2  ;;  %v1324_v13 = vpack.c.bf16 %v346_v6, %v344_v5 }
  0x1f   :  { %v242_v11 = vld [vmem:[%s2416_s3 + $0x148] sm:$0xf]  ;;  %v1326_v14 = vpack.c.bf16 %v351_v10, %v349_v9  ;;  %v348_v15 = vld [vmem:[%s2419_s4 + $0x20] sm:$0xff]  ;;  %v350_v16 = vld [vmem:[%s2419_s4 + $0x30] sm:$0xff]  ;;  %v1505_v9 = vmov -inf   ;;  %v1506_v10 = vmov 0.0  }
  0x20   :  { %v241_v17 = vld [vmem:[%s2416_s3 + $0x140] sm:$0xf]  ;;  %v353_v18 = vld [vmem:[%s2419_s4 + $0x48] sm:$0xff]  ;;  %v355_v19 = vld [vmem:[%s2419_s4 + $0x58] sm:$0xff]  ;;  %v1328_v20 = vpack.c.bf16 %v350_v16, %v348_v15 }
  0x21   :  { %1273 = vmatpush1.bf16.msra.mxu0 %v1272_v35  ;;  %1309 = vmatpush1.bf16.msra.mxu1 %v1308_v38  ;;  %v1330_v22 = vpack.c.bf16 %v355_v19, %v353_v18  ;;  %v352_v23 = vld [vmem:[%s2419_s4 + $0x40] sm:$0xff]  ;;  %v354_v24 = vld [vmem:[%s2419_s4 + $0x50] sm:$0xff]  ;;  %v357_v25 = vld [vmem:[%s2419_s4 + $0x68] sm:$0xff] }
  0x22   :  { %1275 = vmatprep.subr.bf16.mxu0 %v1274_v41  ;;  %1311 = vmatprep.subr.bf16.mxu1 %v1310_v43  ;;  %v359_v26 = vld [vmem:[%s2419_s4 + $0x78] sm:$0xff]  ;;  %v1332_v27 = vpack.c.bf16 %v354_v24, %v352_v23  ;;  %v356_v29 = vld [vmem:[%s2419_s4 + $0x60] sm:$0xff]  ;;  %v358_v30 = vld [vmem:[%s2419_s4 + $0x70] sm:$0xff] }
  0x23   :  { %v1334_v28 = vpack.c.bf16 %v359_v26, %v357_v25  ;;  %v363_v32 = vld [vmem:[%s2419_s4 + $0x98] sm:$0xff]  ;;  %v1336_v33 = vpack.c.bf16 %v358_v30, %v356_v29  ;;  %v360_v35 = vld [vmem:[%s2419_s4 + $0x80] sm:$0xff]  ;;  %v362_v36 = vld [vmem:[%s2419_s4 + $0x90] sm:$0xff] }
  0x24   :  { %v365_v37 = vld [vmem:[%s2419_s4 + $0xa8] sm:$0xff]  ;;  %v367_v38 = vld [vmem:[%s2419_s4 + $0xb8] sm:$0xff]  ;;  %v1340_v39 = vpack.c.bf16 %v362_v36, %v360_v35  ;;  %v364_v42 = vld [vmem:[%s2419_s4 + $0xa0] sm:$0xff] }
  0x25   :  { %1277 = vmatpush1.bf16.msra.mxu0 %v1276_v50  ;;  %1313 = vmatpush1.bf16.msra.mxu1 %v1312_v52  ;;  %v1342_v41 = vpack.c.bf16 %v367_v38, %v365_v37  ;;  %v366_v43 = vld [vmem:[%s2419_s4 + $0xb0] sm:$0xff]  ;;  %v369_v44 = vld [vmem:[%s2419_s4 + $0xc8] sm:$0xff]  ;;  %v371_v45 = vld [vmem:[%s2419_s4 + $0xd8] sm:$0xff] }
  0x26   :  { %1279 = vmatprep.subr.bf16.mxu0 %v1278_v53  ;;  %1315 = vmatprep.subr.bf16.mxu1 %v1314_v55  ;;  %v1346_v47 = vpack.c.bf16 %v371_v45, %v369_v44  ;;  %v368_v48 = vld [vmem:[%s2419_s4 + $0xc0] sm:$0xff]  ;;  %v370_v49 = vld [vmem:[%s2419_s4 + $0xd0] sm:$0xff]  ;;  %v373_v50 = vld [vmem:[%s2419_s4 + $0xe8] sm:$0xff] }
  0x27   :  { %v375_v51 = vld [vmem:[%s2419_s4 + $0xf8] sm:$0xff]  ;;  %v1348_v52 = vpack.c.bf16 %v370_v49, %v368_v48  ;;  %v372_v54 = vld [vmem:[%s2419_s4 + $0xe0] sm:$0xff]  ;;  %v374_v55 = vld [vmem:[%s2419_s4 + $0xf0] sm:$0xff] }
  0x28   :  { %v1350_v53 = vpack.c.bf16 %v375_v51, %v373_v50  ;;  %v377_v56 = vld [vmem:[%s2419_s4 + $0x108] sm:$0xff]  ;;  %v379_v57 = vld [vmem:[%s2419_s4 + $0x118] sm:$0xff]  ;;  %v1352_v58 = vpack.c.bf16 %v374_v55, %v372_v54  ;;  %v380_v2 = vld [vmem:[%s2419_s4 + $0x120] sm:$0xff] }
  0x29   :  { %1281 = vmatpush1.bf16.msra.mxu0 %v1280_v60  ;;  %1317 = vmatpush1.bf16.msra.mxu1 %v1316_v61  ;;  %v1354_v59 = vpack.c.bf16 %v379_v57, %v377_v56  ;;  %v376_v60 = vld [vmem:[%s2419_s4 + $0x100] sm:$0xff]  ;;  %v378_v61 = vld [vmem:[%s2419_s4 + $0x110] sm:$0xff]  ;;  %v383_v63 = vld [vmem:[%s2419_s4 + $0x138] sm:$0xff] }
  0x2a   :  { %1223 = vmatprep.subr.msk.mxu0 %vm122_vm1, %v96_v1  ;;  %1319 = vmatprep.subr.bf16.mxu1 %v1318_v62  ;;  %v381_v62 = vld [vmem:[%s2419_s4 + $0x128] sm:$0xff]  ;;  %v1356_v0 = vpack.c.bf16 %v378_v61, %v376_v60  ;;  %v382_v3 = vld [vmem:[%s2419_s4 + $0x130] sm:$0xff]  ;;  %v384_v6 = vld [vmem:[%s2419_s4 + $0x140] sm:$0xf] }
  0x2b   :  { %v1358_v1 = vpack.c.bf16 %v383_v63, %v381_v62  ;;  %v385_v5 = vld [vmem:[%s2419_s4 + $0x148] sm:$0xf]  ;;  %vm1988_vm4 = vmor %vm49_vm2, %vm48_vm3  ;;  %v772_v19 = vld [vmem:[%s2420_s5 + $0x20] sm:$0xff] }
  0x2c   :  { %51 = vst.msk [vmem:[#allocation2] sm:$0xf] %vm1988_vm4, %v1505_v9  ;;  %52 = vst.msk [vmem:[#allocation3] sm:$0xf] %vm1988_vm4, %v1506_v10  ;;  %v773_v16 = vld [vmem:[%s2420_s5 + $0x28] sm:$0xff]  ;;  %v779_v24 = vld [vmem:[%s2420_s5 + $0x58] sm:$0xff] }
  0x2d   :  { %1224 = vmatpush1.msk.msra.mxu0 %vm122_vm1, %v95_v8  ;;  %1321 = vmatpush1.bf16.msra.mxu1 %v1320_v4  ;;  %v1360_v4 = vpack.c.bf16 %v382_v3, %v380_v2  ;;  %53 = vst.msk [vmem:[#allocation4] sm:$0xf] %vm1988_vm4, %v1506_v10  ;;  %v777_v23 = vld [vmem:[%s2420_s5 + $0x48] sm:$0xff]  ;;  %v776_v26 = vld [vmem:[%s2420_s5 + $0x40] sm:$0xff]  ;;  %v783_v30 = vld [vmem:[%s2420_s5 + $0x78] sm:$0xff] }
  0x2e   :  { %194 = vmatmul.mubr.f32.vlgmr.msra.gmra.mrb[0].mxu0 %v1769_v31  ;;  %1227 = vmatprep.subr.msk.mxu1 %vm122_vm1, %v242_v11  ;;  %v361_v31 = vld [vmem:[%s2419_s4 + $0x88] sm:$0xff]  ;;  %v771_v11 = vld [vmem:[%s2420_s5 + $0x18] sm:$0xff]  ;;  %v1370_v25 = vpack.c.bf16 %v779_v24, %v777_v23  ;;  %v784_v38 = vld [vmem:[%s2420_s5 + $0x80] sm:$0xff] }
  0x2f   :  { %1323 = vmatprep.subr.bf16.mxu0 %v1322_v12  ;;  %1232 = vmatprep.mubr.msk.f32.mxu0 %vm119_vm0, %v263_v46  ;;  %v1338_v34 = vpack.c.bf16 %v363_v32, %v361_v31  ;;  %v1344_v46 = vpack.c.bf16 %v366_v43, %v364_v42  ;;  %v781_v29 = vld [vmem:[%s2420_s5 + $0x68] sm:$0xff]  ;;  %v780_v32 = vld [vmem:[%s2420_s5 + $0x60] sm:$0xff]  ;;  %v787_v36 = vld [vmem:[%s2420_s5 + $0x98] sm:$0xff] }
  0x30   :  { %1325 = vmatpush1.bf16.msra.mxu0 %v1324_v13  ;;  %v768_v13 = vld [vmem:[%s2420_s5] sm:$0xff]  ;;  %v1374_v31 = vpack.c.bf16 %v783_v30, %v781_v29  ;;  %v785_v35 = vld [vmem:[%s2420_s5 + $0x88] sm:$0xff]  ;;  %v791_v43 = vld [vmem:[%s2420_s5 + $0xb8] sm:$0xff]  ;;  %v2173_v29 = vsub.s32 0, %v1722_v7 }
  0x31   :  { %1228 = vmatpush1.msk.msra.mxu1 %vm122_vm1, %v241_v17  ;;  %1327 = vmatprep.subr.bf16.mxu0 %v1326_v14  ;;  %v770_v14 = vld [vmem:[%s2420_s5 + $0x10] sm:$0xff]  ;;  %v775_v17 = vld [vmem:[%s2420_s5 + $0x38] sm:$0xff]  ;;  %v1378_v37 = vpack.c.bf16 %v787_v36, %v785_v35  ;;  %v789_v42 = vld [vmem:[%s2420_s5 + $0xa8] sm:$0xff] }
  0x32   :  { %338 = vmatmul.mubr.f32.vlgmr.msra.gmra.mrb[0].mxu1 %v1791_v40  ;;  %v1364_v15 = vpack.c.bf16 %v770_v14, %v768_v13  ;;  %v1366_v18 = vpack.c.bf16 %v775_v17, %v773_v16  ;;  %v1382_v44 = vpack.c.bf16 %v791_v43, %v789_v42  ;;  %v788_v45 = vld [vmem:[%s2420_s5 + $0xa0] sm:$0xff]  ;;  %v795_v49 = vld [vmem:[%s2420_s5 + $0xd8] sm:$0xff]  ;;  %v794_v51 = vld [vmem:[%s2420_s5 + $0xd0] sm:$0xff] }
  0x33   :  { %v792_v50 = vld [vmem:[%s2420_s5 + $0xc0] sm:$0xff]  ;;  %v799_v54 = vld [vmem:[%s2420_s5 + $0xf8] sm:$0xff]  ;;  %v809_v10 = vld [vmem:[%s2420_s5 + $0x148] sm:$0xf] }
  0x34   :  { %1329 = vmatpush1.bf16.msra.mxu0 %v1328_v20  ;;  %v774_v20 = vld [vmem:[%s2420_s5 + $0x30] sm:$0xff]  ;;  %v1388_v55 = vpack.c.bf16 %v794_v51, %v792_v50  ;;  %v796_v57 = vld [vmem:[%s2420_s5 + $0xe0] sm:$0xff]  ;;  %v803_v60 = vld [vmem:[%s2420_s5 + $0x118] sm:$0xff] }
  0x35   :  { %1331 = vmatprep.subr.bf16.mxu0 %v1330_v22  ;;  %v1368_v22 = vpack.c.bf16 %v774_v20, %v772_v19  ;;  %v800_v63 = vld [vmem:[%s2420_s5 + $0x100] sm:$0xff]  ;;  %v807_v2 = vld [vmem:[%s2420_s5 + $0x138] sm:$0xff]  ;;  %v936_v16 = vld [vmem:[%s2421_s10 + $0x28] sm:$0xff] }
  0x36   :  { %v931_v13 = vld [vmem:[%s2421_s10] sm:$0xff]  ;;  %v938_v17 = vld [vmem:[%s2421_s10 + $0x38] sm:$0xff]  ;;  %v940_v23 = vld [vmem:[%s2421_s10 + $0x48] sm:$0xff] }
  0x37   :  { %v2146_v19 = vpack.c.bf16 %v938_v17, %v936_v16  ;;  %v935_v20 = vld [vmem:[%s2421_s10 + $0x20] sm:$0xff]  ;;  %v942_v24 = vld [vmem:[%s2421_s10 + $0x58] sm:$0xff]  ;;  %v944_v30 = vld [vmem:[%s2421_s10 + $0x68] sm:$0xff] }
  0x38   :  { %1333 = vmatpush1.bf16.msra.mxu0 %v1332_v27  ;;  %v778_v27 = vld [vmem:[%s2420_s5 + $0x50] sm:$0xff]  ;;  %v948_v42 = vld [vmem:[%s2421_s10 + $0x88] sm:$0xff]  ;;  %v950_v43 = vld [vmem:[%s2421_s10 + $0x98] sm:$0xff] }
  0x39   :  { %1335 = vmatprep.subr.bf16.mxu0 %v1334_v28  ;;  %v1372_v28 = vpack.c.bf16 %v778_v27, %v776_v26  ;;  %v2164_v26 = vpack.c.bf16 %v942_v24, %v940_v23  ;;  %v939_v27 = vld [vmem:[%s2421_s10 + $0x40] sm:$0xff]  ;;  %v949_v50 = vld [vmem:[%s2421_s10 + $0x90] sm:$0xff] }
  0x3c   :  { %1337 = vmatpush1.bf16.msra.mxu0 %v1336_v33  ;;  %v782_v33 = vld [vmem:[%s2420_s5 + $0x70] sm:$0xff] }
  0x3d   :  { %1339 = vmatprep.subr.bf16.mxu0 %v1338_v34  ;;  %v1376_v34 = vpack.c.bf16 %v782_v33, %v780_v32  ;;  %v97_v32 = vld [vmem:[%s2422_s6] sm:$0x3]  ;;  %v2185_v33 = vsub.s32 1, %v1722_v7 }
  0x40   :  { %1341 = vmatpush1.bf16.msra.mxu0 %v1340_v39  ;;  %v786_v39 = vld [vmem:[%s2420_s5 + $0x90] sm:$0xff] }
  0x41   :  { %1343 = vmatprep.subr.bf16.mxu0 %v1342_v41  ;;  %v1380_v41 = vpack.c.bf16 %v786_v39, %v784_v38  ;;  %v943_v38 = vld [vmem:[%s2421_s10 + $0x60] sm:$0xff]  ;;  %v945_v39 = vld [vmem:[%s2421_s10 + $0x70] sm:$0xff] }
  0x44   :  { %1345 = vmatpush1.bf16.msra.mxu0 %v1344_v46  ;;  %v790_v46 = vld [vmem:[%s2420_s5 + $0xb0] sm:$0xff] }
  0x45   :  { %1347 = vmatprep.subr.bf16.mxu0 %v1346_v47  ;;  %v793_v47 = vld [vmem:[%s2420_s5 + $0xc8] sm:$0xff]  ;;  %v1384_v48 = vpack.c.bf16 %v790_v46, %v788_v45  ;;  %v2208_v46 = vpack.c.bf16 %v945_v39, %v943_v38 }
  0x48   :  { %1349 = vmatpush1.bf16.msra.mxu0 %v1348_v52  ;;  %v1386_v52 = vpack.c.bf16 %v795_v49, %v793_v47  ;;  %v947_v49 = vld [vmem:[%s2421_s10 + $0x80] sm:$0xff] }
  0x49   :  { %1351 = vmatprep.subr.bf16.mxu0 %v1350_v53  ;;  %v797_v53 = vld [vmem:[%s2420_s5 + $0xe8] sm:$0xff] }
  0x4a   :  { %v1390_v56 = vpack.c.bf16 %v799_v54, %v797_v53  ;;  %v243_v53 = vld [vmem:[%s2423_s7] sm:$0x3]  ;;  %v952_v54 = vld [vmem:[%s2421_s10 + $0xa8] sm:$0xff] }
  0x4c   :  { %1353 = vmatpush1.bf16.msra.mxu0 %v1352_v58  ;;  %v798_v58 = vld [vmem:[%s2420_s5 + $0xf0] sm:$0xff] }
  0x4d   :  { %1355 = vmatprep.subr.bf16.mxu0 %v1354_v59  ;;  %v801_v59 = vld [vmem:[%s2420_s5 + $0x108] sm:$0xff]  ;;  %v1392_v61 = vpack.c.bf16 %v798_v58, %v796_v57  ;;  %v2232_v58 = vpack.c.bf16 %v949_v50, %v947_v49 }
  0x4e   :  { %v1394_v62 = vpack.c.bf16 %v803_v60, %v801_v59  ;;  %v951_v59 = vld [vmem:[%s2421_s10 + $0xa0] sm:$0xff] }
  0x50   :  { %1357 = vmatpush1.bf16.msra.mxu0 %v1356_v0  ;;  %v802_v0 = vld [vmem:[%s2420_s5 + $0x110] sm:$0xff] }
  0x51   :  { %1359 = vmatprep.subr.bf16.mxu0 %v1358_v1  ;;  %v805_v1 = vld [vmem:[%s2420_s5 + $0x128] sm:$0xff]  ;;  %v1396_v3 = vpack.c.bf16 %v802_v0, %v800_v63  ;;  %v252_v63 = vrot.slane %v243_v53, %v2185_v33 }
  0x54   :  { %1361 = vmatpush1.bf16.msra.mxu0 %v1360_v4  ;;  %v1398_v4 = vpack.c.bf16 %v807_v2, %v805_v1  ;;  %v956_v1 = vld [vmem:[%s2421_s10 + $0xc8] sm:$0xff]  ;;  %v958_v2 = vld [vmem:[%s2421_s10 + $0xd8] sm:$0xff] }
  0x55   :  { %1230 = vmatprep.subr.msk.mxu0 %vm122_vm1, %v385_v5  ;;  %v804_v5 = vld [vmem:[%s2420_s5 + $0x120] sm:$0xff] }
  0x58   :  { %1231 = vmatpush1.msk.msra.mxu0 %vm122_vm1, %v384_v6  ;;  %v806_v6 = vld [vmem:[%s2420_s5 + $0x130] sm:$0xff] }
  0x59   :  { %469 = vmatmul.mubr.f32.vlgmr.msra.gmra.mrb[2].mxu0 %v1791_v40  ;;  %v769_v40 = vld [vmem:[%s2420_s5 + $0x8] sm:$0xff]  ;;  %v1400_v9 = vpack.c.bf16 %v806_v6, %v804_v5  ;;  %v2255_v6 = vpack.c.bf16 %v958_v2, %v956_v1 }
  0x5a   :  { %v1362_v12 = vpack.c.bf16 %v771_v11, %v769_v40  ;;  %v808_v40 = vld [vmem:[%s2420_s5 + $0x140] sm:$0xf]  ;;  %v932_v11 = vld [vmem:[%s2421_s10 + $0x8] sm:$0xff] }
  0x5c   :  { %1363 = vmatprep.subr.bf16.mxu1 %v1362_v12  ;;  %v934_v12 = vld [vmem:[%s2421_s10 + $0x18] sm:$0xff] }
  0x5d   :  { %1365 = vmatpush1.bf16.msra.mxu1 %v1364_v15  ;;  %v1402_v14 = vpack.c.bf16 %v934_v12, %v932_v11  ;;  %v933_v15 = vld [vmem:[%s2421_s10 + $0x10] sm:$0xff]  ;;  %v955_v12 = vld [vmem:[%s2421_s10 + $0xc0] sm:$0xff] }
  0x5e   :  { %1367 = vmatprep.subr.bf16.mxu1 %v1366_v18  ;;  %v2144_v18 = vpack.c.bf16 %v933_v15, %v931_v13  ;;  %v957_v13 = vld [vmem:[%s2421_s10 + $0xd0] sm:$0xff] }
  0x5f   :  { %1403 = vmatprep.subr.bf16.mxu0 %v1402_v14  ;;  %v2269_v17 = vpack.c.bf16 %v957_v13, %v955_v12 }
  0x60   :  { %1405 = vmatpush1.bf16.msra.mxu0 %v2144_v18 }
  0x61   :  { %1369 = vmatpush1.bf16.msra.mxu1 %v1368_v22  ;;  %v937_v22 = vld [vmem:[%s2421_s10 + $0x30] sm:$0xff]  ;;  %1407 = vmatprep.subr.bf16.mxu0 %v2146_v19 }
  0x62   :  { %1371 = vmatprep.subr.bf16.mxu1 %v1370_v25  ;;  %v2161_v25 = vpack.c.bf16 %v937_v22, %v935_v20 }
  0x64   :  { %1409 = vmatpush1.bf16.msra.mxu0 %v2161_v25 }
  0x65   :  { %1373 = vmatpush1.bf16.msra.mxu1 %v1372_v28  ;;  %v941_v28 = vld [vmem:[%s2421_s10 + $0x50] sm:$0xff]  ;;  %1411 = vmatprep.subr.bf16.mxu0 %v2164_v26 }
  0x66   :  { %1375 = vmatprep.subr.bf16.mxu1 %v1374_v31  ;;  %v946_v31 = vld [vmem:[%s2421_s10 + $0x78] sm:$0xff]  ;;  %v2188_v36 = vpack.c.bf16 %v941_v28, %v939_v27 }
  0x68   :  { %1413 = vmatpush1.bf16.msra.mxu0 %v2188_v36 }
  0x69   :  { %1377 = vmatpush1.bf16.msra.mxu1 %v1376_v34  ;;  %v1507_v34 = vmov 1966171168  }
  0x6a   :  { %1379 = vmatprep.subr.bf16.mxu1 %v1378_v37  ;;  %v479_v35 = vunpack.c.l.s4 %v1507_v34  ;;  %v2191_v37 = vpack.c.bf16 %v946_v31, %v944_v30 }
  0x6c   :  { %v480_v45 = vunpack.c.0.s8 %v479_v35  ;;  %1415 = vmatprep.subr.bf16.mxu0 %v2191_v37 }
  0x6d   :  { %1381 = vmatpush1.bf16.msra.mxu1 %v1380_v41  ;;  %v102_v41 = vrot.slane %v97_v32, %v2173_v29  ;;  %1417 = vmatpush1.bf16.msra.mxu0 %v2208_v46 }
  0x6e   :  { %1383 = vmatprep.subr.bf16.mxu1 %v1382_v44  ;;  %v106_v44 = vrot.slane %v97_v32, %v2185_v33  ;;  %v2229_v57 = vsub.s32 %v480_v45, %v1722_v7  ;;  %v953_v7 = vld [vmem:[%s2421_s10 + $0xb0] sm:$0xff] }
  0x6f   :  { %v2253_v5 = vpack.c.bf16 %v953_v7, %v951_v59 }
  0x71   :  { %1385 = vmatpush1.bf16.msra.mxu1 %v1384_v48  ;;  %v2211_v48 = vpack.c.bf16 %v950_v43, %v948_v42 }
  0x72   :  { %1387 = vmatprep.subr.bf16.mxu1 %v1386_v52 }
  0x73   :  { %1419 = vmatprep.subr.bf16.mxu0 %v2211_v48 }
  0x74   :  { %1421 = vmatpush1.bf16.msra.mxu0 %v2232_v58 }
  0x75   :  { %1389 = vmatpush1.bf16.msra.mxu1 %v1388_v55  ;;  %v954_v55 = vld [vmem:[%s2421_s10 + $0xb8] sm:$0xff] }
  0x76   :  { %1391 = vmatprep.subr.bf16.mxu1 %v1390_v56  ;;  %v2240_v0 = vpack.c.bf16 %v954_v55, %v952_v54 }
  0x78   :  { %1423 = vmatprep.subr.bf16.mxu0 %v2240_v0 }
  0x79   :  { %1393 = vmatpush1.bf16.msra.mxu1 %v1392_v61  ;;  %v248_v61 = vrot.slane %v243_v53, %v2173_v29  ;;  %1425 = vmatpush1.bf16.msra.mxu0 %v2253_v5 }
  0x7a   :  { %1395 = vmatprep.subr.bf16.mxu1 %v1394_v62  ;;  %1427 = vmatprep.subr.bf16.mxu0 %v2255_v6 }
  0x7d   :  { %1397 = vmatpush1.bf16.msra.mxu1 %v1396_v3  ;;  %1429 = vmatpush1.bf16.msra.mxu0 %v2269_v17 }
  0x7e   :  { %1399 = vmatprep.subr.bf16.mxu1 %v1398_v4 }
  0x81   :  { %1401 = vmatpush1.bf16.msra.mxu1 %v1400_v9 }
  0x82   :  { %1233 = vmatprep.subr.msk.mxu1 %vm122_vm1, %v809_v10 }
  0x85   :  { %1234 = vmatpush1.msk.msra.mxu1 %vm122_vm1, %v808_v40 }
  0x86   :  { %1443 = vmatprep.subr.bf16.mxu1 %v1402_v14 }
 0x101   :  { %v195_v47 = vpop.f32.mrb[0].mxu0 }
 0x102   :  { %v196_v51 = vadd.f32 %v195_v47, %v102_v41  ;;  %v197_v52 = vpop.f32.mrb[1].mxu0 }
 0x103   :  { %v198_v56 = vadd.f32 %v197_v52, %v106_v44 }
 0x105   :  { %v477_v60 = vcombine.low %v196_v51, %v198_v56  ;;  %v339_v62 = vpop.f32.mrb[0].mxu1 }
 0x106   :  { %v341_v3 = vpop.f32.mrb[1].mxu1  ;;  %v340_v10 = vadd.f32 %v339_v62, %v248_v61 }
 0x107   :  { %v484_v4 = vrot.slane %v477_v60, %v2229_v57  ;;  %v342_v11 = vadd.f32 %v341_v3, %v252_v63 }
 0x109   :  { %v485_v9 = vcombine.high %v484_v4, %v484_v4  ;;  %v492_v40 = vrot.slane %v484_v4, %v2229_v57 }
 0x10b   :  { %v499_v14 = vrot.slane %v485_v9, %v2229_v57  ;;  %v503_v15 = vrot.slane %v492_v40, %v2173_v29  ;;  %v507_v16 = vrot.slane %v492_v40, %v2185_v33 }
 0x10d   :  { %v511_v20 = vrot.slane %v499_v14, %v2173_v29  ;;  %v520_v22 = vmul.f32 %v503_v15, %v340_v10  ;;  %v515_v23 = vrot.slane %v499_v14, %v2185_v33  ;;  %v521_v24 = vmul.f32 %v507_v16, %v342_v11 }
 0x10f   :  { %v522_v27 = vmul.f32 %v511_v20, %v340_v10  ;;  %v526_v28 = vsel %vm48_vm3, %v520_v22, -inf  ;;  %v523_v30 = vmul.f32 %v515_v23, %v342_v11  ;;  %v534_v31 = vsel %vm533_vm5, %v521_v24, -inf  ;;  %v524_v11 = vld [vmem:[#allocation2] sm:$0xf] }
 0x110   :  { %v527_v32 = vrot.slane %v526_v28, 4  ;;  %v535_v34 = vrot.slane %v534_v31, 4 }
 0x111   :  { %v541_v35 = vsel %vm48_vm3, %v522_v27, -inf  ;;  %v548_v38 = vsel %vm533_vm5, %v523_v30, -inf }
 0x112   :  { %v528_v39 = vmax.f32 %v526_v28, %v527_v32  ;;  %v542_v41 = vrot.slane %v541_v35, 4  ;;  %v536_v42 = vmax.f32 %v534_v31, %v535_v34  ;;  %v549_v43 = vrot.slane %v548_v38, 4 }
 0x114   :  { %v529_v44 = vrot.slane %v528_v39, 2  ;;  %v543_v45 = vmax.f32 %v541_v35, %v542_v41  ;;  %v537_v47 = vrot.slane %v536_v42, 2  ;;  %v550_v49 = vmax.f32 %v548_v38, %v549_v43 }
 0x116   :  { %v530_v50 = vmax.f32 %v528_v39, %v529_v44  ;;  %v544_v51 = vrot.slane %v543_v45, 2  ;;  %v538_v52 = vmax.f32 %v536_v42, %v537_v47  ;;  %v551_v53 = vrot.slane %v550_v49, 2  ;;  %v386_v47 = vld [vmem:[%s2424_s8] sm:$0x3] }
 0x118   :  { %v531_v54 = vrot.slane %v530_v50, 1  ;;  %v545_v55 = vmax.f32 %v543_v45, %v544_v51  ;;  %v539_v56 = vrot.slane %v538_v52, 1  ;;  %v552_v59 = vmax.f32 %v550_v49, %v551_v53 }
 0x119   :  { %v395_v49 = vrot.slane %v386_v47, %v2185_v33 }
 0x11a   :  { %v532_v60 = vmax.f32 %v530_v50, %v531_v54  ;;  %v546_v61 = vrot.slane %v545_v55, 1  ;;  %v540_v62 = vmax.f32 %v538_v52, %v539_v56  ;;  %v553_v63 = vrot.slane %v552_v59, 1 }
 0x11c   :  { %v547_v7 = vmax.f32 %v545_v55, %v546_v61  ;;  %v554_v1 = vmax.f32 %v552_v59, %v553_v63  ;;  %v559_v2 = vcombine.low %v532_v60, %v540_v62 }
 0x11e   :  { %v567_v3 = vcombine.low %v547_v7, %v554_v1  ;;  %v566_v9 = vrot.slane %v559_v2, %v1749_v21 }
 0x120   :  { %v574_v4 = vrot.slane %v567_v3, %v1749_v21 }
 0x122   :  { %v579_v10 = vrot.slane %v574_v4, 7 }
 0x124   :  { %v581_v40 = vsel %vm580_vm6, %v579_v10, %v566_v9 }
 0x125   :  { %v583_v12 = vsel %vm582_vm7, %v579_v10, %v581_v40 }
 0x126   :  { %v585_v13 = vsel %vm584_vm8, %v579_v10, %v583_v12 }
 0x127   :  { %v587_v14 = vsel %vm586_vm9, %v579_v10, %v585_v13 }
 0x128   :  { %v589_v15 = vmax.f32 %v524_v11, %v587_v14 }
 0x12a   :  { %v600_v16 = vrot.slane %v589_v15, %v2229_v57  ;;  %760 = vst.msk [vmem:[#allocation2] sm:$0xf] %vm1988_vm4, %v589_v15  ;;  %v590_v50 = vsub.f32 %v524_v11, %v589_v15 }
 0x12c   :  { %v601_v20 = vcombine.high %v600_v16, %v600_v16  ;;  %v605_v23 = vrot.slane %v600_v16, %v2173_v29  ;;  %v609_v28 = vrot.slane %v600_v16, %v2185_v33  ;;  %v470_v31 = vpop.f32.mrb[2].mxu0 }
 0x12d   :  { %v472_v32 = vpop.f32.mrb[3].mxu0 }
 0x12e   :  { %v613_v34 = vrot.slane %v601_v20, %v2173_v29  ;;  %v617_v35 = vrot.slane %v601_v20, %v2185_v33  ;;  %v623_v38 = vsub.f32 %v521_v24, %v609_v28  ;;  %v622_v39 = vsub.f32 %v520_v22, %v605_v23 }
 0x12f   :  { %v391_v24 = vrot.slane %v386_v47, %v2173_v29  ;;  %v473_v22 = vadd.f32 %v472_v32, %v395_v49 }
 0x130   :  { %v624_v41 = vsub.f32 %v522_v27, %v613_v34  ;;  %v625_v42 = vsub.f32 %v523_v30, %v617_v35  ;;  %v628_v43 = vmul.f32 1.442695, %v623_v38  ;;  %v626_v57 = vmul.f32 1.442695, %v622_v39 }
 0x131   :  { %v591_v27 = vmul.f32 1.442695, %v590_v50  ;;  %v471_v30 = vadd.f32 %v470_v31, %v391_v24 }
 0x132   :  { %1486 = vpow2.f32 %v628_v43  ;;  %v630_v44 = vmul.f32 1.442695, %v624_v41  ;;  %v632_v45 = vmul.f32 1.442695, %v625_v42 }
 0x133   :  { %1488 = vpow2.f32 %v626_v57 }
 0x134   :  { %1490 = vpow2.f32 %v632_v45 }
 0x135   :  { %1492 = vpow2.f32 %v630_v44 }
 0x136   :  { %1494 = vpow2.f32 %v591_v27 }
 0x13c   :  { %v1487_v51 = vpop.eup %1486 }
 0x13d   :  { %v1489_v52 = vpop.eup %1488  ;;  %v643_v53 = vsel %vm533_vm5, %v1487_v51, 0.0  ;;  %v699_v54 = vmul.f32 %v1487_v51, %v473_v22 }
 0x13e   :  { %v1491_v55 = vpop.eup %1490  ;;  %v644_v56 = vrot.slane %v643_v53, 4  ;;  %v636_v59 = vsel %vm48_vm3, %v1489_v52, 0.0  ;;  %v698_v60 = vmul.f32 %v1489_v52, %v471_v30 }
 0x13f   :  { %v1493_v61 = vpop.eup %1492  ;;  %v657_v62 = vsel %vm533_vm5, %v1491_v55, 0.0  ;;  %v637_v63 = vrot.slane %v636_v59, 4  ;;  %v701_v7 = vmul.f32 %v1491_v55, %v473_v22  ;;  %v709_v1 = vsel %vm533_vm5, %v699_v54, 0.0 }
 0x140   :  { %v645_v2 = vadd.f32 %v644_v56, %v643_v53  ;;  %v658_v3 = vrot.slane %v657_v62, 4  ;;  %v650_v4 = vsel %vm48_vm3, %v1493_v61, 0.0  ;;  %v700_v9 = vmul.f32 %v1493_v61, %v471_v30  ;;  %v1495_v27 = vpop.eup %1494 }
 0x141   :  { %v638_v10 = vadd.f32 %v637_v63, %v636_v59  ;;  %v651_v40 = vrot.slane %v650_v4, 4  ;;  %v702_v11 = vsel %vm48_vm3, %v698_v60, 0.0  ;;  %v710_v12 = vrot.slane %v709_v1, 4 }
 0x142   :  { %v646_v13 = vrot.slane %v645_v2, 2  ;;  %v659_v14 = vadd.f32 %v658_v3, %v657_v62  ;;  %v703_v15 = vrot.slane %v702_v11, 4  ;;  %v716_v16 = vsel %vm48_vm3, %v700_v9, 0.0 }
 0x143   :  { %v639_v20 = vrot.slane %v638_v10, 2  ;;  %v652_v23 = vadd.f32 %v651_v40, %v650_v4  ;;  %v717_v28 = vrot.slane %v716_v16, 4  ;;  %v711_v31 = vadd.f32 %v710_v12, %v709_v1 }
 0x144   :  { %v647_v32 = vadd.f32 %v646_v13, %v645_v2  ;;  %v660_v34 = vrot.slane %v659_v14, 2  ;;  %v704_v35 = vadd.f32 %v703_v15, %v702_v11  ;;  %v723_v38 = vsel %vm533_vm5, %v701_v7, 0.0 }
 0x145   :  { %v640_v39 = vadd.f32 %v639_v20, %v638_v10  ;;  %v653_v41 = vrot.slane %v652_v23, 2  ;;  %v718_v42 = vadd.f32 %v717_v28, %v716_v16  ;;  %v712_v43 = vrot.slane %v711_v31, 2  ;;  %v634_v16 = vld [vmem:[#allocation3] sm:$0xf] }
 0x146   :  { %v648_v57 = vrot.slane %v647_v32, 1  ;;  %v661_v44 = vadd.f32 %v660_v34, %v659_v14  ;;  %v705_v45 = vrot.slane %v704_v35, 2  ;;  %v724_v47 = vrot.slane %v723_v38, 4 }
 0x147   :  { %v641_v49 = vrot.slane %v640_v39, 1  ;;  %v654_v50 = vadd.f32 %v653_v41, %v652_v23  ;;  %v719_v24 = vrot.slane %v718_v42, 2  ;;  %v713_v22 = vadd.f32 %v712_v43, %v711_v31 }
 0x148   :  { %v649_v30 = vadd.f32 %v648_v57, %v647_v32  ;;  %v662_v51 = vrot.slane %v661_v44, 1  ;;  %v706_v52 = vadd.f32 %v705_v45, %v704_v35  ;;  %v725_v53 = vadd.f32 %v724_v47, %v723_v38 }
 0x149   :  { %v642_v54 = vadd.f32 %v641_v49, %v640_v39  ;;  %v655_v55 = vrot.slane %v654_v50, 1  ;;  %v720_v56 = vadd.f32 %v719_v24, %v718_v42  ;;  %v714_v59 = vrot.slane %v713_v22, 1  ;;  %v696_v42 = vld [vmem:[#allocation4] sm:$0xf] }
 0x14a   :  { %v663_v60 = vadd.f32 %v662_v51, %v661_v44  ;;  %v707_v61 = vrot.slane %v706_v52, 1  ;;  %v726_v62 = vrot.slane %v725_v53, 2  ;;  %v635_v32 = vmul.f32 %v1495_v27, %v634_v16 }
 0x14b   :  { %v656_v63 = vadd.f32 %v655_v55, %v654_v50  ;;  %v668_v7 = vcombine.low %v642_v54, %v649_v30  ;;  %v721_v1 = vrot.slane %v720_v56, 1  ;;  %v715_v2 = vadd.f32 %v714_v59, %v713_v22  ;;  %v967_v54 = vld [vmem:[%s2421_s10 + $0x120] sm:$0xff]  ;;  %v969_v55 = vld [vmem:[%s2421_s10 + $0x130] sm:$0xff]  ;;  %v972_v59 = vld [vmem:[%s2421_s10 + $0x148] sm:$0xf] }
 0x14c   :  { %v708_v3 = vadd.f32 %v707_v61, %v706_v52  ;;  %v727_v4 = vadd.f32 %v726_v62, %v725_v53  ;;  %v697_v44 = vmul.f32 %v1495_v27, %v696_v42  ;;  %v970_v27 = vld [vmem:[%s2421_s10 + $0x138] sm:$0xff]  ;;  %v911_v61 = vld [vmem:[%s2425_s9] sm:$0x3] }
 0x14d   :  { %v676_v9 = vcombine.low %v656_v63, %v663_v60  ;;  %v722_v10 = vadd.f32 %v721_v1, %v720_v56  ;;  %v675_v14 = vrot.slane %v668_v7, %v1749_v21  ;;  %v1440_v56 = vpack.c.bf16 %v969_v55, %v967_v54  ;;  %v971_v60 = vld [vmem:[%s2421_s10 + $0x140] sm:$0xf] }
 0x14e   :  { %v728_v40 = vrot.slane %v727_v4, 1  ;;  %v734_v11 = vcombine.low %v708_v3, %v715_v2  ;;  %v916_v62 = vrot.slane %v911_v61, %v2173_v29  ;;  %v920_v63 = vrot.slane %v911_v61, %v2185_v33 }
 0x14f   :  { %v683_v12 = vrot.slane %v676_v9, %v1749_v21 }
 0x150   :  { %v729_v13 = vadd.f32 %v728_v40, %v727_v4  ;;  %v741_v38 = vrot.slane %v734_v11, %v1749_v21  ;;  %v921_v1 = vcombine.low %v916_v62, %v920_v63 }
 0x151   :  { %v686_v15 = vrot.slane %v683_v12, 7 }
 0x152   :  { %v742_v20 = vcombine.low %v722_v10, %v729_v13  ;;  %v928_v9 = vrot.slane %v921_v1, %v1749_v21  ;;  %v1502_v10 = vld [vmem:[%s2417_s0] sm:$0xf] }
 0x153   :  { %v687_v23 = vsel %vm580_vm6, %v686_v15, %v675_v14 }
 0x154   :  { %v688_v28 = vsel %vm582_vm7, %v686_v15, %v687_v23  ;;  %v749_v31 = vrot.slane %v742_v20, %v1749_v21 }
 0x155   :  { %v689_v34 = vsel %vm584_vm8, %v686_v15, %v688_v28 }
 0x156   :  { %v690_v35 = vsel %vm586_vm9, %v686_v15, %v689_v34  ;;  %v752_v39 = vrot.slane %v749_v31, 7 }
 0x157   :  { %v692_v41 = vadd.f32 %v690_v35, %v635_v32 }
 0x158   :  { %v753_v43 = vsel %vm580_vm6, %v752_v39, %v741_v38 }
 0x159   :  { %695 = vst.msk [vmem:[#allocation3] sm:$0xf] %vm1988_vm4, %v692_v41  ;;  %v754_v57 = vsel %vm582_vm7, %v752_v39, %v753_v43 }
 0x15a   :  { %v755_v45 = vsel %vm584_vm8, %v752_v39, %v754_v57 }
 0x15b   :  { %v756_v47 = vsel %vm586_vm9, %v752_v39, %v755_v45  ;;  %v1198_v45 = vld [vmem:[%s2427_s12] sm:$0x3] }
 0x15c   :  { %v758_v49 = vadd.f32 %v756_v47, %v697_v44  ;;  %v1178_v44 = vld [vmem:[%s2426_s11] sm:$0x3] }
 0x15d   :  { %v1183_v47 = vrot.slane %v1178_v44, %v2173_v29 }
 0x15e   :  { %759 = vst.msk [vmem:[#allocation4] sm:$0xf] %vm1988_vm4, %v758_v49  ;;  %v1187_v49 = vrot.slane %v1178_v44, %v2185_v33 }
 0x160   :  { %v765_v50 = vld [vmem:[#allocation3] sm:$0xf] }
 0x161   :  { %1496 = vrcp.f32 %v765_v50  ;;  %v1203_v50 = vrot.slane %v1198_v45, %v2173_v29 }
 0x165   :  { %v764_v22 = vld [vmem:[#allocation4] sm:$0xf] }
 0x16b   :  { %v1497_v24 = vpop.eup %1496 }
 0x16c   :  { %v767_v30 = vmul.f32 %v1497_v24, %v764_v22  ;;  %v1207_v24 = vrot.slane %v1198_v45, %v2185_v33 }
 0x16e   :  { %v817_v51 = vrot.slane %v767_v30, %v1749_v21  ;;  %v1188_v30 = vcombine.low %v1183_v47, %v1187_v49 }
 0x170   :  { %v818_v52 = vcombine.high %v817_v51, %v817_v51 }
 0x172   :  { %1235 = vmatprep.mubr.msk.f32.mxu1 %vm119_vm0, %v818_v52 }
 0x173   :  { %893 = vmatmul.mubr.f32.vlgmr.msra.gmra.mrb[2].mxu1 %v817_v51 }
 0x174   :  { %1445 = vmatpush1.bf16.msra.mxu1 %v2144_v18  ;;  %v960_v18 = vld [vmem:[%s2421_s10 + $0xe8] sm:$0xff] }
 0x175   :  { %1447 = vmatprep.subr.bf16.mxu1 %v2146_v19  ;;  %v962_v19 = vld [vmem:[%s2421_s10 + $0xf8] sm:$0xff] }
 0x178   :  { %1449 = vmatpush1.bf16.msra.mxu1 %v2161_v25  ;;  %v1430_v25 = vpack.c.bf16 %v962_v19, %v960_v18  ;;  %v1208_v18 = vcombine.low %v1203_v50, %v1207_v24 }
 0x179   :  { %1451 = vmatprep.subr.bf16.mxu1 %v2164_v26  ;;  %v959_v26 = vld [vmem:[%s2421_s10 + $0xe0] sm:$0xff] }
 0x17a   :  { %1431 = vmatprep.subr.bf16.mxu0 %v1430_v25 }
 0x17c   :  { %1453 = vmatpush1.bf16.msra.mxu1 %v2188_v36  ;;  %v961_v36 = vld [vmem:[%s2421_s10 + $0xf0] sm:$0xff] }
 0x17d   :  { %1455 = vmatprep.subr.bf16.mxu1 %v2191_v37  ;;  %v1432_v37 = vpack.c.bf16 %v961_v36, %v959_v26  ;;  %v1215_v36 = vrot.slane %v1208_v18, %v1749_v21 }
 0x17f   :  { %1433 = vmatpush1.bf16.msra.mxu0 %v1432_v37 }
 0x180   :  { %1457 = vmatpush1.bf16.msra.mxu1 %v2208_v46  ;;  %v964_v46 = vld [vmem:[%s2421_s10 + $0x108] sm:$0xff] }
 0x181   :  { %1459 = vmatprep.subr.bf16.mxu1 %v2211_v48  ;;  %v966_v48 = vld [vmem:[%s2421_s10 + $0x118] sm:$0xff] }
 0x184   :  { %1461 = vmatpush1.bf16.msra.mxu1 %v2232_v58  ;;  %v1434_v58 = vpack.c.bf16 %v966_v48, %v964_v46 }
 0x185   :  { %1463 = vmatprep.subr.bf16.mxu1 %v2240_v0  ;;  %v963_v0 = vld [vmem:[%s2421_s10 + $0x100] sm:$0xff] }
 0x186   :  { %1435 = vmatprep.subr.bf16.mxu0 %v1434_v58 }
 0x188   :  { %1465 = vmatpush1.bf16.msra.mxu1 %v2253_v5  ;;  %v965_v5 = vld [vmem:[%s2421_s10 + $0x110] sm:$0xff] }
 0x189   :  { %1467 = vmatprep.subr.bf16.mxu1 %v2255_v6  ;;  %v1436_v6 = vpack.c.bf16 %v965_v5, %v963_v0 }
 0x18b   :  { %1437 = vmatpush1.bf16.msra.mxu0 %v1436_v6 }
 0x18c   :  { %1469 = vmatpush1.bf16.msra.mxu1 %v2269_v17  ;;  %v968_v17 = vld [vmem:[%s2421_s10 + $0x128] sm:$0xff] }
 0x18d   :  { %1471 = vmatprep.subr.bf16.mxu1 %v1430_v25  ;;  %v1438_v53 = vpack.c.bf16 %v970_v27, %v968_v17  ;;  %v1195_v25 = vrot.slane %v1188_v30, %v1749_v21 }
 0x18f   :  { %1439 = vmatprep.subr.bf16.mxu0 %v1438_v53 }
 0x190   :  { %1473 = vmatpush1.bf16.msra.mxu1 %v1432_v37  ;;  %1441 = vmatpush1.bf16.msra.mxu0 %v1440_v56 }
 0x191   :  { %1475 = vmatprep.subr.bf16.mxu1 %v1434_v58  ;;  %1236 = vmatprep.subr.msk.mxu0 %vm122_vm1, %v972_v59 }
 0x194   :  { %1477 = vmatpush1.bf16.msra.mxu1 %v1436_v6  ;;  %1237 = vmatpush1.msk.msra.mxu0 %vm122_vm1, %v971_v60 }
 0x195   :  { %1479 = vmatprep.subr.bf16.mxu1 %v1438_v53 }
 0x198   :  { %1481 = vmatpush1.bf16.msra.mxu1 %v1440_v56 }
 0x199   :  { %1239 = vmatprep.subr.msk.mxu1 %vm122_vm1, %v972_v59 }
 0x19c   :  { %1240 = vmatpush1.msk.msra.mxu1 %vm122_vm1, %v971_v60 }
 0x246   :  { %v894_v7 = vpop.f32.mrb[2].mxu1 }
 0x247   :  { %v896_v2 = vpop.f32.mrb[3].mxu1 }
 0x248   :  { %v901_v3 = vcombine.low %v894_v7, %v896_v2 }
 0x24a   :  { %v908_v4 = vrot.slane %v901_v3, %v1749_v21 }
 0x24c   :  { %v910_v40 = vadd.f32 %v1502_v10, %v908_v4 }
 0x24e   :  { %v930_v11 = vadd.f32 %v928_v9, %v910_v40 }
 0x250   :  { %v980_v12 = vrot.slane %v930_v11, %v1749_v21 }
 0x252   :  { %v981_v13 = vcombine.high %v980_v12, %v980_v12 }
 0x254   :  { %1238 = vmatprep.mubr.msk.f32.mxu0 %vm119_vm0, %v981_v13 }
 0x255   :  { %1056 = vmatmul.mubr.f32.vlgmr.msra.gmra.mrb[4].mxu0 %v980_v12 }
 0x328   :  { %v1057_v14 = vpop.f32.mrb[4].mxu0 }
 0x329   :  { %v1062_v15 = vmul.f32 0.25, %v1057_v14  ;;  %v1059_v16 = vpop.f32.mrb[5].mxu0 }
 0x32a   :  { %v1063_v20 = vmul.f32 0.25, %v1059_v16 }
 0x32c   :  { %v1066_v23 = vcombine.low %v1062_v15, %v1063_v20 }
 0x32e   :  { %v1073_v28 = vrot.slane %v1066_v23, %v1749_v21 }
 0x330   :  { %v1075_v31 = vsub.f32 %v930_v11, %v1073_v28 }
 0x332   :  { %v1076_v32 = vmul.f32 %v1075_v31, %v1075_v31 }
 0x334   :  { %v1084_v34 = vrot.slane %v1076_v32, %v1749_v21 }
 0x336   :  { %v1085_v35 = vcombine.high %v1084_v34, %v1084_v34 }
 0x338   :  { %1241 = vmatprep.mubr.msk.f32.mxu1 %vm119_vm0, %v1085_v35 }
 0x339   :  { %1154 = vmatmul.mubr.f32.vlgmr.msra.gmra.mrb[4].mxu1 %v1084_v34 }
 0x40c   :  { %v1155_v38 = vpop.f32.mrb[4].mxu1 }
 0x40d   :  { %v1160_v39 = vmul.f32 0.25, %v1155_v38  ;;  %v1157_v41 = vpop.f32.mrb[5].mxu1 }
 0x40e   :  { %v1161_v42 = vmul.f32 0.25, %v1157_v41 }
 0x40f   :  { %v1162_v43 = vadd.f32 1e-05, %v1160_v39 }
 0x410   :  { %v1163_v57 = vadd.f32 1e-05, %v1161_v42 }
 0x411   :  { %1498 = vrsqrt.f32 %v1162_v43 }
 0x412   :  { %1500 = vrsqrt.f32 %v1163_v57 }
 0x41b   :  { %v1499_v22 = vpop.eup %1498 }
 0x41c   :  { %v1501_v51 = vpop.eup %1500 }
 0x41d   :  { %v1168_v52 = vcombine.low %v1499_v22, %v1501_v51 }
 0x41f   :  { %v1175_v19 = vrot.slane %v1168_v52, %v1749_v21 }
 0x421   :  { %v1177_v26 = vmul.f32 %v1175_v19, %v1075_v31 }
 0x423   :  { %v1197_v37 = vmul.f32 %v1195_v25, %v1177_v26 }
 0x425   :  { %v1217_v46 = vadd.f32 %v1215_v36, %v1197_v37 }
 0x427   :  { %1218 = vst.msk [vmem:[%s2428_s13] sm:$0xf] %vm1988_vm4, %v1217_v46 }

// kernel: graph_cnn_forward.18
= control target key start
LH: loop header
LB: loop body
LE: loop exit
PB: predicated region body
PF: predicated region fallthrough
CT: control target
= control target key end

     0   :  { %s3471_s24 = smov 0   ;;  %s4303_s0 = inlined_call_operand.vmem [shape: f32[2,41,4], index: 0, kind: input, shape index: {}]   ;;  %s4304_s1 = inlined_call_operand.vmem [shape: bf16[4,2048], index: 1, kind: input, shape index: {}]   ;;  %s4305_s2 = inlined_call_operand.vmem [shape: f32[1,2048], index: 2, kind: input, shape index: {}]   ;;  %s4306_s3 = inlined_call_operand.vmem [shape: bf16[2048,4], index: 3, kind: input, shape index: {}]   ;;  %s4307_s4 = inlined_call_operand.vmem [shape: f32[1,4], index: 4, kind: input, shape index: {}]   ;;  %s4308_s5 = inlined_call_operand.vmem [shape: f32[1,4], index: 5, kind: input, shape index: {}]   ;;  %s4309_s6 = inlined_call_operand.vmem [shape: f32[1,4], index: 6, kind: input, shape index: {}]   ;;  %s4310_s7 = inlined_call_operand.vmem [shape: f32[2,41,4], index: 7, kind: output, shape index: {}]  }
   0x1 LB: > { %s2816_s25 = sadd.s32 4294967295, %s3427_s24   ;;  %p2820_p0 = scmp.ge.s32.totalorder %s3427_s24, 1  ;;  %s3427_s24 = sphi %s3471_s24, %s17_s24  }
   0x2   : > { %p237_p1 = scmp.lt.s32.totalorder %s3427_s24, 3 }
   0x4   : > { %p238_p2 = pnand %p2820_p0, %p237_p1 }
   0x5   : > { %v289_v0 = vld [vmem:[%s4304_s1] sm:$0xff] (!%p238_p2)  ;;  %v297_v1 = vlaneseq (!%p238_p2)  ;;  %p269_p3 = scmp.lt.s32.totalorder (!%p238_p2), %s2816_s25, 1  ;;  %v3429_v2 = vmov (!%p238_p2), 1983009808   ;;  %v3430_v4 = vmov (!%p238_p2), 0   ;;  %v290_v5 = vld [vmem:[%s4304_s1 + $0x8] sm:$0xff] (!%p238_p2) }
   0x6   : > { %241 = sbr.rel (%p238_p2) target bundleno = 891 (0x37b), region = 48  ;;  %v383_v3 = vunpack.c.l.s4 (!%p238_p2), %v3429_v2  ;;  %540 = vmatprep.mubr.bf16.mxu0 (!%p238_p2), %v3430_v4  ;;  %603 = vmatprep.mubr.bf16.mxu1 (!%p238_p2), %v3430_v4  ;;  %v381_v8 = vcombine.high (!%p238_p2), %v289_v0, %v289_v0  ;;  %v398_v9 = vcombine.high (!%p238_p2), %v290_v5, %v290_v5  ;;  %v291_v10 = vld [vmem:[%s4304_s1 + $0x10] sm:$0xff] (!%p238_p2)  ;;  %vm459_vm0 = vcmask (!%p238_p2), 1041408   ;;  %v292_v35 = vld [vmem:[%s4304_s1 + $0x18] sm:$0xff] (!%p238_p2)  ;;  %v3275_v48 = vld [vmem:[%s4306_s3 + $0x40] sm:$0xff] (!%p238_p2)  }
   0x7   : > { %v3487_v6 = vshrl.u32 (!%p238_p2), %v297_v1, 7  ;;  %v415_v12 = vcombine.high (!%p238_p2), %v291_v10, %v291_v10  ;;  %vm449_vm1 = vcmask (!%p238_p2), 31744   ;;  %v432_v36 = vcombine.high (!%p238_p2), %v292_v35, %v292_v35  ;;  %v3276_v49 = vld [vmem:[%s4306_s3 + $0xc0] sm:$0xff] (!%p238_p2)   ;;  %v3279_v52 = vld [vmem:[%s4306_s3 + $0x48] sm:$0xff] (!%p238_p2)   ;;  %v3283_v56 = vld [vmem:[%s4306_s3 + $0x50] sm:$0xff] (!%p238_p2)  }
   0x8   : > { %v384_v7 = vunpack.c.0.s8 (!%p238_p2), %v383_v3  ;;  %v3277_v50 = vld [vmem:[%s4306_s3] sm:$0xff] (!%p238_p2)   ;;  %v3280_v53 = vld [vmem:[%s4306_s3 + $0xc8] sm:$0xff] (!%p238_p2)   ;;  %v3284_v57 = vld [vmem:[%s4306_s3 + $0xd0] sm:$0xff] (!%p238_p2)   ;;  %vm2664_vm2 = vcmask (!%p238_p2), 24576  }
   0x9   : > { %v3278_v51 = vld [vmem:[%s4306_s3 + $0x80] sm:$0xff] (!%p238_p2)   ;;  %v3281_v54 = vld [vmem:[%s4306_s3 + $0x8] sm:$0xff] (!%p238_p2)   ;;  %v3285_v58 = vld [vmem:[%s4306_s3 + $0x10] sm:$0xff] (!%p238_p2)  }
   0xa   : > { %v387_v11 = vsub.s32 (!%p238_p2), %v384_v7, %v3487_v6  ;;  %v3282_v55 = vld [vmem:[%s4306_s3 + $0x88] sm:$0xff] (!%p238_p2)   ;;  %v3286_v59 = vld [vmem:[%s4306_s3 + $0x90] sm:$0xff] (!%p238_p2)   ;;  %v3287_v60 = vld [vmem:[%s4306_s3 + $0x58] sm:$0xff] (!%p238_p2)  }
   0xb   : > { %v3288_v61 = vld [vmem:[%s4306_s3 + $0xd8] sm:$0xff] (!%p238_p2)   ;;  %v3292_v1 = vld [vmem:[%s4306_s3 + $0xe0] sm:$0xff] (!%p238_p2)   ;;  %v3297_v7 = vld [vmem:[%s4306_s3 + $0x28] sm:$0xff] (!%p238_p2)  }
   0xc   : > { %v388_v13 = vrot.slane (!%p238_p2), %v289_v0, %v387_v11  ;;  %v395_v14 = vrot.slane (!%p238_p2), %v381_v8, %v387_v11  ;;  %v405_v15 = vrot.slane (!%p238_p2), %v290_v5, %v387_v11  ;;  %v412_v16 = vrot.slane (!%p238_p2), %v398_v9, %v387_v11  ;;  %v3289_v62 = vld [vmem:[%s4306_s3 + $0x18] sm:$0xff] (!%p238_p2)   ;;  %v3291_v0 = vld [vmem:[%s4306_s3 + $0x60] sm:$0xff] (!%p238_p2)   ;;  %v3296_v5 = vld [vmem:[%s4306_s3 + $0xe8] sm:$0xff] (!%p238_p2)  }
   0xd   : > { %s4312_s25 = smov (!%p269_p3, %s2816_s25), 1  ;;  %v422_v25 = vrot.slane %v291_v10, %v387_v11  ;;  %v429_v26 = vrot.slane %v415_v12, %v387_v11  ;;  %v439_v39 = vrot.slane %v292_v35, %v387_v11  ;;  %v446_v40 = vrot.slane %v432_v36, %v387_v11  ;;  %v3290_v63 = vld [vmem:[%s4306_s3 + $0x98] sm:$0xff]   ;;  %v3293_v2 = vld [vmem:[%s4306_s3 + $0x20] sm:$0xff]   ;;  %v3298_v8 = vld [vmem:[%s4306_s3 + $0xa8] sm:$0xff]  }
   0xe   : > { %s3260_s9 = smul.u32 48, %s4312_s25  ;;  %v396_v19 = vcombine.high %v388_v13, %v388_v13  ;;  %v397_v20 = vcombine.high %v395_v14, %v395_v14  ;;  %v461_v21 = vsel %vm459_vm0, %v388_v13, 0  ;;  %v467_v22 = vsel %vm459_vm0, %v395_v14, 0  ;;  %v3294_v3 = vld [vmem:[%s4306_s3 + $0xa0] sm:$0xff]   ;;  %v3299_v9 = vld [vmem:[%s4306_s3 + $0x70] sm:$0xff]   ;;  %v3303_v13 = vld [vmem:[%s4306_s3 + $0x78] sm:$0xff]  }
   0xf   : > { %v413_v23 = vcombine.high %v405_v15, %v405_v15  ;;  %v414_v24 = vcombine.high %v412_v16, %v412_v16  ;;  %v473_v28 = vsel %vm459_vm0, %v405_v15, 0  ;;  %v479_v29 = vsel %vm459_vm0, %v412_v16, 0  ;;  %v3300_v10 = vld [vmem:[%s4306_s3 + $0xf0] sm:$0xff]   ;;  %v3304_v14 = vld [vmem:[%s4306_s3 + $0xf8] sm:$0xff]  }
  0x10   : > { %s3501_s12 = scalar_lea.vmem %s4303_s0, %s3260_s9  ;;  %2823 = vmatprep.subr.msk.bf16.mxu0 %vm459_vm0, %v396_v19  ;;  %2827 = vmatprep.subr.msk.bf16.mxu1 %vm459_vm0, %v397_v20  ;;  %v430_v30 = vcombine.high %v422_v25, %v422_v25  ;;  %v431_v31 = vcombine.high %v429_v26, %v429_v26  ;;  %v485_v42 = vsel %vm459_vm0, %v422_v25, 0  ;;  %v491_v43 = vsel %vm459_vm0, %v429_v26, 0  ;;  %v3301_v11 = vld [vmem:[%s4306_s3 + $0x30] sm:$0xff]   ;;  %v3305_v15 = vld [vmem:[%s4306_s3 + $0x38] sm:$0xff]   ;;  %s4286_s16 = scalar_lea.vmem %s4310_s7, %s3260_s9 }
  0x11   : > { %v280_v17 = vld [vmem:[%s3501_s12] sm:$0xff]  ;;  %v281_v18 = vld [vmem:[%s3501_s12 + $0x8] sm:$0xff]  ;;  %509 = vmatpush1.bf16.msra.mxu0 %v461_v21  ;;  %572 = vmatpush1.bf16.msra.mxu1 %v467_v22  ;;  %v282_v32 = vld [vmem:[%s3501_s12 + $0x10] sm:$0xff]  ;;  %v497_v44 = vsel %vm459_vm0, %v439_v39, 0  ;;  %v503_v45 = vsel %vm459_vm0, %v446_v40, 0  ;;  %v447_v46 = vcombine.high %v439_v39, %v439_v39  ;;  %v448_v47 = vcombine.high %v446_v40, %v446_v40 }
  0x12   : > { %v3509_v27 = vpack.c.bf16 %v281_v18, %v280_v17  ;;  %2831 = vmatprep.subr.msk.bf16.mxu0 %vm459_vm0, %v413_v23  ;;  %2835 = vmatprep.subr.msk.bf16.mxu1 %vm459_vm0, %v414_v24  ;;  %v283_v33 = vld [vmem:[%s3501_s12 + $0x18] sm:$0xff]  ;;  %v284_v37 = vld [vmem:[%s3501_s12 + $0x20] sm:$0xff]  ;;  %v285_v38 = vld [vmem:[%s3501_s12 + $0x28] sm:$0x1]  ;;  %v299_v19 = vsub.s32 0, %v3487_v6  ;;  %v307_v20 = vsub.s32 2, %v3487_v6 }
  0x13   : > { %v3525_v34 = vpack.c.bf16 %v283_v33, %v282_v32  ;;  %v3538_v41 = vpack.c.bf16 %v285_v38, %v284_v37  ;;  %v3302_v12 = vld [vmem:[%s4306_s3 + $0xb0] sm:$0xff]   ;;  %v3306_v16 = vld [vmem:[%s4306_s3 + $0xb8] sm:$0xff]   ;;  %v3307_v17 = vld [vmem:[%s4306_s3 + $0x140] sm:$0xff]   ;;  %v303_v22 = vsub.s32 1, %v3487_v6  ;;  %v311_v23 = vsub.s32 3, %v3487_v6 }
  0x14   : > { %2824 = vmatmul.mubr.msk.bf16.vlgmr.msra.gmra.mrb[0].mxu0 %vm449_vm1, %v3509_v27  ;;  %2828 = vmatmul.mubr.msk.bf16.vlgmr.msra.gmra.mrb[0].mxu1 %vm449_vm1, %v3509_v27  ;;  %v3308_v18 = vld [vmem:[%s4306_s3 + $0x1c0] sm:$0xff]  }
  0x15   : > { %550 = vmatprep.mubr.bf16.mxu0 %v3430_v4  ;;  %635 = vmatpush1.bf16.msra.mxu0 %v473_v28  ;;  %v3711_v21 = vld [vmem:[%s4305_s2] sm:$0xff] }
  0x16   : > { %613 = vmatprep.mubr.bf16.mxu1 %v3430_v4  ;;  %698 = vmatpush1.bf16.msra.mxu1 %v479_v29  ;;  %v3718_v24 = vrot.slane %v3711_v21, %v299_v19  ;;  %v3723_v25 = vrot.slane %v3711_v21, %v307_v20  ;;  %v3728_v26 = vrot.slane %v3711_v21, %v303_v22 }
  0x17   : > { %2839 = vmatprep.subr.msk.bf16.mxu0 %vm459_vm0, %v430_v30  ;;  %2843 = vmatprep.subr.msk.bf16.mxu1 %vm459_vm0, %v431_v31 }
  0x1c   : > { %2825 = vmatmul.mubr.msk.bf16.gmra.mrb[4].mxu0 %vm449_vm1, %v3525_v34  ;;  %2829 = vmatmul.mubr.msk.bf16.gmra.mrb[4].mxu1 %vm449_vm1, %v3525_v34 }
  0x1d   : > { %560 = vmatprep.mubr.bf16.mxu0 %v3430_v4  ;;  %623 = vmatprep.mubr.bf16.mxu1 %v3430_v4 }
  0x24   : > { %2826 = vmatmul.mubr.msk.bf16.gmra.mrb[8].mxu0 %vm449_vm1, %v3538_v41  ;;  %2830 = vmatmul.mubr.msk.bf16.gmra.mrb[8].mxu1 %vm449_vm1, %v3538_v41 }
  0x25   : > { %666 = vmatprep.mubr.bf16.mxu0 %v3430_v4  ;;  %729 = vmatprep.mubr.bf16.mxu1 %v3430_v4 }
  0x2c   : > { %2832 = vmatmul.mubr.msk.bf16.vlgmr.msra.gmra.mrb[12].mxu0 %vm449_vm1, %v3509_v27  ;;  %2836 = vmatmul.mubr.msk.bf16.vlgmr.msra.gmra.mrb[12].mxu1 %vm449_vm1, %v3509_v27 }
  0x2d   : > { %676 = vmatprep.mubr.bf16.mxu0 %v3430_v4  ;;  %739 = vmatprep.mubr.bf16.mxu1 %v3430_v4 }
  0x2e   : > { %761 = vmatpush1.bf16.msra.mxu0 %v485_v42  ;;  %824 = vmatpush1.bf16.msra.mxu1 %v491_v43 }
  0x2f   : > { %2847 = vmatprep.subr.msk.bf16.mxu0 %vm459_vm0, %v447_v46  ;;  %2851 = vmatprep.subr.msk.bf16.mxu1 %vm459_vm0, %v448_v47 }
  0x34   : > { %2833 = vmatmul.mubr.msk.bf16.gmra.mrb[16].mxu0 %vm449_vm1, %v3525_v34  ;;  %2837 = vmatmul.mubr.msk.bf16.gmra.mrb[16].mxu1 %vm449_vm1, %v3525_v34 }
  0x35   : > { %686 = vmatprep.mubr.bf16.mxu0 %v3430_v4  ;;  %749 = vmatprep.mubr.bf16.mxu1 %v3430_v4 }
  0x3c   : > { %2834 = vmatmul.mubr.msk.bf16.gmra.mrb[20].mxu0 %vm449_vm1, %v3538_v41  ;;  %2838 = vmatmul.mubr.msk.bf16.gmra.mrb[20].mxu1 %vm449_vm1, %v3538_v41 }
  0x3d   : > { %792 = vmatprep.mubr.bf16.mxu0 %v3430_v4  ;;  %855 = vmatprep.mubr.bf16.mxu1 %v3430_v4 }
  0x44   : > { %2840 = vmatmul.mubr.msk.bf16.vlgmr.msra.gmra.mrb[24].mxu0 %vm449_vm1, %v3509_v27  ;;  %2844 = vmatmul.mubr.msk.bf16.vlgmr.msra.gmra.mrb[24].mxu1 %vm449_vm1, %v3509_v27 }
  0x45   : > { %802 = vmatprep.mubr.bf16.mxu0 %v3430_v4  ;;  %887 = vmatpush1.bf16.msra.mxu0 %v497_v44 }
  0x46   : > { %865 = vmatprep.mubr.bf16.mxu1 %v3430_v4  ;;  %950 = vmatpush1.bf16.msra.mxu1 %v503_v45 }
  0x47   : > { %2988 = vmatprep.subr.bf16.mxu0 %v3275_v48  ;;  %3022 = vmatprep.subr.bf16.mxu1 %v3276_v49 }
  0x4c   : > { %2841 = vmatmul.mubr.msk.bf16.gmra.mrb[28].mxu0 %vm449_vm1, %v3525_v34  ;;  %2845 = vmatmul.mubr.msk.bf16.gmra.mrb[28].mxu1 %vm449_vm1, %v3525_v34 }
  0x4d   : > { %812 = vmatprep.mubr.bf16.mxu0 %v3430_v4  ;;  %875 = vmatprep.mubr.bf16.mxu1 %v3430_v4 }
  0x54   : > { %2842 = vmatmul.mubr.msk.bf16.gmra.mrb[32].mxu0 %vm449_vm1, %v3538_v41  ;;  %2846 = vmatmul.mubr.msk.bf16.gmra.mrb[32].mxu1 %vm449_vm1, %v3538_v41 }
  0x55   : > { %918 = vmatprep.mubr.bf16.mxu0 %v3430_v4  ;;  %981 = vmatprep.mubr.bf16.mxu1 %v3430_v4 }
  0x5c   : > { %2848 = vmatmul.mubr.msk.bf16.vlgmr.msra.gmra.mrb[36].mxu0 %vm449_vm1, %v3509_v27  ;;  %2852 = vmatmul.mubr.msk.bf16.vlgmr.msra.gmra.mrb[36].mxu1 %vm449_vm1, %v3509_v27  ;;  %v3733_v27 = vrot.slane %v3711_v21, %v311_v23 }
  0x5d   : > { %928 = vmatprep.mubr.bf16.mxu0 %v3430_v4  ;;  %991 = vmatprep.mubr.bf16.mxu1 %v3430_v4 }
  0x5e   : > { %2989 = vmatpush3.bf16.msra.mxu0 %v3277_v50  ;;  %3023 = vmatpush3.bf16.msra.mxu1 %v3278_v51 }
  0x5f   : > { %2990 = vmatprep.subr.bf16.mxu0 %v3279_v52  ;;  %3024 = vmatprep.subr.bf16.mxu1 %v3280_v53 }
  0x62   : > { %2991 = vmatpush3.bf16.msra.mxu0 %v3281_v54  ;;  %3025 = vmatpush3.bf16.msra.mxu1 %v3282_v55 }
  0x63   : > { %2992 = vmatprep.subr.bf16.mxu0 %v3283_v56  ;;  %3026 = vmatprep.subr.bf16.mxu1 %v3284_v57 }
  0x64   : > { %2849 = vmatmul.mubr.msk.bf16.gmra.mrb[40].mxu0 %vm449_vm1, %v3525_v34  ;;  %2853 = vmatmul.mubr.msk.bf16.gmra.mrb[40].mxu1 %vm449_vm1, %v3525_v34 }
  0x65   : > { %938 = vmatprep.mubr.bf16.mxu0 %v3430_v4  ;;  %1001 = vmatprep.mubr.bf16.mxu1 %v3430_v4  ;;  %v3295_v4 = vld [vmem:[%s4306_s3 + $0x68] sm:$0xff]  }
  0x66   : > { %2993 = vmatpush3.bf16.msra.mxu0 %v3285_v58  ;;  %3027 = vmatpush3.bf16.msra.mxu1 %v3286_v59  ;;  %v3309_v58 = vld [vmem:[%s4306_s3 + $0x100] sm:$0xff]  }
  0x67   : > { %2994 = vmatprep.subr.bf16.mxu0 %v3287_v60  ;;  %3028 = vmatprep.subr.bf16.mxu1 %v3288_v61  ;;  %v3310_v59 = vld [vmem:[%s4306_s3 + $0x180] sm:$0xff]  }
  0x6a   : > { %2995 = vmatpush3.bf16.msra.mxu0 %v3289_v62  ;;  %3029 = vmatpush3.bf16.msra.mxu1 %v3290_v63 }
  0x6b   : > { %2996 = vmatprep.subr.bf16.mxu0 %v3291_v0  ;;  %3030 = vmatprep.subr.bf16.mxu1 %v3292_v1  ;;  %v3311_v0 = vld [vmem:[%s4306_s3 + $0x148] sm:$0xff]  }
  0x6c   : > { %2850 = vmatmul.mubr.msk.bf16.gmra.mrb[44].mxu0 %vm449_vm1, %v3538_v41  ;;  %2854 = vmatmul.mubr.msk.bf16.gmra.mrb[44].mxu1 %vm449_vm1, %v3538_v41  ;;  %v3312_v1 = vld [vmem:[%s4306_s3 + $0x1c8] sm:$0xff]  }
  0x6e   : > { %2997 = vmatpush3.bf16.msra.mxu0 %v3293_v2  ;;  %3031 = vmatpush3.bf16.msra.mxu1 %v3294_v3 }
  0x6f   : > { %2998 = vmatprep.subr.bf16.mxu0 %v3295_v4  ;;  %3032 = vmatprep.subr.bf16.mxu1 %v3296_v5 }
  0x72   : > { %2999 = vmatpush3.bf16.msra.mxu0 %v3297_v7  ;;  %3033 = vmatpush3.bf16.msra.mxu1 %v3298_v8 }
  0x73   : > { %3000 = vmatprep.subr.bf16.mxu0 %v3299_v9  ;;  %3034 = vmatprep.subr.bf16.mxu1 %v3300_v10 }
  0x76   : > { %3001 = vmatpush3.bf16.msra.mxu0 %v3301_v11  ;;  %3035 = vmatpush3.bf16.msra.mxu1 %v3302_v12 }
  0x77   : > { %3002 = vmatprep.subr.bf16.mxu0 %v3303_v13  ;;  %3036 = vmatprep.subr.bf16.mxu1 %v3304_v14 }
  0x7a   : > { %3003 = vmatpush3.bf16.msra.mxu0 %v3305_v15  ;;  %3037 = vmatpush3.bf16.msra.mxu1 %v3306_v16 }
  0x7b   : > { %3056 = vmatprep.subr.bf16.mxu0 %v3307_v17  ;;  %3090 = vmatprep.subr.bf16.mxu1 %v3308_v18  ;;  %v3313_v17 = vld [vmem:[%s4306_s3 + $0x108] sm:$0xff]  }
  0x7c   : > { %v3314_v18 = vld [vmem:[%s4306_s3 + $0x188] sm:$0xff]  }
  0xe7   : > { %v542_v28 = vpop.f32.mrb[0].mxu0  ;;  %v605_v29 = vpop.f32.mrb[0].mxu1 }
  0xe8   : > { %v543_v30 = vadd.f32 %v542_v28, %v3718_v24  ;;  %v606_v31 = vadd.f32 %v605_v29, %v3723_v25  ;;  %v544_v32 = vpop.f32.mrb[1].mxu0  ;;  %v607_v33 = vpop.f32.mrb[1].mxu1 }
  0xe9   : > { %v545_v34 = vadd.f32 %v544_v32, %v3728_v26  ;;  %v608_v35 = vadd.f32 %v607_v33, %v3733_v27  ;;  %v546_v36 = vpop.f32.mrb[2].mxu0  ;;  %v609_v37 = vpop.f32.mrb[2].mxu1 }
  0xea   : > { %v1014_v38 = vmax.f32 %v606_v31, 0.0  ;;  %v547_v39 = vadd.f32 %v546_v36, %v3718_v24  ;;  %v610_v40 = vadd.f32 %v609_v37, %v3723_v25  ;;  %v548_v41 = vpop.f32.mrb[3].mxu0  ;;  %v611_v42 = vpop.f32.mrb[3].mxu1  ;;  %v1012_v46 = vmax.f32 %v543_v30, 0.0  ;;  %v3315_v30 = vld [vmem:[%s4306_s3 + $0x150] sm:$0xff]  }
  0xeb   : > { %v1015_v43 = vmax.f32 %v608_v35, 0.0  ;;  %v549_v44 = vadd.f32 %v548_v41, %v3728_v26  ;;  %v612_v45 = vadd.f32 %v611_v42, %v3733_v27  ;;  %v1013_v49 = vmax.f32 %v545_v34, 0.0  ;;  %v3316_v31 = vld [vmem:[%s4306_s3 + $0x1d0] sm:$0xff]  }
  0xec   : > { %v1028_v47 = vmax.f32 %v547_v39, 0.0  ;;  %v1030_v48 = vmax.f32 %v610_v40, 0.0  ;;  %v3317_v40 = vld [vmem:[%s4306_s3 + $0x110] sm:$0xff]  }
  0xed   : > { %v1029_v50 = vmax.f32 %v549_v44, 0.0  ;;  %v1031_v51 = vmax.f32 %v612_v45, 0.0  ;;  %v3318_v41 = vld [vmem:[%s4306_s3 + $0x190] sm:$0xff]  }
  0xee   : > { %v1108_v52 = vpack.c.bf16 %v1028_v47, %v1012_v46  ;;  %v1110_v53 = vpack.c.bf16 %v1030_v48, %v1014_v38  ;;  %v3319_v46 = vld [vmem:[%s4306_s3 + $0x158] sm:$0xff]   ;;  %v315_v48 = vsub.s32 4, %v3487_v6 }
  0xef   : > { %v1109_v54 = vpack.c.bf16 %v1029_v50, %v1013_v49  ;;  %v1111_v55 = vpack.c.bf16 %v1031_v51, %v1015_v43  ;;  %v552_v56 = vpop.f32.mrb[4].mxu0  ;;  %v615_v57 = vpop.f32.mrb[4].mxu1  ;;  %v3320_v47 = vld [vmem:[%s4306_s3 + $0x1d8] sm:$0xff]   ;;  %v323_v49 = vsub.s32 6, %v3487_v6 }
  0xf0   : > { %v553_v60 = vadd.f32 %v552_v56, %v3718_v24  ;;  %v554_v61 = vpop.f32.mrb[5].mxu0  ;;  %v616_v62 = vadd.f32 %v615_v57, %v3723_v25  ;;  %v617_v63 = vpop.f32.mrb[5].mxu1 }
  0xf1   : > { %v555_v2 = vadd.f32 %v554_v61, %v3728_v26  ;;  %2219 = vmatprep.mubr.bf16.mxu0 %v1109_v54  ;;  %2276 = vmatprep.mubr.bf16.mxu1 %v1111_v55  ;;  %v556_v3 = vpop.f32.mrb[6].mxu0  ;;  %v618_v4 = vadd.f32 %v617_v63, %v3733_v27  ;;  %v619_v5 = vpop.f32.mrb[6].mxu1  ;;  %v319_v54 = vsub.s32 5, %v3487_v6  ;;  %v327_v55 = vsub.s32 7, %v3487_v6 }
  0xf2   : > { %v1044_v7 = vmax.f32 %v553_v60, 0.0  ;;  %v557_v8 = vadd.f32 %v556_v3, %v3718_v24  ;;  %v1046_v9 = vmax.f32 %v616_v62, 0.0  ;;  %2220 = vmatmul.mubr.bf16.vlgmr.msra.gmra.mrb[48].mxu0 %v1108_v52  ;;  %2277 = vmatmul.mubr.bf16.vlgmr.msra.gmra.mrb[48].mxu1 %v1110_v53  ;;  %v558_v10 = vpop.f32.mrb[7].mxu0  ;;  %v620_v11 = vadd.f32 %v619_v5, %v3723_v25  ;;  %v621_v12 = vpop.f32.mrb[7].mxu1 }
  0xf3   : > { %v1045_v13 = vmax.f32 %v555_v2, 0.0  ;;  %3057 = vmatpush3.bf16.msra.mxu0 %v3309_v58  ;;  %3091 = vmatpush3.bf16.msra.mxu1 %v3310_v59  ;;  %v559_v14 = vadd.f32 %v558_v10, %v3728_v26  ;;  %v1047_v15 = vmax.f32 %v618_v4, 0.0  ;;  %v622_v16 = vadd.f32 %v621_v12, %v3733_v27  ;;  %v3321_v2 = vld [vmem:[%s4306_s3 + $0x118] sm:$0xff]   ;;  %v3323_v4 = vld [vmem:[%s4306_s3 + $0x160] sm:$0xff]  }
  0xf4   : > { %v1060_v28 = vmax.f32 %v557_v8, 0.0  ;;  %v1062_v29 = vmax.f32 %v620_v11, 0.0  ;;  %3058 = vmatprep.subr.bf16.mxu0 %v3311_v0  ;;  %3092 = vmatprep.subr.bf16.mxu1 %v3312_v1  ;;  %v3819_v5 = vrot.slane %v3711_v21, %v323_v49  ;;  %v3829_v10 = vrot.slane %v3711_v21, %v327_v55 }
  0xf5   : > { %v1061_v32 = vmax.f32 %v559_v14, 0.0  ;;  %v1063_v33 = vmax.f32 %v622_v16, 0.0  ;;  %v3326_v16 = vld [vmem:[%s4306_s3 + $0x1a0] sm:$0xff]  }
  0xf6   : > { %v1124_v34 = vpack.c.bf16 %v1060_v28, %v1044_v7  ;;  %v1126_v35 = vpack.c.bf16 %v1062_v29, %v1046_v9  ;;  %v3824_v9 = vrot.slane %v3711_v21, %v319_v54  ;;  %v3327_v29 = vld [vmem:[%s4306_s3 + $0x168] sm:$0xff]  }
  0xf7   : > { %v1125_v36 = vpack.c.bf16 %v1061_v32, %v1045_v13  ;;  %v1127_v37 = vpack.c.bf16 %v1063_v33, %v1047_v15  ;;  %3059 = vmatpush3.bf16.msra.mxu0 %v3313_v17  ;;  %3093 = vmatpush3.bf16.msra.mxu1 %v3314_v18  ;;  %v562_v38 = vpop.f32.mrb[8].mxu0  ;;  %v625_v39 = vpop.f32.mrb[8].mxu1  ;;  %v3325_v15 = vld [vmem:[%s4306_s3 + $0x120] sm:$0xff]  }
  0xf8   : > { %v563_v42 = vadd.f32 %v562_v38, %v3718_v24  ;;  %v564_v43 = vpop.f32.mrb[9].mxu0  ;;  %3060 = vmatprep.subr.bf16.mxu0 %v3315_v30  ;;  %3094 = vmatprep.subr.bf16.mxu1 %v3316_v31  ;;  %v626_v44 = vadd.f32 %v625_v39, %v3723_v25  ;;  %v627_v45 = vpop.f32.mrb[9].mxu1  ;;  %v3328_v30 = vld [vmem:[%s4306_s3 + $0x1e8] sm:$0xff]  }
  0xf9   : > { %v565_v50 = vadd.f32 %v564_v43, %v3728_v26  ;;  %v566_v51 = vpop.f32.mrb[10].mxu0  ;;  %2227 = vmatprep.mubr.bf16.mxu0 %v1125_v36  ;;  %v628_v52 = vadd.f32 %v627_v45, %v3733_v27  ;;  %v629_v53 = vpop.f32.mrb[10].mxu1  ;;  %2284 = vmatprep.mubr.bf16.mxu1 %v1127_v37  ;;  %v3330_v45 = vld [vmem:[%s4306_s3 + $0x1a8] sm:$0xff]  }
  0xfa   : > { %v1076_v56 = vmax.f32 %v563_v42, 0.0  ;;  %v567_v57 = vadd.f32 %v566_v51, %v3718_v24  ;;  %v1078_v58 = vmax.f32 %v626_v44, 0.0  ;;  %v568_v59 = vpop.f32.mrb[11].mxu0  ;;  %2228 = vmatmul.mubr.bf16.gmra.mrb[52].mxu0 %v1124_v34  ;;  %v630_v60 = vadd.f32 %v629_v53, %v3723_v25  ;;  %v631_v61 = vpop.f32.mrb[11].mxu1  ;;  %2285 = vmatmul.mubr.bf16.gmra.mrb[52].mxu1 %v1126_v35  ;;  %v3322_v24 = vld [vmem:[%s4306_s3 + $0x198] sm:$0xff]   ;;  %v3329_v44 = vld [vmem:[%s4306_s3 + $0x128] sm:$0xff]  }
  0xfb   : > { %v1077_v62 = vmax.f32 %v565_v50, 0.0  ;;  %3061 = vmatpush3.bf16.msra.mxu0 %v3317_v40  ;;  %3095 = vmatpush3.bf16.msra.mxu1 %v3318_v41  ;;  %v569_v63 = vadd.f32 %v568_v59, %v3728_v26  ;;  %v1079_v0 = vmax.f32 %v628_v52, 0.0  ;;  %v632_v1 = vadd.f32 %v631_v61, %v3733_v27  ;;  %v3324_v26 = vld [vmem:[%s4306_s3 + $0x1e0] sm:$0xff]   ;;  %v3331_v53 = vld [vmem:[%s4306_s3 + $0x170] sm:$0xff]  }
  0xfc   : > { %v1092_v3 = vmax.f32 %v567_v57, 0.0  ;;  %v1094_v25 = vmax.f32 %v630_v60, 0.0  ;;  %3062 = vmatprep.subr.bf16.mxu0 %v3319_v46  ;;  %3096 = vmatprep.subr.bf16.mxu1 %v3320_v47  ;;  %v3814_v27 = vrot.slane %v3711_v21, %v315_v48 }
  0xfd   : > { %v1093_v7 = vmax.f32 %v569_v63, 0.0  ;;  %v1095_v8 = vmax.f32 %v632_v1, 0.0  ;;  %v3333_v63 = vld [vmem:[%s4306_s3 + $0x130] sm:$0xff]  }
  0xfe   : > { %v1140_v11 = vpack.c.bf16 %v1092_v3, %v1076_v56  ;;  %v1142_v12 = vpack.c.bf16 %v1094_v25, %v1078_v58  ;;  %v3332_v56 = vld [vmem:[%s4306_s3 + $0x1f0] sm:$0xff]   ;;  %v3336_v3 = vld [vmem:[%s4306_s3 + $0x1f8] sm:$0xff]  }
  0xff   : > { %v1141_v13 = vpack.c.bf16 %v1093_v7, %v1077_v62  ;;  %v1143_v14 = vpack.c.bf16 %v1095_v8, %v1079_v0  ;;  %3063 = vmatpush3.bf16.msra.mxu0 %v3321_v2  ;;  %3097 = vmatpush3.bf16.msra.mxu1 %v3322_v24  ;;  %v668_v17 = vpop.f32.mrb[12].mxu0  ;;  %v731_v18 = vpop.f32.mrb[12].mxu1  ;;  %v3334_v0 = vld [vmem:[%s4306_s3 + $0x1b0] sm:$0xff]   ;;  %v3335_v24 = vld [vmem:[%s4306_s3 + $0x178] sm:$0xff]  }
 0x100   : > { %3064 = vmatprep.subr.bf16.mxu0 %v3323_v4  ;;  %3098 = vmatprep.subr.bf16.mxu1 %v3324_v26  ;;  %v669_v21 = vadd.f32 %v668_v17, %v3814_v27  ;;  %v670_v28 = vpop.f32.mrb[13].mxu0  ;;  %v732_v31 = vadd.f32 %v731_v18, %v3819_v5  ;;  %v733_v32 = vpop.f32.mrb[13].mxu1 }
 0x101   : > { %2235 = vmatprep.mubr.bf16.mxu0 %v1141_v13  ;;  %2292 = vmatprep.mubr.bf16.mxu1 %v1143_v14  ;;  %v671_v33 = vadd.f32 %v670_v28, %v3824_v9  ;;  %v672_v34 = vpop.f32.mrb[14].mxu0  ;;  %v734_v35 = vadd.f32 %v733_v32, %v3829_v10  ;;  %v735_v36 = vpop.f32.mrb[14].mxu1  ;;  %v3337_v28 = vld [vmem:[%s4306_s3 + $0x138] sm:$0xff]  }
 0x102   : > { %2236 = vmatmul.mubr.bf16.gmra.mrb[56].mxu0 %v1140_v11  ;;  %v1016_v37 = vmax.f32 %v669_v21, 0.0  ;;  %2293 = vmatmul.mubr.bf16.gmra.mrb[56].mxu1 %v1142_v12  ;;  %v673_v38 = vadd.f32 %v672_v34, %v3814_v27  ;;  %v1018_v39 = vmax.f32 %v732_v31, 0.0  ;;  %v674_v40 = vpop.f32.mrb[15].mxu0  ;;  %v736_v41 = vadd.f32 %v735_v36, %v3819_v5  ;;  %v737_v42 = vpop.f32.mrb[15].mxu1  ;;  %v3340_v36 = vld [vmem:[%s4306_s3 + $0x2c0] sm:$0xff]  }
 0x103   : > { %3065 = vmatpush3.bf16.msra.mxu0 %v3325_v15  ;;  %3099 = vmatpush3.bf16.msra.mxu1 %v3326_v16  ;;  %v1017_v43 = vmax.f32 %v671_v33, 0.0  ;;  %v675_v46 = vadd.f32 %v674_v40, %v3824_v9  ;;  %v1019_v47 = vmax.f32 %v734_v35, 0.0  ;;  %v738_v50 = vadd.f32 %v737_v42, %v3829_v10  ;;  %v3339_v35 = vld [vmem:[%s4306_s3 + $0x240] sm:$0xff]  }
 0x104   : > { %3066 = vmatprep.subr.bf16.mxu0 %v3327_v29  ;;  %3100 = vmatprep.subr.bf16.mxu1 %v3328_v30  ;;  %v1032_v51 = vmax.f32 %v673_v38, 0.0  ;;  %v1034_v52 = vmax.f32 %v736_v41, 0.0  ;;  %v3338_v29 = vld [vmem:[%s4306_s3 + $0x1b8] sm:$0xff]  }
 0x105   : > { %v1033_v57 = vmax.f32 %v675_v46, 0.0  ;;  %v1035_v58 = vmax.f32 %v738_v50, 0.0  ;;  %v3343_v50 = vld [vmem:[%s4306_s3 + $0x248] sm:$0xff]  }
 0x106   : > { %v3863_v59 = vpack.c.bf16 %v1032_v51, %v1016_v37  ;;  %v3865_v60 = vpack.c.bf16 %v1034_v52, %v1018_v39  ;;  %v3344_v51 = vld [vmem:[%s4306_s3 + $0x2c8] sm:$0xff]  }
 0x107   : > { %3067 = vmatpush3.bf16.msra.mxu0 %v3329_v44  ;;  %3101 = vmatpush3.bf16.msra.mxu1 %v3330_v45  ;;  %v1113_v61 = vpack.c.bf16 %v1033_v57, %v1017_v43  ;;  %v1115_v62 = vpack.c.bf16 %v1035_v58, %v1019_v47  ;;  %v678_v1 = vpop.f32.mrb[16].mxu0  ;;  %v741_v2 = vpop.f32.mrb[16].mxu1  ;;  %v3341_v43 = vld [vmem:[%s4306_s3 + $0x200] sm:$0xff]  }
 0x108   : > { %3068 = vmatprep.subr.bf16.mxu0 %v3331_v53  ;;  %3102 = vmatprep.subr.bf16.mxu1 %v3332_v56  ;;  %v679_v25 = vadd.f32 %v678_v1, %v3814_v27  ;;  %v680_v4 = vpop.f32.mrb[17].mxu0  ;;  %v742_v26 = vadd.f32 %v741_v2, %v3819_v5  ;;  %v743_v7 = vpop.f32.mrb[17].mxu1  ;;  %v3342_v44 = vld [vmem:[%s4306_s3 + $0x280] sm:$0xff]  }
 0x109   : > { %2333 = vmatprep.mubr.bf16.mxu0 %v1113_v61  ;;  %v681_v8 = vadd.f32 %v680_v4, %v3824_v9  ;;  %v682_v11 = vpop.f32.mrb[18].mxu0  ;;  %2390 = vmatprep.mubr.bf16.mxu1 %v1115_v62  ;;  %v744_v12 = vadd.f32 %v743_v7, %v3829_v10  ;;  %v745_v13 = vpop.f32.mrb[18].mxu1 }
 0x10a   : > { %v1048_v14 = vmax.f32 %v679_v25, 0.0  ;;  %v683_v15 = vadd.f32 %v682_v11, %v3814_v27  ;;  %v1050_v16 = vmax.f32 %v742_v26, 0.0  ;;  %v684_v17 = vpop.f32.mrb[19].mxu0  ;;  %v746_v18 = vadd.f32 %v745_v13, %v3819_v5  ;;  %v747_v21 = vpop.f32.mrb[19].mxu1  ;;  %v3345_v26 = vld [vmem:[%s4306_s3 + $0x208] sm:$0xff]   ;;  %v3347_v11 = vld [vmem:[%s4306_s3 + $0x250] sm:$0xff]  }
 0x10b   : > { %3069 = vmatpush3.bf16.msra.mxu0 %v3333_v63  ;;  %3103 = vmatpush3.bf16.msra.mxu1 %v3334_v0  ;;  %v1049_v30 = vmax.f32 %v681_v8, 0.0  ;;  %v685_v31 = vadd.f32 %v684_v17, %v3824_v9  ;;  %v1051_v32 = vmax.f32 %v744_v12, 0.0  ;;  %v748_v33 = vadd.f32 %v747_v21, %v3829_v10  ;;  %v3922_v0 = vld [vmem:[%s4305_s2 + $0x8] sm:$0xff]  ;;  %v3348_v12 = vld [vmem:[%s4306_s3 + $0x2d0] sm:$0xff]  }
 0x10c   : > { %3070 = vmatprep.subr.bf16.mxu0 %v3335_v24  ;;  %3104 = vmatprep.subr.bf16.mxu1 %v3336_v3  ;;  %v1064_v34 = vmax.f32 %v683_v15, 0.0  ;;  %v1066_v37 = vmax.f32 %v746_v18, 0.0  ;;  %v3960_v17 = vrot.slane %v3922_v0, %v311_v23  ;;  %v3349_v21 = vld [vmem:[%s4306_s3 + $0x210] sm:$0xff]   ;;  %v3351_v23 = vld [vmem:[%s4306_s3 + $0x258] sm:$0xff]  }
 0x10d   : > { %v1065_v38 = vmax.f32 %v685_v31, 0.0  ;;  %v1067_v39 = vmax.f32 %v748_v33, 0.0  ;;  %v3352_v31 = vld [vmem:[%s4306_s3 + $0x2d8] sm:$0xff]  }
 0x10e   : > { %v3899_v40 = vpack.c.bf16 %v1064_v34, %v1048_v14  ;;  %v3901_v41 = vpack.c.bf16 %v1066_v37, %v1050_v16  ;;  %v3945_v14 = vrot.slane %v3922_v0, %v299_v19  ;;  %v3955_v16 = vrot.slane %v3922_v0, %v303_v22  ;;  %v3350_v22 = vld [vmem:[%s4306_s3 + $0x290] sm:$0xff]  }
 0x10f   : > { %3071 = vmatpush3.bf16.msra.mxu0 %v3337_v28  ;;  %3105 = vmatpush3.bf16.msra.mxu1 %v3338_v29  ;;  %v1129_v42 = vpack.c.bf16 %v1065_v38, %v1049_v30  ;;  %v1131_v45 = vpack.c.bf16 %v1067_v39, %v1051_v32  ;;  %v688_v46 = vpop.f32.mrb[20].mxu0  ;;  %v751_v47 = vpop.f32.mrb[20].mxu1 }
 0x110   : > { %3124 = vmatprep.subr.bf16.mxu0 %v3339_v35  ;;  %3158 = vmatprep.subr.bf16.mxu1 %v3340_v36  ;;  %v689_v52 = vadd.f32 %v688_v46, %v3814_v27  ;;  %v690_v53 = vpop.f32.mrb[21].mxu0  ;;  %v752_v56 = vadd.f32 %v751_v47, %v3819_v5  ;;  %v753_v57 = vpop.f32.mrb[21].mxu1 }
 0x111   : > { %v691_v58 = vadd.f32 %v690_v53, %v3824_v9  ;;  %v692_v61 = vpop.f32.mrb[22].mxu0  ;;  %v754_v62 = vadd.f32 %v753_v57, %v3829_v10  ;;  %v755_v63 = vpop.f32.mrb[22].mxu1  ;;  %v3356_v57 = vld [vmem:[%s4306_s3 + $0x2e0] sm:$0xff]  }
 0x112   : > { %2334 = vmatmul.mubr.bf16.vlgmr.msra.gmra.mrb[60].mxu0 %v3863_v59  ;;  %2391 = vmatmul.mubr.bf16.vlgmr.msra.gmra.mrb[60].mxu1 %v3865_v60  ;;  %v1080_v1 = vmax.f32 %v689_v52, 0.0  ;;  %v693_v2 = vadd.f32 %v692_v61, %v3814_v27  ;;  %v1082_v24 = vmax.f32 %v752_v56, 0.0  ;;  %v694_v3 = vpop.f32.mrb[23].mxu0  ;;  %v756_v25 = vadd.f32 %v755_v63, %v3819_v5  ;;  %v757_v4 = vpop.f32.mrb[23].mxu1  ;;  %v3346_v59 = vld [vmem:[%s4306_s3 + $0x288] sm:$0xff]   ;;  %v3355_v56 = vld [vmem:[%s4306_s3 + $0x260] sm:$0xff]  }
 0x113   : > { %3125 = vmatpush3.bf16.msra.mxu0 %v3341_v43  ;;  %3159 = vmatpush3.bf16.msra.mxu1 %v3342_v44  ;;  %v1081_v7 = vmax.f32 %v691_v58, 0.0  ;;  %v695_v60 = vadd.f32 %v694_v3, %v3824_v9  ;;  %v1083_v8 = vmax.f32 %v754_v62, 0.0  ;;  %v758_v27 = vadd.f32 %v757_v4, %v3829_v10  ;;  %v3358_v3 = vld [vmem:[%s4306_s3 + $0x2a0] sm:$0xff]  }
 0x114   : > { %3126 = vmatprep.subr.bf16.mxu0 %v3343_v50  ;;  %3160 = vmatprep.subr.bf16.mxu1 %v3344_v51  ;;  %v1096_v5 = vmax.f32 %v693_v2, 0.0  ;;  %v1098_v13 = vmax.f32 %v756_v25, 0.0  ;;  %v3950_v9 = vrot.slane %v3922_v0, %v307_v20  ;;  %v3353_v50 = vld [vmem:[%s4306_s3 + $0x218] sm:$0xff]  }
 0x115   : > { %2341 = vmatprep.mubr.bf16.mxu0 %v1129_v42  ;;  %v1097_v10 = vmax.f32 %v695_v60, 0.0  ;;  %2398 = vmatprep.mubr.bf16.mxu1 %v1131_v45  ;;  %v1099_v15 = vmax.f32 %v758_v27, 0.0  ;;  %v3360_v60 = vld [vmem:[%s4306_s3 + $0x2e8] sm:$0xff]  }
 0x116   : > { %v3962_v19 = vpack.c.bf16 %v1096_v5, %v1080_v1  ;;  %v3964_v18 = vpack.c.bf16 %v1098_v13, %v1082_v24  ;;  %v3357_v24 = vld [vmem:[%s4306_s3 + $0x220] sm:$0xff]  }
 0x117   : > { %3127 = vmatpush3.bf16.msra.mxu0 %v3345_v26  ;;  %3161 = vmatpush3.bf16.msra.mxu1 %v3346_v59  ;;  %v1145_v20 = vpack.c.bf16 %v1097_v10, %v1081_v7  ;;  %v1147_v28 = vpack.c.bf16 %v1099_v15, %v1083_v8  ;;  %v794_v29 = vpop.f32.mrb[24].mxu0  ;;  %v857_v30 = vpop.f32.mrb[24].mxu1  ;;  %v3359_v7 = vld [vmem:[%s4306_s3 + $0x268] sm:$0xff]  }
 0x118   : > { %3128 = vmatprep.subr.bf16.mxu0 %v3347_v11  ;;  %3162 = vmatprep.subr.bf16.mxu1 %v3348_v12  ;;  %v795_v32 = vadd.f32 %v794_v29, %v3945_v14  ;;  %v796_v33 = vpop.f32.mrb[25].mxu0  ;;  %v858_v34 = vadd.f32 %v857_v30, %v3950_v9  ;;  %v859_v35 = vpop.f32.mrb[25].mxu1 }
 0x119   : > { %v797_v36 = vadd.f32 %v796_v33, %v3955_v16  ;;  %v798_v37 = vpop.f32.mrb[26].mxu0  ;;  %v860_v38 = vadd.f32 %v859_v35, %v3960_v17  ;;  %v861_v39 = vpop.f32.mrb[26].mxu1  ;;  %v3364_v35 = vld [vmem:[%s4306_s3 + $0x2f0] sm:$0xff]  }
 0x11a   : > { %2342 = vmatmul.mubr.bf16.gmra.mrb[64].mxu0 %v3899_v40  ;;  %2399 = vmatmul.mubr.bf16.gmra.mrb[64].mxu1 %v3901_v41  ;;  %v1020_v42 = vmax.f32 %v795_v32, 0.0  ;;  %v799_v43 = vadd.f32 %v798_v37, %v3945_v14  ;;  %v1022_v44 = vmax.f32 %v858_v34, 0.0  ;;  %v800_v45 = vpop.f32.mrb[27].mxu0  ;;  %v862_v46 = vadd.f32 %v861_v39, %v3950_v9  ;;  %v863_v47 = vpop.f32.mrb[27].mxu1  ;;  %v3354_v40 = vld [vmem:[%s4306_s3 + $0x298] sm:$0xff]   ;;  %v3363_v34 = vld [vmem:[%s4306_s3 + $0x270] sm:$0xff]  }
 0x11b   : > { %3129 = vmatpush3.bf16.msra.mxu0 %v3349_v21  ;;  %3163 = vmatpush3.bf16.msra.mxu1 %v3350_v22  ;;  %v1021_v51 = vmax.f32 %v797_v36, 0.0  ;;  %v801_v41 = vadd.f32 %v800_v45, %v3955_v16  ;;  %v1023_v52 = vmax.f32 %v860_v38, 0.0  ;;  %v864_v53 = vadd.f32 %v863_v47, %v3960_v17  ;;  %v3366_v45 = vld [vmem:[%s4306_s3 + $0x2b0] sm:$0xff]  }
 0x11c   : > { %3130 = vmatprep.subr.bf16.mxu0 %v3351_v23  ;;  %3164 = vmatprep.subr.bf16.mxu1 %v3352_v31  ;;  %v1036_v58 = vmax.f32 %v799_v43, 0.0  ;;  %v1038_v61 = vmax.f32 %v862_v46, 0.0  ;;  %v3361_v23 = vld [vmem:[%s4306_s3 + $0x228] sm:$0xff]  }
 0x11d   : > { %2349 = vmatprep.mubr.bf16.mxu0 %v1145_v20  ;;  %2406 = vmatprep.mubr.bf16.mxu1 %v1147_v28  ;;  %v1037_v62 = vmax.f32 %v801_v41, 0.0  ;;  %v1039_v63 = vmax.f32 %v864_v53, 0.0  ;;  %v3368_v41 = vld [vmem:[%s4306_s3 + $0x2f8] sm:$0xff]  }
 0x11e   : > { %v4000_v1 = vpack.c.bf16 %v1036_v58, %v1020_v42  ;;  %v4002_v2 = vpack.c.bf16 %v1038_v61, %v1022_v44  ;;  %v3365_v44 = vld [vmem:[%s4306_s3 + $0x230] sm:$0xff]  }
 0x11f   : > { %3131 = vmatpush3.bf16.msra.mxu0 %v3353_v50  ;;  %3165 = vmatpush3.bf16.msra.mxu1 %v3354_v40  ;;  %v1117_v25 = vpack.c.bf16 %v1037_v62, %v1021_v51  ;;  %v1119_v4 = vpack.c.bf16 %v1039_v63, %v1023_v52  ;;  %v804_v26 = vpop.f32.mrb[28].mxu0  ;;  %v867_v59 = vpop.f32.mrb[28].mxu1  ;;  %v3367_v51 = vld [vmem:[%s4306_s3 + $0x278] sm:$0xff]  }
 0x120   : > { %3132 = vmatprep.subr.bf16.mxu0 %v3355_v56  ;;  %3166 = vmatprep.subr.bf16.mxu1 %v3356_v57  ;;  %v805_v8 = vadd.f32 %v804_v26, %v3945_v14  ;;  %v806_v27 = vpop.f32.mrb[29].mxu0  ;;  %v868_v5 = vadd.f32 %v867_v59, %v3950_v9  ;;  %v869_v11 = vpop.f32.mrb[29].mxu1 }
 0x121   : > { %v807_v12 = vadd.f32 %v806_v27, %v3955_v16  ;;  %v808_v13 = vpop.f32.mrb[30].mxu0  ;;  %v870_v10 = vadd.f32 %v869_v11, %v3960_v17  ;;  %v871_v15 = vpop.f32.mrb[30].mxu1  ;;  %v3372_v11 = vld [vmem:[%s4306_s3 + $0x3c0] sm:$0xff]  }
 0x122   : > { %2350 = vmatmul.mubr.bf16.gmra.mrb[68].mxu0 %v3962_v19  ;;  %2407 = vmatmul.mubr.bf16.gmra.mrb[68].mxu1 %v3964_v18  ;;  %v1052_v20 = vmax.f32 %v805_v8, 0.0  ;;  %v809_v21 = vadd.f32 %v808_v13, %v3945_v14  ;;  %v1054_v22 = vmax.f32 %v868_v5, 0.0  ;;  %v810_v28 = vpop.f32.mrb[31].mxu0  ;;  %v872_v29 = vadd.f32 %v871_v15, %v3950_v9  ;;  %v873_v30 = vpop.f32.mrb[31].mxu1  ;;  %v3362_v19 = vld [vmem:[%s4306_s3 + $0x2a8] sm:$0xff]  }
 0x123   : > { %3133 = vmatpush3.bf16.msra.mxu0 %v3357_v24  ;;  %3167 = vmatpush3.bf16.msra.mxu1 %v3358_v3  ;;  %v1053_v31 = vmax.f32 %v807_v12, 0.0  ;;  %v811_v18 = vadd.f32 %v810_v28, %v3955_v16  ;;  %v1055_v32 = vmax.f32 %v870_v10, 0.0  ;;  %v874_v33 = vadd.f32 %v873_v30, %v3960_v17  ;;  %v3376_v30 = vld [vmem:[%s4306_s3 + $0x3c8] sm:$0xff]  }
 0x124   : > { %3134 = vmatprep.subr.bf16.mxu0 %v3359_v7  ;;  %3168 = vmatprep.subr.bf16.mxu1 %v3360_v60  ;;  %v1068_v36 = vmax.f32 %v809_v21, 0.0  ;;  %v1070_v37 = vmax.f32 %v872_v29, 0.0  ;;  %v3369_v7 = vld [vmem:[%s4306_s3 + $0x238] sm:$0xff]   ;;  %v4081_v10 = vrot.slane %v3922_v0, %v315_v48  ;;  %v4096_v21 = vrot.slane %v3922_v0, %v327_v55  ;;  %v3375_v29 = vld [vmem:[%s4306_s3 + $0x348] sm:$0xff]  }
 0x125   : > { %2447 = vmatprep.mubr.bf16.mxu0 %v1117_v25  ;;  %2504 = vmatprep.mubr.bf16.mxu1 %v1119_v4  ;;  %v1069_v38 = vmax.f32 %v811_v18, 0.0  ;;  %v1071_v39 = vmax.f32 %v874_v33, 0.0  ;;  %v3370_v60 = vld [vmem:[%s4306_s3 + $0x2b8] sm:$0xff]  }
 0x126   : > { %v4038_v42 = vpack.c.bf16 %v1068_v36, %v1052_v20  ;;  %v4040_v43 = vpack.c.bf16 %v1070_v37, %v1054_v22  ;;  %v4091_v20 = vrot.slane %v3922_v0, %v319_v54  ;;  %v3374_v54 = vld [vmem:[%s4306_s3 + $0x380] sm:$0xff]  }
 0x127   : > { %3135 = vmatpush3.bf16.msra.mxu0 %v3361_v23  ;;  %3169 = vmatpush3.bf16.msra.mxu1 %v3362_v19  ;;  %v4048_v46 = vpack.c.bf16 %v1069_v38, %v1053_v31  ;;  %v4050_v47 = vpack.c.bf16 %v1071_v39, %v1055_v32  ;;  %v814_v50 = vpop.f32.mrb[32].mxu0  ;;  %v877_v40 = vpop.f32.mrb[32].mxu1 }
 0x128   : > { %3136 = vmatprep.subr.bf16.mxu0 %v3363_v34  ;;  %3170 = vmatprep.subr.bf16.mxu1 %v3364_v35  ;;  %v815_v52 = vadd.f32 %v814_v50, %v3945_v14  ;;  %v816_v53 = vpop.f32.mrb[33].mxu0  ;;  %v878_v56 = vadd.f32 %v877_v40, %v3950_v9  ;;  %v879_v57 = vpop.f32.mrb[33].mxu1  ;;  %v3377_v50 = vld [vmem:[%s4306_s3 + $0x308] sm:$0xff]  }
 0x129   : > { %v817_v58 = vadd.f32 %v816_v53, %v3955_v16  ;;  %v818_v61 = vpop.f32.mrb[34].mxu0  ;;  %v880_v62 = vadd.f32 %v879_v57, %v3960_v17  ;;  %v881_v63 = vpop.f32.mrb[34].mxu1  ;;  %v3380_v53 = vld [vmem:[%s4306_s3 + $0x3d0] sm:$0xff]  }
 0x12a   : > { %v1084_v24 = vmax.f32 %v815_v52, 0.0  ;;  %v819_v3 = vadd.f32 %v818_v61, %v3945_v14  ;;  %v1086_v25 = vmax.f32 %v878_v56, 0.0  ;;  %v820_v4 = vpop.f32.mrb[35].mxu0  ;;  %v882_v26 = vadd.f32 %v881_v63, %v3950_v9  ;;  %v883_v59 = vpop.f32.mrb[35].mxu1  ;;  %v3371_v9 = vld [vmem:[%s4306_s3 + $0x340] sm:$0xff]   ;;  %v3379_v52 = vld [vmem:[%s4306_s3 + $0x350] sm:$0xff]  }
 0x12b   : > { %3137 = vmatpush3.bf16.msra.mxu0 %v3365_v44  ;;  %3171 = vmatpush3.bf16.msra.mxu1 %v3366_v45  ;;  %v1085_v8 = vmax.f32 %v817_v58, 0.0  ;;  %v821_v27 = vadd.f32 %v820_v4, %v3955_v16  ;;  %v1087_v5 = vmax.f32 %v880_v62, 0.0  ;;  %v884_v14 = vadd.f32 %v883_v59, %v3960_v17  ;;  %v3384_v59 = vld [vmem:[%s4306_s3 + $0x3d8] sm:$0xff]  }
 0x12c   : > { %3138 = vmatprep.subr.bf16.mxu0 %v3367_v51  ;;  %3172 = vmatprep.subr.bf16.mxu1 %v3368_v41  ;;  %v1100_v12 = vmax.f32 %v819_v3, 0.0  ;;  %v1102_v13 = vmax.f32 %v882_v26, 0.0  ;;  %v4086_v16 = vrot.slane %v3922_v0, %v323_v49  ;;  %v3373_v49 = vld [vmem:[%s4306_s3 + $0x300] sm:$0xff]   ;;  %v3382_v3 = vld [vmem:[%s4306_s3 + $0x390] sm:$0xff]   ;;  %v3383_v26 = vld [vmem:[%s4306_s3 + $0x358] sm:$0xff]  }
 0x12d   : > { %v1101_v17 = vmax.f32 %v821_v27, 0.0  ;;  %v1103_v15 = vmax.f32 %v884_v14, 0.0 }
 0x12e   : > { %v4098_v22 = vpack.c.bf16 %v1100_v12, %v1084_v24  ;;  %v4100_v48 = vpack.c.bf16 %v1102_v13, %v1086_v25  ;;  %v3381_v24 = vld [vmem:[%s4306_s3 + $0x310] sm:$0xff]  }
 0x12f   : > { %3139 = vmatpush3.bf16.msra.mxu0 %v3369_v7  ;;  %3173 = vmatpush3.bf16.msra.mxu1 %v3370_v60  ;;  %v4108_v28 = vpack.c.bf16 %v1101_v17, %v1085_v8  ;;  %v4110_v6 = vpack.c.bf16 %v1103_v15, %v1087_v5  ;;  %v920_v55 = vpop.f32.mrb[36].mxu0  ;;  %v983_v0 = vpop.f32.mrb[36].mxu1 }
 0x130   : > { %3192 = vmatprep.subr.bf16.mxu0 %v3371_v9  ;;  %3226 = vmatprep.subr.bf16.mxu1 %v3372_v11  ;;  %v921_v23 = vadd.f32 %v920_v55, %v4081_v10  ;;  %v922_v19 = vpop.f32.mrb[37].mxu0  ;;  %v984_v31 = vadd.f32 %v983_v0, %v4086_v16  ;;  %v985_v18 = vpop.f32.mrb[37].mxu1  ;;  %v3385_v55 = vld [vmem:[%s4306_s3 + $0x318] sm:$0xff]  }
 0x131   : > { %v923_v32 = vadd.f32 %v922_v19, %v4091_v20  ;;  %v924_v33 = vpop.f32.mrb[38].mxu0  ;;  %v986_v34 = vadd.f32 %v985_v18, %v4096_v21  ;;  %v987_v35 = vpop.f32.mrb[38].mxu1  ;;  %v3388_v19 = vld [vmem:[%s4306_s3 + $0x3e0] sm:$0xff]  }
 0x132   : > { %2448 = vmatmul.mubr.bf16.vlgmr.msra.gmra.mrb[72].mxu0 %v4000_v1  ;;  %2505 = vmatmul.mubr.bf16.vlgmr.msra.gmra.mrb[72].mxu1 %v4002_v2  ;;  %v1024_v36 = vmax.f32 %v921_v23, 0.0  ;;  %v925_v37 = vadd.f32 %v924_v33, %v4081_v10  ;;  %v1026_v38 = vmax.f32 %v984_v31, 0.0  ;;  %v926_v39 = vpop.f32.mrb[39].mxu0  ;;  %v988_v44 = vadd.f32 %v987_v35, %v4086_v16  ;;  %v989_v45 = vpop.f32.mrb[39].mxu1  ;;  %v3378_v1 = vld [vmem:[%s4306_s3 + $0x388] sm:$0xff]   ;;  %v3387_v23 = vld [vmem:[%s4306_s3 + $0x360] sm:$0xff]  }
 0x133   : > { %3193 = vmatpush3.bf16.msra.mxu0 %v3373_v49  ;;  %3227 = vmatpush3.bf16.msra.mxu1 %v3374_v54  ;;  %v1025_v40 = vmax.f32 %v923_v32, 0.0  ;;  %v927_v2 = vadd.f32 %v926_v39, %v4091_v20  ;;  %v1027_v51 = vmax.f32 %v986_v34, 0.0  ;;  %v990_v41 = vadd.f32 %v989_v45, %v4096_v21  ;;  %v3392_v45 = vld [vmem:[%s4306_s3 + $0x3e8] sm:$0xff]  }
 0x134   : > { %3194 = vmatprep.subr.bf16.mxu0 %v3375_v29  ;;  %3228 = vmatprep.subr.bf16.mxu1 %v3376_v30  ;;  %v1040_v56 = vmax.f32 %v925_v37, 0.0  ;;  %v1042_v57 = vmax.f32 %v988_v44, 0.0  ;;  %v3390_v37 = vld [vmem:[%s4306_s3 + $0x3a0] sm:$0xff]   ;;  %v3391_v44 = vld [vmem:[%s4306_s3 + $0x368] sm:$0xff]  }
 0x135   : > { %2455 = vmatprep.mubr.bf16.mxu0 %v4048_v46  ;;  %2512 = vmatprep.mubr.bf16.mxu1 %v4050_v47  ;;  %v1041_v58 = vmax.f32 %v927_v2, 0.0  ;;  %v1043_v61 = vmax.f32 %v990_v41, 0.0 }
 0x136   : > { %v4142_v62 = vpack.c.bf16 %v1040_v56, %v1024_v36  ;;  %v4144_v63 = vpack.c.bf16 %v1042_v57, %v1026_v38  ;;  %v3389_v36 = vld [vmem:[%s4306_s3 + $0x320] sm:$0xff]  }
 0x137   : > { %3195 = vmatpush3.bf16.msra.mxu0 %v3377_v50  ;;  %3229 = vmatpush3.bf16.msra.mxu1 %v3378_v1  ;;  %v4152_v25 = vpack.c.bf16 %v1041_v58, %v1025_v40  ;;  %v4154_v46 = vpack.c.bf16 %v1043_v61, %v1027_v51  ;;  %v930_v47 = vpop.f32.mrb[40].mxu0  ;;  %v993_v4 = vpop.f32.mrb[40].mxu1 }
 0x138   : > { %3196 = vmatprep.subr.bf16.mxu0 %v3379_v52  ;;  %3230 = vmatprep.subr.bf16.mxu1 %v3380_v53  ;;  %v931_v7 = vadd.f32 %v930_v47, %v4081_v10  ;;  %v932_v60 = vpop.f32.mrb[41].mxu0  ;;  %v994_v8 = vadd.f32 %v993_v4, %v4086_v16  ;;  %v995_v27 = vpop.f32.mrb[41].mxu1  ;;  %v3393_v47 = vld [vmem:[%s4306_s3 + $0x328] sm:$0xff]  }
 0x139   : > { %v933_v5 = vadd.f32 %v932_v60, %v4091_v20  ;;  %v934_v14 = vpop.f32.mrb[42].mxu0  ;;  %v996_v9 = vadd.f32 %v995_v27, %v4096_v21  ;;  %v997_v11 = vpop.f32.mrb[42].mxu1 }
 0x13a   : > { %2456 = vmatmul.mubr.bf16.gmra.mrb[76].mxu0 %v4038_v42  ;;  %2513 = vmatmul.mubr.bf16.gmra.mrb[76].mxu1 %v4040_v43  ;;  %v1056_v12 = vmax.f32 %v931_v7, 0.0  ;;  %v935_v13 = vadd.f32 %v934_v14, %v4081_v10  ;;  %v1058_v17 = vmax.f32 %v994_v8, 0.0  ;;  %v936_v15 = vpop.f32.mrb[43].mxu0  ;;  %v998_v49 = vadd.f32 %v997_v11, %v4086_v16  ;;  %v999_v54 = vpop.f32.mrb[43].mxu1  ;;  %v3386_v42 = vld [vmem:[%s4306_s3 + $0x398] sm:$0xff]   ;;  %v3398_v14 = vld [vmem:[%s4306_s3 + $0x3b0] sm:$0xff]  }
 0x13b   : > { %3197 = vmatpush3.bf16.msra.mxu0 %v3381_v24  ;;  %3231 = vmatpush3.bf16.msra.mxu1 %v3382_v3  ;;  %v1057_v0 = vmax.f32 %v933_v5, 0.0  ;;  %v937_v43 = vadd.f32 %v936_v15, %v4091_v20  ;;  %v1059_v29 = vmax.f32 %v996_v9, 0.0  ;;  %v1000_v30 = vadd.f32 %v999_v54, %v4096_v21  ;;  %v3397_v5 = vld [vmem:[%s4306_s3 + $0x330] sm:$0xff]  }
 0x13c   : > { %3198 = vmatprep.subr.bf16.mxu0 %v3383_v26  ;;  %3232 = vmatprep.subr.bf16.mxu1 %v3384_v59  ;;  %v1072_v31 = vmax.f32 %v935_v13, 0.0  ;;  %v1074_v18 = vmax.f32 %v998_v49, 0.0  ;;  %v3396_v59 = vld [vmem:[%s4306_s3 + $0x3f0] sm:$0xff]   ;;  %v3402_v13 = vld [vmem:[%s4306_s3 + $0x3b8] sm:$0xff]  }
 0x13d   : > { %2463 = vmatprep.mubr.bf16.mxu0 %v4108_v28  ;;  %2520 = vmatprep.mubr.bf16.mxu1 %v4110_v6  ;;  %v1073_v32 = vmax.f32 %v937_v43, 0.0  ;;  %v1075_v33 = vmax.f32 %v1000_v30, 0.0 }
 0x13e   : > { %v4186_v34 = vpack.c.bf16 %v1072_v31, %v1056_v12  ;;  %v4188_v35 = vpack.c.bf16 %v1074_v18, %v1058_v17  ;;  %v3401_v12 = vld [vmem:[%s4306_s3 + $0x338] sm:$0xff]  }
 0x13f   : > { %3199 = vmatpush3.bf16.msra.mxu0 %v3385_v55  ;;  %3233 = vmatpush3.bf16.msra.mxu1 %v3386_v42  ;;  %v4196_v38 = vpack.c.bf16 %v1073_v32, %v1057_v0  ;;  %v4198_v28 = vpack.c.bf16 %v1075_v33, %v1059_v29  ;;  %v940_v6 = vpop.f32.mrb[44].mxu0  ;;  %v1003_v39 = vpop.f32.mrb[44].mxu1 }
 0x140   : > { %3200 = vmatprep.subr.bf16.mxu0 %v3387_v23  ;;  %3234 = vmatprep.subr.bf16.mxu1 %v3388_v19  ;;  %v941_v50 = vadd.f32 %v940_v6, %v4081_v10  ;;  %v942_v1 = vpop.f32.mrb[45].mxu0  ;;  %v1004_v40 = vadd.f32 %v1003_v39, %v4086_v16  ;;  %v1005_v2 = vpop.f32.mrb[45].mxu1 }
 0x141   : > { %v943_v51 = vadd.f32 %v942_v1, %v4091_v20  ;;  %v944_v41 = vpop.f32.mrb[46].mxu0  ;;  %v1006_v52 = vadd.f32 %v1005_v2, %v4096_v21  ;;  %v1007_v53 = vpop.f32.mrb[46].mxu1 }
 0x142   : > { %2464 = vmatmul.mubr.bf16.gmra.mrb[80].mxu0 %v4098_v22  ;;  %2521 = vmatmul.mubr.bf16.gmra.mrb[80].mxu1 %v4100_v48  ;;  %v1088_v56 = vmax.f32 %v941_v50, 0.0  ;;  %v945_v57 = vadd.f32 %v944_v41, %v4081_v10  ;;  %v1090_v58 = vmax.f32 %v1004_v40, 0.0  ;;  %v946_v61 = vpop.f32.mrb[47].mxu0  ;;  %v1008_v24 = vadd.f32 %v1007_v53, %v4086_v16  ;;  %v1009_v3 = vpop.f32.mrb[47].mxu1  ;;  %v3394_v22 = vld [vmem:[%s4306_s3 + $0x3a8] sm:$0xff]   ;;  %v3395_v16 = vld [vmem:[%s4306_s3 + $0x370] sm:$0xff]  }
 0x143   : > { %3201 = vmatpush3.bf16.msra.mxu0 %v3389_v36  ;;  %3235 = vmatpush3.bf16.msra.mxu1 %v3390_v37  ;;  %v1089_v4 = vmax.f32 %v943_v51, 0.0  ;;  %v947_v48 = vadd.f32 %v946_v61, %v4091_v20  ;;  %v1091_v26 = vmax.f32 %v1006_v52, 0.0  ;;  %v1010_v10 = vadd.f32 %v1009_v3, %v4096_v21 }
 0x144   : > { %3202 = vmatprep.subr.bf16.mxu0 %v3391_v44  ;;  %3236 = vmatprep.subr.bf16.mxu1 %v3392_v45  ;;  %v1104_v7 = vmax.f32 %v945_v57, 0.0  ;;  %v1106_v60 = vmax.f32 %v1008_v24, 0.0 }
 0x145   : > { %2561 = vmatprep.mubr.bf16.mxu0 %v4152_v25  ;;  %2618 = vmatprep.mubr.bf16.mxu1 %v4154_v46  ;;  %v1105_v20 = vmax.f32 %v947_v48, 0.0  ;;  %v1107_v8 = vmax.f32 %v1010_v10, 0.0  ;;  %v3399_v25 = vld [vmem:[%s4306_s3 + $0x378] sm:$0xff]  }
 0x146   : > { %v1152_v27 = vpack.c.bf16 %v1104_v7, %v1088_v56  ;;  %v1154_v21 = vpack.c.bf16 %v1106_v60, %v1090_v58  ;;  %v3400_v46 = vld [vmem:[%s4306_s3 + $0x3f8] sm:$0xff]  }
 0x147   : > { %3203 = vmatpush3.bf16.msra.mxu0 %v3393_v47  ;;  %3237 = vmatpush3.bf16.msra.mxu1 %v3394_v22  ;;  %v1153_v9 = vpack.c.bf16 %v1105_v20, %v1089_v4  ;;  %v1155_v11 = vpack.c.bf16 %v1107_v8, %v1091_v26 }
 0x148   : > { %3204 = vmatprep.subr.bf16.mxu0 %v3395_v16  ;;  %3238 = vmatprep.subr.bf16.mxu1 %v3396_v59 }
 0x14b   : > { %3205 = vmatpush3.bf16.msra.mxu0 %v3397_v5  ;;  %3239 = vmatpush3.bf16.msra.mxu1 %v3398_v14 }
 0x14c   : > { %3206 = vmatprep.subr.bf16.mxu0 %v3399_v25  ;;  %3240 = vmatprep.subr.bf16.mxu1 %v3400_v46 }
 0x14f   : > { %3207 = vmatpush3.bf16.msra.mxu0 %v3401_v12  ;;  %3241 = vmatpush3.bf16.msra.mxu1 %v3402_v13 }
 0x152   : > { %2562 = vmatmul.mubr.bf16.vlgmr.msra.gmra.mrb[84].mxu0 %v4142_v62  ;;  %2619 = vmatmul.mubr.bf16.vlgmr.msra.gmra.mrb[84].mxu1 %v4144_v63  ;;  %v2855_v62 = vld [vmem:[%s4307_s4] ss:$0 sm:$0xff] }
 0x153   : > { %2569 = vmatprep.mubr.bf16.mxu0 %v4196_v38  ;;  %2626 = vmatprep.mubr.bf16.mxu1 %v4198_v28 }
 0x15a   : > { %2570 = vmatmul.mubr.bf16.gmra.mrb[88].mxu0 %v4186_v34  ;;  %2627 = vmatmul.mubr.bf16.gmra.mrb[88].mxu1 %v4188_v35 }
 0x15b   : > { %2577 = vmatprep.mubr.bf16.mxu0 %v1153_v9  ;;  %2634 = vmatprep.mubr.bf16.mxu1 %v1155_v11 }
 0x162   : > { %2578 = vmatmul.mubr.bf16.gmra.mrb[92].mxu0 %v1152_v27  ;;  %2635 = vmatmul.mubr.bf16.gmra.mrb[92].mxu1 %v1154_v21 }
 0x1c5   : > { %v3004_v17 = vpop.f32.mrb[48].mxu0  ;;  %v3038_v15 = vpop.f32.mrb[48].mxu1 }
 0x1c6   : > { %v3005_v49 = vpop.f32.mrb[49].mxu0  ;;  %v3039_v63 = vpop.f32.mrb[49].mxu1 }
 0x1c7   : > { %v3006_v54 = vadd.f32 %v3005_v49, %v3004_v17  ;;  %v3040_v55 = vadd.f32 %v3039_v63, %v3038_v15  ;;  %v3007_v42 = vpop.f32.mrb[50].mxu0  ;;  %v3041_v0 = vpop.f32.mrb[50].mxu1 }
 0x1c8   : > { %v3008_v43 = vpop.f32.mrb[51].mxu0  ;;  %v3042_v29 = vpop.f32.mrb[51].mxu1 }
 0x1c9   : > { %v2222_v30 = vadd.f32 %v3006_v54, %v2855_v62  ;;  %v3009_v23 = vadd.f32 %v3008_v43, %v3007_v42  ;;  %v3043_v19 = vadd.f32 %v3042_v29, %v3041_v0 }
 0x1cb   : > { %v2279_v31 = vadd.f32 %v3040_v55, %v2222_v30  ;;  %v2225_v18 = vadd.f32 %v3009_v23, %v2855_v62 }
 0x1cd   : > { %v2282_v32 = vadd.f32 %v3043_v19, %v2225_v18  ;;  %v3010_v33 = vpop.f32.mrb[52].mxu0  ;;  %v3044_v34 = vpop.f32.mrb[52].mxu1 }
 0x1ce   : > { %v3011_v35 = vpop.f32.mrb[53].mxu0  ;;  %v3045_v36 = vpop.f32.mrb[53].mxu1 }
 0x1cf   : > { %v3012_v37 = vadd.f32 %v3011_v35, %v3010_v33  ;;  %v3013_v38 = vpop.f32.mrb[54].mxu0  ;;  %v3046_v28 = vadd.f32 %v3045_v36, %v3044_v34  ;;  %v3047_v6 = vpop.f32.mrb[54].mxu1 }
 0x1d0   : > { %v3014_v39 = vpop.f32.mrb[55].mxu0  ;;  %v3048_v44 = vpop.f32.mrb[55].mxu1 }
 0x1d1   : > { %v2230_v45 = vadd.f32 %v3012_v37, %v2855_v62  ;;  %v3015_v50 = vadd.f32 %v3014_v39, %v3013_v38  ;;  %v3049_v1 = vadd.f32 %v3048_v44, %v3047_v6 }
 0x1d3   : > { %v2233_v40 = vadd.f32 %v3015_v50, %v2855_v62  ;;  %v2287_v2 = vadd.f32 %v3046_v28, %v2230_v45 }
 0x1d5   : > { %v2290_v51 = vadd.f32 %v3049_v1, %v2233_v40  ;;  %v3016_v41 = vpop.f32.mrb[56].mxu0  ;;  %v3050_v52 = vpop.f32.mrb[56].mxu1 }
 0x1d6   : > { %v3017_v53 = vpop.f32.mrb[57].mxu0  ;;  %v3051_v56 = vpop.f32.mrb[57].mxu1 }
 0x1d7   : > { %v3018_v57 = vadd.f32 %v3017_v53, %v3016_v41  ;;  %v3019_v58 = vpop.f32.mrb[58].mxu0  ;;  %v3052_v61 = vadd.f32 %v3051_v56, %v3050_v52  ;;  %v3053_v24 = vpop.f32.mrb[58].mxu1 }
 0x1d8   : > { %v3020_v3 = vpop.f32.mrb[59].mxu0  ;;  %v3054_v47 = vpop.f32.mrb[59].mxu1 }
 0x1d9   : > { %v2238_v22 = vadd.f32 %v3018_v57, %v2855_v62  ;;  %v3021_v4 = vadd.f32 %v3020_v3, %v3019_v58  ;;  %v3055_v48 = vadd.f32 %v3054_v47, %v3053_v24 }
 0x1db   : > { %v2241_v26 = vadd.f32 %v3021_v4, %v2855_v62  ;;  %v2295_v10 = vadd.f32 %v3052_v61, %v2238_v22 }
 0x1dd   : > { %v2298_v16 = vadd.f32 %v3055_v48, %v2241_v26 }
 0x1e5   : > { %v3072_v59 = vpop.f32.mrb[60].mxu0  ;;  %v3106_v7 = vpop.f32.mrb[60].mxu1 }
 0x1e6   : > { %v3073_v60 = vpop.f32.mrb[61].mxu0  ;;  %v3107_v20 = vpop.f32.mrb[61].mxu1 }
 0x1e7   : > { %v3074_v8 = vadd.f32 %v3073_v60, %v3072_v59  ;;  %v3108_v27 = vadd.f32 %v3107_v20, %v3106_v7  ;;  %v3075_v21 = vpop.f32.mrb[62].mxu0  ;;  %v3109_v5 = vpop.f32.mrb[62].mxu1 }
 0x1e8   : > { %v3076_v14 = vpop.f32.mrb[63].mxu0  ;;  %v3110_v9 = vpop.f32.mrb[63].mxu1 }
 0x1e9   : > { %v2336_v11 = vadd.f32 %v3074_v8, %v2279_v31  ;;  %v3077_v25 = vadd.f32 %v3076_v14, %v3075_v21  ;;  %v3111_v46 = vadd.f32 %v3110_v9, %v3109_v5 }
 0x1eb   : > { %v2393_v12 = vadd.f32 %v3108_v27, %v2336_v11  ;;  %v2339_v13 = vadd.f32 %v3077_v25, %v2282_v32 }
 0x1ed   : > { %v2396_v17 = vadd.f32 %v3111_v46, %v2339_v13  ;;  %v3078_v15 = vpop.f32.mrb[64].mxu0  ;;  %v3112_v62 = vpop.f32.mrb[64].mxu1 }
 0x1ee   : > { %v3079_v49 = vpop.f32.mrb[65].mxu0  ;;  %v3113_v63 = vpop.f32.mrb[65].mxu1 }
 0x1ef   : > { %v3080_v54 = vadd.f32 %v3079_v49, %v3078_v15  ;;  %v3081_v55 = vpop.f32.mrb[66].mxu0  ;;  %v3114_v42 = vadd.f32 %v3113_v63, %v3112_v62  ;;  %v3115_v0 = vpop.f32.mrb[66].mxu1 }
 0x1f0   : > { %v3082_v43 = vpop.f32.mrb[67].mxu0  ;;  %v3116_v29 = vpop.f32.mrb[67].mxu1 }
 0x1f1   : > { %v2344_v30 = vadd.f32 %v3080_v54, %v2287_v2  ;;  %v3083_v23 = vadd.f32 %v3082_v43, %v3081_v55  ;;  %v3117_v19 = vadd.f32 %v3116_v29, %v3115_v0 }
 0x1f3   : > { %v2347_v18 = vadd.f32 %v3083_v23, %v2290_v51  ;;  %v2401_v31 = vadd.f32 %v3114_v42, %v2344_v30 }
 0x1f5   : > { %v2404_v33 = vadd.f32 %v3117_v19, %v2347_v18  ;;  %v3084_v34 = vpop.f32.mrb[68].mxu0  ;;  %v3118_v35 = vpop.f32.mrb[68].mxu1 }
 0x1f6   : > { %v3085_v32 = vpop.f32.mrb[69].mxu0  ;;  %v3119_v36 = vpop.f32.mrb[69].mxu1 }
 0x1f7   : > { %v3086_v37 = vadd.f32 %v3085_v32, %v3084_v34  ;;  %v3087_v38 = vpop.f32.mrb[70].mxu0  ;;  %v3120_v28 = vadd.f32 %v3119_v36, %v3118_v35  ;;  %v3121_v6 = vpop.f32.mrb[70].mxu1 }
 0x1f8   : > { %v3088_v39 = vpop.f32.mrb[71].mxu0  ;;  %v3122_v44 = vpop.f32.mrb[71].mxu1 }
 0x1f9   : > { %v2352_v45 = vadd.f32 %v3086_v37, %v2295_v10  ;;  %v3089_v50 = vadd.f32 %v3088_v39, %v3087_v38  ;;  %v3123_v1 = vadd.f32 %v3122_v44, %v3121_v6 }
 0x1fb   : > { %v2355_v40 = vadd.f32 %v3089_v50, %v2298_v16  ;;  %v2409_v2 = vadd.f32 %v3120_v28, %v2352_v45 }
 0x1fd   : > { %v2412_v41 = vadd.f32 %v3123_v1, %v2355_v40 }
 0x205   : > { %v3140_v52 = vpop.f32.mrb[72].mxu0  ;;  %v3174_v51 = vpop.f32.mrb[72].mxu1 }
 0x206   : > { %v3141_v53 = vpop.f32.mrb[73].mxu0  ;;  %v3175_v56 = vpop.f32.mrb[73].mxu1 }
 0x207   : > { %v3142_v57 = vadd.f32 %v3141_v53, %v3140_v52  ;;  %v3176_v58 = vadd.f32 %v3175_v56, %v3174_v51  ;;  %v3143_v61 = vpop.f32.mrb[74].mxu0  ;;  %v3177_v24 = vpop.f32.mrb[74].mxu1  ;;  %v3415_v53 = vld [vmem:[%s3501_s12] sm:$0xff] }
 0x208   : > { %v3144_v3 = vpop.f32.mrb[75].mxu0  ;;  %v3178_v47 = vpop.f32.mrb[75].mxu1 }
 0x209   : > { %v2450_v22 = vadd.f32 %v3142_v57, %v2393_v12  ;;  %v3145_v4 = vadd.f32 %v3144_v3, %v3143_v61  ;;  %v3179_v48 = vadd.f32 %v3178_v47, %v3177_v24 }
 0x20b   : > { %v2507_v26 = vadd.f32 %v3176_v58, %v2450_v22  ;;  %v2453_v10 = vadd.f32 %v3145_v4, %v2396_v17  ;;  %v3416_v4 = vld [vmem:[%s3501_s12 + $0x8] sm:$0xff] }
 0x20d   : > { %v2510_v59 = vadd.f32 %v3179_v48, %v2453_v10  ;;  %v3146_v7 = vpop.f32.mrb[76].mxu0  ;;  %v3180_v16 = vpop.f32.mrb[76].mxu1 }
 0x20e   : > { %v3147_v60 = vpop.f32.mrb[77].mxu0  ;;  %v3181_v20 = vpop.f32.mrb[77].mxu1 }
 0x20f   : > { %v3148_v8 = vadd.f32 %v3147_v60, %v3146_v7  ;;  %v3149_v27 = vpop.f32.mrb[78].mxu0  ;;  %v3182_v21 = vadd.f32 %v3181_v20, %v3180_v16  ;;  %v3183_v5 = vpop.f32.mrb[78].mxu1 }
 0x210   : > { %v3150_v14 = vpop.f32.mrb[79].mxu0  ;;  %v3184_v9 = vpop.f32.mrb[79].mxu1 }
 0x211   : > { %v2458_v11 = vadd.f32 %v3148_v8, %v2401_v31  ;;  %v3151_v25 = vadd.f32 %v3150_v14, %v3149_v27  ;;  %v3185_v46 = vadd.f32 %v3184_v9, %v3183_v5  ;;  %v3417_v14 = vld [vmem:[%s3501_s12 + $0x10] sm:$0xff] }
 0x213   : > { %v2461_v13 = vadd.f32 %v3151_v25, %v2404_v33  ;;  %v2515_v12 = vadd.f32 %v3182_v21, %v2458_v11 }
 0x215   : > { %v2518_v15 = vadd.f32 %v3185_v46, %v2461_v13  ;;  %v3152_v62 = vpop.f32.mrb[80].mxu0  ;;  %v3186_v49 = vpop.f32.mrb[80].mxu1 }
 0x216   : > { %v3153_v17 = vpop.f32.mrb[81].mxu0  ;;  %v3187_v63 = vpop.f32.mrb[81].mxu1 }
 0x217   : > { %v3154_v54 = vadd.f32 %v3153_v17, %v3152_v62  ;;  %v3155_v55 = vpop.f32.mrb[82].mxu0  ;;  %v3188_v42 = vadd.f32 %v3187_v63, %v3186_v49  ;;  %v3189_v0 = vpop.f32.mrb[82].mxu1  ;;  %v3418_v17 = vld [vmem:[%s3501_s12 + $0x18] sm:$0xff] }
 0x218   : > { %v3156_v43 = vpop.f32.mrb[83].mxu0  ;;  %v3190_v29 = vpop.f32.mrb[83].mxu1 }
 0x219   : > { %v2466_v30 = vadd.f32 %v3154_v54, %v2409_v2  ;;  %v3157_v23 = vadd.f32 %v3156_v43, %v3155_v55  ;;  %v3191_v19 = vadd.f32 %v3190_v29, %v3189_v0 }
 0x21b   : > { %v2469_v18 = vadd.f32 %v3157_v23, %v2412_v41  ;;  %v2523_v31 = vadd.f32 %v3188_v42, %v2466_v30 }
 0x21d   : > { %v2526_v34 = vadd.f32 %v3191_v19, %v2469_v18  ;;  %v3419_v19 = vld [vmem:[%s3501_s12 + $0x20] sm:$0xff] }
 0x225   : > { %v3208_v35 = vpop.f32.mrb[84].mxu0  ;;  %v3242_v33 = vpop.f32.mrb[84].mxu1 }
 0x226   : > { %v3209_v32 = vpop.f32.mrb[85].mxu0  ;;  %v3243_v36 = vpop.f32.mrb[85].mxu1 }
 0x227   : > { %v3210_v37 = vadd.f32 %v3209_v32, %v3208_v35  ;;  %v3244_v38 = vadd.f32 %v3243_v36, %v3242_v33  ;;  %v3211_v28 = vpop.f32.mrb[86].mxu0  ;;  %v3245_v6 = vpop.f32.mrb[86].mxu1  ;;  %v3420_v33 = vld [vmem:[%s3501_s12 + $0x28] sm:$0x1] }
 0x228   : > { %v3212_v39 = vpop.f32.mrb[87].mxu0  ;;  %v3246_v44 = vpop.f32.mrb[87].mxu1 }
 0x229   : > { %v2564_v45 = vadd.f32 %v3210_v37, %v2507_v26  ;;  %v3213_v50 = vadd.f32 %v3212_v39, %v3211_v28  ;;  %v3247_v1 = vadd.f32 %v3246_v44, %v3245_v6 }
 0x22b   : > { %v2621_v40 = vadd.f32 %v3244_v38, %v2564_v45  ;;  %v2567_v2 = vadd.f32 %v3213_v50, %v2510_v59 }
 0x22d   : > { %v2624_v41 = vadd.f32 %v3247_v1, %v2567_v2  ;;  %v3214_v52 = vpop.f32.mrb[88].mxu0  ;;  %v3248_v51 = vpop.f32.mrb[88].mxu1  ;;  %v2643_v56 = vadd.f32 %v3415_v53, %v2621_v40 }
 0x22e   : > { %v3215_v57 = vpop.f32.mrb[89].mxu0  ;;  %v3249_v58 = vpop.f32.mrb[89].mxu1 }
 0x22f   : > { %v3216_v61 = vadd.f32 %v3215_v57, %v3214_v52  ;;  %v3250_v24 = vadd.f32 %v3249_v58, %v3248_v51  ;;  %v3217_v3 = vpop.f32.mrb[90].mxu0  ;;  %v3251_v47 = vpop.f32.mrb[90].mxu1  ;;  %v2649_v22 = vsel %vm449_vm1, %v2643_v56, 0.0  ;;  %v2644_v48 = vadd.f32 %v3416_v4, %v2624_v41 }
 0x230   : > { %v3218_v26 = vpop.f32.mrb[91].mxu0  ;;  %v3252_v10 = vpop.f32.mrb[91].mxu1  ;;  %2650 = vadd.xlane.f32.xlu0 %v2649_v22 }
 0x231   : > { %v2572_v59 = vadd.f32 %v3216_v61, %v2515_v12  ;;  %v3219_v7 = vadd.f32 %v3218_v26, %v3217_v3  ;;  %v3253_v16 = vadd.f32 %v3252_v10, %v3251_v47  ;;  %v2652_v8 = vsel %vm449_vm1, %v2644_v48, 0.0 }
 0x233   : > { %v2629_v60 = vadd.f32 %v3250_v24, %v2572_v59  ;;  %v2575_v20 = vadd.f32 %v3219_v7, %v2518_v15 }
 0x234   : > { %2653 = vadd.xlane.f32.xlu0 %v2652_v8 }
 0x235   : > { %v2632_v27 = vadd.f32 %v3253_v16, %v2575_v20  ;;  %v3220_v21 = vpop.f32.mrb[92].mxu0  ;;  %v3254_v5 = vpop.f32.mrb[92].mxu1  ;;  %v2645_v9 = vadd.f32 %v3417_v14, %v2629_v60 }
 0x236   : > { %v3221_v11 = vpop.f32.mrb[93].mxu0  ;;  %v3255_v25 = vpop.f32.mrb[93].mxu1 }
 0x237   : > { %v3222_v46 = vadd.f32 %v3221_v11, %v3220_v21  ;;  %v3256_v13 = vadd.f32 %v3255_v25, %v3254_v5  ;;  %v3223_v62 = vpop.f32.mrb[94].mxu0  ;;  %v3257_v12 = vpop.f32.mrb[94].mxu1  ;;  %v2655_v49 = vsel %vm449_vm1, %v2645_v9, 0.0  ;;  %v2646_v63 = vadd.f32 %v3418_v17, %v2632_v27 }
 0x238   : > { %v3224_v15 = vpop.f32.mrb[95].mxu0  ;;  %v3258_v54 = vpop.f32.mrb[95].mxu1  ;;  %2656 = vadd.xlane.f32.xlu1 %v2655_v49  ;;  %v2985_v49 = vld [vmem:[%s4309_s6] ss:$0 sm:$0xff] }
 0x239   : > { %v2580_v55 = vadd.f32 %v3222_v46, %v2523_v31  ;;  %v3225_v42 = vadd.f32 %v3224_v15, %v3223_v62  ;;  %v3259_v0 = vadd.f32 %v3258_v54, %v3257_v12  ;;  %v2658_v30 = vsel %vm449_vm1, %v2646_v63, 0.0  ;;  %v2984_v46 = vld [vmem:[%s4308_s5] ss:$0 sm:$0xff] }
 0x23b   : > { %v2637_v43 = vadd.f32 %v3256_v13, %v2580_v55  ;;  %v2583_v29 = vadd.f32 %v3225_v42, %v2526_v34 }
 0x23c   : > { %2659 = vadd.xlane.f32.xlu1 %v2658_v30 }
 0x23d   : > { %v2640_v23 = vadd.f32 %v3259_v0, %v2583_v29  ;;  %v2647_v18 = vadd.f32 %v3419_v19, %v2637_v43 }
 0x23f   : > { %v2661_v35 = vsel %vm449_vm1, %v2647_v18, 0.0  ;;  %v2648_v32 = vadd.f32 %v3420_v33, %v2640_v23 }
 0x240   : > { %2662 = vadd.xlane.f32.xlu0 %v2661_v35 }
 0x241   : > { %v2665_v36 = vsel %vm2664_vm2, %v2648_v32, 0.0 }
 0x242   : > { %2666 = vadd.xlane.f32.xlu1 %v2665_v36 }
 0x2bd   : > { %v2651_v31 = vpop.xlane.xlu0 %2650 }
 0x2be   : > { %v2669_v37 = vmul.f32 0.25, %v2651_v31 }
 0x2c0   : > { %v2675_v38 = vsub.f32 %v2643_v56, %v2669_v37 }
 0x2c1   : > { %v2654_v28 = vpop.xlane.xlu0 %2653 }
 0x2c2   : > { %v2670_v34 = vmul.f32 0.25, %v2654_v28  ;;  %v2681_v6 = vmul.f32 %v2675_v38, %v2675_v38 }
 0x2c4   : > { %v2676_v39 = vsub.f32 %v2644_v48, %v2670_v34  ;;  %v2687_v44 = vsel %vm449_vm1, %v2681_v6, 0.0 }
 0x2c5   : > { %v2657_v45 = vpop.xlane.xlu1 %2656  ;;  %2688 = vadd.xlane.f32.xlu0 %v2687_v44 }
 0x2c6   : > { %v2671_v50 = vmul.f32 0.25, %v2657_v45  ;;  %v2682_v1 = vmul.f32 %v2676_v39, %v2676_v39 }
 0x2c8   : > { %v2677_v40 = vsub.f32 %v2645_v9, %v2671_v50  ;;  %v2690_v2 = vsel %vm449_vm1, %v2682_v1, 0.0 }
 0x2c9   : > { %v2660_v41 = vpop.xlane.xlu1 %2659  ;;  %2691 = vadd.xlane.f32.xlu1 %v2690_v2 }
 0x2ca   : > { %v2672_v52 = vmul.f32 0.25, %v2660_v41  ;;  %v2683_v51 = vmul.f32 %v2677_v40, %v2677_v40 }
 0x2cc   : > { %v2678_v53 = vsub.f32 %v2646_v63, %v2672_v52  ;;  %v2693_v56 = vsel %vm449_vm1, %v2683_v51, 0.0 }
 0x2cd   : > { %2694 = vadd.xlane.f32.xlu0 %v2693_v56  ;;  %v2663_v57 = vpop.xlane.xlu0 %2662 }
 0x2ce   : > { %v2673_v58 = vmul.f32 0.25, %v2663_v57  ;;  %v2684_v61 = vmul.f32 %v2678_v53, %v2678_v53 }
 0x2cf   : > { %v2667_v24 = vpop.xlane.xlu1 %2666 }
 0x2d0   : > { %v2679_v3 = vsub.f32 %v2647_v18, %v2673_v58  ;;  %v2674_v47 = vmul.f32 0.25, %v2667_v24  ;;  %v2696_v22 = vsel %vm449_vm1, %v2684_v61, 0.0 }
 0x2d1   : > { %2697 = vadd.xlane.f32.xlu1 %v2696_v22 }
 0x2d2   : > { %v2680_v4 = vsub.f32 %v2648_v32, %v2674_v47  ;;  %v2685_v48 = vmul.f32 %v2679_v3, %v2679_v3 }
 0x2d4   : > { %v2699_v26 = vsel %vm449_vm1, %v2685_v48, 0.0  ;;  %v2686_v10 = vmul.f32 %v2680_v4, %v2680_v4 }
 0x2d5   : > { %2700 = vadd.xlane.f32.xlu0 %v2699_v26 }
 0x2d6   : > { %v2702_v59 = vsel %vm2664_vm2, %v2686_v10, 0.0 }
 0x2d7   : > { %2703 = vadd.xlane.f32.xlu1 %v2702_v59 }
 0x352   : > { %v2689_v7 = vpop.xlane.xlu0 %2688 }
 0x353   : > { %v2705_v16 = vmul.f32 0.25, %v2689_v7 }
 0x355   : > { %v2711_v60 = vadd.f32 1e-05, %v2705_v16 }
 0x356   : > { %v2692_v20 = vpop.xlane.xlu1 %2691 }
 0x357   : > { %3403 = vrsqrt.f32 %v2711_v60  ;;  %v2706_v8 = vmul.f32 0.25, %v2692_v20 }
 0x359   : > { %v2712_v27 = vadd.f32 1e-05, %v2706_v8 }
 0x35a   : > { %v2695_v21 = vpop.xlane.xlu0 %2694 }
 0x35b   : > { %3405 = vrsqrt.f32 %v2712_v27  ;;  %v2707_v5 = vmul.f32 0.25, %v2695_v21 }
 0x35d   : > { %v2713_v14 = vadd.f32 1e-05, %v2707_v5 }
 0x35e   : > { %v2698_v9 = vpop.xlane.xlu1 %2697 }
 0x35f   : > { %3407 = vrsqrt.f32 %v2713_v14  ;;  %v2708_v11 = vmul.f32 0.25, %v2698_v9 }
 0x361   : > { %v3404_v25 = vpop.eup %3403  ;;  %v2714_v13 = vadd.f32 1e-05, %v2708_v11 }
 0x362   : > { %v2723_v62 = vmul.f32 %v3404_v25, %v2675_v38  ;;  %v2701_v12 = vpop.xlane.xlu0 %2700 }
 0x363   : > { %3409 = vrsqrt.f32 %v2714_v13  ;;  %v2709_v17 = vmul.f32 0.25, %v2701_v12 }
 0x364   : > { %v2736_v63 = vmul.f32 %v2984_v46, %v2723_v62  ;;  %v2704_v15 = vpop.xlane.xlu1 %2703 }
 0x365   : > { %v3406_v54 = vpop.eup %3405  ;;  %v2715_v55 = vadd.f32 1e-05, %v2709_v17  ;;  %v2710_v42 = vmul.f32 0.25, %v2704_v15 }
 0x366   : > { %v2749_v0 = vadd.f32 %v2985_v49, %v2736_v63  ;;  %v2724_v43 = vmul.f32 %v3406_v54, %v2676_v39 }
 0x367   : > { %3411 = vrsqrt.f32 %v2715_v55  ;;  %v2716_v29 = vadd.f32 1e-05, %v2710_v42 }
 0x368   : > { %2755 = vst.msk [vmem:[%s4286_s16] sm:$0xff] %vm449_vm1, %v2749_v0  ;;  %v2737_v30 = vmul.f32 %v2984_v46, %v2724_v43 }
 0x369   : > { %v3408_v23 = vpop.eup %3407  ;;  %3413 = vrsqrt.f32 %v2716_v29 }
 0x36a   : > { %v2750_v19 = vadd.f32 %v2985_v49, %v2737_v30  ;;  %v2725_v18 = vmul.f32 %v3408_v23, %v2677_v40 }
 0x36c   : > { %2756 = vst.msk [vmem:[%s4286_s16 + $0x8] sm:$0xff] %vm449_vm1, %v2750_v19  ;;  %v2738_v35 = vmul.f32 %v2984_v46, %v2725_v18 }
 0x36d   : > { %v3410_v33 = vpop.eup %3409 }
 0x36e   : > { %v2751_v32 = vadd.f32 %v2985_v49, %v2738_v35  ;;  %v2726_v36 = vmul.f32 %v3410_v33, %v2678_v53 }
 0x370   : > { %2757 = vst.msk [vmem:[%s4286_s16 + $0x10] sm:$0xff] %vm449_vm1, %v2751_v32  ;;  %v2739_v31 = vmul.f32 %v2984_v46, %v2726_v36 }
 0x371   : > { %v3412_v37 = vpop.eup %3411 }
 0x372   : > { %v2752_v38 = vadd.f32 %v2985_v49, %v2739_v31  ;;  %v2727_v28 = vmul.f32 %v3412_v37, %v2679_v3 }
 0x373   : > { %v3414_v34 = vpop.eup %3413 }
 0x374   : > { %2758 = vst.msk [vmem:[%s4286_s16 + $0x18] sm:$0xff] %vm449_vm1, %v2752_v38  ;;  %v2740_v6 = vmul.f32 %v2984_v46, %v2727_v28  ;;  %v2728_v39 = vmul.f32 %v3414_v34, %v2680_v4 }
 0x376   : > { %v2753_v44 = vadd.f32 %v2985_v49, %v2740_v6  ;;  %v2741_v45 = vmul.f32 %v2984_v46, %v2728_v39 }
 0x378   : > { %2759 = vst.msk [vmem:[%s4286_s16 + $0x20] sm:$0xff] %vm449_vm1, %v2753_v44  ;;  %v2754_v50 = vadd.f32 %v2985_v49, %v2741_v45 }
 0x37a   : > { %2760 = vst.msk [vmem:[%s4286_s16 + $0x28] sm:$0x1] %vm2664_vm2, %v2754_v50 }
 0x37b PF: > { %s17_s24 = sadd.s32 1, %s3427_s24  }
 0x37c   : > { %p14_p4 = scmp.ge.s32.totalorder %s17_s24, 4  }
 0x37e   :  { %16 = sbr.rel (!%p14_p4) target bundleno = 1 (0x1), region = 78 }

// kernel: graph_cnn_forward.14
= control target key start
LH: loop header
LB: loop body
LE: loop exit
PB: predicated region body
PF: predicated region fallthrough
CT: control target
= control target key end

     0   :  { %12 = vsyncpa [#allocation3], 0  ;;  %s4595_s0 = inlined_call_operand.vmem [shape: f32[2,41,4], index: 0, kind: input, shape index: {}]   ;;  %s4596_s1 = inlined_call_operand.vmem [shape: bf16[4,2048], index: 1, kind: input, shape index: {}]   ;;  %s4597_s2 = inlined_call_operand.vmem [shape: f32[1,2048], index: 2, kind: input, shape index: {}]   ;;  %s4598_s3 = inlined_call_operand.vmem [shape: bf16[2048,4], index: 3, kind: input, shape index: {}]   ;;  %s4599_s4 = inlined_call_operand.hbm [shape: f32[1,4], index: 4, kind: input, shape index: {}]   ;;  %s4600_s5 = inlined_call_operand.hbm [shape: f32[1,4], index: 5, kind: input, shape index: {}]   ;;  %s4601_s6 = inlined_call_operand.hbm [shape: f32[1,4], index: 6, kind: input, shape index: {}]   ;;  %s4602_s7 = inlined_call_operand.vmem [shape: f32[2,41,4], index: 7, kind: output, shape index: {}]  }
   0x1   :  { %13 = vsyncpa [#allocation5], 0  ;;  %s3672_s24 = smov 0  }
   0x2 LB: > { %s3678_s25 = sadd.s32 4294967295, %s3625_s24   ;;  %p2887_p0 = scmp.ge.s32.totalorder %s3625_s24, 1  ;;  %s3625_s24 = sphi %s3672_s24, %s19_s24  }
   0x3   : > { %p202_p1 = scmp.lt.s32.totalorder %s3625_s24, 3  ;;  %p4603_p2 = scmp.eq.s32.totalorder %s3678_s25, 0 }
   0x4   : > { %s3627_s27 = smov [#allocation4]   ;;  %s3628_s29 = smov [#allocation2]  }
   0x5   : > { %p3683_p3 = pnand %p2887_p0, %p202_p1  ;;  %s235_s28 = sshll.u32 %s3627_s27, 4  ;;  %s236_s28 = int_to_ptr.vmem [resolvable:$true] %s235_s28 }
   0x6   : > { %s224_s30 = sshll.u32 %s3628_s29, 4  ;;  %s3629_s8 = smov [#allocation6]   ;;  %s3695_s30 = int_to_ptr.vmem [resolvable:$true] %s224_s30 }
   0x7   : > { %s4605_s26 = scalar_select %p3683_p3, 1, 0 }
   0x8   : > { %p3348_p4 = pneg %p3683_p3  ;;  %s246_s9 = sshll.u32 %s3629_s8, 4  ;;  %s3697_s9 = int_to_ptr.vmem [resolvable:$true] %s246_s9 }
   0x9   : > { %s3527_s13 = scalar_lea.hbm %s4600_s5, 16 }
   0xa   : > { %p3691_p5 = pnand %p4603_p2, %p3348_p4  ;;  %p3528_p6 = scmp.ne.s32.totalorder %s4600_s5, %s3527_s13 }
   0xb   : > { %p3534_p10 = scmp.lt.u32.totalorder %s3527_s13, %s4600_s5 }
   0xc   : > { %p3707_p7 = pneg %p3691_p5 }
   0xe   : > { %p3530_p8 = pnand %p3707_p7, %p3528_p6 }
  0x10   : > { %p3531_p9 = pneg %p3530_p8 }
  0x12   : > { %p3536_p11 = pnand %p3534_p10, %p3531_p9 }
  0x14   : > { %3539 = shalt.err (!%p3536_p11)
}
  0x15   : > { %s3540_s19 = scalar_lea.vmem %s236_s28, 16  ;;  %s3547_s20 = scalar_lea.vmem %s236_s28, 32 }
  0x16   : > { %p3541_p12 = scmp.ne.s32.totalorder %s236_s28, %s3540_s19  ;;  %p3548_p1 = scmp.lt.s32.totalorder %s236_s28, %s236_s28 }
  0x17   : > { %p3549_p4 = scmp.lt.s32.totalorder %s3547_s20, %s3540_s19 }
  0x18   : > { %p3543_p13 = pnand %p3541_p12, %p3707_p7 }
  0x19   : > { %p3550_p2 = por %p3549_p4, %p3548_p1 }
  0x1a   : > { %p3544_p0 = pneg %p3543_p13 }
  0x1c   : > { %p3551_p3 = pnand %p3550_p2, %p3544_p0 }
  0x1e   : > { %3554 = shalt.err (!%p3551_p3)
}
  0x1f   : > { %3354 = dma.hbm_to_vmem [thread:$0]  (!%p3691_p5), %s4600_s5, 16, %s236_s28, [#allocation5]  }
  0x20   : > { %s3555_s29 = scalar_lea.hbm %s4599_s4, 16 }
  0x21   : > { %p3556_p6 = scmp.ne.s32.totalorder %s4599_s4, %s3555_s29  ;;  %p3562_p2 = scmp.lt.u32.totalorder %s3555_s29, %s4599_s4 }
  0x23   : > { %p3558_p8 = pnand %p3556_p6, %p3707_p7 }
  0x25   : > { %p3559_p9 = pneg %p3558_p8 }
  0x27   : > { %p3564_p3 = pnand %p3562_p2, %p3559_p9 }
  0x29   : > { %3567 = shalt.err (!%p3564_p3)
}
  0x2a   : > { %s3568_s28 = scalar_lea.vmem %s3695_s30, 16  ;;  %s3575_s14 = scalar_lea.vmem %s3695_s30, 32 }
  0x2b   : > { %p3569_p10 = scmp.ne.s32.totalorder %s3695_s30, %s3568_s28  ;;  %p3576_p13 = scmp.lt.s32.totalorder %s3695_s30, %s3695_s30 }
  0x2c   : > { %p3577_p0 = scmp.lt.s32.totalorder %s3575_s14, %s3568_s28 }
  0x2d   : > { %p3571_p11 = pnand %p3569_p10, %p3707_p7 }
  0x2e   : > { %p3578_p1 = por %p3577_p0, %p3576_p13 }
  0x2f   : > { %p3572_p12 = pneg %p3571_p11 }
  0x31   : > { %p3579_p4 = pnand %p3578_p1, %p3572_p12 }
  0x33   : > { %3582 = shalt.err (!%p3579_p4)
}
  0x34   : > { %3351 = dma.hbm_to_vmem [thread:$0]  (!%p3691_p5), %s4599_s4, 16, %s3695_s30, [#allocation3]  }
  0x35   : > { %s3583_s20 = scalar_lea.hbm %s4601_s6, 16 }
  0x36   : > { %p3584_p6 = scmp.ne.s32.totalorder %s4601_s6, %s3583_s20  ;;  %p3590_p2 = scmp.lt.u32.totalorder %s3583_s20, %s4601_s6 }
  0x38   : > { %p3586_p8 = pnand %p3584_p6, %p3707_p7 }
  0x3a   : > { %p3587_p9 = pneg %p3586_p8 }
  0x3c   : > { %p3592_p3 = pnand %p3590_p2, %p3587_p9 }
  0x3e   : > { %3595 = shalt.err (!%p3592_p3)
}
  0x3f   : > { %s3596_s30 = scalar_lea.vmem %s3697_s9, 16  ;;  %s3603_s29 = scalar_lea.vmem %s3697_s9, 32 }
  0x40   : > { %p3597_p10 = scmp.ne.s32.totalorder %s3697_s9, %s3596_s30  ;;  %p3604_p13 = scmp.lt.s32.totalorder %s3697_s9, %s3697_s9 }
  0x41   : > { %p3605_p0 = scmp.lt.s32.totalorder %s3603_s29, %s3596_s30 }
  0x42   : > { %p3599_p11 = pnand %p3597_p10, %p3707_p7 }
  0x43   : > { %p3606_p1 = por %p3605_p0, %p3604_p13 }
  0x44   : > { %p3600_p12 = pneg %p3599_p11 }
  0x46   : > { %p3607_p4 = pnand %p3606_p1, %p3600_p12 }
  0x48   : > { %3610 = shalt.err (!%p3607_p4)
}
  0x49   : > { %3357 = dma.hbm_to_vmem [thread:$0]  (!%p3691_p5), %s4601_s6, 16, %s3697_s9, [#allocation5]  }
  0x4a   : > { %p4608_p6 = scmp.ne.s32.totalorder %s4605_s26, 0 }
  0x4b   : > { %p4609_p7 = scmp.eq.s32.totalorder (!%p4608_p6), %s3678_s25, 0 }
  0x4c   : > { %267 = sbr.rel (%p4608_p6) target bundleno = 973 (0x3cd), region = 48 }
  0x53   : > { %3616 = dma.done.wait (%p4609_p7), [#allocation3], 16   ;;  %p4610_p8 = pmov %p4609_p7 }
  0x54   : > { %p4611_p9 = pmov %p4609_p7 }
  0x55   : > { %3618 = vsyncadd (%p4610_p8), [#allocation3], 4294967280 }
  0x56   : > { %3620 = dma.done.wait (%p4611_p9), [#allocation5], 32   ;;  %p4612_p2 = pmov %p4609_p7 }
  0x57   : > { %v335_v0 = vlaneseq  ;;  %v3630_v1 = vmov 1983009808   ;;  %v3631_v3 = vmov 0   ;;  %p307_p5 = scmp.lt.s32.totalorder %s3678_s25, 1  ;;  %v327_v7 = vld [vmem:[%s4596_s1] sm:$0xff]  ;;  %vm497_vm0 = vcmask 1041408  }
  0x58   : > { %3622 = vsyncadd (%p4612_p2), [#allocation5], 4294967264  ;;  %v421_v2 = vunpack.c.l.s4 %v3630_v1  ;;  %578 = vmatprep.mubr.bf16.mxu0 %v3631_v3  ;;  %641 = vmatprep.mubr.bf16.mxu1 %v3631_v3  ;;  %v328_v8 = vld [vmem:[%s4596_s1 + $0x8] sm:$0xff]  ;;  %v329_v9 = vld [vmem:[%s4596_s1 + $0x10] sm:$0xff]  ;;  %v419_v11 = vcombine.high %v327_v7, %v327_v7  ;;  %vm487_vm1 = vcmask 31744   ;;  %vm2702_vm2 = vcmask 24576  }
  0x59   : > { %v3784_v4 = vshrl.u32 %v335_v0, 7  ;;  %s4614_s25 = smov (!%p307_p5, %s3678_s25), 1  ;;  %v436_v13 = vcombine.high %v328_v8, %v328_v8  ;;  %v453_v17 = vcombine.high %v329_v9, %v329_v9  ;;  %v330_v35 = vld [vmem:[%s4596_s1 + $0x18] sm:$0xff]  ;;  %v3381_v48 = vld [vmem:[%s4598_s3 + $0x40] sm:$0xff]   ;;  %v3385_v51 = vld [vmem:[%s4598_s3 + $0x48] sm:$0xff]  }
  0x5a   : > { %v422_v5 = vunpack.c.0.s8 %v421_v2  ;;  %s3335_s26 = smul.u32 48, %s4614_s25  ;;  %v470_v38 = vcombine.high %v330_v35, %v330_v35  ;;  %v3383_v49 = vld [vmem:[%s4598_s3 + $0xc0] sm:$0xff]   ;;  %v3387_v53 = vld [vmem:[%s4598_s3 + $0xc8] sm:$0xff]   ;;  %v3389_v55 = vld [vmem:[%s4598_s3 + $0x50] sm:$0xff]  }
  0x5b   : > { %v3382_v50 = vld [vmem:[%s4598_s3] sm:$0xff]   ;;  %v3386_v54 = vld [vmem:[%s4598_s3 + $0x8] sm:$0xff]   ;;  %v3391_v57 = vld [vmem:[%s4598_s3 + $0xd0] sm:$0xff]  }
  0x5c   : > { %v425_v6 = vsub.s32 %v422_v5, %v3784_v4  ;;  %s3799_s13 = scalar_lea.vmem %s4595_s0, %s3335_s26  ;;  %v3384_v52 = vld [vmem:[%s4598_s3 + $0x80] sm:$0xff]   ;;  %v3388_v56 = vld [vmem:[%s4598_s3 + $0x88] sm:$0xff]   ;;  %v3390_v58 = vld [vmem:[%s4598_s3 + $0x10] sm:$0xff]   ;;  %s4578_s14 = scalar_lea.vmem %s4602_s7, %s3335_s26 }
  0x5d   : > { %v318_v14 = vld [vmem:[%s3799_s13] sm:$0xff]  ;;  %v319_v15 = vld [vmem:[%s3799_s13 + $0x8] sm:$0xff]  ;;  %v320_v30 = vld [vmem:[%s3799_s13 + $0x10] sm:$0xff] }
  0x5e   : > { %v426_v10 = vrot.slane %v327_v7, %v425_v6  ;;  %v443_v12 = vrot.slane %v328_v8, %v425_v6  ;;  %v460_v16 = vrot.slane %v329_v9, %v425_v6  ;;  %v433_v20 = vrot.slane %v419_v11, %v425_v6  ;;  %v321_v33 = vld [vmem:[%s3799_s13 + $0x18] sm:$0xff]  ;;  %v322_v36 = vld [vmem:[%s3799_s13 + $0x20] sm:$0xff]  ;;  %v323_v37 = vld [vmem:[%s3799_s13 + $0x28] sm:$0x1] }
  0x5f   : > { %v450_v22 = vrot.slane %v436_v13, %v425_v6  ;;  %v3812_v25 = vpack.c.bf16 %v319_v15, %v318_v14  ;;  %v467_v28 = vrot.slane %v453_v17, %v425_v6  ;;  %v3828_v34 = vpack.c.bf16 %v321_v33, %v320_v30  ;;  %v3393_v59 = vld [vmem:[%s4598_s3 + $0x58] sm:$0xff]   ;;  %v3392_v60 = vld [vmem:[%s4598_s3 + $0x90] sm:$0xff]   ;;  %v3397_v63 = vld [vmem:[%s4598_s3 + $0x60] sm:$0xff]  }
  0x60   : > { %v434_v18 = vcombine.high %v426_v10, %v426_v10  ;;  %v499_v19 = vsel %vm497_vm0, %v426_v10, 0  ;;  %v451_v21 = vcombine.high %v443_v12, %v443_v12  ;;  %v435_v23 = vcombine.high %v433_v20, %v433_v20  ;;  %v3395_v61 = vld [vmem:[%s4598_s3 + $0xd8] sm:$0xff]   ;;  %v3399_v1 = vld [vmem:[%s4598_s3 + $0xe0] sm:$0xff]   ;;  %v3402_v7 = vld [vmem:[%s4598_s3 + $0x28] sm:$0xff]  }
  0x61   : > { %v505_v24 = vsel %vm497_vm0, %v433_v20, 0  ;;  %v511_v26 = vsel %vm497_vm0, %v443_v12, 0  ;;  %v452_v27 = vcombine.high %v450_v22, %v450_v22  ;;  %v468_v29 = vcombine.high %v460_v16, %v460_v16  ;;  %v3394_v62 = vld [vmem:[%s4598_s3 + $0x18] sm:$0xff]   ;;  %v3398_v2 = vld [vmem:[%s4598_s3 + $0x20] sm:$0xff]   ;;  %v3405_v8 = vld [vmem:[%s4598_s3 + $0x70] sm:$0xff]  }
  0x62   : > { %2898 = vmatprep.subr.msk.bf16.mxu0 %vm497_vm0, %v434_v18  ;;  %2902 = vmatprep.subr.msk.bf16.mxu1 %vm497_vm0, %v435_v23  ;;  %v517_v31 = vsel %vm497_vm0, %v450_v22, 0  ;;  %v469_v32 = vcombine.high %v467_v28, %v467_v28  ;;  %v3842_v39 = vpack.c.bf16 %v323_v37, %v322_v36  ;;  %v477_v40 = vrot.slane %v330_v35, %v425_v6  ;;  %v3396_v0 = vld [vmem:[%s4598_s3 + $0x98] sm:$0xff]   ;;  %v3400_v5 = vld [vmem:[%s4598_s3 + $0xa0] sm:$0xff]   ;;  %v3404_v9 = vld [vmem:[%s4598_s3 + $0xa8] sm:$0xff]  }
  0x63   : > { %547 = vmatpush1.bf16.msra.mxu0 %v499_v19  ;;  %610 = vmatpush1.bf16.msra.mxu1 %v505_v24  ;;  %v484_v41 = vrot.slane %v470_v38, %v425_v6  ;;  %v523_v42 = vsel %vm497_vm0, %v460_v16, 0  ;;  %v529_v43 = vsel %vm497_vm0, %v467_v28, 0  ;;  %v3403_v6 = vld [vmem:[%s4598_s3 + $0xe8] sm:$0xff]   ;;  %v3407_v10 = vld [vmem:[%s4598_s3 + $0xf0] sm:$0xff]   ;;  %v3409_v12 = vld [vmem:[%s4598_s3 + $0x78] sm:$0xff]   ;;  %v337_v19 = vsub.s32 0, %v3784_v4 }
  0x64   : > { %2906 = vmatprep.subr.msk.bf16.mxu0 %vm497_vm0, %v451_v21  ;;  %2910 = vmatprep.subr.msk.bf16.mxu1 %vm497_vm0, %v452_v27  ;;  %v535_v44 = vsel %vm497_vm0, %v477_v40, 0  ;;  %v485_v46 = vcombine.high %v477_v40, %v477_v40  ;;  %v3406_v11 = vld [vmem:[%s4598_s3 + $0x30] sm:$0xff]   ;;  %v3411_v14 = vld [vmem:[%s4598_s3 + $0xf8] sm:$0xff]   ;;  %v3413_v16 = vld [vmem:[%s4598_s3 + $0x140] sm:$0xff]   ;;  %v341_v21 = vsub.s32 1, %v3784_v4  ;;  %v345_v22 = vsub.s32 2, %v3784_v4 }
  0x65   : > { %v541_v45 = vsel %vm497_vm0, %v484_v41, 0  ;;  %v486_v47 = vcombine.high %v484_v41, %v484_v41  ;;  %v3408_v13 = vld [vmem:[%s4598_s3 + $0xb0] sm:$0xff]   ;;  %v3410_v15 = vld [vmem:[%s4598_s3 + $0x38] sm:$0xff]   ;;  %v3415_v18 = vld [vmem:[%s4598_s3 + $0x1c0] sm:$0xff]   ;;  %v349_v23 = vsub.s32 3, %v3784_v4 }
  0x66   : > { %2899 = vmatmul.mubr.msk.bf16.vlgmr.msra.gmra.mrb[0].mxu0 %vm487_vm1, %v3812_v25  ;;  %2903 = vmatmul.mubr.msk.bf16.vlgmr.msra.gmra.mrb[0].mxu1 %vm487_vm1, %v3812_v25  ;;  %v3412_v17 = vld [vmem:[%s4598_s3 + $0xb8] sm:$0xff]   ;;  %v4014_v20 = vld [vmem:[%s4597_s2] sm:$0xff] }
  0x67   : > { %588 = vmatprep.mubr.bf16.mxu0 %v3631_v3  ;;  %673 = vmatpush1.bf16.msra.mxu0 %v511_v26  ;;  %v4022_v24 = vrot.slane %v4014_v20, %v337_v19  ;;  %v4032_v26 = vrot.slane %v4014_v20, %v345_v22  ;;  %v4037_v28 = vrot.slane %v4014_v20, %v349_v23 }
  0x68   : > { %2914 = vmatprep.subr.msk.bf16.mxu0 %vm497_vm0, %v468_v29  ;;  %651 = vmatprep.mubr.bf16.mxu1 %v3631_v3 }
  0x69   : > { %736 = vmatpush1.bf16.msra.mxu1 %v517_v31 }
  0x6a   : > { %2918 = vmatprep.subr.msk.bf16.mxu1 %vm497_vm0, %v469_v32 }
  0x6e   : > { %2900 = vmatmul.mubr.msk.bf16.gmra.mrb[4].mxu0 %vm487_vm1, %v3828_v34  ;;  %2904 = vmatmul.mubr.msk.bf16.gmra.mrb[4].mxu1 %vm487_vm1, %v3828_v34 }
  0x6f   : > { %598 = vmatprep.mubr.bf16.mxu0 %v3631_v3  ;;  %661 = vmatprep.mubr.bf16.mxu1 %v3631_v3 }
  0x76   : > { %2901 = vmatmul.mubr.msk.bf16.gmra.mrb[8].mxu0 %vm487_vm1, %v3842_v39  ;;  %2905 = vmatmul.mubr.msk.bf16.gmra.mrb[8].mxu1 %vm487_vm1, %v3842_v39 }
  0x77   : > { %704 = vmatprep.mubr.bf16.mxu0 %v3631_v3  ;;  %767 = vmatprep.mubr.bf16.mxu1 %v3631_v3 }
  0x7e   : > { %2907 = vmatmul.mubr.msk.bf16.vlgmr.msra.gmra.mrb[12].mxu0 %vm487_vm1, %v3812_v25  ;;  %2911 = vmatmul.mubr.msk.bf16.vlgmr.msra.gmra.mrb[12].mxu1 %vm487_vm1, %v3812_v25 }
  0x7f   : > { %714 = vmatprep.mubr.bf16.mxu0 %v3631_v3  ;;  %799 = vmatpush1.bf16.msra.mxu0 %v523_v42 }
  0x80   : > { %2922 = vmatprep.subr.msk.bf16.mxu0 %vm497_vm0, %v485_v46  ;;  %777 = vmatprep.mubr.bf16.mxu1 %v3631_v3 }
  0x81   : > { %862 = vmatpush1.bf16.msra.mxu1 %v529_v43 }
  0x82   : > { %2926 = vmatprep.subr.msk.bf16.mxu1 %vm497_vm0, %v486_v47 }
  0x86   : > { %2908 = vmatmul.mubr.msk.bf16.gmra.mrb[16].mxu0 %vm487_vm1, %v3828_v34  ;;  %2912 = vmatmul.mubr.msk.bf16.gmra.mrb[16].mxu1 %vm487_vm1, %v3828_v34 }
  0x87   : > { %724 = vmatprep.mubr.bf16.mxu0 %v3631_v3  ;;  %787 = vmatprep.mubr.bf16.mxu1 %v3631_v3 }
  0x8e   : > { %2909 = vmatmul.mubr.msk.bf16.gmra.mrb[20].mxu0 %vm487_vm1, %v3842_v39  ;;  %2913 = vmatmul.mubr.msk.bf16.gmra.mrb[20].mxu1 %vm487_vm1, %v3842_v39 }
  0x8f   : > { %830 = vmatprep.mubr.bf16.mxu0 %v3631_v3  ;;  %893 = vmatprep.mubr.bf16.mxu1 %v3631_v3 }
  0x96   : > { %2915 = vmatmul.mubr.msk.bf16.vlgmr.msra.gmra.mrb[24].mxu0 %vm487_vm1, %v3812_v25  ;;  %2919 = vmatmul.mubr.msk.bf16.vlgmr.msra.gmra.mrb[24].mxu1 %vm487_vm1, %v3812_v25 }
  0x97   : > { %840 = vmatprep.mubr.bf16.mxu0 %v3631_v3  ;;  %925 = vmatpush1.bf16.msra.mxu0 %v535_v44 }
  0x98   : > { %3063 = vmatprep.subr.bf16.mxu0 %v3381_v48  ;;  %903 = vmatprep.mubr.bf16.mxu1 %v3631_v3 }
  0x99   : > { %988 = vmatpush1.bf16.msra.mxu1 %v541_v45 }
  0x9a   : > { %3097 = vmatprep.subr.bf16.mxu1 %v3383_v49 }
  0x9e   : > { %2916 = vmatmul.mubr.msk.bf16.gmra.mrb[28].mxu0 %vm487_vm1, %v3828_v34  ;;  %2920 = vmatmul.mubr.msk.bf16.gmra.mrb[28].mxu1 %vm487_vm1, %v3828_v34 }
  0x9f   : > { %850 = vmatprep.mubr.bf16.mxu0 %v3631_v3  ;;  %913 = vmatprep.mubr.bf16.mxu1 %v3631_v3 }
  0xa6   : > { %2917 = vmatmul.mubr.msk.bf16.gmra.mrb[32].mxu0 %vm487_vm1, %v3842_v39  ;;  %2921 = vmatmul.mubr.msk.bf16.gmra.mrb[32].mxu1 %vm487_vm1, %v3842_v39 }
  0xa7   : > { %956 = vmatprep.mubr.bf16.mxu0 %v3631_v3  ;;  %1019 = vmatprep.mubr.bf16.mxu1 %v3631_v3 }
  0xae   : > { %2923 = vmatmul.mubr.msk.bf16.vlgmr.msra.gmra.mrb[36].mxu0 %vm487_vm1, %v3812_v25  ;;  %2927 = vmatmul.mubr.msk.bf16.vlgmr.msra.gmra.mrb[36].mxu1 %vm487_vm1, %v3812_v25  ;;  %v4027_v25 = vrot.slane %v4014_v20, %v341_v21 }
  0xaf   : > { %966 = vmatprep.mubr.bf16.mxu0 %v3631_v3  ;;  %3064 = vmatpush3.bf16.msra.mxu0 %v3382_v50 }
  0xb0   : > { %3065 = vmatprep.subr.bf16.mxu0 %v3385_v51  ;;  %1029 = vmatprep.mubr.bf16.mxu1 %v3631_v3 }
  0xb1   : > { %3098 = vmatpush3.bf16.msra.mxu1 %v3384_v52 }
  0xb2   : > { %3099 = vmatprep.subr.bf16.mxu1 %v3387_v53 }
  0xb3   : > { %3066 = vmatpush3.bf16.msra.mxu0 %v3386_v54 }
  0xb4   : > { %3067 = vmatprep.subr.bf16.mxu0 %v3389_v55  ;;  %v3414_v55 = vld [vmem:[%s4598_s3 + $0x100] sm:$0xff]  }
  0xb5   : > { %3100 = vmatpush3.bf16.msra.mxu1 %v3388_v56 }
  0xb6   : > { %2924 = vmatmul.mubr.msk.bf16.gmra.mrb[40].mxu0 %vm487_vm1, %v3828_v34  ;;  %3101 = vmatprep.subr.bf16.mxu1 %v3391_v57 }
  0xb7   : > { %976 = vmatprep.mubr.bf16.mxu0 %v3631_v3  ;;  %3068 = vmatpush3.bf16.msra.mxu0 %v3390_v58 }
  0xb8   : > { %2928 = vmatmul.mubr.msk.bf16.gmra.mrb[40].mxu1 %vm487_vm1, %v3828_v34  ;;  %3069 = vmatprep.subr.bf16.mxu0 %v3393_v59  ;;  %v3417_v59 = vld [vmem:[%s4598_s3 + $0x148] sm:$0xff]  }
  0xb9   : > { %1039 = vmatprep.mubr.bf16.mxu1 %v3631_v3  ;;  %3102 = vmatpush3.bf16.msra.mxu1 %v3392_v60  ;;  %v3401_v3 = vld [vmem:[%s4598_s3 + $0x68] sm:$0xff]  }
  0xba   : > { %3103 = vmatprep.subr.bf16.mxu1 %v3395_v61 }
  0xbb   : > { %3070 = vmatpush3.bf16.msra.mxu0 %v3394_v62 }
  0xbc   : > { %3071 = vmatprep.subr.bf16.mxu0 %v3397_v63 }
  0xbd   : > { %3104 = vmatpush3.bf16.msra.mxu1 %v3396_v0  ;;  %v3416_v0 = vld [vmem:[%s4598_s3 + $0x180] sm:$0xff]  }
  0xbe   : > { %2925 = vmatmul.mubr.msk.bf16.gmra.mrb[44].mxu0 %vm487_vm1, %v3842_v39  ;;  %3105 = vmatprep.subr.bf16.mxu1 %v3399_v1 }
  0xbf   : > { %3072 = vmatpush3.bf16.msra.mxu0 %v3398_v2 }
  0xc0   : > { %2929 = vmatmul.mubr.msk.bf16.gmra.mrb[44].mxu1 %vm487_vm1, %v3842_v39  ;;  %3073 = vmatprep.subr.bf16.mxu0 %v3401_v3 }
  0xc1   : > { %3106 = vmatpush3.bf16.msra.mxu1 %v3400_v5 }
  0xc2   : > { %3107 = vmatprep.subr.bf16.mxu1 %v3403_v6 }
  0xc3   : > { %3074 = vmatpush3.bf16.msra.mxu0 %v3402_v7  ;;  %v3419_v7 = vld [vmem:[%s4598_s3 + $0x1c8] sm:$0xff]  }
  0xc4   : > { %3075 = vmatprep.subr.bf16.mxu0 %v3405_v8 }
  0xc5   : > { %3108 = vmatpush3.bf16.msra.mxu1 %v3404_v9 }
  0xc6   : > { %3109 = vmatprep.subr.bf16.mxu1 %v3407_v10 }
  0xc7   : > { %3076 = vmatpush3.bf16.msra.mxu0 %v3406_v11 }
  0xc8   : > { %3077 = vmatprep.subr.bf16.mxu0 %v3409_v12  ;;  %v3418_v12 = vld [vmem:[%s4598_s3 + $0x108] sm:$0xff]  }
  0xc9   : > { %3110 = vmatpush3.bf16.msra.mxu1 %v3408_v13 }
  0xca   : > { %3111 = vmatprep.subr.bf16.mxu1 %v3411_v14 }
  0xcb   : > { %3078 = vmatpush3.bf16.msra.mxu0 %v3410_v15 }
  0xcc   : > { %3131 = vmatprep.subr.bf16.mxu0 %v3413_v16 }
  0xcd   : > { %3112 = vmatpush3.bf16.msra.mxu1 %v3412_v17  ;;  %v3421_v17 = vld [vmem:[%s4598_s3 + $0x150] sm:$0xff]  }
  0xce   : > { %3165 = vmatprep.subr.bf16.mxu1 %v3415_v18 }
 0x139   : > { %v580_v27 = vpop.f32.mrb[0].mxu0  ;;  %v643_v33 = vpop.f32.mrb[0].mxu1 }
 0x13a   : > { %v581_v29 = vadd.f32 %v580_v27, %v4022_v24  ;;  %v582_v30 = vpop.f32.mrb[1].mxu0  ;;  %v644_v35 = vadd.f32 %v643_v33, %v4032_v26  ;;  %v645_v37 = vpop.f32.mrb[1].mxu1  ;;  %v3423_v33 = vld [vmem:[%s4598_s3 + $0x1d0] sm:$0xff]  }
 0x13b   : > { %v583_v31 = vadd.f32 %v582_v30, %v4027_v25  ;;  %v584_v32 = vpop.f32.mrb[2].mxu0  ;;  %v646_v39 = vadd.f32 %v645_v37, %v4037_v28  ;;  %v647_v40 = vpop.f32.mrb[2].mxu1  ;;  %v3420_v30 = vld [vmem:[%s4598_s3 + $0x188] sm:$0xff]   ;;  %v3422_v37 = vld [vmem:[%s4598_s3 + $0x110] sm:$0xff]  }
 0x13c   : > { %v585_v34 = vadd.f32 %v584_v32, %v4022_v24  ;;  %v586_v36 = vpop.f32.mrb[3].mxu0  ;;  %v1050_v41 = vmax.f32 %v581_v29, 0.0  ;;  %v648_v43 = vadd.f32 %v647_v40, %v4032_v26  ;;  %v649_v44 = vpop.f32.mrb[3].mxu1  ;;  %v1052_v49 = vmax.f32 %v644_v35, 0.0 }
 0x13d   : > { %v587_v38 = vadd.f32 %v586_v36, %v4027_v25  ;;  %v1051_v45 = vmax.f32 %v583_v31, 0.0  ;;  %v650_v47 = vadd.f32 %v649_v44, %v4037_v28  ;;  %v1053_v52 = vmax.f32 %v646_v39, 0.0 }
 0x13e   : > { %v1066_v42 = vmax.f32 %v585_v34, 0.0  ;;  %v1068_v50 = vmax.f32 %v648_v43, 0.0 }
 0x13f   : > { %v1067_v46 = vmax.f32 %v587_v38, 0.0  ;;  %v1069_v53 = vmax.f32 %v650_v47, 0.0  ;;  %v3424_v47 = vld [vmem:[%s4598_s3 + $0x190] sm:$0xff]  }
 0x140   : > { %v1146_v48 = vpack.c.bf16 %v1066_v42, %v1050_v41  ;;  %v1148_v56 = vpack.c.bf16 %v1068_v50, %v1052_v49  ;;  %v3425_v41 = vld [vmem:[%s4598_s3 + $0x158] sm:$0xff]   ;;  %v353_v42 = vsub.s32 4, %v3784_v4 }
 0x141   : > { %v1147_v51 = vpack.c.bf16 %v1067_v46, %v1051_v45  ;;  %v590_v54 = vpop.f32.mrb[4].mxu0  ;;  %v1149_v60 = vpack.c.bf16 %v1069_v53, %v1053_v52  ;;  %v653_v63 = vpop.f32.mrb[4].mxu1 }
 0x142   : > { %v591_v57 = vadd.f32 %v590_v54, %v4022_v24  ;;  %v592_v58 = vpop.f32.mrb[5].mxu0  ;;  %v654_v3 = vadd.f32 %v653_v63, %v4032_v26  ;;  %v655_v6 = vpop.f32.mrb[5].mxu1  ;;  %v3427_v54 = vld [vmem:[%s4598_s3 + $0x1d8] sm:$0xff]  }
 0x143   : > { %v593_v61 = vadd.f32 %v592_v58, %v4027_v25  ;;  %2257 = vmatprep.mubr.bf16.mxu0 %v1147_v51  ;;  %v594_v62 = vpop.f32.mrb[6].mxu0  ;;  %v656_v10 = vadd.f32 %v655_v6, %v4037_v28  ;;  %2314 = vmatprep.mubr.bf16.mxu1 %v1149_v60  ;;  %v657_v11 = vpop.f32.mrb[6].mxu1  ;;  %v365_v60 = vsub.s32 7, %v3784_v4 }
 0x144   : > { %v1082_v1 = vmax.f32 %v591_v57, 0.0  ;;  %v595_v2 = vadd.f32 %v594_v62, %v4022_v24  ;;  %2258 = vmatmul.mubr.bf16.vlgmr.msra.gmra.mrb[48].mxu0 %v1146_v48  ;;  %v596_v5 = vpop.f32.mrb[7].mxu0  ;;  %v1084_v14 = vmax.f32 %v654_v3, 0.0  ;;  %v658_v15 = vadd.f32 %v657_v11, %v4032_v26  ;;  %2315 = vmatmul.mubr.bf16.vlgmr.msra.gmra.mrb[48].mxu1 %v1148_v56  ;;  %v659_v16 = vpop.f32.mrb[7].mxu1 }
 0x145   : > { %v1083_v8 = vmax.f32 %v593_v61, 0.0  ;;  %3132 = vmatpush3.bf16.msra.mxu0 %v3414_v55  ;;  %v597_v9 = vadd.f32 %v596_v5, %v4027_v25  ;;  %v1085_v27 = vmax.f32 %v656_v10, 0.0  ;;  %3166 = vmatpush3.bf16.msra.mxu1 %v3416_v0  ;;  %v660_v29 = vadd.f32 %v659_v16, %v4037_v28 }
 0x146   : > { %v1098_v13 = vmax.f32 %v595_v2, 0.0  ;;  %3133 = vmatprep.subr.bf16.mxu0 %v3417_v59  ;;  %v1100_v32 = vmax.f32 %v658_v15, 0.0  ;;  %3167 = vmatprep.subr.bf16.mxu1 %v3419_v7  ;;  %v357_v48 = vsub.s32 5, %v3784_v4  ;;  %v361_v55 = vsub.s32 6, %v3784_v4 }
 0x147   : > { %v1099_v18 = vmax.f32 %v597_v9, 0.0  ;;  %v1101_v35 = vmax.f32 %v660_v29, 0.0  ;;  %v3431_v9 = vld [vmem:[%s4598_s3 + $0x1e0] sm:$0xff]  }
 0x148   : > { %v1162_v31 = vpack.c.bf16 %v1098_v13, %v1082_v1  ;;  %v1164_v38 = vpack.c.bf16 %v1100_v32, %v1084_v14  ;;  %v4111_v1 = vrot.slane %v4014_v20, %v353_v42  ;;  %v4120_v6 = vrot.slane %v4014_v20, %v357_v48  ;;  %v3432_v29 = vld [vmem:[%s4598_s3 + $0x1a0] sm:$0xff]  }
 0x149   : > { %v1163_v34 = vpack.c.bf16 %v1099_v18, %v1083_v8  ;;  %3134 = vmatpush3.bf16.msra.mxu0 %v3418_v12  ;;  %v600_v36 = vpop.f32.mrb[8].mxu0  ;;  %v1165_v43 = vpack.c.bf16 %v1101_v35, %v1085_v27  ;;  %3168 = vmatpush3.bf16.msra.mxu1 %v3420_v30  ;;  %v663_v46 = vpop.f32.mrb[8].mxu1  ;;  %v3430_v12 = vld [vmem:[%s4598_s3 + $0x120] sm:$0xff]   ;;  %v4136_v14 = vrot.slane %v4014_v20, %v365_v60  ;;  %v3433_v18 = vld [vmem:[%s4598_s3 + $0x168] sm:$0xff]  }
 0x14a   : > { %v601_v39 = vadd.f32 %v600_v36, %v4022_v24  ;;  %v602_v40 = vpop.f32.mrb[9].mxu0  ;;  %3135 = vmatprep.subr.bf16.mxu0 %v3421_v17  ;;  %v664_v51 = vadd.f32 %v663_v46, %v4032_v26  ;;  %v665_v53 = vpop.f32.mrb[9].mxu1  ;;  %3169 = vmatprep.subr.bf16.mxu1 %v3423_v33 }
 0x14b   : > { %v603_v44 = vadd.f32 %v602_v40, %v4027_v25  ;;  %v604_v45 = vpop.f32.mrb[10].mxu0  ;;  %2265 = vmatprep.mubr.bf16.mxu0 %v1163_v34  ;;  %v666_v58 = vadd.f32 %v665_v53, %v4037_v28  ;;  %v667_v59 = vpop.f32.mrb[10].mxu1  ;;  %2322 = vmatprep.mubr.bf16.mxu1 %v1165_v43 }
 0x14c   : > { %v1114_v49 = vmax.f32 %v601_v39, 0.0  ;;  %v605_v50 = vadd.f32 %v604_v45, %v4022_v24  ;;  %v606_v52 = vpop.f32.mrb[11].mxu0  ;;  %2266 = vmatmul.mubr.bf16.gmra.mrb[52].mxu0 %v1162_v31  ;;  %v3426_v24 = vld [vmem:[%s4598_s3 + $0x118] sm:$0xff]   ;;  %v1116_v62 = vmax.f32 %v664_v51, 0.0  ;;  %v668_v63 = vadd.f32 %v667_v59, %v4032_v26  ;;  %v669_v0 = vpop.f32.mrb[11].mxu1  ;;  %2323 = vmatmul.mubr.bf16.gmra.mrb[52].mxu1 %v1164_v38  ;;  %v3434_v39 = vld [vmem:[%s4598_s3 + $0x128] sm:$0xff]  }
 0x14d   : > { %v1115_v56 = vmax.f32 %v603_v44, 0.0  ;;  %3136 = vmatpush3.bf16.msra.mxu0 %v3422_v37  ;;  %v607_v57 = vadd.f32 %v606_v52, %v4027_v25  ;;  %v3429_v25 = vld [vmem:[%s4598_s3 + $0x160] sm:$0xff]   ;;  %v1117_v3 = vmax.f32 %v666_v58, 0.0  ;;  %3170 = vmatpush3.bf16.msra.mxu1 %v3424_v47  ;;  %v670_v5 = vadd.f32 %v669_v0, %v4037_v28  ;;  %v3428_v26 = vld [vmem:[%s4598_s3 + $0x198] sm:$0xff]   ;;  %v3435_v37 = vld [vmem:[%s4598_s3 + $0x1e8] sm:$0xff]  }
 0x14e   : > { %v1130_v61 = vmax.f32 %v605_v50, 0.0  ;;  %3137 = vmatprep.subr.bf16.mxu0 %v3425_v41  ;;  %v1132_v8 = vmax.f32 %v668_v63, 0.0  ;;  %3171 = vmatprep.subr.bf16.mxu1 %v3427_v54  ;;  %v4128_v28 = vrot.slane %v4014_v20, %v361_v55  ;;  %v3436_v52 = vld [vmem:[%s4598_s3 + $0x1a8] sm:$0xff]   ;;  %v3441_v63 = vld [vmem:[%s4598_s3 + $0x178] sm:$0xff]  }
 0x14f   : > { %v1131_v2 = vmax.f32 %v607_v57, 0.0  ;;  %v1133_v11 = vmax.f32 %v670_v5, 0.0  ;;  %v3439_v57 = vld [vmem:[%s4598_s3 + $0x1f0] sm:$0xff]  }
 0x150   : > { %v1178_v7 = vpack.c.bf16 %v1130_v61, %v1114_v49  ;;  %v1180_v15 = vpack.c.bf16 %v1132_v8, %v1116_v62  ;;  %v3437_v49 = vld [vmem:[%s4598_s3 + $0x170] sm:$0xff]  }
 0x151   : > { %v1179_v10 = vpack.c.bf16 %v1131_v2, %v1115_v56  ;;  %3138 = vmatpush3.bf16.msra.mxu0 %v3426_v24  ;;  %v706_v13 = vpop.f32.mrb[12].mxu0  ;;  %v1181_v27 = vpack.c.bf16 %v1133_v11, %v1117_v3  ;;  %3172 = vmatpush3.bf16.msra.mxu1 %v3428_v26  ;;  %v769_v31 = vpop.f32.mrb[12].mxu1  ;;  %v3438_v24 = vld [vmem:[%s4598_s3 + $0x130] sm:$0xff]  }
 0x152   : > { %3139 = vmatprep.subr.bf16.mxu0 %v3429_v25  ;;  %v707_v16 = vadd.f32 %v706_v13, %v4111_v1  ;;  %v708_v17 = vpop.f32.mrb[13].mxu0  ;;  %3173 = vmatprep.subr.bf16.mxu1 %v3431_v9  ;;  %v770_v34 = vadd.f32 %v769_v31, %v4128_v28  ;;  %v771_v36 = vpop.f32.mrb[13].mxu1  ;;  %v3440_v3 = vld [vmem:[%s4598_s3 + $0x1b0] sm:$0xff]   ;;  %v3443_v9 = vld [vmem:[%s4598_s3 + $0x1f8] sm:$0xff]  }
 0x153   : > { %2273 = vmatprep.mubr.bf16.mxu0 %v1179_v10  ;;  %v709_v30 = vadd.f32 %v708_v17, %v4120_v6  ;;  %v710_v20 = vpop.f32.mrb[14].mxu0  ;;  %2330 = vmatprep.mubr.bf16.mxu1 %v1181_v27  ;;  %v772_v41 = vadd.f32 %v771_v36, %v4136_v14  ;;  %v773_v43 = vpop.f32.mrb[14].mxu1 }
 0x154   : > { %2274 = vmatmul.mubr.bf16.gmra.mrb[56].mxu0 %v1178_v7  ;;  %v1054_v32 = vmax.f32 %v707_v16, 0.0  ;;  %v711_v33 = vadd.f32 %v710_v20, %v4111_v1  ;;  %v712_v35 = vpop.f32.mrb[15].mxu0  ;;  %2331 = vmatmul.mubr.bf16.gmra.mrb[56].mxu1 %v1180_v15  ;;  %v1056_v45 = vmax.f32 %v770_v34, 0.0  ;;  %v774_v46 = vadd.f32 %v773_v43, %v4128_v28  ;;  %v775_v47 = vpop.f32.mrb[15].mxu1  ;;  %v3442_v15 = vld [vmem:[%s4598_s3 + $0x138] sm:$0xff]   ;;  %v3445_v20 = vld [vmem:[%s4598_s3 + $0x240] sm:$0xff]  }
 0x155   : > { %3140 = vmatpush3.bf16.msra.mxu0 %v3430_v12  ;;  %v1055_v38 = vmax.f32 %v709_v30, 0.0  ;;  %v713_v40 = vadd.f32 %v712_v35, %v4120_v6  ;;  %3174 = vmatpush3.bf16.msra.mxu1 %v3432_v29  ;;  %v1057_v51 = vmax.f32 %v772_v41, 0.0  ;;  %v776_v53 = vadd.f32 %v775_v47, %v4136_v14  ;;  %v3446_v41 = vld [vmem:[%s4598_s3 + $0x200] sm:$0xff]  }
 0x156   : > { %3141 = vmatprep.subr.bf16.mxu0 %v3433_v18  ;;  %v1070_v44 = vmax.f32 %v711_v33, 0.0  ;;  %3175 = vmatprep.subr.bf16.mxu1 %v3435_v37  ;;  %v1072_v56 = vmax.f32 %v774_v46, 0.0  ;;  %v3444_v33 = vld [vmem:[%s4598_s3 + $0x1b8] sm:$0xff]   ;;  %v3449_v46 = vld [vmem:[%s4598_s3 + $0x248] sm:$0xff]  }
 0x157   : > { %v1071_v50 = vmax.f32 %v713_v40, 0.0  ;;  %v1073_v59 = vmax.f32 %v776_v53, 0.0 }
 0x158   : > { %v4164_v54 = vpack.c.bf16 %v1070_v44, %v1054_v32  ;;  %v4172_v62 = vpack.c.bf16 %v1072_v56, %v1056_v45 }
 0x159   : > { %3142 = vmatpush3.bf16.msra.mxu0 %v3434_v39  ;;  %v1151_v58 = vpack.c.bf16 %v1071_v50, %v1055_v38  ;;  %v716_v61 = vpop.f32.mrb[16].mxu0  ;;  %3176 = vmatpush3.bf16.msra.mxu1 %v3436_v52  ;;  %v1153_v2 = vpack.c.bf16 %v1073_v59, %v1057_v51  ;;  %v779_v7 = vpop.f32.mrb[16].mxu1  ;;  %v3447_v39 = vld [vmem:[%s4598_s3 + $0x2c0] sm:$0xff]   ;;  %v3451_v59 = vld [vmem:[%s4598_s3 + $0x2c8] sm:$0xff]  }
 0x15a   : > { %3143 = vmatprep.subr.bf16.mxu0 %v3437_v49  ;;  %v717_v0 = vadd.f32 %v716_v61, %v4111_v1  ;;  %v718_v25 = vpop.f32.mrb[17].mxu0  ;;  %3177 = vmatprep.subr.bf16.mxu1 %v3439_v57  ;;  %v780_v11 = vadd.f32 %v779_v7, %v4128_v28  ;;  %v781_v13 = vpop.f32.mrb[17].mxu1  ;;  %v3448_v51 = vld [vmem:[%s4598_s3 + $0x280] sm:$0xff]   ;;  %v4221_v57 = vld [vmem:[%s4597_s2 + $0x8] sm:$0xff]  ;;  %v3453_v7 = vld [vmem:[%s4598_s3 + $0x250] sm:$0xff]  }
 0x15b   : > { %2371 = vmatprep.mubr.bf16.mxu0 %v1151_v58  ;;  %v719_v5 = vadd.f32 %v718_v25, %v4120_v6  ;;  %v720_v26 = vpop.f32.mrb[18].mxu0  ;;  %2428 = vmatprep.mubr.bf16.mxu1 %v1153_v2  ;;  %v782_v18 = vadd.f32 %v781_v13, %v4136_v14  ;;  %v783_v27 = vpop.f32.mrb[18].mxu1  ;;  %v3450_v25 = vld [vmem:[%s4598_s3 + $0x208] sm:$0xff]  }
 0x15c   : > { %v1086_v8 = vmax.f32 %v717_v0, 0.0  ;;  %v721_v10 = vadd.f32 %v720_v26, %v4111_v1  ;;  %v722_v12 = vpop.f32.mrb[19].mxu0  ;;  %v1088_v30 = vmax.f32 %v780_v11, 0.0  ;;  %v784_v31 = vadd.f32 %v783_v27, %v4128_v28  ;;  %v785_v32 = vpop.f32.mrb[19].mxu1 }
 0x15d   : > { %3144 = vmatpush3.bf16.msra.mxu0 %v3438_v24  ;;  %v1087_v16 = vmax.f32 %v719_v5, 0.0  ;;  %v723_v17 = vadd.f32 %v722_v12, %v4120_v6  ;;  %3178 = vmatpush3.bf16.msra.mxu1 %v3440_v3  ;;  %v1089_v35 = vmax.f32 %v782_v18, 0.0  ;;  %v786_v36 = vadd.f32 %v785_v32, %v4136_v14  ;;  %v3456_v32 = vld [vmem:[%s4598_s3 + $0x290] sm:$0xff]  }
 0x15e   : > { %3145 = vmatprep.subr.bf16.mxu0 %v3441_v63  ;;  %v1102_v29 = vmax.f32 %v721_v10, 0.0  ;;  %3179 = vmatprep.subr.bf16.mxu1 %v3443_v9  ;;  %v1104_v38 = vmax.f32 %v784_v31, 0.0  ;;  %v4242_v10 = vrot.slane %v4221_v57, %v337_v19  ;;  %v4269_v27 = vrot.slane %v4221_v57, %v349_v23 }
 0x15f   : > { %v1103_v34 = vmax.f32 %v723_v17, 0.0  ;;  %v1105_v43 = vmax.f32 %v786_v36, 0.0 }
 0x160   : > { %v4200_v37 = vpack.c.bf16 %v1102_v29, %v1086_v8  ;;  %v4208_v45 = vpack.c.bf16 %v1104_v38, %v1088_v30 }
 0x161   : > { %3146 = vmatpush3.bf16.msra.mxu0 %v3442_v15  ;;  %v1167_v40 = vpack.c.bf16 %v1103_v34, %v1087_v16  ;;  %v726_v44 = vpop.f32.mrb[20].mxu0  ;;  %3180 = vmatpush3.bf16.msra.mxu1 %v3444_v33  ;;  %v1169_v50 = vpack.c.bf16 %v1105_v43, %v1089_v35  ;;  %v789_v56 = vpop.f32.mrb[20].mxu1  ;;  %v3455_v15 = vld [vmem:[%s4598_s3 + $0x2d0] sm:$0xff]   ;;  %v4261_v16 = vrot.slane %v4221_v57, %v345_v22  ;;  %v3457_v22 = vld [vmem:[%s4598_s3 + $0x258] sm:$0xff]  }
 0x162   : > { %3199 = vmatprep.subr.bf16.mxu0 %v3445_v20  ;;  %v727_v47 = vadd.f32 %v726_v44, %v4111_v1  ;;  %v728_v49 = vpop.f32.mrb[21].mxu0  ;;  %3233 = vmatprep.subr.bf16.mxu1 %v3447_v39  ;;  %v790_v61 = vadd.f32 %v789_v56, %v4128_v28  ;;  %v791_v0 = vpop.f32.mrb[21].mxu1  ;;  %v3459_v35 = vld [vmem:[%s4598_s3 + $0x2d8] sm:$0xff]  }
 0x163   : > { %v729_v52 = vadd.f32 %v728_v49, %v4120_v6  ;;  %v730_v53 = vpop.f32.mrb[22].mxu0  ;;  %v792_v3 = vadd.f32 %v791_v0, %v4136_v14  ;;  %v793_v5 = vpop.f32.mrb[22].mxu1  ;;  %v3458_v43 = vld [vmem:[%s4598_s3 + $0x218] sm:$0xff]   ;;  %v3461_v49 = vld [vmem:[%s4598_s3 + $0x260] sm:$0xff]  }
 0x164   : > { %2372 = vmatmul.mubr.bf16.vlgmr.msra.gmra.mrb[60].mxu0 %v4164_v54  ;;  %v1118_v58 = vmax.f32 %v727_v47, 0.0  ;;  %v731_v24 = vadd.f32 %v730_v53, %v4111_v1  ;;  %v732_v63 = vpop.f32.mrb[23].mxu0  ;;  %2429 = vmatmul.mubr.bf16.vlgmr.msra.gmra.mrb[60].mxu1 %v4172_v62  ;;  %v1120_v26 = vmax.f32 %v790_v61, 0.0  ;;  %v794_v8 = vadd.f32 %v793_v5, %v4128_v28  ;;  %v795_v9 = vpop.f32.mrb[23].mxu1  ;;  %v3460_v56 = vld [vmem:[%s4598_s3 + $0x298] sm:$0xff]   ;;  %v3462_v0 = vld [vmem:[%s4598_s3 + $0x220] sm:$0xff]  }
 0x165   : > { %3200 = vmatpush3.bf16.msra.mxu0 %v3446_v41  ;;  %v1119_v2 = vmax.f32 %v729_v52, 0.0  ;;  %2379 = vmatprep.mubr.bf16.mxu0 %v1167_v40  ;;  %v733_v54 = vadd.f32 %v732_v63, %v4120_v6  ;;  %v3452_v6 = vld [vmem:[%s4598_s3 + $0x288] sm:$0xff]   ;;  %v1121_v11 = vmax.f32 %v792_v3, 0.0  ;;  %v796_v12 = vadd.f32 %v795_v9, %v4136_v14 }
 0x166   : > { %3201 = vmatprep.subr.bf16.mxu0 %v3449_v46  ;;  %v1134_v1 = vmax.f32 %v731_v24, 0.0  ;;  %3234 = vmatpush3.bf16.msra.mxu1 %v3448_v51  ;;  %v4251_v28 = vrot.slane %v4221_v57, %v341_v21  ;;  %v1136_v19 = vmax.f32 %v794_v8, 0.0  ;;  %v3454_v21 = vld [vmem:[%s4598_s3 + $0x210] sm:$0xff]   ;;  %v3463_v24 = vld [vmem:[%s4598_s3 + $0x2e0] sm:$0xff]   ;;  %v3465_v3 = vld [vmem:[%s4598_s3 + $0x268] sm:$0xff]  }
 0x167   : > { %v1135_v62 = vmax.f32 %v733_v54, 0.0  ;;  %2436 = vmatprep.mubr.bf16.mxu1 %v1169_v50  ;;  %3235 = vmatprep.subr.bf16.mxu1 %v3451_v59  ;;  %v1137_v17 = vmax.f32 %v796_v12, 0.0 }
 0x168   : > { %v4253_v13 = vpack.c.bf16 %v1134_v1, %v1118_v58  ;;  %v4271_v29 = vpack.c.bf16 %v1136_v19, %v1120_v26 }
 0x169   : > { %3202 = vmatpush3.bf16.msra.mxu0 %v3450_v25  ;;  %v1183_v14 = vpack.c.bf16 %v1135_v62, %v1119_v2  ;;  %v832_v18 = vpop.f32.mrb[24].mxu0  ;;  %v1185_v31 = vpack.c.bf16 %v1137_v17, %v1121_v11  ;;  %v895_v34 = vpop.f32.mrb[24].mxu1  ;;  %v3467_v11 = vld [vmem:[%s4598_s3 + $0x2e8] sm:$0xff]  }
 0x16a   : > { %3203 = vmatprep.subr.bf16.mxu0 %v3453_v7  ;;  %v833_v30 = vadd.f32 %v832_v18, %v4242_v10  ;;  %v834_v20 = vpop.f32.mrb[25].mxu0  ;;  %3236 = vmatpush3.bf16.msra.mxu1 %v3452_v6  ;;  %v896_v39 = vadd.f32 %v895_v34, %v4261_v16  ;;  %v897_v41 = vpop.f32.mrb[25].mxu1  ;;  %v3464_v7 = vld [vmem:[%s4598_s3 + $0x2a0] sm:$0xff]   ;;  %v3466_v17 = vld [vmem:[%s4598_s3 + $0x228] sm:$0xff]  }
 0x16b   : > { %v835_v33 = vadd.f32 %v834_v20, %v4251_v28  ;;  %v836_v23 = vpop.f32.mrb[26].mxu0  ;;  %3237 = vmatprep.subr.bf16.mxu1 %v3455_v15  ;;  %v898_v46 = vadd.f32 %v897_v41, %v4269_v27  ;;  %v899_v47 = vpop.f32.mrb[26].mxu1  ;;  %v3469_v20 = vld [vmem:[%s4598_s3 + $0x270] sm:$0xff]   ;;  %v3468_v34 = vld [vmem:[%s4598_s3 + $0x2a8] sm:$0xff]  }
 0x16c   : > { %2380 = vmatmul.mubr.bf16.gmra.mrb[64].mxu0 %v4200_v37  ;;  %v1058_v36 = vmax.f32 %v833_v30, 0.0  ;;  %v837_v38 = vadd.f32 %v836_v23, %v4242_v10  ;;  %v838_v40 = vpop.f32.mrb[27].mxu0  ;;  %2437 = vmatmul.mubr.bf16.gmra.mrb[64].mxu1 %v4208_v45  ;;  %v1060_v51 = vmax.f32 %v896_v39, 0.0  ;;  %v900_v52 = vadd.f32 %v899_v47, %v4261_v16  ;;  %v901_v53 = vpop.f32.mrb[27].mxu1  ;;  %v3470_v41 = vld [vmem:[%s4598_s3 + $0x230] sm:$0xff]  }
 0x16d   : > { %3204 = vmatpush3.bf16.msra.mxu0 %v3454_v21  ;;  %2387 = vmatprep.mubr.bf16.mxu0 %v1183_v14  ;;  %v1059_v44 = vmax.f32 %v835_v33, 0.0  ;;  %v839_v37 = vadd.f32 %v838_v40, %v4251_v28  ;;  %v1061_v59 = vmax.f32 %v898_v46, 0.0  ;;  %v902_v45 = vadd.f32 %v901_v53, %v4269_v27  ;;  %v3473_v46 = vld [vmem:[%s4598_s3 + $0x278] sm:$0xff]  }
 0x16e   : > { %3205 = vmatprep.subr.bf16.mxu0 %v3457_v22  ;;  %v1074_v50 = vmax.f32 %v837_v38, 0.0  ;;  %3238 = vmatpush3.bf16.msra.mxu1 %v3456_v32  ;;  %v1076_v63 = vmax.f32 %v900_v52, 0.0  ;;  %v3471_v38 = vld [vmem:[%s4598_s3 + $0x2f0] sm:$0xff]  }
 0x16f   : > { %2444 = vmatprep.mubr.bf16.mxu1 %v1185_v31  ;;  %v1075_v58 = vmax.f32 %v839_v37, 0.0  ;;  %3239 = vmatprep.subr.bf16.mxu1 %v3459_v35  ;;  %v1077_v2 = vmax.f32 %v902_v45, 0.0 }
 0x170   : > { %v4304_v61 = vpack.c.bf16 %v1074_v50, %v1058_v36  ;;  %v4312_v5 = vpack.c.bf16 %v1076_v63, %v1060_v51  ;;  %v3472_v51 = vld [vmem:[%s4598_s3 + $0x2b0] sm:$0xff]  }
 0x171   : > { %3206 = vmatpush3.bf16.msra.mxu0 %v3458_v43  ;;  %v1155_v25 = vpack.c.bf16 %v1075_v58, %v1059_v44  ;;  %v842_v54 = vpop.f32.mrb[28].mxu0  ;;  %v1157_v8 = vpack.c.bf16 %v1077_v2, %v1061_v59  ;;  %v905_v62 = vpop.f32.mrb[28].mxu1  ;;  %v3475_v59 = vld [vmem:[%s4598_s3 + $0x2f8] sm:$0xff]  }
 0x172   : > { %3207 = vmatprep.subr.bf16.mxu0 %v3461_v49  ;;  %v843_v1 = vadd.f32 %v842_v54, %v4242_v10  ;;  %v844_v26 = vpop.f32.mrb[29].mxu0  ;;  %3240 = vmatpush3.bf16.msra.mxu1 %v3460_v56  ;;  %v906_v15 = vadd.f32 %v905_v62, %v4261_v16  ;;  %v907_v21 = vpop.f32.mrb[29].mxu1  ;;  %v3474_v2 = vld [vmem:[%s4598_s3 + $0x238] sm:$0xff]   ;;  %v4378_v62 = vrot.slane %v4221_v57, %v353_v42  ;;  %v3479_v42 = vld [vmem:[%s4598_s3 + $0x3c0] sm:$0xff]  }
 0x173   : > { %v845_v9 = vadd.f32 %v844_v26, %v4251_v28  ;;  %v846_v6 = vpop.f32.mrb[30].mxu0  ;;  %3241 = vmatprep.subr.bf16.mxu1 %v3463_v24  ;;  %v908_v22 = vadd.f32 %v907_v21, %v4269_v27  ;;  %v909_v30 = vpop.f32.mrb[30].mxu1  ;;  %v4397_v21 = vrot.slane %v4221_v57, %v361_v55  ;;  %v3481_v55 = vld [vmem:[%s4598_s3 + $0x348] sm:$0xff]  }
 0x174   : > { %2388 = vmatmul.mubr.bf16.gmra.mrb[68].mxu0 %v4253_v13  ;;  %v1090_v12 = vmax.f32 %v843_v1, 0.0  ;;  %v847_v19 = vadd.f32 %v846_v6, %v4242_v10  ;;  %v848_v14 = vpop.f32.mrb[31].mxu0  ;;  %2445 = vmatmul.mubr.bf16.gmra.mrb[68].mxu1 %v4271_v29  ;;  %v1092_v32 = vmax.f32 %v906_v15, 0.0  ;;  %v910_v33 = vadd.f32 %v909_v30, %v4261_v16  ;;  %v911_v23 = vpop.f32.mrb[31].mxu1 }
 0x175   : > { %3208 = vmatpush3.bf16.msra.mxu0 %v3462_v0  ;;  %2485 = vmatprep.mubr.bf16.mxu0 %v1155_v25  ;;  %v1091_v18 = vmax.f32 %v845_v9, 0.0  ;;  %v849_v13 = vadd.f32 %v848_v14, %v4251_v28  ;;  %v1093_v36 = vmax.f32 %v908_v22, 0.0  ;;  %v912_v29 = vadd.f32 %v911_v23, %v4269_v27 }
 0x176   : > { %3209 = vmatprep.subr.bf16.mxu0 %v3465_v3  ;;  %v1106_v31 = vmax.f32 %v847_v19, 0.0  ;;  %3242 = vmatpush3.bf16.msra.mxu1 %v3464_v7  ;;  %v1108_v40 = vmax.f32 %v910_v33, 0.0  ;;  %v4387_v15 = vrot.slane %v4221_v57, %v357_v48  ;;  %v3483_v33 = vld [vmem:[%s4598_s3 + $0x3c8] sm:$0xff]  }
 0x177   : > { %2542 = vmatprep.mubr.bf16.mxu1 %v1157_v8  ;;  %v1107_v35 = vmax.f32 %v849_v13, 0.0  ;;  %3243 = vmatprep.subr.bf16.mxu1 %v3467_v11  ;;  %v1109_v44 = vmax.f32 %v912_v29, 0.0  ;;  %v4407_v13 = vrot.slane %v4221_v57, %v365_v60 }
 0x178   : > { %v4342_v39 = vpack.c.bf16 %v1106_v31, %v1090_v12  ;;  %v4352_v47 = vpack.c.bf16 %v1108_v40, %v1092_v32  ;;  %v3480_v31 = vld [vmem:[%s4598_s3 + $0x380] sm:$0xff]  }
 0x179   : > { %3210 = vmatpush3.bf16.msra.mxu0 %v3466_v17  ;;  %v4347_v43 = vpack.c.bf16 %v1107_v35, %v1091_v18  ;;  %v852_v37 = vpop.f32.mrb[32].mxu0  ;;  %v4358_v52 = vpack.c.bf16 %v1109_v44, %v1093_v36  ;;  %v915_v58 = vpop.f32.mrb[32].mxu1 }
 0x17a   : > { %3211 = vmatprep.subr.bf16.mxu0 %v3469_v20  ;;  %v853_v49 = vadd.f32 %v852_v37, %v4242_v10  ;;  %v854_v50 = vpop.f32.mrb[33].mxu0  ;;  %3244 = vmatpush3.bf16.msra.mxu1 %v3468_v34  ;;  %v916_v63 = vadd.f32 %v915_v58, %v4261_v16  ;;  %v917_v25 = vpop.f32.mrb[33].mxu1  ;;  %v3485_v37 = vld [vmem:[%s4598_s3 + $0x350] sm:$0xff]  }
 0x17b   : > { %v855_v53 = vadd.f32 %v854_v50, %v4251_v28  ;;  %v856_v56 = vpop.f32.mrb[34].mxu0  ;;  %3245 = vmatprep.subr.bf16.mxu1 %v3471_v38  ;;  %v918_v1 = vadd.f32 %v917_v25, %v4269_v27  ;;  %v919_v26 = vpop.f32.mrb[34].mxu1  ;;  %v3482_v38 = vld [vmem:[%s4598_s3 + $0x308] sm:$0xff]   ;;  %v3487_v58 = vld [vmem:[%s4598_s3 + $0x3d0] sm:$0xff]   ;;  %v3489_v25 = vld [vmem:[%s4598_s3 + $0x358] sm:$0xff]  }
 0x17c   : > { %v1122_v45 = vmax.f32 %v853_v49, 0.0  ;;  %v857_v24 = vadd.f32 %v856_v56, %v4242_v10  ;;  %v858_v0 = vpop.f32.mrb[35].mxu0  ;;  %v3477_v10 = vld [vmem:[%s4598_s3 + $0x340] sm:$0xff]   ;;  %v1124_v8 = vmax.f32 %v916_v63, 0.0  ;;  %v920_v9 = vadd.f32 %v919_v26, %v4261_v16  ;;  %v921_v6 = vpop.f32.mrb[35].mxu1 }
 0x17d   : > { %3212 = vmatpush3.bf16.msra.mxu0 %v3470_v41  ;;  %v1123_v54 = vmax.f32 %v855_v53, 0.0  ;;  %v859_v3 = vadd.f32 %v858_v0, %v4251_v28  ;;  %v3476_v28 = vld [vmem:[%s4598_s3 + $0x2b8] sm:$0xff]   ;;  %v1125_v12 = vmax.f32 %v918_v1, 0.0  ;;  %v922_v19 = vadd.f32 %v921_v6, %v4269_v27  ;;  %v3478_v27 = vld [vmem:[%s4598_s3 + $0x300] sm:$0xff]   ;;  %v3488_v1 = vld [vmem:[%s4598_s3 + $0x390] sm:$0xff]  }
 0x17e   : > { %3213 = vmatprep.subr.bf16.mxu0 %v3473_v46  ;;  %v1138_v7 = vmax.f32 %v857_v24, 0.0  ;;  %3246 = vmatpush3.bf16.msra.mxu1 %v3472_v51  ;;  %v1140_v14 = vmax.f32 %v920_v9, 0.0  ;;  %v3486_v24 = vld [vmem:[%s4598_s3 + $0x310] sm:$0xff]   ;;  %v3491_v9 = vld [vmem:[%s4598_s3 + $0x3d8] sm:$0xff]  }
 0x17f   : > { %v1139_v11 = vmax.f32 %v859_v3, 0.0  ;;  %3247 = vmatprep.subr.bf16.mxu1 %v3475_v59  ;;  %v1141_v17 = vmax.f32 %v922_v19, 0.0 }
 0x180   : > { %v4392_v16 = vpack.c.bf16 %v1138_v7, %v1122_v45  ;;  %v4412_v22 = vpack.c.bf16 %v1140_v14, %v1124_v8 }
 0x181   : > { %3214 = vmatpush3.bf16.msra.mxu0 %v3474_v2  ;;  %v4402_v48 = vpack.c.bf16 %v1139_v11, %v1123_v54  ;;  %v958_v18 = vpop.f32.mrb[36].mxu0  ;;  %v4418_v32 = vpack.c.bf16 %v1141_v17, %v1125_v12  ;;  %v1021_v57 = vpop.f32.mrb[36].mxu1 }
 0x182   : > { %3267 = vmatprep.subr.bf16.mxu0 %v3477_v10  ;;  %v959_v30 = vadd.f32 %v958_v18, %v4378_v62  ;;  %v960_v20 = vpop.f32.mrb[37].mxu0  ;;  %3248 = vmatpush3.bf16.msra.mxu1 %v3476_v28  ;;  %v1022_v35 = vadd.f32 %v1021_v57, %v4397_v21  ;;  %v1023_v29 = vpop.f32.mrb[37].mxu1  ;;  %v3493_v18 = vld [vmem:[%s4598_s3 + $0x360] sm:$0xff]  }
 0x183   : > { %v961_v4 = vadd.f32 %v960_v20, %v4387_v15  ;;  %v962_v60 = vpop.f32.mrb[38].mxu0  ;;  %3301 = vmatprep.subr.bf16.mxu1 %v3479_v42  ;;  %v1024_v41 = vadd.f32 %v1023_v29, %v4407_v13  ;;  %v1025_v44 = vpop.f32.mrb[38].mxu1  ;;  %v3490_v42 = vld [vmem:[%s4598_s3 + $0x318] sm:$0xff]   ;;  %v3495_v57 = vld [vmem:[%s4598_s3 + $0x3e0] sm:$0xff]   ;;  %v3497_v29 = vld [vmem:[%s4598_s3 + $0x368] sm:$0xff]  }
 0x184   : > { %2486 = vmatmul.mubr.bf16.vlgmr.msra.gmra.mrb[72].mxu0 %v4304_v61  ;;  %v1062_v23 = vmax.f32 %v959_v30, 0.0  ;;  %v963_v34 = vadd.f32 %v962_v60, %v4378_v62  ;;  %v964_v36 = vpop.f32.mrb[39].mxu0  ;;  %v1064_v49 = vmax.f32 %v1022_v35, 0.0  ;;  %v1026_v50 = vadd.f32 %v1025_v44, %v4397_v21  ;;  %v1027_v51 = vpop.f32.mrb[39].mxu1 }
 0x185   : > { %3268 = vmatpush3.bf16.msra.mxu0 %v3478_v27  ;;  %2493 = vmatprep.mubr.bf16.mxu0 %v4347_v43  ;;  %v1063_v61 = vmax.f32 %v961_v4, 0.0  ;;  %v965_v40 = vadd.f32 %v964_v36, %v4387_v15  ;;  %v3484_v43 = vld [vmem:[%s4598_s3 + $0x388] sm:$0xff]   ;;  %v1065_v56 = vmax.f32 %v1024_v41, 0.0  ;;  %v3496_v41 = vld [vmem:[%s4598_s3 + $0x3a0] sm:$0xff]  }
 0x186   : > { %2543 = vmatmul.mubr.bf16.vlgmr.msra.gmra.mrb[72].mxu1 %v4312_v5  ;;  %3269 = vmatprep.subr.bf16.mxu0 %v3481_v55  ;;  %v1078_v46 = vmax.f32 %v963_v34, 0.0  ;;  %v1028_v5 = vadd.f32 %v1027_v51, %v4407_v13  ;;  %v1080_v45 = vmax.f32 %v1026_v50, 0.0  ;;  %v3494_v34 = vld [vmem:[%s4598_s3 + $0x320] sm:$0xff]   ;;  %v3499_v50 = vld [vmem:[%s4598_s3 + $0x3e8] sm:$0xff]  }
 0x187   : > { %3302 = vmatpush3.bf16.msra.mxu1 %v3480_v31  ;;  %2550 = vmatprep.mubr.bf16.mxu1 %v4358_v52  ;;  %v1079_v53 = vmax.f32 %v965_v40, 0.0 }
 0x188   : > { %3303 = vmatprep.subr.bf16.mxu1 %v3483_v33  ;;  %v4446_v59 = vpack.c.bf16 %v1078_v46, %v1062_v23  ;;  %v1081_v52 = vmax.f32 %v1028_v5, 0.0  ;;  %v4456_v2 = vpack.c.bf16 %v1080_v45, %v1064_v49 }
 0x189   : > { %3270 = vmatpush3.bf16.msra.mxu0 %v3482_v38  ;;  %v4451_v63 = vpack.c.bf16 %v1079_v53, %v1063_v61  ;;  %v968_v0 = vpop.f32.mrb[40].mxu0 }
 0x18a   : > { %3271 = vmatprep.subr.bf16.mxu0 %v3485_v37  ;;  %v969_v54 = vadd.f32 %v968_v0, %v4378_v62  ;;  %v970_v3 = vpop.f32.mrb[41].mxu0  ;;  %v4462_v26 = vpack.c.bf16 %v1081_v52, %v1065_v56 }
 0x18b   : > { %3304 = vmatpush3.bf16.msra.mxu1 %v3484_v43  ;;  %v971_v10 = vadd.f32 %v970_v3, %v4387_v15  ;;  %v972_v7 = vpop.f32.mrb[42].mxu0  ;;  %v1031_v8 = vpop.f32.mrb[40].mxu1 }
 0x18c   : > { %2494 = vmatmul.mubr.bf16.gmra.mrb[76].mxu0 %v4342_v39  ;;  %3305 = vmatprep.subr.bf16.mxu1 %v3487_v58  ;;  %v1094_v6 = vmax.f32 %v969_v54, 0.0  ;;  %v973_v28 = vadd.f32 %v972_v7, %v4378_v62  ;;  %v1032_v11 = vadd.f32 %v1031_v8, %v4397_v21  ;;  %v974_v12 = vpop.f32.mrb[43].mxu0  ;;  %v1033_v19 = vpop.f32.mrb[41].mxu1  ;;  %v3498_v58 = vld [vmem:[%s4598_s3 + $0x328] sm:$0xff]  }
 0x18d   : > { %3272 = vmatpush3.bf16.msra.mxu0 %v3486_v24  ;;  %2501 = vmatprep.mubr.bf16.mxu0 %v4402_v48  ;;  %v1095_v39 = vmax.f32 %v971_v10, 0.0  ;;  %v975_v14 = vadd.f32 %v974_v12, %v4387_v15  ;;  %v1034_v27 = vadd.f32 %v1033_v19, %v4407_v13  ;;  %v1035_v17 = vpop.f32.mrb[42].mxu1  ;;  %v3492_v48 = vld [vmem:[%s4598_s3 + $0x398] sm:$0xff]   ;;  %v3503_v10 = vld [vmem:[%s4598_s3 + $0x3f0] sm:$0xff]  }
 0x18e   : > { %2551 = vmatmul.mubr.bf16.gmra.mrb[76].mxu1 %v4352_v47  ;;  %3273 = vmatprep.subr.bf16.mxu0 %v3489_v25  ;;  %v1110_v55 = vmax.f32 %v973_v28, 0.0  ;;  %v1096_v30 = vmax.f32 %v1032_v11, 0.0  ;;  %v1036_v20 = vadd.f32 %v1035_v17, %v4397_v21  ;;  %v1037_v31 = vpop.f32.mrb[43].mxu1  ;;  %v3504_v28 = vld [vmem:[%s4598_s3 + $0x3b0] sm:$0xff]   ;;  %v3507_v12 = vld [vmem:[%s4598_s3 + $0x3f8] sm:$0xff]  }
 0x18f   : > { %3306 = vmatpush3.bf16.msra.mxu1 %v3488_v1  ;;  %2558 = vmatprep.mubr.bf16.mxu1 %v4418_v32  ;;  %v1111_v4 = vmax.f32 %v975_v14, 0.0  ;;  %v1097_v60 = vmax.f32 %v1034_v27, 0.0  ;;  %v1038_v47 = vadd.f32 %v1037_v31, %v4407_v13  ;;  %v3506_v19 = vld [vmem:[%s4598_s3 + $0x338] sm:$0xff]   ;;  %v2930_v14 = vld [vmem:[#allocation2] ss:$0 sm:$0xff] }
 0x190   : > { %3307 = vmatprep.subr.bf16.mxu1 %v3491_v9  ;;  %v4490_v33 = vpack.c.bf16 %v1110_v55, %v1094_v6  ;;  %v1112_v23 = vmax.f32 %v1036_v20, 0.0 }
 0x191   : > { %3274 = vmatpush3.bf16.msra.mxu0 %v3490_v42  ;;  %v4495_v35 = vpack.c.bf16 %v1111_v4, %v1095_v39  ;;  %v1113_v32 = vmax.f32 %v1038_v47, 0.0  ;;  %v978_v36 = vpop.f32.mrb[44].mxu0  ;;  %v3508_v42 = vld [vmem:[%s4598_s3 + $0x3b8] sm:$0xff]  }
 0x192   : > { %3275 = vmatprep.subr.bf16.mxu0 %v3493_v18  ;;  %v4500_v38 = vpack.c.bf16 %v1112_v23, %v1096_v30  ;;  %v979_v61 = vadd.f32 %v978_v36, %v4378_v62  ;;  %v980_v40 = vpop.f32.mrb[45].mxu0 }
 0x193   : > { %3308 = vmatpush3.bf16.msra.mxu1 %v3492_v48  ;;  %v1177_v44 = vpack.c.bf16 %v1113_v32, %v1097_v60  ;;  %v981_v37 = vadd.f32 %v980_v40, %v4387_v15  ;;  %v982_v46 = vpop.f32.mrb[46].mxu0  ;;  %v1041_v49 = vpop.f32.mrb[44].mxu1 }
 0x194   : > { %2502 = vmatmul.mubr.bf16.gmra.mrb[80].mxu0 %v4392_v16  ;;  %3309 = vmatprep.subr.bf16.mxu1 %v3495_v57  ;;  %v1126_v51 = vmax.f32 %v979_v61, 0.0  ;;  %v983_v43 = vadd.f32 %v982_v46, %v4378_v62  ;;  %v1042_v53 = vadd.f32 %v1041_v49, %v4397_v21  ;;  %v984_v56 = vpop.f32.mrb[47].mxu0  ;;  %v1043_v5 = vpop.f32.mrb[45].mxu1  ;;  %v3501_v62 = vld [vmem:[%s4598_s3 + $0x370] sm:$0xff]  }
 0x195   : > { %3276 = vmatpush3.bf16.msra.mxu0 %v3494_v34  ;;  %2599 = vmatprep.mubr.bf16.mxu0 %v4451_v63  ;;  %v1127_v16 = vmax.f32 %v981_v37, 0.0  ;;  %v985_v45 = vadd.f32 %v984_v56, %v4387_v15  ;;  %v1044_v24 = vadd.f32 %v1043_v5, %v4407_v13  ;;  %v1045_v52 = vpop.f32.mrb[46].mxu1  ;;  %v3500_v15 = vld [vmem:[%s4598_s3 + $0x3a8] sm:$0xff]  }
 0x196   : > { %2559 = vmatmul.mubr.bf16.gmra.mrb[80].mxu1 %v4412_v22  ;;  %3277 = vmatprep.subr.bf16.mxu0 %v3497_v29  ;;  %v1142_v0 = vmax.f32 %v983_v43, 0.0  ;;  %v1128_v25 = vmax.f32 %v1042_v53, 0.0  ;;  %v1046_v54 = vadd.f32 %v1045_v52, %v4397_v21  ;;  %v1047_v3 = vpop.f32.mrb[47].mxu1  ;;  %v3502_v21 = vld [vmem:[%s4598_s3 + $0x330] sm:$0xff]  }
 0x197   : > { %3310 = vmatpush3.bf16.msra.mxu1 %v3496_v41  ;;  %2656 = vmatprep.mubr.bf16.mxu1 %v4462_v26  ;;  %v1143_v63 = vmax.f32 %v985_v45, 0.0  ;;  %v1129_v1 = vmax.f32 %v1044_v24, 0.0  ;;  %v1048_v22 = vadd.f32 %v1047_v3, %v4407_v13  ;;  %v3505_v26 = vld [vmem:[%s4598_s3 + $0x378] sm:$0xff]  }
 0x198   : > { %3311 = vmatprep.subr.bf16.mxu1 %v3499_v50  ;;  %v1190_v7 = vpack.c.bf16 %v1142_v0, %v1126_v51  ;;  %v1144_v8 = vmax.f32 %v1046_v54, 0.0 }
 0x199   : > { %3278 = vmatpush3.bf16.msra.mxu0 %v3498_v58  ;;  %v1191_v9 = vpack.c.bf16 %v1143_v63, %v1127_v16  ;;  %v1145_v6 = vmax.f32 %v1048_v22, 0.0 }
 0x19a   : > { %3279 = vmatprep.subr.bf16.mxu0 %v3501_v62  ;;  %v1192_v13 = vpack.c.bf16 %v1144_v8, %v1128_v25 }
 0x19b   : > { %3312 = vmatpush3.bf16.msra.mxu1 %v3500_v15  ;;  %v1193_v11 = vpack.c.bf16 %v1145_v6, %v1129_v1 }
 0x19c   : > { %3313 = vmatprep.subr.bf16.mxu1 %v3503_v10 }
 0x19d   : > { %3280 = vmatpush3.bf16.msra.mxu0 %v3502_v21 }
 0x19e   : > { %3281 = vmatprep.subr.bf16.mxu0 %v3505_v26 }
 0x19f   : > { %3314 = vmatpush3.bf16.msra.mxu1 %v3504_v28 }
 0x1a0   : > { %3315 = vmatprep.subr.bf16.mxu1 %v3507_v12 }
 0x1a1   : > { %3282 = vmatpush3.bf16.msra.mxu0 %v3506_v19 }
 0x1a3   : > { %3316 = vmatpush3.bf16.msra.mxu1 %v3508_v42 }
 0x1a4   : > { %2600 = vmatmul.mubr.bf16.vlgmr.msra.gmra.mrb[84].mxu0 %v4446_v59 }
 0x1a5   : > { %2607 = vmatprep.mubr.bf16.mxu0 %v4495_v35 }
 0x1a6   : > { %2657 = vmatmul.mubr.bf16.vlgmr.msra.gmra.mrb[84].mxu1 %v4456_v2 }
 0x1a7   : > { %2664 = vmatprep.mubr.bf16.mxu1 %v1177_v44 }
 0x1ac   : > { %2608 = vmatmul.mubr.bf16.gmra.mrb[88].mxu0 %v4490_v33 }
 0x1ad   : > { %2615 = vmatprep.mubr.bf16.mxu0 %v1191_v9 }
 0x1ae   : > { %2665 = vmatmul.mubr.bf16.gmra.mrb[88].mxu1 %v4500_v38 }
 0x1af   : > { %2672 = vmatprep.mubr.bf16.mxu1 %v1193_v11 }
 0x1b4   : > { %2616 = vmatmul.mubr.bf16.gmra.mrb[92].mxu0 %v1190_v7 }
 0x1b6   : > { %2673 = vmatmul.mubr.bf16.gmra.mrb[92].mxu1 %v1192_v13 }
 0x217   : > { %v3079_v39 = vpop.f32.mrb[48].mxu0  ;;  %v3113_v55 = vpop.f32.mrb[48].mxu1 }
 0x218   : > { %v3080_v27 = vpop.f32.mrb[49].mxu0  ;;  %v3114_v30 = vpop.f32.mrb[49].mxu1 }
 0x219   : > { %v3081_v17 = vadd.f32 %v3080_v27, %v3079_v39  ;;  %v3082_v18 = vpop.f32.mrb[50].mxu0  ;;  %v3115_v2 = vadd.f32 %v3114_v30, %v3113_v55  ;;  %v3116_v48 = vpop.f32.mrb[50].mxu1 }
 0x21a   : > { %v3083_v59 = vpop.f32.mrb[51].mxu0  ;;  %v3117_v4 = vpop.f32.mrb[51].mxu1 }
 0x21b   : > { %v2260_v20 = vadd.f32 %v3081_v17, %v2930_v14  ;;  %v3084_v31 = vadd.f32 %v3083_v59, %v3082_v18  ;;  %v3118_v57 = vadd.f32 %v3117_v4, %v3116_v48 }
 0x21d   : > { %v2263_v60 = vadd.f32 %v3084_v31, %v2930_v14  ;;  %v2317_v47 = vadd.f32 %v3115_v2, %v2260_v20 }
 0x21f   : > { %v2320_v33 = vadd.f32 %v3118_v57, %v2263_v60  ;;  %v3085_v23 = vpop.f32.mrb[52].mxu0  ;;  %v3119_v36 = vpop.f32.mrb[52].mxu1 }
 0x220   : > { %v3086_v34 = vpop.f32.mrb[53].mxu0  ;;  %v3120_v38 = vpop.f32.mrb[53].mxu1 }
 0x221   : > { %v3087_v35 = vadd.f32 %v3086_v34, %v3085_v23  ;;  %v3088_v32 = vpop.f32.mrb[54].mxu0  ;;  %v3121_v41 = vadd.f32 %v3120_v38, %v3119_v36  ;;  %v3122_v44 = vpop.f32.mrb[54].mxu1 }
 0x222   : > { %v3089_v29 = vpop.f32.mrb[55].mxu0  ;;  %v3123_v37 = vpop.f32.mrb[55].mxu1 }
 0x223   : > { %v2268_v61 = vadd.f32 %v3087_v35, %v2930_v14  ;;  %v3090_v40 = vadd.f32 %v3089_v29, %v3088_v32  ;;  %v3124_v50 = vadd.f32 %v3123_v37, %v3122_v44 }
 0x225   : > { %v2271_v46 = vadd.f32 %v3090_v40, %v2930_v14  ;;  %v2325_v49 = vadd.f32 %v3121_v41, %v2268_v61 }
 0x227   : > { %v2328_v51 = vadd.f32 %v3124_v50, %v2271_v46  ;;  %v3091_v43 = vpop.f32.mrb[56].mxu0  ;;  %v3125_v58 = vpop.f32.mrb[56].mxu1 }
 0x228   : > { %v3092_v53 = vpop.f32.mrb[57].mxu0  ;;  %v3126_v45 = vpop.f32.mrb[57].mxu1 }
 0x229   : > { %v3093_v56 = vadd.f32 %v3092_v53, %v3091_v43  ;;  %v3094_v5 = vpop.f32.mrb[58].mxu0  ;;  %v3127_v62 = vadd.f32 %v3126_v45, %v3125_v58  ;;  %v3128_v0 = vpop.f32.mrb[58].mxu1 }
 0x22a   : > { %v3095_v16 = vpop.f32.mrb[59].mxu0  ;;  %v3129_v25 = vpop.f32.mrb[59].mxu1 }
 0x22b   : > { %v2276_v24 = vadd.f32 %v3093_v56, %v2930_v14  ;;  %v3096_v52 = vadd.f32 %v3095_v16, %v3094_v5  ;;  %v3130_v15 = vadd.f32 %v3129_v25, %v3128_v0 }
 0x22d   : > { %v2279_v54 = vadd.f32 %v3096_v52, %v2930_v14  ;;  %v2333_v3 = vadd.f32 %v3127_v62, %v2276_v24 }
 0x22f   : > { %v2336_v63 = vadd.f32 %v3130_v15, %v2279_v54 }
 0x237   : > { %v3147_v1 = vpop.f32.mrb[60].mxu0  ;;  %v3181_v8 = vpop.f32.mrb[60].mxu1 }
 0x238   : > { %v3148_v22 = vpop.f32.mrb[61].mxu0  ;;  %v3182_v9 = vpop.f32.mrb[61].mxu1 }
 0x239   : > { %v3149_v10 = vadd.f32 %v3148_v22, %v3147_v1  ;;  %v3150_v7 = vpop.f32.mrb[62].mxu0  ;;  %v3183_v13 = vadd.f32 %v3182_v9, %v3181_v8  ;;  %v3184_v28 = vpop.f32.mrb[62].mxu1 }
 0x23a   : > { %v3151_v21 = vpop.f32.mrb[63].mxu0  ;;  %v3185_v11 = vpop.f32.mrb[63].mxu1 }
 0x23b   : > { %v2374_v6 = vadd.f32 %v3149_v10, %v2317_v47  ;;  %v3152_v26 = vadd.f32 %v3151_v21, %v3150_v7  ;;  %v3186_v42 = vadd.f32 %v3185_v11, %v3184_v28 }
 0x23d   : > { %v2377_v12 = vadd.f32 %v3152_v26, %v2320_v33  ;;  %v2431_v19 = vadd.f32 %v3183_v13, %v2374_v6 }
 0x23f   : > { %v2434_v39 = vadd.f32 %v3186_v42, %v2377_v12  ;;  %v3153_v14 = vpop.f32.mrb[64].mxu0  ;;  %v3187_v55 = vpop.f32.mrb[64].mxu1 }
 0x240   : > { %v3154_v27 = vpop.f32.mrb[65].mxu0  ;;  %v3188_v30 = vpop.f32.mrb[65].mxu1 }
 0x241   : > { %v3155_v17 = vadd.f32 %v3154_v27, %v3153_v14  ;;  %v3156_v18 = vpop.f32.mrb[66].mxu0  ;;  %v3189_v2 = vadd.f32 %v3188_v30, %v3187_v55  ;;  %v3190_v48 = vpop.f32.mrb[66].mxu1 }
 0x242   : > { %v3157_v59 = vpop.f32.mrb[67].mxu0  ;;  %v3191_v4 = vpop.f32.mrb[67].mxu1 }
 0x243   : > { %v2382_v20 = vadd.f32 %v3155_v17, %v2325_v49  ;;  %v3158_v31 = vadd.f32 %v3157_v59, %v3156_v18  ;;  %v3192_v57 = vadd.f32 %v3191_v4, %v3190_v48 }
 0x245   : > { %v2385_v60 = vadd.f32 %v3158_v31, %v2328_v51  ;;  %v2439_v47 = vadd.f32 %v3189_v2, %v2382_v20 }
 0x247   : > { %v2442_v23 = vadd.f32 %v3192_v57, %v2385_v60  ;;  %v3159_v33 = vpop.f32.mrb[68].mxu0  ;;  %v3193_v36 = vpop.f32.mrb[68].mxu1 }
 0x248   : > { %v3160_v34 = vpop.f32.mrb[69].mxu0  ;;  %v3194_v38 = vpop.f32.mrb[69].mxu1 }
 0x249   : > { %v3161_v35 = vadd.f32 %v3160_v34, %v3159_v33  ;;  %v3162_v32 = vpop.f32.mrb[70].mxu0  ;;  %v3195_v41 = vadd.f32 %v3194_v38, %v3193_v36  ;;  %v3196_v44 = vpop.f32.mrb[70].mxu1 }
 0x24a   : > { %v3163_v29 = vpop.f32.mrb[71].mxu0  ;;  %v3197_v37 = vpop.f32.mrb[71].mxu1 }
 0x24b   : > { %v2390_v61 = vadd.f32 %v3161_v35, %v2333_v3  ;;  %v3164_v40 = vadd.f32 %v3163_v29, %v3162_v32  ;;  %v3198_v50 = vadd.f32 %v3197_v37, %v3196_v44 }
 0x24d   : > { %v2393_v46 = vadd.f32 %v3164_v40, %v2336_v63  ;;  %v2447_v49 = vadd.f32 %v3195_v41, %v2390_v61 }
 0x24f   : > { %v2450_v43 = vadd.f32 %v3198_v50, %v2393_v46 }
 0x257   : > { %v3215_v51 = vpop.f32.mrb[72].mxu0 }
 0x258   : > { %v3216_v53 = vpop.f32.mrb[73].mxu0 }
 0x259   : > { %v3217_v56 = vadd.f32 %v3216_v53, %v3215_v51  ;;  %v3218_v5 = vpop.f32.mrb[74].mxu0  ;;  %v3249_v58 = vpop.f32.mrb[72].mxu1  ;;  %v3521_v53 = vld [vmem:[%s3799_s13] sm:$0xff] }
 0x25a   : > { %v3219_v16 = vpop.f32.mrb[75].mxu0  ;;  %v3250_v45 = vpop.f32.mrb[73].mxu1 }
 0x25b   : > { %v2488_v24 = vadd.f32 %v3217_v56, %v2431_v19  ;;  %v3220_v52 = vadd.f32 %v3219_v16, %v3218_v5  ;;  %v3251_v62 = vadd.f32 %v3250_v45, %v3249_v58  ;;  %v3252_v0 = vpop.f32.mrb[74].mxu1 }
 0x25c   : > { %v3253_v25 = vpop.f32.mrb[75].mxu1 }
 0x25d   : > { %v2491_v54 = vadd.f32 %v3220_v52, %v2434_v39  ;;  %v2545_v3 = vadd.f32 %v3251_v62, %v2488_v24  ;;  %v3254_v15 = vadd.f32 %v3253_v25, %v3252_v0  ;;  %v3522_v52 = vld [vmem:[%s3799_s13 + $0x8] sm:$0xff] }
 0x25f   : > { %v2548_v1 = vadd.f32 %v3254_v15, %v2491_v54  ;;  %v3221_v63 = vpop.f32.mrb[76].mxu0 }
 0x260   : > { %v3222_v22 = vpop.f32.mrb[77].mxu0 }
 0x261   : > { %v3223_v10 = vadd.f32 %v3222_v22, %v3221_v63  ;;  %v3224_v7 = vpop.f32.mrb[78].mxu0  ;;  %v3255_v8 = vpop.f32.mrb[76].mxu1 }
 0x262   : > { %v3225_v21 = vpop.f32.mrb[79].mxu0  ;;  %v3256_v9 = vpop.f32.mrb[77].mxu1 }
 0x263   : > { %v2496_v6 = vadd.f32 %v3223_v10, %v2439_v47  ;;  %v3226_v26 = vadd.f32 %v3225_v21, %v3224_v7  ;;  %v3257_v13 = vadd.f32 %v3256_v9, %v3255_v8  ;;  %v3258_v28 = vpop.f32.mrb[78].mxu1 }
 0x264   : > { %v3259_v11 = vpop.f32.mrb[79].mxu1 }
 0x265   : > { %v2499_v12 = vadd.f32 %v3226_v26, %v2442_v23  ;;  %v2553_v19 = vadd.f32 %v3257_v13, %v2496_v6  ;;  %v3260_v42 = vadd.f32 %v3259_v11, %v3258_v28  ;;  %v3523_v6 = vld [vmem:[%s3799_s13 + $0x10] sm:$0xff] }
 0x267   : > { %v2556_v14 = vadd.f32 %v3260_v42, %v2499_v12  ;;  %v3227_v39 = vpop.f32.mrb[80].mxu0  ;;  %v3524_v42 = vld [vmem:[%s3799_s13 + $0x18] sm:$0xff] }
 0x268   : > { %v3228_v27 = vpop.f32.mrb[81].mxu0 }
 0x269   : > { %v3229_v17 = vadd.f32 %v3228_v27, %v3227_v39  ;;  %v3230_v18 = vpop.f32.mrb[82].mxu0  ;;  %v3261_v55 = vpop.f32.mrb[80].mxu1 }
 0x26a   : > { %v3231_v59 = vpop.f32.mrb[83].mxu0  ;;  %v3262_v30 = vpop.f32.mrb[81].mxu1 }
 0x26b   : > { %v2504_v20 = vadd.f32 %v3229_v17, %v2447_v49  ;;  %v3232_v31 = vadd.f32 %v3231_v59, %v3230_v18  ;;  %v3263_v2 = vadd.f32 %v3262_v30, %v3261_v55  ;;  %v3264_v48 = vpop.f32.mrb[82].mxu1 }
 0x26c   : > { %v3265_v4 = vpop.f32.mrb[83].mxu1 }
 0x26d   : > { %v2507_v60 = vadd.f32 %v3232_v31, %v2450_v43  ;;  %v2561_v47 = vadd.f32 %v3263_v2, %v2504_v20  ;;  %v3266_v57 = vadd.f32 %v3265_v4, %v3264_v48 }
 0x26f   : > { %v2564_v33 = vadd.f32 %v3266_v57, %v2507_v60  ;;  %v3525_v60 = vld [vmem:[%s3799_s13 + $0x20] sm:$0xff] }
 0x277   : > { %v3283_v23 = vpop.f32.mrb[84].mxu0 }
 0x278   : > { %v3284_v34 = vpop.f32.mrb[85].mxu0 }
 0x279   : > { %v3285_v35 = vadd.f32 %v3284_v34, %v3283_v23  ;;  %v3286_v32 = vpop.f32.mrb[86].mxu0  ;;  %v3317_v36 = vpop.f32.mrb[84].mxu1  ;;  %v3526_v34 = vld [vmem:[%s3799_s13 + $0x28] sm:$0x1] }
 0x27a   : > { %v3287_v29 = vpop.f32.mrb[87].mxu0  ;;  %v3318_v38 = vpop.f32.mrb[85].mxu1 }
 0x27b   : > { %v2602_v61 = vadd.f32 %v3285_v35, %v2545_v3  ;;  %v3288_v40 = vadd.f32 %v3287_v29, %v3286_v32  ;;  %v3319_v41 = vadd.f32 %v3318_v38, %v3317_v36  ;;  %v3320_v44 = vpop.f32.mrb[86].mxu1 }
 0x27c   : > { %v3321_v37 = vpop.f32.mrb[87].mxu1 }
 0x27d   : > { %v2605_v46 = vadd.f32 %v3288_v40, %v2548_v1  ;;  %v2659_v49 = vadd.f32 %v3319_v41, %v2602_v61  ;;  %v3322_v50 = vadd.f32 %v3321_v37, %v3320_v44 }
 0x27f   : > { %v2662_v43 = vadd.f32 %v3322_v50, %v2605_v46  ;;  %v3289_v51 = vpop.f32.mrb[88].mxu0  ;;  %v2681_v56 = vadd.f32 %v3521_v53, %v2659_v49 }
 0x280   : > { %v3290_v5 = vpop.f32.mrb[89].mxu0 }
 0x281   : > { %v3291_v58 = vadd.f32 %v3290_v5, %v3289_v51  ;;  %v3292_v16 = vpop.f32.mrb[90].mxu0  ;;  %v3323_v45 = vpop.f32.mrb[88].mxu1  ;;  %v2687_v24 = vsel %vm487_vm1, %v2681_v56, 0.0  ;;  %v2682_v62 = vadd.f32 %v3522_v52, %v2662_v43 }
 0x282   : > { %v3293_v0 = vpop.f32.mrb[91].mxu0  ;;  %v3324_v25 = vpop.f32.mrb[89].mxu1  ;;  %2688 = vadd.xlane.f32.xlu0 %v2687_v24 }
 0x283   : > { %v2610_v54 = vadd.f32 %v3291_v58, %v2553_v19  ;;  %v3294_v3 = vadd.f32 %v3293_v0, %v3292_v16  ;;  %v3325_v15 = vadd.f32 %v3324_v25, %v3323_v45  ;;  %v3326_v1 = vpop.f32.mrb[90].mxu1  ;;  %v2690_v8 = vsel %vm487_vm1, %v2682_v62, 0.0 }
 0x284   : > { %v3327_v63 = vpop.f32.mrb[91].mxu1 }
 0x285   : > { %v2613_v22 = vadd.f32 %v3294_v3, %v2556_v14  ;;  %v2667_v10 = vadd.f32 %v3325_v15, %v2610_v54  ;;  %v3328_v7 = vadd.f32 %v3327_v63, %v3326_v1 }
 0x286   : > { %2691 = vadd.xlane.f32.xlu0 %v2690_v8 }
 0x287   : > { %v2670_v21 = vadd.f32 %v3328_v7, %v2613_v22  ;;  %v3295_v9 = vpop.f32.mrb[92].mxu0  ;;  %v2683_v26 = vadd.f32 %v3523_v6, %v2667_v10 }
 0x288   : > { %v3296_v13 = vpop.f32.mrb[93].mxu0 }
 0x289   : > { %v3297_v28 = vadd.f32 %v3296_v13, %v3295_v9  ;;  %v3298_v11 = vpop.f32.mrb[94].mxu0  ;;  %v3329_v12 = vpop.f32.mrb[92].mxu1  ;;  %v2693_v19 = vsel %vm487_vm1, %v2683_v26, 0.0  ;;  %v2684_v39 = vadd.f32 %v3524_v42, %v2670_v21 }
 0x28a   : > { %v3299_v27 = vpop.f32.mrb[95].mxu0  ;;  %v3330_v14 = vpop.f32.mrb[93].mxu1  ;;  %2694 = vadd.xlane.f32.xlu1 %v2693_v19 }
 0x28b   : > { %v2618_v17 = vadd.f32 %v3297_v28, %v2561_v47  ;;  %v3300_v18 = vadd.f32 %v3299_v27, %v3298_v11  ;;  %v3331_v55 = vadd.f32 %v3330_v14, %v3329_v12  ;;  %v3332_v59 = vpop.f32.mrb[94].mxu1  ;;  %v2696_v48 = vsel %vm487_vm1, %v2684_v39, 0.0  ;;  %v3059_v12 = vld [vmem:[#allocation4] ss:$0 sm:$0xff]  ;;  %v3060_v27 = vld [vmem:[#allocation6] ss:$0 sm:$0xff] }
 0x28c   : > { %v3333_v30 = vpop.f32.mrb[95].mxu1 }
 0x28d   : > { %v2621_v20 = vadd.f32 %v3300_v18, %v2564_v33  ;;  %v2675_v31 = vadd.f32 %v3331_v55, %v2618_v17  ;;  %v3334_v2 = vadd.f32 %v3333_v30, %v3332_v59 }
 0x28e   : > { %2697 = vadd.xlane.f32.xlu1 %v2696_v48 }
 0x28f   : > { %v2678_v4 = vadd.f32 %v3334_v2, %v2621_v20  ;;  %v2685_v57 = vadd.f32 %v3525_v60, %v2675_v31 }
 0x291   : > { %v2699_v23 = vsel %vm487_vm1, %v2685_v57, 0.0  ;;  %v2686_v35 = vadd.f32 %v3526_v34, %v2678_v4 }
 0x292   : > { %2700 = vadd.xlane.f32.xlu0 %v2699_v23 }
 0x293   : > { %v2703_v47 = vsel %vm2702_vm2, %v2686_v35, 0.0 }
 0x294   : > { %2704 = vadd.xlane.f32.xlu1 %v2703_v47 }
 0x30f   : > { %v2689_v32 = vpop.xlane.xlu0 %2688 }
 0x310   : > { %v2707_v36 = vmul.f32 0.25, %v2689_v32 }
 0x312   : > { %v2713_v33 = vsub.f32 %v2681_v56, %v2707_v36 }
 0x313   : > { %v2692_v29 = vpop.xlane.xlu0 %2691 }
 0x314   : > { %v2708_v38 = vmul.f32 0.25, %v2692_v29  ;;  %v2719_v61 = vmul.f32 %v2713_v33, %v2713_v33 }
 0x316   : > { %v2714_v40 = vsub.f32 %v2682_v62, %v2708_v38  ;;  %v2725_v41 = vsel %vm487_vm1, %v2719_v61, 0.0 }
 0x317   : > { %v2695_v44 = vpop.xlane.xlu1 %2694  ;;  %2726 = vadd.xlane.f32.xlu0 %v2725_v41 }
 0x318   : > { %v2709_v37 = vmul.f32 0.25, %v2695_v44  ;;  %v2720_v46 = vmul.f32 %v2714_v40, %v2714_v40 }
 0x31a   : > { %v2715_v49 = vsub.f32 %v2683_v26, %v2709_v37  ;;  %v2728_v50 = vsel %vm487_vm1, %v2720_v46, 0.0 }
 0x31b   : > { %v2698_v43 = vpop.xlane.xlu1 %2697  ;;  %2729 = vadd.xlane.f32.xlu1 %v2728_v50 }
 0x31c   : > { %v2710_v51 = vmul.f32 0.25, %v2698_v43  ;;  %v2721_v53 = vmul.f32 %v2715_v49, %v2715_v49 }
 0x31e   : > { %v2716_v5 = vsub.f32 %v2684_v39, %v2710_v51  ;;  %v2731_v56 = vsel %vm487_vm1, %v2721_v53, 0.0 }
 0x31f   : > { %2732 = vadd.xlane.f32.xlu0 %v2731_v56  ;;  %v2701_v58 = vpop.xlane.xlu0 %2700 }
 0x320   : > { %v2711_v16 = vmul.f32 0.25, %v2701_v58  ;;  %v2722_v45 = vmul.f32 %v2716_v5, %v2716_v5 }
 0x321   : > { %v2705_v24 = vpop.xlane.xlu1 %2704 }
 0x322   : > { %v2717_v52 = vsub.f32 %v2685_v57, %v2711_v16  ;;  %v2712_v62 = vmul.f32 0.25, %v2705_v24  ;;  %v2734_v0 = vsel %vm487_vm1, %v2722_v45, 0.0 }
 0x323   : > { %2735 = vadd.xlane.f32.xlu1 %v2734_v0 }
 0x324   : > { %v2718_v25 = vsub.f32 %v2686_v35, %v2712_v62  ;;  %v2723_v54 = vmul.f32 %v2717_v52, %v2717_v52 }
 0x326   : > { %v2737_v3 = vsel %vm487_vm1, %v2723_v54, 0.0  ;;  %v2724_v15 = vmul.f32 %v2718_v25, %v2718_v25 }
 0x327   : > { %2738 = vadd.xlane.f32.xlu0 %v2737_v3 }
 0x328   : > { %v2740_v1 = vsel %vm2702_vm2, %v2724_v15, 0.0 }
 0x329   : > { %2741 = vadd.xlane.f32.xlu1 %v2740_v1 }
 0x3a4   : > { %v2727_v63 = vpop.xlane.xlu0 %2726 }
 0x3a5   : > { %v2743_v22 = vmul.f32 0.25, %v2727_v63 }
 0x3a7   : > { %v2749_v10 = vadd.f32 1e-05, %v2743_v22 }
 0x3a8   : > { %v2730_v7 = vpop.xlane.xlu1 %2729 }
 0x3a9   : > { %3509 = vrsqrt.f32 %v2749_v10  ;;  %v2744_v8 = vmul.f32 0.25, %v2730_v7 }
 0x3ab   : > { %v2750_v21 = vadd.f32 1e-05, %v2744_v8 }
 0x3ac   : > { %v2733_v9 = vpop.xlane.xlu0 %2732 }
 0x3ad   : > { %3511 = vrsqrt.f32 %v2750_v21  ;;  %v2745_v6 = vmul.f32 0.25, %v2733_v9 }
 0x3af   : > { %v2751_v26 = vadd.f32 1e-05, %v2745_v6 }
 0x3b0   : > { %v2736_v13 = vpop.xlane.xlu1 %2735 }
 0x3b1   : > { %3513 = vrsqrt.f32 %v2751_v26  ;;  %v2746_v28 = vmul.f32 0.25, %v2736_v13 }
 0x3b3   : > { %v3510_v11 = vpop.eup %3509  ;;  %v2752_v19 = vadd.f32 1e-05, %v2746_v28 }
 0x3b4   : > { %v2761_v42 = vmul.f32 %v3510_v11, %v2713_v33  ;;  %v2739_v39 = vpop.xlane.xlu0 %2738 }
 0x3b5   : > { %3515 = vrsqrt.f32 %v2752_v19  ;;  %v2747_v14 = vmul.f32 0.25, %v2739_v39 }
 0x3b6   : > { %v2774_v17 = vmul.f32 %v3059_v12, %v2761_v42  ;;  %v2742_v18 = vpop.xlane.xlu1 %2741 }
 0x3b7   : > { %v3512_v55 = vpop.eup %3511  ;;  %v2753_v59 = vadd.f32 1e-05, %v2747_v14  ;;  %v2748_v30 = vmul.f32 0.25, %v2742_v18 }
 0x3b8   : > { %v2787_v20 = vadd.f32 %v3060_v27, %v2774_v17  ;;  %v2762_v31 = vmul.f32 %v3512_v55, %v2714_v40 }
 0x3b9   : > { %3517 = vrsqrt.f32 %v2753_v59  ;;  %v2754_v2 = vadd.f32 1e-05, %v2748_v30 }
 0x3ba   : > { %2793 = vst.msk [vmem:[%s4578_s14] sm:$0xff] %vm487_vm1, %v2787_v20  ;;  %v2775_v48 = vmul.f32 %v3059_v12, %v2762_v31 }
 0x3bb   : > { %v3514_v4 = vpop.eup %3513  ;;  %3519 = vrsqrt.f32 %v2754_v2 }
 0x3bc   : > { %v2788_v60 = vadd.f32 %v3060_v27, %v2775_v48  ;;  %v2763_v57 = vmul.f32 %v3514_v4, %v2715_v49 }
 0x3be   : > { %2794 = vst.msk [vmem:[%s4578_s14 + $0x8] sm:$0xff] %vm487_vm1, %v2788_v60  ;;  %v2776_v23 = vmul.f32 %v3059_v12, %v2763_v57 }
 0x3bf   : > { %v3516_v34 = vpop.eup %3515 }
 0x3c0   : > { %v2789_v35 = vadd.f32 %v3060_v27, %v2776_v23  ;;  %v2764_v47 = vmul.f32 %v3516_v34, %v2716_v5 }
 0x3c2   : > { %2795 = vst.msk [vmem:[%s4578_s14 + $0x10] sm:$0xff] %vm487_vm1, %v2789_v35  ;;  %v2777_v32 = vmul.f32 %v3059_v12, %v2764_v47 }
 0x3c3   : > { %v3518_v36 = vpop.eup %3517 }
 0x3c4   : > { %v2790_v33 = vadd.f32 %v3060_v27, %v2777_v32  ;;  %v2765_v29 = vmul.f32 %v3518_v36, %v2717_v52 }
 0x3c5   : > { %v3520_v38 = vpop.eup %3519 }
 0x3c6   : > { %2796 = vst.msk [vmem:[%s4578_s14 + $0x18] sm:$0xff] %vm487_vm1, %v2790_v33  ;;  %v2778_v61 = vmul.f32 %v3059_v12, %v2765_v29  ;;  %v2766_v40 = vmul.f32 %v3520_v38, %v2718_v25 }
 0x3c8   : > { %v2791_v41 = vadd.f32 %v3060_v27, %v2778_v61  ;;  %v2779_v44 = vmul.f32 %v3059_v12, %v2766_v40 }
 0x3ca   : > { %2797 = vst.msk [vmem:[%s4578_s14 + $0x20] sm:$0xff] %vm487_vm1, %v2791_v41  ;;  %v2792_v37 = vadd.f32 %v3060_v27, %v2779_v44 }
 0x3cc   : > { %2798 = vst.msk [vmem:[%s4578_s14 + $0x28] sm:$0x1] %vm2702_vm2, %v2792_v37 }
 0x3cd PF: > { %s19_s24 = sadd.s32 1, %s3625_s24  }
 0x3ce   : > { %p16_p3 = scmp.ge.s32.totalorder %s19_s24, 4  }
 0x3d0   :  { %18 = sbr.rel (!%p16_p3) target bundleno = 2 (0x2), region = 91 }
 0x3d7   :  { %2820 = vsyncpa [#allocation3], 1 }
 0x3d8   :  { %2822 = vsyncpa [#allocation3 + $0x1], 1 }
 0x3d9   :  { %2823 = vsyncpa [#allocation5], 1 }

// kernel: graph_cnn_forward.21
= control target key start
LH: loop header
LB: loop body
LE: loop exit
PB: predicated region body
PF: predicated region fallthrough
CT: control target
= control target key end

     0   :  { %v3556_v5 = vmov 1983009808   ;;  %v56_v7 = vlaneseq  ;;  %vm3558_vm0 = vmmov 0   ;;  %vm2468_vm1 = vcmask 1043456   ;;  %s4463_s2 = inlined_call_operand.vmem [shape: bf16[3200,128], index: 2, kind: input, shape index: {}]   ;;  %s4464_s0 = inlined_call_operand.vmem [shape: f32[2,3200], index: 0, kind: input, shape index: {}]   ;;  %s4465_s3 = inlined_call_operand.vmem [shape: f32[1,128], index: 3, kind: input, shape index: {}]   ;;  %s4466_s9 = inlined_call_operand.vmem [shape: f32[164,4], index: 9, kind: input, shape index: {}]   ;;  %s4467_s4 = inlined_call_operand.vmem [shape: f32[128,4], index: 4, kind: input, shape index: {}]   ;;  %s4468_s1 = inlined_call_operand.vmem [shape: f32[2,164], index: 1, kind: input, shape index: {}]   ;;  %s4469_s7 = inlined_call_operand.vmem [shape: f32[4,1], index: 7, kind: input, shape index: {}]   ;;  %s4470_s6 = inlined_call_operand.vmem [shape: f32[4,1], index: 6, kind: input, shape index: {}]   ;;  %s4471_s8 = inlined_call_operand.<no memory space> [shape: f32[1,1], index: 8, kind: input, shape index: {}]   ;;  %s4472_s5 = inlined_call_operand.vmem [shape: f32[1,4], index: 5, kind: input, shape index: {}]   ;;  %s4473_s10 = inlined_call_operand.vmem [shape: f32[2,1], index: 10, kind: output, shape index: {}]  }
   0x1   :  { %v3346_v0 = vld [vmem:[%s4463_s2 + $0x40] sm:$0xff]   ;;  %v3348_v2 = vld [vmem:[%s4463_s2 + $0x48] sm:$0xff]   ;;  %v3350_v4 = vld [vmem:[%s4463_s2 + $0x50] sm:$0xff]   ;;  %v54_v6 = vunpack.c.l.s4 %v3556_v5  ;;  %vm2465_vm2 = vcmask 293888   ;;  %vm2544_vm3 = vcmask 31744   ;;  %vm2711_vm4 = vcmask 1024  }
   0x2   :  { %v3347_v1 = vld [vmem:[%s4463_s2] sm:$0xff]   ;;  %2929 = vmatprep.subr.bf16.mxu1 %v3346_v0  ;;  %v3349_v3 = vld [vmem:[%s4463_s2 + $0x8] sm:$0xff]   ;;  %v3351_v8 = vld [vmem:[%s4463_s2 + $0x10] sm:$0xff]   ;;  %v57_v11 = vshrl.u32 %v56_v7, 7 }
   0x3   :  { %2930 = vmatpush3.bf16.msra.mxu1 %v3347_v1  ;;  %v3352_v9 = vld [vmem:[%s4463_s2 + $0x58] sm:$0xff]   ;;  %v55_v10 = vunpack.c.0.s8 %v54_v6  ;;  %v3354_v13 = vld [vmem:[%s4463_s2 + $0x60] sm:$0xff]   ;;  %v3356_v16 = vld [vmem:[%s4463_s2 + $0x68] sm:$0xff]  }
   0x4   :  { %2931 = vmatprep.subr.bf16.mxu1 %v3348_v2  ;;  %v3353_v12 = vld [vmem:[%s4463_s2 + $0x18] sm:$0xff]   ;;  %v3355_v15 = vld [vmem:[%s4463_s2 + $0x20] sm:$0xff]   ;;  %v3357_v18 = vld [vmem:[%s4463_s2 + $0x28] sm:$0xff]  }
   0x5   :  { %v3642_v14 = vsub.s32 %v55_v10, %v57_v11  ;;  %v38_v17 = vld [vmem:[%s4464_s0] sm:$0xff]  ;;  %v3358_v20 = vld [vmem:[%s4463_s2 + $0x70] sm:$0xff]   ;;  %v3360_v27 = vld [vmem:[%s4463_s2 + $0x78] sm:$0xff]  }
   0x6   :  { %v52_v21 = vcombine.high %v38_v17, %v38_v17  ;;  %v3365_v23 = vld [vmem:[%s4463_s2 + $0x140] sm:$0xff]   ;;  %v3359_v25 = vld [vmem:[%s4463_s2 + $0x30] sm:$0xff]   ;;  %v3369_v28 = vld [vmem:[%s4463_s2 + $0x148] sm:$0xff]  }
   0x7   :  { %2932 = vmatpush3.bf16.msra.mxu1 %v3349_v3  ;;  %v59_v19 = vrot.slane %v38_v17, %v3642_v14  ;;  %v3366_v24 = vld [vmem:[%s4463_s2 + $0x100] sm:$0xff]   ;;  %2973 = vmatprep.subr.bf16.mxu0 %v3365_v23  ;;  %v3370_v30 = vld [vmem:[%s4463_s2 + $0x108] sm:$0xff]   ;;  %v3361_v31 = vld [vmem:[%s4463_s2 + $0x38] sm:$0xff]  }
   0x8   :  { %2933 = vmatprep.subr.bf16.mxu1 %v3350_v4  ;;  %2974 = vmatpush3.bf16.msra.mxu0 %v3366_v24  ;;  %v3676_v29 = vrot.slane %v52_v21, %v3642_v14  ;;  %v3363_v32 = vld [vmem:[%s4463_s2 + $0xc0] sm:$0xff]   ;;  %v3373_v33 = vld [vmem:[%s4463_s2 + $0x150] sm:$0xff]   ;;  %v3367_v38 = vld [vmem:[%s4463_s2 + $0xc8] sm:$0xff]  }
   0x9   :  { %v67_v22 = vcombine.high %v59_v19, %v59_v19  ;;  %2975 = vmatprep.subr.bf16.mxu0 %v3369_v28  ;;  %v3374_v35 = vld [vmem:[%s4463_s2 + $0x110] sm:$0xff]   ;;  %v3364_v36 = vld [vmem:[%s4463_s2 + $0x80] sm:$0xff]   ;;  %v186_v37 = vpack.c.bf16 %v59_v19, %v59_v19  ;;  %v3377_v39 = vld [vmem:[%s4463_s2 + $0x158] sm:$0xff]  }
   0xa   :  { %v68_v34 = vcombine.high %v3676_v29, %v3676_v29  ;;  %v3378_v41 = vld [vmem:[%s4463_s2 + $0x118] sm:$0xff]   ;;  %v3368_v42 = vld [vmem:[%s4463_s2 + $0x88] sm:$0xff]   ;;  %v3371_v43 = vld [vmem:[%s4463_s2 + $0xd0] sm:$0xff]  }
   0xb   :  { %2934 = vmatpush3.bf16.msra.mxu1 %v3351_v8  ;;  %v187_v26 = vpack.c.bf16 %v67_v22, %v67_v22  ;;  %v3381_v44 = vld [vmem:[%s4463_s2 + $0x160] sm:$0xff]   ;;  %v3372_v46 = vld [vmem:[%s4463_s2 + $0x90] sm:$0xff]   ;;  %v3375_v47 = vld [vmem:[%s4463_s2 + $0xd8] sm:$0xff]  }
   0xc   :  { %2935 = vmatprep.subr.bf16.mxu1 %v3352_v9  ;;  %2976 = vmatpush3.bf16.msra.mxu0 %v3370_v30  ;;  %v189_v40 = vpack.c.bf16 %v68_v34, %v68_v34  ;;  %v3382_v45 = vld [vmem:[%s4463_s2 + $0x120] sm:$0xff]   ;;  %v3385_v48 = vld [vmem:[%s4463_s2 + $0x168] sm:$0xff]   ;;  %v3376_v50 = vld [vmem:[%s4463_s2 + $0x98] sm:$0xff]  }
   0xd   :  { %1850 = vmatprep.mubr.bf16.mxu1 %v187_v26  ;;  %2977 = vmatprep.subr.bf16.mxu0 %v3373_v33  ;;  %v3386_v49 = vld [vmem:[%s4463_s2 + $0x128] sm:$0xff]   ;;  %v3379_v51 = vld [vmem:[%s4463_s2 + $0xe0] sm:$0xff]   ;;  %v3389_v52 = vld [vmem:[%s4463_s2 + $0x170] sm:$0xff]  }
   0xe   :  { %v3390_v53 = vld [vmem:[%s4463_s2 + $0x130] sm:$0xff]   ;;  %v3380_v54 = vld [vmem:[%s4463_s2 + $0xa0] sm:$0xff]   ;;  %v3383_v55 = vld [vmem:[%s4463_s2 + $0xe8] sm:$0xff]  }
   0xf   :  { %2936 = vmatpush3.bf16.msra.mxu1 %v3353_v12  ;;  %v3393_v56 = vld [vmem:[%s4463_s2 + $0x178] sm:$0xff]   ;;  %v39_v58 = vld [vmem:[%s4464_s0 + $0x8] sm:$0xff]  ;;  %v3398_v61 = vld [vmem:[%s4463_s2 + $0x240] sm:$0xff]  }
  0x10   :  { %2937 = vmatprep.subr.bf16.mxu1 %v3354_v13  ;;  %2978 = vmatpush3.bf16.msra.mxu0 %v3374_v35  ;;  %v3394_v57 = vld [vmem:[%s4463_s2 + $0x138] sm:$0xff]   ;;  %v3384_v59 = vld [vmem:[%s4463_s2 + $0xa8] sm:$0xff]   ;;  %v76_v60 = vrot.slane %v39_v58, %v3642_v14  ;;  %v3387_v62 = vld [vmem:[%s4463_s2 + $0xf0] sm:$0xff]   ;;  %v69_v63 = vcombine.high %v39_v58, %v39_v58 }
  0x11   :  { %2979 = vmatprep.subr.bf16.mxu0 %v3377_v39  ;;  %v3388_v1 = vld [vmem:[%s4463_s2 + $0xb0] sm:$0xff]   ;;  %v3399_v4 = vld [vmem:[%s4463_s2 + $0x200] sm:$0xff]   ;;  %v3402_v5 = vld [vmem:[%s4463_s2 + $0x248] sm:$0xff]  }
  0x12   :  { %v84_v0 = vcombine.high %v76_v60, %v76_v60  ;;  %v190_v2 = vpack.c.bf16 %v76_v60, %v76_v60  ;;  %v3391_v6 = vld [vmem:[%s4463_s2 + $0xf8] sm:$0xff]   ;;  %v3781_v7 = vrot.slane %v69_v63, %v3642_v14  ;;  %v3403_v9 = vld [vmem:[%s4463_s2 + $0x208] sm:$0xff]   ;;  %v3406_v10 = vld [vmem:[%s4463_s2 + $0x250] sm:$0xff]  }
  0x13   :  { %2938 = vmatpush3.bf16.msra.mxu1 %v3355_v15  ;;  %v3392_v8 = vld [vmem:[%s4463_s2 + $0xb8] sm:$0xff]   ;;  %v3395_v11 = vld [vmem:[%s4463_s2 + $0x1c0] sm:$0xff]   ;;  %v188_v15 = vpack.c.bf16 %v3676_v29, %v3676_v29  ;;  %v3404_v23 = vld [vmem:[%s4463_s2 + $0x1d0] sm:$0xff]  }
  0x14   :  { %2939 = vmatprep.subr.bf16.mxu1 %v3356_v16  ;;  %2980 = vmatpush3.bf16.msra.mxu0 %v3378_v41  ;;  %v191_v3 = vpack.c.bf16 %v84_v0, %v84_v0  ;;  %v85_v12 = vcombine.high %v3781_v7, %v3781_v7  ;;  %v3397_v13 = vld [vmem:[%s4463_s2 + $0x180] sm:$0xff]   ;;  %v3407_v16 = vld [vmem:[%s4463_s2 + $0x210] sm:$0xff]   ;;  %v3410_v17 = vld [vmem:[%s4463_s2 + $0x258] sm:$0xff]  }
  0x15   :  { %2981 = vmatprep.subr.bf16.mxu0 %v3381_v44  ;;  %v3411_v21 = vld [vmem:[%s4463_s2 + $0x218] sm:$0xff]   ;;  %v3414_v22 = vld [vmem:[%s4463_s2 + $0x260] sm:$0xff]   ;;  %v3405_v24 = vld [vmem:[%s4463_s2 + $0x190] sm:$0xff]  }
  0x16   :  { %1930 = vmatprep.mubr.bf16.mxu0 %v191_v3  ;;  %v193_v19 = vpack.c.bf16 %v85_v12, %v85_v12  ;;  %v3418_v26 = vld [vmem:[%s4463_s2 + $0x268] sm:$0xff]   ;;  %v3409_v28 = vld [vmem:[%s4463_s2 + $0x198] sm:$0xff]   ;;  %v3422_v30 = vld [vmem:[%s4463_s2 + $0x270] sm:$0xff]  }
  0x17   :  { %2940 = vmatpush3.bf16.msra.mxu1 %v3357_v18  ;;  %v3400_v18 = vld [vmem:[%s4463_s2 + $0x1c8] sm:$0xff]   ;;  %v3423_v33 = vld [vmem:[%s4463_s2 + $0x230] sm:$0xff]   ;;  %v3426_v34 = vld [vmem:[%s4463_s2 + $0x278] sm:$0xff]  }
  0x18   :  { %2941 = vmatprep.subr.bf16.mxu1 %v3358_v20  ;;  %2982 = vmatpush3.bf16.msra.mxu0 %v3382_v45  ;;  %v3401_v20 = vld [vmem:[%s4463_s2 + $0x188] sm:$0xff]   ;;  %v3420_v41 = vld [vmem:[%s4463_s2 + $0x1f0] sm:$0xff]   ;;  %v3443_v63 = vld [vmem:[%s4463_s2 + $0x318] sm:$0xff]  }
  0x19   :  { %2983 = vmatprep.subr.bf16.mxu0 %v3385_v48  ;;  %v3419_v29 = vld [vmem:[%s4463_s2 + $0x228] sm:$0xff]   ;;  %v3421_v44 = vld [vmem:[%s4463_s2 + $0x1b0] sm:$0xff]   ;;  %v3446_v0 = vld [vmem:[%s4463_s2 + $0x360] sm:$0xff]  }
  0x1a   :  { %v3416_v35 = vld [vmem:[%s4463_s2 + $0x1e8] sm:$0xff]   ;;  %v3439_v58 = vld [vmem:[%s4463_s2 + $0x310] sm:$0xff]   ;;  %v3447_v3 = vld [vmem:[%s4463_s2 + $0x320] sm:$0xff]  }
  0x1b   :  { %2942 = vmatpush3.bf16.msra.mxu1 %v3359_v25  ;;  %v3415_v25 = vld [vmem:[%s4463_s2 + $0x220] sm:$0xff]   ;;  %v3434_v48 = vld [vmem:[%s4463_s2 + $0x348] sm:$0xff]   ;;  %v3458_v12 = vld [vmem:[%s4463_s2 + $0x378] sm:$0xff]  }
  0x1c   :  { %2943 = vmatprep.subr.bf16.mxu1 %v3360_v27  ;;  %2984 = vmatpush3.bf16.msra.mxu0 %v3386_v49  ;;  %v3408_v27 = vld [vmem:[%s4463_s2 + $0x1d8] sm:$0xff]   ;;  %v3432_v60 = vld [vmem:[%s4463_s2 + $0x2c8] sm:$0xff]  }
  0x1d   :  { %2985 = vmatprep.subr.bf16.mxu0 %v3389_v52  ;;  %v3424_v49 = vld [vmem:[%s4463_s2 + $0x1f8] sm:$0xff]   ;;  %v3435_v52 = vld [vmem:[%s4463_s2 + $0x308] sm:$0xff]  }
  0x1f   :  { %2944 = vmatpush3.bf16.msra.mxu1 %v3361_v31  ;;  %v3412_v31 = vld [vmem:[%s4463_s2 + $0x1e0] sm:$0xff]  }
  0x20   :  { %2951 = vmatprep.subr.bf16.mxu1 %v3363_v32  ;;  %2986 = vmatpush3.bf16.msra.mxu0 %v3390_v53  ;;  %v3413_v32 = vld [vmem:[%s4463_s2 + $0x1a0] sm:$0xff]   ;;  %v3438_v53 = vld [vmem:[%s4463_s2 + $0x350] sm:$0xff]  }
  0x21   :  { %2987 = vmatprep.subr.bf16.mxu0 %v3393_v56  ;;  %v3429_v56 = vld [vmem:[%s4463_s2 + $0x280] sm:$0xff]  }
  0x22   :  { %1851 = vmatmul.mubr.bf16.vlgmr.msra.gmra.mrb[0].mxu1 %v186_v37  ;;  %v40_v37 = vld [vmem:[%s4464_s0 + $0x10] sm:$0xff] }
  0x23   :  { %2952 = vmatpush3.bf16.msra.mxu1 %v3364_v36  ;;  %1890 = vmatprep.mubr.bf16.mxu1 %v189_v40  ;;  %v3417_v36 = vld [vmem:[%s4463_s2 + $0x1a8] sm:$0xff]   ;;  %v93_v39 = vrot.slane %v40_v37, %v3642_v14  ;;  %v3430_v40 = vld [vmem:[%s4463_s2 + $0x340] sm:$0xff]  }
  0x24   :  { %2953 = vmatprep.subr.bf16.mxu1 %v3367_v38  ;;  %2988 = vmatpush3.bf16.msra.mxu0 %v3394_v57  ;;  %v3427_v38 = vld [vmem:[%s4463_s2 + $0x238] sm:$0xff]   ;;  %v192_v57 = vpack.c.bf16 %v3781_v7, %v3781_v7  ;;  %v3451_v7 = vld [vmem:[%s4463_s2 + $0x328] sm:$0xff]  }
  0x25   :  { %3017 = vmatprep.subr.bf16.mxu0 %v3398_v61  ;;  %v194_v45 = vpack.c.bf16 %v93_v39, %v93_v39 }
  0x27   :  { %2954 = vmatpush3.bf16.msra.mxu1 %v3368_v42  ;;  %1931 = vmatmul.mubr.bf16.vlgmr.msra.gmra.mrb[0].mxu0 %v190_v2  ;;  %v101_v42 = vcombine.high %v93_v39, %v93_v39  ;;  %v3437_v2 = vld [vmem:[%s4463_s2 + $0x290] sm:$0xff]   ;;  %v3475_v39 = vld [vmem:[%s4463_s2 + $0x458] sm:$0xff]  }
  0x28   :  { %2955 = vmatprep.subr.bf16.mxu1 %v3371_v43  ;;  %3018 = vmatpush3.bf16.msra.mxu0 %v3399_v4  ;;  %v86_v43 = vcombine.high %v40_v37, %v40_v37  ;;  %v3450_v4 = vld [vmem:[%s4463_s2 + $0x368] sm:$0xff]  }
  0x29   :  { %3019 = vmatprep.subr.bf16.mxu0 %v3402_v5  ;;  %v3440_v5 = vld [vmem:[%s4463_s2 + $0x2d8] sm:$0xff]   ;;  %v3465_v37 = vld [vmem:[%s4463_s2 + $0x3c8] sm:$0xff]  }
  0x2b   :  { %2956 = vmatpush3.bf16.msra.mxu1 %v3372_v46  ;;  %v195_v46 = vpack.c.bf16 %v101_v42, %v101_v42  ;;  %v3469_v42 = vld [vmem:[%s4463_s2 + $0x3d0] sm:$0xff]  }
  0x2c   :  { %2957 = vmatprep.subr.bf16.mxu1 %v3375_v47  ;;  %3020 = vmatpush3.bf16.msra.mxu0 %v3403_v9  ;;  %v3431_v47 = vld [vmem:[%s4463_s2 + $0x300] sm:$0xff]  }
  0x2d   :  { %3021 = vmatprep.subr.bf16.mxu0 %v3406_v10  ;;  %2010 = vmatprep.mubr.bf16.mxu0 %v195_v46  ;;  %v3444_v9 = vld [vmem:[%s4463_s2 + $0x2e0] sm:$0xff]   ;;  %v3473_v46 = vld [vmem:[%s4463_s2 + $0x3d8] sm:$0xff]  }
  0x2e   :  { %v3445_v10 = vld [vmem:[%s4463_s2 + $0x2a0] sm:$0xff]  }
  0x2f   :  { %2958 = vmatpush3.bf16.msra.mxu1 %v3376_v50  ;;  %v3888_v50 = vrot.slane %v86_v43, %v3642_v14  ;;  %v3476_v43 = vld [vmem:[%s4463_s2 + $0x418] sm:$0xff]  }
  0x30   :  { %2959 = vmatprep.subr.bf16.mxu1 %v3379_v51  ;;  %3022 = vmatpush3.bf16.msra.mxu0 %v3407_v16  ;;  %v3425_v51 = vld [vmem:[%s4463_s2 + $0x1b8] sm:$0xff]  }
  0x31   :  { %3023 = vmatprep.subr.bf16.mxu0 %v3410_v17  ;;  %v3460_v16 = vld [vmem:[%s4463_s2 + $0x338] sm:$0xff]  }
  0x32   :  { %v41_v17 = vld [vmem:[%s4464_s0 + $0x18] sm:$0xff] }
  0x33   :  { %2960 = vmatpush3.bf16.msra.mxu1 %v3380_v54  ;;  %v3428_v54 = vld [vmem:[%s4463_s2 + $0x2c0] sm:$0xff]  }
  0x34   :  { %2961 = vmatprep.subr.bf16.mxu1 %v3383_v55  ;;  %3024 = vmatpush3.bf16.msra.mxu0 %v3411_v21  ;;  %v102_v55 = vcombine.high %v3888_v50, %v3888_v50  ;;  %v3453_v21 = vld [vmem:[%s4463_s2 + $0x2b0] sm:$0xff]  }
  0x35   :  { %3025 = vmatprep.subr.bf16.mxu0 %v3414_v22 }
  0x36   :  { %v197_v61 = vpack.c.bf16 %v102_v55, %v102_v55  ;;  %v3488_v55 = vld [vmem:[%s4463_s2 + $0x430] sm:$0xff]  }
  0x37   :  { %2962 = vmatpush3.bf16.msra.mxu1 %v3384_v59  ;;  %v3442_v59 = vld [vmem:[%s4463_s2 + $0x358] sm:$0xff]  }
  0x38   :  { %2963 = vmatprep.subr.bf16.mxu1 %v3387_v62  ;;  %3026 = vmatpush3.bf16.msra.mxu0 %v3415_v25  ;;  %v3433_v62 = vld [vmem:[%s4463_s2 + $0x288] sm:$0xff]  }
  0x39   :  { %3027 = vmatprep.subr.bf16.mxu0 %v3418_v26 }
  0x3b   :  { %2964 = vmatpush3.bf16.msra.mxu1 %v3388_v1  ;;  %v3436_v1 = vld [vmem:[%s4463_s2 + $0x2d0] sm:$0xff]  }
  0x3c   :  { %2965 = vmatprep.subr.bf16.mxu1 %v3391_v6  ;;  %3028 = vmatpush3.bf16.msra.mxu0 %v3419_v29  ;;  %v3441_v6 = vld [vmem:[%s4463_s2 + $0x298] sm:$0xff]  }
  0x3d   :  { %3029 = vmatprep.subr.bf16.mxu0 %v3422_v30  ;;  %v3457_v29 = vld [vmem:[%s4463_s2 + $0x2b8] sm:$0xff]  }
  0x3f   :  { %2966 = vmatpush3.bf16.msra.mxu1 %v3392_v8  ;;  %v3454_v8 = vld [vmem:[%s4463_s2 + $0x370] sm:$0xff]  }
  0x40   :  { %2995 = vmatprep.subr.bf16.mxu1 %v3395_v11  ;;  %3030 = vmatpush3.bf16.msra.mxu0 %v3423_v33  ;;  %v3455_v11 = vld [vmem:[%s4463_s2 + $0x330] sm:$0xff]  }
  0x41   :  { %3031 = vmatprep.subr.bf16.mxu0 %v3426_v34  ;;  %v3471_v33 = vld [vmem:[%s4463_s2 + $0x450] sm:$0xff]   ;;  %v3462_v34 = vld [vmem:[%s4463_s2 + $0x380] sm:$0xff]  }
  0x42   :  { %1891 = vmatmul.mubr.bf16.vlgmr.msra.gmra.mrb[4].mxu1 %v188_v15  ;;  %v3449_v15 = vld [vmem:[%s4463_s2 + $0x2a8] sm:$0xff]  }
  0x43   :  { %2996 = vmatpush3.bf16.msra.mxu1 %v3397_v13  ;;  %1970 = vmatprep.mubr.bf16.mxu1 %v193_v19  ;;  %v3448_v13 = vld [vmem:[%s4463_s2 + $0x2e8] sm:$0xff]   ;;  %v110_v19 = vrot.slane %v41_v17, %v3642_v14 }
  0x44   :  { %2997 = vmatprep.subr.bf16.mxu1 %v3400_v18  ;;  %3032 = vmatpush3.bf16.msra.mxu0 %v3427_v38  ;;  %v3452_v18 = vld [vmem:[%s4463_s2 + $0x2f0] sm:$0xff]  }
  0x45   :  { %3061 = vmatprep.subr.bf16.mxu0 %v3430_v40  ;;  %v118_v22 = vcombine.high %v110_v19, %v110_v19  ;;  %v198_v25 = vpack.c.bf16 %v110_v19, %v110_v19  ;;  %v3472_v38 = vld [vmem:[%s4463_s2 + $0x410] sm:$0xff]   ;;  %v3466_v40 = vld [vmem:[%s4463_s2 + $0x388] sm:$0xff]  }
  0x46   :  { %v3499_v19 = vld [vmem:[%s4463_s2 + $0x488] sm:$0xff]  }
  0x47   :  { %2998 = vmatpush3.bf16.msra.mxu1 %v3401_v20  ;;  %2011 = vmatmul.mubr.bf16.vlgmr.msra.gmra.mrb[4].mxu0 %v194_v45  ;;  %v3463_v20 = vld [vmem:[%s4463_s2 + $0x440] sm:$0xff]   ;;  %v199_v26 = vpack.c.bf16 %v118_v22, %v118_v22  ;;  %v3470_v45 = vld [vmem:[%s4463_s2 + $0x390] sm:$0xff]   ;;  %v3509_v22 = vld [vmem:[%s4463_s2 + $0x518] sm:$0xff]  }
  0x48   :  { %2999 = vmatprep.subr.bf16.mxu1 %v3404_v23  ;;  %3062 = vmatpush3.bf16.msra.mxu0 %v3431_v47  ;;  %v103_v23 = vcombine.high %v41_v17, %v41_v17  ;;  %v3480_v47 = vld [vmem:[%s4463_s2 + $0x420] sm:$0xff]   ;;  %v3505_v17 = vld [vmem:[%s4463_s2 + $0x510] sm:$0xff]  }
  0x49   :  { %3063 = vmatprep.subr.bf16.mxu0 %v3434_v48  ;;  %2090 = vmatprep.mubr.bf16.mxu0 %v199_v26  ;;  %v3483_v48 = vld [vmem:[%s4463_s2 + $0x468] sm:$0xff]   ;;  %v3513_v26 = vld [vmem:[%s4463_s2 + $0x520] sm:$0xff]  }
  0x4a   :  { %v3998_v30 = vrot.slane %v103_v23, %v3642_v14  ;;  %v3512_v23 = vld [vmem:[%s4463_s2 + $0x560] sm:$0xff]  }
  0x4b   :  { %3000 = vmatpush3.bf16.msra.mxu1 %v3405_v24  ;;  %v3456_v24 = vld [vmem:[%s4463_s2 + $0x2f8] sm:$0xff]  }
  0x4c   :  { %3001 = vmatprep.subr.bf16.mxu1 %v3408_v27  ;;  %3064 = vmatpush3.bf16.msra.mxu0 %v3435_v52  ;;  %v3464_v27 = vld [vmem:[%s4463_s2 + $0x400] sm:$0xff]   ;;  %v3487_v52 = vld [vmem:[%s4463_s2 + $0x470] sm:$0xff]  }
  0x4d   :  { %3065 = vmatprep.subr.bf16.mxu0 %v3438_v53  ;;  %v3478_v53 = vld [vmem:[%s4463_s2 + $0x3a0] sm:$0xff]  }
  0x4f   :  { %3002 = vmatpush3.bf16.msra.mxu1 %v3409_v28  ;;  %v3467_v28 = vld [vmem:[%s4463_s2 + $0x448] sm:$0xff]  }
  0x50   :  { %3003 = vmatprep.subr.bf16.mxu1 %v3412_v31  ;;  %3066 = vmatpush3.bf16.msra.mxu0 %v3439_v58  ;;  %v3461_v31 = vld [vmem:[%s4463_s2 + $0x3c0] sm:$0xff]   ;;  %v3485_v58 = vld [vmem:[%s4463_s2 + $0x3f0] sm:$0xff]  }
  0x51   :  { %3067 = vmatprep.subr.bf16.mxu0 %v3442_v59  ;;  %v42_v59 = vld [vmem:[%s4464_s0 + $0x20] sm:$0xff] }
  0x53   :  { %3004 = vmatpush3.bf16.msra.mxu1 %v3413_v32  ;;  %v3468_v32 = vld [vmem:[%s4463_s2 + $0x408] sm:$0xff]  }
  0x54   :  { %3005 = vmatprep.subr.bf16.mxu1 %v3416_v35  ;;  %3068 = vmatpush3.bf16.msra.mxu0 %v3443_v63  ;;  %v119_v35 = vcombine.high %v3998_v30, %v3998_v30  ;;  %v3486_v63 = vld [vmem:[%s4463_s2 + $0x3b0] sm:$0xff]  }
  0x55   :  { %3069 = vmatprep.subr.bf16.mxu0 %v3446_v0 }
  0x57   :  { %3006 = vmatpush3.bf16.msra.mxu1 %v3417_v36  ;;  %v196_v36 = vpack.c.bf16 %v3888_v50, %v3888_v50  ;;  %v3477_v50 = vld [vmem:[%s4463_s2 + $0x3e0] sm:$0xff]  }
  0x58   :  { %3007 = vmatprep.subr.bf16.mxu1 %v3420_v41  ;;  %3070 = vmatpush3.bf16.msra.mxu0 %v3447_v3  ;;  %v201_v41 = vpack.c.bf16 %v119_v35, %v119_v35  ;;  %v3524_v35 = vld [vmem:[%s4463_s2 + $0x578] sm:$0xff]  }
  0x59   :  { %3071 = vmatprep.subr.bf16.mxu0 %v3450_v4 }
  0x5b   :  { %3008 = vmatpush3.bf16.msra.mxu1 %v3421_v44  ;;  %v3479_v44 = vld [vmem:[%s4463_s2 + $0x460] sm:$0xff]  }
  0x5c   :  { %3009 = vmatprep.subr.bf16.mxu1 %v3424_v49  ;;  %3072 = vmatpush3.bf16.msra.mxu0 %v3451_v7  ;;  %v3474_v49 = vld [vmem:[%s4463_s2 + $0x398] sm:$0xff]  }
  0x5d   :  { %3073 = vmatprep.subr.bf16.mxu0 %v3454_v8  ;;  %v3490_v7 = vld [vmem:[%s4463_s2 + $0x3b8] sm:$0xff]  }
  0x5f   :  { %3010 = vmatpush3.bf16.msra.mxu1 %v3425_v51  ;;  %v3484_v51 = vld [vmem:[%s4463_s2 + $0x428] sm:$0xff]  }
  0x60   :  { %3039 = vmatprep.subr.bf16.mxu1 %v3428_v54  ;;  %3074 = vmatpush3.bf16.msra.mxu0 %v3455_v11  ;;  %v3481_v54 = vld [vmem:[%s4463_s2 + $0x3e8] sm:$0xff]   ;;  %v3504_v11 = vld [vmem:[%s4463_s2 + $0x550] sm:$0xff]  }
  0x61   :  { %3075 = vmatprep.subr.bf16.mxu0 %v3458_v12  ;;  %v3495_v12 = vld [vmem:[%s4463_s2 + $0x480] sm:$0xff]  }
  0x62   :  { %1971 = vmatmul.mubr.bf16.vlgmr.msra.gmra.mrb[8].mxu1 %v192_v57  ;;  %v3482_v57 = vld [vmem:[%s4463_s2 + $0x3a8] sm:$0xff]  }
  0x63   :  { %3040 = vmatpush3.bf16.msra.mxu1 %v3429_v56  ;;  %2050 = vmatprep.mubr.bf16.mxu1 %v197_v61  ;;  %v3491_v56 = vld [vmem:[%s4463_s2 + $0x478] sm:$0xff]   ;;  %v127_v61 = vrot.slane %v42_v59, %v3642_v14 }
  0x64   :  { %3041 = vmatprep.subr.bf16.mxu1 %v3432_v60  ;;  %3076 = vmatpush3.bf16.msra.mxu0 %v3460_v16  ;;  %v3493_v60 = vld [vmem:[%s4463_s2 + $0x438] sm:$0xff]   ;;  %v3498_v16 = vld [vmem:[%s4463_s2 + $0x4c8] sm:$0xff]  }
  0x65   :  { %3105 = vmatprep.subr.bf16.mxu0 %v3463_v20  ;;  %v135_v0 = vcombine.high %v127_v61, %v127_v61  ;;  %v202_v3 = vpack.c.bf16 %v127_v61, %v127_v61  ;;  %v3534_v61 = vld [vmem:[%s4463_s2 + $0x590] sm:$0xff]  }
  0x67   :  { %3042 = vmatpush3.bf16.msra.mxu1 %v3433_v62  ;;  %2091 = vmatmul.mubr.bf16.vlgmr.msra.gmra.mrb[8].mxu0 %v198_v25  ;;  %v3496_v62 = vld [vmem:[%s4463_s2 + $0x540] sm:$0xff]   ;;  %v203_v4 = vpack.c.bf16 %v135_v0, %v135_v0  ;;  %v3506_v25 = vld [vmem:[%s4463_s2 + $0x4d8] sm:$0xff]  }
  0x68   :  { %3043 = vmatprep.subr.bf16.mxu1 %v3436_v1  ;;  %3106 = vmatpush3.bf16.msra.mxu0 %v3464_v27  ;;  %v120_v1 = vcombine.high %v42_v59, %v42_v59  ;;  %v3516_v27 = vld [vmem:[%s4463_s2 + $0x568] sm:$0xff]   ;;  %v3538_v59 = vld [vmem:[%s4463_s2 + $0x618] sm:$0xff]  }
  0x69   :  { %3107 = vmatprep.subr.bf16.mxu0 %v3467_v28  ;;  %2170 = vmatprep.mubr.bf16.mxu0 %v203_v4  ;;  %v3507_v28 = vld [vmem:[%s4463_s2 + $0x498] sm:$0xff]   ;;  %v3547_v4 = vld [vmem:[%s4463_s2 + $0x630] sm:$0xff]  }
  0x6a   :  { %v4105_v8 = vrot.slane %v120_v1, %v3642_v14  ;;  %v3537_v0 = vld [vmem:[%s4463_s2 + $0x598] sm:$0xff]   ;;  %v3544_v1 = vld [vmem:[%s4463_s2 + $0x628] sm:$0xff]  }
  0x6b   :  { %3044 = vmatpush3.bf16.msra.mxu1 %v3437_v2  ;;  %v3489_v2 = vld [vmem:[%s4463_s2 + $0x3f8] sm:$0xff]  }
  0x6c   :  { %3045 = vmatprep.subr.bf16.mxu1 %v3440_v5  ;;  %3108 = vmatpush3.bf16.msra.mxu0 %v3468_v32  ;;  %v3497_v5 = vld [vmem:[%s4463_s2 + $0x500] sm:$0xff]  }
  0x6d   :  { %3109 = vmatprep.subr.bf16.mxu0 %v3471_v33  ;;  %v3511_v32 = vld [vmem:[%s4463_s2 + $0x4a0] sm:$0xff]   ;;  %v3514_v33 = vld [vmem:[%s4463_s2 + $0x4e8] sm:$0xff]  }
  0x6f   :  { %3046 = vmatpush3.bf16.msra.mxu1 %v3441_v6  ;;  %v3500_v6 = vld [vmem:[%s4463_s2 + $0x548] sm:$0xff]  }
  0x70   :  { %3047 = vmatprep.subr.bf16.mxu1 %v3444_v9  ;;  %3110 = vmatpush3.bf16.msra.mxu0 %v3472_v38  ;;  %v3494_v9 = vld [vmem:[%s4463_s2 + $0x4c0] sm:$0xff]   ;;  %v3526_v38 = vld [vmem:[%s4463_s2 + $0x538] sm:$0xff]  }
  0x71   :  { %3111 = vmatprep.subr.bf16.mxu0 %v3475_v39 }
  0x73   :  { %3048 = vmatpush3.bf16.msra.mxu1 %v3445_v10  ;;  %v3501_v10 = vld [vmem:[%s4463_s2 + $0x508] sm:$0xff]  }
  0x74   :  { %3049 = vmatprep.subr.bf16.mxu1 %v3448_v13  ;;  %3112 = vmatpush3.bf16.msra.mxu0 %v3476_v43  ;;  %v136_v13 = vcombine.high %v4105_v8, %v4105_v8  ;;  %v3519_v43 = vld [vmem:[%s4463_s2 + $0x4b0] sm:$0xff]  }
  0x75   :  { %3113 = vmatprep.subr.bf16.mxu0 %v3479_v44 }
  0x76   :  { %v205_v20 = vpack.c.bf16 %v136_v13, %v136_v13  ;;  %v3549_v13 = vld [vmem:[%s4463_s2 + $0x5b8] sm:$0xff]  }
  0x77   :  { %3050 = vmatpush3.bf16.msra.mxu1 %v3449_v15  ;;  %v200_v15 = vpack.c.bf16 %v3998_v30, %v3998_v30  ;;  %v3517_v30 = vld [vmem:[%s4463_s2 + $0x528] sm:$0xff]  }
  0x78   :  { %3051 = vmatprep.subr.bf16.mxu1 %v3452_v18  ;;  %3114 = vmatpush3.bf16.msra.mxu0 %v3480_v47  ;;  %v3508_v18 = vld [vmem:[%s4463_s2 + $0x558] sm:$0xff]  }
  0x79   :  { %3115 = vmatprep.subr.bf16.mxu0 %v3483_v48  ;;  %v3522_v47 = vld [vmem:[%s4463_s2 + $0x4f8] sm:$0xff]   ;;  %v3557_v48 = vmov 0.0  }
  0x7b   :  { %3052 = vmatpush3.bf16.msra.mxu1 %v3453_v21  ;;  %v3502_v21 = vld [vmem:[%s4463_s2 + $0x4d0] sm:$0xff]  }
  0x7c   :  { %3053 = vmatprep.subr.bf16.mxu1 %v3456_v24  ;;  %3116 = vmatpush3.bf16.msra.mxu0 %v3484_v51  ;;  %v3503_v24 = vld [vmem:[%s4463_s2 + $0x490] sm:$0xff]   ;;  %v3532_v51 = vld [vmem:[%s4463_s2 + $0x608] sm:$0xff]  }
  0x7d   :  { %3117 = vmatprep.subr.bf16.mxu0 %v3487_v52  ;;  %v3527_v52 = vld [vmem:[%s4463_s2 + $0x5c0] sm:$0xff]  }
  0x7f   :  { %3054 = vmatpush3.bf16.msra.mxu1 %v3457_v29  ;;  %v3510_v29 = vld [vmem:[%s4463_s2 + $0x4e0] sm:$0xff]  }
  0x80   :  { %3083 = vmatprep.subr.bf16.mxu1 %v3461_v31  ;;  %3118 = vmatpush3.bf16.msra.mxu0 %v3488_v55  ;;  %v3520_v31 = vld [vmem:[%s4463_s2 + $0x570] sm:$0xff]  }
  0x81   :  { %3119 = vmatprep.subr.bf16.mxu0 %v3491_v56  ;;  %v3535_v55 = vld [vmem:[%s4463_s2 + $0x610] sm:$0xff]   ;;  %v3530_v56 = vld [vmem:[%s4463_s2 + $0x5c8] sm:$0xff]  }
  0x82   :  { %2051 = vmatmul.mubr.bf16.vlgmr.msra.gmra.mrb[12].mxu1 %v196_v36  ;;  %v3515_v36 = vld [vmem:[%s4463_s2 + $0x4a8] sm:$0xff]  }
  0x83   :  { %3084 = vmatpush3.bf16.msra.mxu1 %v3462_v34  ;;  %2130 = vmatprep.mubr.bf16.mxu1 %v201_v41  ;;  %v3521_v34 = vld [vmem:[%s4463_s2 + $0x530] sm:$0xff]  }
  0x84   :  { %3085 = vmatprep.subr.bf16.mxu1 %v3465_v37  ;;  %3120 = vmatpush3.bf16.msra.mxu0 %v3493_v60  ;;  %v43_v37 = vld [vmem:[%s4464_s0 + $0x28] sm:$0xff]  ;;  %v3533_v60 = vld [vmem:[%s4463_s2 + $0x5d0] sm:$0xff]  }
  0x85   :  { %3149 = vmatprep.subr.bf16.mxu0 %v3496_v62  ;;  %v144_v39 = vrot.slane %v43_v37, %v3642_v14  ;;  %v3541_v62 = vld [vmem:[%s4463_s2 + $0x620] sm:$0xff]  }
  0x87   :  { %3086 = vmatpush3.bf16.msra.mxu1 %v3466_v40  ;;  %2171 = vmatmul.mubr.bf16.vlgmr.msra.gmra.mrb[12].mxu0 %v202_v3  ;;  %v3518_v40 = vld [vmem:[%s4463_s2 + $0x4f0] sm:$0xff]   ;;  %v152_v41 = vcombine.high %v144_v39, %v144_v39  ;;  %v206_v44 = vpack.c.bf16 %v144_v39, %v144_v39  ;;  %v3540_v3 = vld [vmem:[%s4463_s2 + $0x5a0] sm:$0xff]  }
  0x88   :  { %3087 = vmatprep.subr.bf16.mxu1 %v3469_v42  ;;  %3150 = vmatpush3.bf16.msra.mxu0 %v3497_v5  ;;  %v137_v42 = vcombine.high %v43_v37, %v43_v37  ;;  %v3542_v5 = vld [vmem:[%s4463_s2 + $0x5e8] sm:$0xff]  }
  0x89   :  { %3151 = vmatprep.subr.bf16.mxu0 %v3500_v6  ;;  %v3543_v6 = vld [vmem:[%s4463_s2 + $0x5a8] sm:$0xff]  }
  0x8b   :  { %3088 = vmatpush3.bf16.msra.mxu1 %v3470_v45  ;;  %v207_v45 = vpack.c.bf16 %v152_v41, %v152_v41  ;;  %v2438_v41 = vld [vmem:[%s4466_s9 + $0x20] sm:$0xff] }
  0x8c   :  { %3089 = vmatprep.subr.bf16.mxu1 %v3473_v46  ;;  %3152 = vmatpush3.bf16.msra.mxu0 %v3501_v10  ;;  %v3529_v46 = vld [vmem:[%s4463_s2 + $0x600] sm:$0xff]  }
  0x8d   :  { %3153 = vmatprep.subr.bf16.mxu0 %v3504_v11  ;;  %2250 = vmatprep.mubr.bf16.mxu0 %v207_v45  ;;  %v3546_v11 = vld [vmem:[%s4463_s2 + $0x5b0] sm:$0xff]  }
  0x8e   :  { %v2440_v45 = vld [vmem:[%s4466_s9 + $0x30] sm:$0xff] }
  0x8f   :  { %3090 = vmatpush3.bf16.msra.mxu1 %v3474_v49  ;;  %v4204_v49 = vrot.slane %v137_v42, %v3642_v14  ;;  %v2439_v42 = vld [vmem:[%s4466_s9 + $0x28] sm:$0xff] }
  0x90   :  { %3091 = vmatprep.subr.bf16.mxu1 %v3477_v50  ;;  %3154 = vmatpush3.bf16.msra.mxu0 %v3505_v17  ;;  %v3523_v50 = vld [vmem:[%s4463_s2 + $0x4b8] sm:$0xff]  }
  0x91   :  { %3155 = vmatprep.subr.bf16.mxu0 %v3508_v18  ;;  %v153_v14 = vcombine.high %v4204_v49, %v4204_v49 }
  0x93   :  { %3092 = vmatpush3.bf16.msra.mxu1 %v3478_v53  ;;  %v204_v53 = vpack.c.bf16 %v4105_v8, %v4105_v8  ;;  %v2717_v8 = vld.sshfl [vmem:[%s4464_s0 + $0x30] sm:$0x3 pattern:$0x76325410] }
  0x94   :  { %3093 = vmatprep.subr.bf16.mxu1 %v3481_v54  ;;  %3156 = vmatpush3.bf16.msra.mxu0 %v3509_v22  ;;  %v3528_v54 = vld [vmem:[%s4463_s2 + $0x580] sm:$0xff]   ;;  %v210_v10 = vpack.c.bf16 %v2717_v8, %v2717_v8  ;;  %v2449_v8 = vld [vmem:[%s4466_s9 + $0x78] sm:$0xff] }
  0x95   :  { %3157 = vmatprep.subr.bf16.mxu0 %v3512_v23 }
  0x97   :  { %3094 = vmatpush3.bf16.msra.mxu1 %v3482_v57  ;;  %v209_v57 = vpack.c.bf16 %v153_v14, %v153_v14  ;;  %v2342_v14 = vld [vmem:[%s4467_s4 + $0x18] sm:$0xff] }
  0x98   :  { %3095 = vmatprep.subr.bf16.mxu1 %v3485_v58  ;;  %3158 = vmatpush3.bf16.msra.mxu0 %v3513_v26  ;;  %v3531_v58 = vld [vmem:[%s4463_s2 + $0x588] sm:$0xff]  }
  0x99   :  { %3159 = vmatprep.subr.bf16.mxu0 %v3516_v27  ;;  %v2434_v27 = vld [vmem:[%s4466_s9] sm:$0xff] }
  0x9b   :  { %3096 = vmatpush3.bf16.msra.mxu1 %v3486_v63  ;;  %v3536_v63 = vld [vmem:[%s4463_s2 + $0x5d8] sm:$0xff]  }
  0x9c   :  { %3097 = vmatprep.subr.bf16.mxu1 %v3489_v2  ;;  %3160 = vmatpush3.bf16.msra.mxu0 %v3517_v30  ;;  %v3539_v2 = vld [vmem:[%s4463_s2 + $0x5e0] sm:$0xff]  }
  0x9d   :  { %3161 = vmatprep.subr.bf16.mxu0 %v3520_v31  ;;  %v2718_v30 = vld [vmem:[%s4465_s3] ss:$0 sm:$0xff] }
  0x9f   :  { %3098 = vmatpush3.bf16.msra.mxu1 %v3490_v7  ;;  %v3551_v7 = vld [vmem:[%s4463_s2 + $0x638] sm:$0xff]  }
  0xa0   :  { %3127 = vmatprep.subr.bf16.mxu1 %v3494_v9  ;;  %3162 = vmatpush3.bf16.msra.mxu0 %v3521_v34  ;;  %v3545_v9 = vld [vmem:[%s4463_s2 + $0x5f0] sm:$0xff]   ;;  %v2437_v34 = vld [vmem:[%s4466_s9 + $0x18] sm:$0xff] }
  0xa1   :  { %3163 = vmatprep.subr.bf16.mxu0 %v3524_v35 }
  0xa2   :  { %2131 = vmatmul.mubr.bf16.vlgmr.msra.gmra.mrb[16].mxu1 %v200_v15  ;;  %v208_v15 = vpack.c.bf16 %v4204_v49, %v4204_v49  ;;  %v2340_v49 = vld [vmem:[%s4467_s4 + $0x8] sm:$0xff] }
  0xa3   :  { %3128 = vmatpush3.bf16.msra.mxu1 %v3495_v12  ;;  %2210 = vmatprep.mubr.bf16.mxu1 %v205_v20  ;;  %v3548_v12 = vld [vmem:[%s4463_s2 + $0x5f8] sm:$0xff]  }
  0xa4   :  { %3129 = vmatprep.subr.bf16.mxu1 %v3498_v16  ;;  %3164 = vmatpush3.bf16.msra.mxu0 %v3526_v38 }
  0xa5   :  { %3223 = vmatprep.subr.bf16.mxu0 %v3557_v48 }
  0xa7   :  { %3130 = vmatpush3.bf16.msra.mxu1 %v3499_v19  ;;  %2251 = vmatmul.mubr.bf16.vlgmr.msra.gmra.mrb[16].mxu0 %v206_v44  ;;  %v3319_v44 = vpack.c.bf16 %v2439_v42, %v2438_v41  ;;  %v2543_v42 = vld [vmem:[%s4469_s7] sm:$0xf] }
  0xa8   :  { %3131 = vmatprep.subr.bf16.mxu1 %v3502_v21  ;;  %3224 = vmatpush3.bf16.msra.mxu0 %v3529_v46  ;;  %v3559_v21 = vmov 0.0|0.0   ;;  %v2441_v46 = vld [vmem:[%s4466_s9 + $0x38] sm:$0xff] }
  0xa9   :  { %3225 = vmatprep.subr.bf16.mxu0 %v3557_v48  ;;  %3239 = vmatprep.mubr.msk.bf16.mxu0 %vm3558_vm0, %v3557_v48 }
  0xab   :  { %3132 = vmatpush3.bf16.msra.mxu1 %v3503_v24 }
  0xac   :  { %3133 = vmatprep.subr.bf16.mxu1 %v3506_v25  ;;  %3226 = vmatpush3.bf16.msra.mxu0 %v3532_v51 }
  0xad   :  { %3227 = vmatprep.subr.bf16.mxu0 %v3557_v48 }
  0xaf   :  { %3134 = vmatpush3.bf16.msra.mxu1 %v3507_v28  ;;  %v2435_v28 = vld [vmem:[%s4466_s9 + $0x8] sm:$0xff] }
  0xb0   :  { %3135 = vmatprep.subr.bf16.mxu1 %v3510_v29  ;;  %3228 = vmatpush3.bf16.msra.mxu0 %v3535_v55  ;;  %v3313_v29 = vpack.c.bf16 %v2435_v28, %v2434_v27 }
  0xb1   :  { %3229 = vmatprep.subr.bf16.mxu0 %v3557_v48 }
  0xb3   :  { %3136 = vmatpush3.bf16.msra.mxu1 %v3511_v32 }
  0xb4   :  { %3137 = vmatprep.subr.bf16.mxu1 %v3514_v33  ;;  %3230 = vmatpush3.bf16.msra.mxu0 %v3538_v59  ;;  %v2436_v33 = vld [vmem:[%s4466_s9 + $0x10] sm:$0xff] }
  0xb5   :  { %3231 = vmatprep.subr.bf16.mxu0 %v3557_v48  ;;  %v3316_v38 = vpack.c.bf16 %v2437_v34, %v2436_v33  ;;  %v2444_v59 = vld [vmem:[%s4466_s9 + $0x50] sm:$0xff] }
  0xb7   :  { %3138 = vmatpush3.bf16.msra.mxu1 %v3515_v36 }
  0xb8   :  { %3139 = vmatprep.subr.bf16.mxu1 %v3518_v40  ;;  %3232 = vmatpush3.bf16.msra.mxu0 %v3541_v62  ;;  %v2345_v62 = vld [vmem:[%s4467_s4 + $0x30] sm:$0xff] }
  0xb9   :  { %3233 = vmatprep.subr.bf16.mxu0 %v3557_v48 }
  0xbb   :  { %3140 = vmatpush3.bf16.msra.mxu1 %v3519_v43 }
  0xbc   :  { %3141 = vmatprep.subr.bf16.mxu1 %v3522_v47  ;;  %3234 = vmatpush3.bf16.msra.mxu0 %v3544_v1  ;;  %v2339_v47 = vld [vmem:[%s4467_s4] sm:$0xff] }
  0xbd   :  { %3235 = vmatprep.subr.bf16.mxu0 %v3557_v48  ;;  %v3289_v51 = vpack.c.bf16 %v2340_v49, %v2339_v47  ;;  %v2446_v1 = vld [vmem:[%s4466_s9 + $0x60] sm:$0xff] }
  0xbf   :  { %3142 = vmatpush3.bf16.msra.mxu1 %v3523_v50  ;;  %v2341_v50 = vld [vmem:[%s4467_s4 + $0x10] sm:$0xff] }
  0xc0   :  { %3171 = vmatprep.subr.bf16.mxu1 %v3527_v52  ;;  %3236 = vmatpush3.bf16.msra.mxu0 %v3547_v4  ;;  %v3322_v52 = vpack.c.bf16 %v2441_v46, %v2440_v45  ;;  %v3292_v55 = vpack.c.bf16 %v2342_v14, %v2341_v50  ;;  %v2347_v4 = vld [vmem:[%s4467_s4 + $0x40] sm:$0xff] }
  0xc1   :  { %3237 = vmatprep.subr.bf16.mxu0 %v3557_v48 }
  0xc2   :  { %2211 = vmatmul.mubr.bf16.vlgmr.msra.gmra.mrb[20].mxu1 %v204_v53  ;;  %v2442_v53 = vld [vmem:[%s4466_s9 + $0x40] sm:$0xff] }
  0xc3   :  { %3172 = vmatpush3.bf16.msra.mxu1 %v3528_v54  ;;  %2290 = vmatprep.mubr.bf16.mxu1 %v209_v57  ;;  %v2443_v54 = vld [vmem:[%s4466_s9 + $0x48] sm:$0xff] }
  0xc4   :  { %3173 = vmatprep.subr.bf16.mxu1 %v3530_v56  ;;  %3238 = vmatpush3.bf16.msra.mxu0 %v3551_v7  ;;  %v2343_v56 = vld [vmem:[%s4467_s4 + $0x20] sm:$0xff]  ;;  %v2344_v57 = vld [vmem:[%s4467_s4 + $0x28] sm:$0xff]  ;;  %v2448_v7 = vld [vmem:[%s4466_s9 + $0x70] sm:$0xff] }
  0xc5   :  { %3312 = vmatprep.subr.bf16.mxu0 %v3559_v21 }
  0xc7   :  { %3174 = vmatpush3.bf16.msra.mxu1 %v3531_v58  ;;  %3240 = vmatmul.mubr.bf16.vlgmr.msra.gmra.mrb[20].mxu0 %v210_v10  ;;  %v3325_v58 = vpack.c.bf16 %v2443_v54, %v2442_v53 }
  0xc8   :  { %3175 = vmatprep.subr.bf16.mxu1 %v3533_v60  ;;  %3314 = vmatpush1.bf16.msra.mxu0 %v3313_v29  ;;  %v2445_v60 = vld [vmem:[%s4466_s9 + $0x58] sm:$0xff]  ;;  %v2452_v29 = vld [vmem:[%s4466_s9 + $0x90] sm:$0xff] }
  0xc9   :  { %3315 = vmatprep.subr.bf16.mxu0 %v3559_v21 }
  0xcb   :  { %3176 = vmatpush3.bf16.msra.mxu1 %v3534_v61  ;;  %v3295_v61 = vpack.c.bf16 %v2344_v57, %v2343_v56 }
  0xcc   :  { %3177 = vmatprep.subr.bf16.mxu1 %v3536_v63  ;;  %3317 = vmatpush1.bf16.msra.mxu0 %v3316_v38  ;;  %v2346_v63 = vld [vmem:[%s4467_s4 + $0x38] sm:$0xff] }
  0xcd   :  { %3318 = vmatprep.subr.bf16.mxu0 %v3559_v21 }
  0xcf   :  { %3178 = vmatpush3.bf16.msra.mxu1 %v3537_v0  ;;  %v3328_v0 = vpack.c.bf16 %v2445_v60, %v2444_v59 }
  0xd0   :  { %3179 = vmatprep.subr.bf16.mxu1 %v3539_v2  ;;  %3320 = vmatpush1.bf16.msra.mxu0 %v3319_v44  ;;  %v2447_v2 = vld [vmem:[%s4466_s9 + $0x68] sm:$0xff] }
  0xd1   :  { %3321 = vmatprep.subr.bf16.mxu0 %v3559_v21 }
  0xd3   :  { %3180 = vmatpush3.bf16.msra.mxu1 %v3540_v3  ;;  %v3298_v3 = vpack.c.bf16 %v2346_v63, %v2345_v62 }
  0xd4   :  { %3181 = vmatprep.subr.bf16.mxu1 %v3542_v5  ;;  %3323 = vmatpush1.bf16.msra.mxu0 %v3322_v52  ;;  %v2348_v5 = vld [vmem:[%s4467_s4 + $0x48] sm:$0xff] }
  0xd5   :  { %3324 = vmatprep.subr.bf16.mxu0 %v3559_v21 }
  0xd7   :  { %3182 = vmatpush3.bf16.msra.mxu1 %v3543_v6  ;;  %v3331_v6 = vpack.c.bf16 %v2447_v2, %v2446_v1 }
  0xd8   :  { %3183 = vmatprep.subr.bf16.mxu1 %v3545_v9  ;;  %3326 = vmatpush1.bf16.msra.mxu0 %v3325_v58  ;;  %v3301_v9 = vpack.c.bf16 %v2348_v5, %v2347_v4 }
  0xd9   :  { %3327 = vmatprep.subr.bf16.mxu0 %v3559_v21 }
  0xdb   :  { %3184 = vmatpush3.bf16.msra.mxu1 %v3546_v11  ;;  %v2349_v11 = vld [vmem:[%s4467_s4 + $0x50] sm:$0xff] }
  0xdc   :  { %3185 = vmatprep.subr.bf16.mxu1 %v3548_v12  ;;  %3329 = vmatpush1.bf16.msra.mxu0 %v3328_v0  ;;  %v2350_v12 = vld [vmem:[%s4467_s4 + $0x58] sm:$0xff] }
  0xdd   :  { %3330 = vmatprep.subr.bf16.mxu0 %v3559_v21 }
  0xdf   :  { %3186 = vmatpush3.bf16.msra.mxu1 %v3549_v13 }
  0xe0   :  { %3288 = vmatprep.subr.bf16.mxu1 %v3559_v21  ;;  %3332 = vmatpush1.bf16.msra.mxu0 %v3331_v6 }
  0xe1   :  { %3333 = vmatprep.subr.bf16.mxu0 %v3559_v21 }
  0xe2   :  { %2291 = vmatmul.mubr.bf16.vlgmr.msra.gmra.mrb[24].mxu1 %v208_v15  ;;  %v3334_v15 = vpack.c.bf16 %v2449_v8, %v2448_v7 }
  0xe3   :  { %3275 = vmatprep.mubr.msk.f32.mxu1 %vm3558_vm0, %v3557_v48  ;;  %3290 = vmatpush3.bf16.msra.mxu1 %v3289_v51 }
  0xe4   :  { %3291 = vmatprep.subr.bf16.mxu1 %v3559_v21  ;;  %3335 = vmatpush1.bf16.msra.mxu0 %v3334_v15 }
  0xe5   :  { %3336 = vmatprep.subr.bf16.mxu0 %v3559_v21 }
  0xe7   :  { %3293 = vmatpush3.bf16.msra.mxu1 %v3292_v55 }
  0xe8   :  { %3294 = vmatprep.subr.bf16.mxu1 %v3559_v21 }
  0xeb   :  { %3296 = vmatpush3.bf16.msra.mxu1 %v3295_v61 }
  0xec   :  { %3297 = vmatprep.subr.bf16.mxu1 %v3559_v21 }
  0xef   :  { %3299 = vmatpush3.bf16.msra.mxu1 %v3298_v3 }
  0xf0   :  { %3300 = vmatprep.subr.bf16.mxu1 %v3559_v21 }
  0xf3   :  { %3302 = vmatpush3.bf16.msra.mxu1 %v3301_v9 }
  0xf4   :  { %3303 = vmatprep.subr.bf16.mxu1 %v3559_v21 }
  0xf5   :  { %v2945_v16 = vpop.f32.mrb[0].mxu1 }
  0xf6   :  { %v2946_v17 = vpop.f32.mrb[1].mxu1 }
  0xf7   :  { %v2947_v18 = vadd.f32 %v2946_v17, %v2945_v16  ;;  %v2948_v19 = vpop.f32.mrb[2].mxu1 }
  0xf8   :  { %v2949_v20 = vpop.f32.mrb[3].mxu1  ;;  %v3304_v19 = vpack.c.bf16 %v2350_v12, %v2349_v11 }
  0xf9   :  { %v1853_v35 = vadd.f32 %v2947_v18, %v2718_v30  ;;  %v2450_v20 = vld [vmem:[%s4466_s9 + $0x80] sm:$0xff]  ;;  %v2453_v30 = vld [vmem:[%s4466_s9 + $0x98] sm:$0xff] }
  0xfa   :  { %v2989_v22 = vpop.f32.mrb[0].mxu0  ;;  %3305 = vmatpush3.bf16.msra.mxu1 %v3304_v19  ;;  %v3340_v33 = vpack.c.bf16 %v2453_v30, %v2452_v29 }
  0xfb   :  { %v2990_v23 = vpop.f32.mrb[1].mxu0  ;;  %3306 = vmatprep.subr.bf16.mxu1 %v3559_v21 }
  0xfc   :  { %v2991_v24 = vadd.f32 %v2990_v23, %v2989_v22  ;;  %v2992_v25 = vpop.f32.mrb[2].mxu0  ;;  %v2451_v22 = vld [vmem:[%s4466_s9 + $0x88] sm:$0xff] }
  0xfd   :  { %v2993_v26 = vpop.f32.mrb[3].mxu0  ;;  %v3337_v23 = vpack.c.bf16 %v2451_v22, %v2450_v20  ;;  %v2351_v25 = vld [vmem:[%s4467_s4 + $0x60] sm:$0xff] }
  0xfe   :  { %v2352_v26 = vld [vmem:[%s4467_s4 + $0x68] sm:$0xff] }
  0xff   :  { %3338 = vmatpush1.bf16.msra.mxu0 %v3337_v23  ;;  %v3307_v28 = vpack.c.bf16 %v2352_v26, %v2351_v25 }
 0x100   :  { %3339 = vmatprep.subr.bf16.mxu0 %v3559_v21 }
 0x101   :  { %3308 = vmatpush3.bf16.msra.mxu1 %v3307_v28 }
 0x102   :  { %3309 = vmatprep.subr.bf16.mxu1 %v3559_v21  ;;  %v2454_v21 = vld [vmem:[%s4466_s9 + $0xa0] sm:$0xf] }
 0x103   :  { %3341 = vmatpush1.bf16.msra.mxu0 %v3340_v33  ;;  %v2919_v33 = vld [vmem:[%s4472_s5] ss:$0 sm:$0xff] }
 0x104   :  { %2512 = vmatprep.subr.mxu0 %v3557_v48 }
 0x107   :  { %2921 = vmatpush1.msk.msra.mxu0 %vm2468_vm1, %v2454_v21 }
 0x108   :  { %3278 = vmatprep.subr.mxu0 %v3557_v48 }
 0x115   :  { %v2967_v31 = vpop.f32.mrb[4].mxu1 }
 0x116   :  { %v2968_v32 = vpop.f32.mrb[5].mxu1 }
 0x117   :  { %v2969_v36 = vadd.f32 %v2968_v32, %v2967_v31  ;;  %v2970_v37 = vpop.f32.mrb[6].mxu1 }
 0x118   :  { %v2971_v39 = vpop.f32.mrb[7].mxu1  ;;  %v2354_v37 = vld [vmem:[%s4467_s4 + $0x78] sm:$0xff] }
 0x119   :  { %v1893_v40 = vadd.f32 %v2969_v36, %v1853_v35  ;;  %v2353_v36 = vld [vmem:[%s4467_s4 + $0x70] sm:$0xff]  ;;  %v2920_v39 = vld.sshfl [vmem:[%s4468_s1] sm:$0x33 pattern:$0x76325410] }
 0x11a   :  { %v3033_v10 = vpop.f32.mrb[4].mxu0  ;;  %v3310_v38 = vpack.c.bf16 %v2354_v37, %v2353_v36  ;;  %v2463_v41 = vcombine.high %v2920_v39, %v2920_v39 }
 0x11b   :  { %v4323_v43 = vadd.f32 %v2991_v24, %v1893_v40  ;;  %v3034_v13 = vpop.f32.mrb[5].mxu0 }
 0x11c   :  { %v3035_v16 = vadd.f32 %v3034_v13, %v3033_v10  ;;  %v3036_v17 = vpop.f32.mrb[6].mxu0  ;;  %3311 = vmatpush3.bf16.msra.mxu1 %v3310_v38  ;;  %2922 = vmatprep.mubr.msk.f32.mxu0 %vm2465_vm2, %v2463_v41 }
 0x11d   :  { %v3037_v18 = vpop.f32.mrb[7].mxu0  ;;  %2537 = vmatmul.mubr.f32.vlgmr.msra.gmra.mrb[24].mxu0 %v2920_v39 }
 0x11e   :  { %3280 = vmatprep.mubr.msk.f32.mxu0 %vm3558_vm0, %v3557_v48  ;;  %3279 = vmatpush3.msk.msra.mxu0 %vm2468_vm1, %v2543_v42 }
 0x11f   :  { %3283 = vmatprep.subr.mxu0 %v3557_v48 }
 0x135   :  { %v3011_v24 = vpop.f32.mrb[8].mxu1 }
 0x136   :  { %v3012_v27 = vpop.f32.mrb[9].mxu1 }
 0x137   :  { %v3013_v31 = vadd.f32 %v3012_v27, %v3011_v24  ;;  %v3014_v32 = vpop.f32.mrb[10].mxu1 }
 0x138   :  { %v3015_v34 = vpop.f32.mrb[11].mxu1  ;;  %v15_v32 = vstv %s4471_s8 }
 0x139   :  { %v1973_v35 = vadd.f32 %v3013_v31, %v4323_v43  ;;  %v2542_v31 = vld [vmem:[%s4470_s6] sm:$0xf]  ;;  %16 = vst [vmem:[#allocation2] sm:$0x1] %v15_v32 }
 0x13a   :  { %v3077_v43 = vpop.f32.mrb[8].mxu0 }
 0x13b   :  { %v2013_v40 = vadd.f32 %v3035_v16, %v1973_v35  ;;  %v3078_v44 = vpop.f32.mrb[9].mxu0 }
 0x13c   :  { %v3079_v45 = vadd.f32 %v3078_v44, %v3077_v43  ;;  %v3080_v46 = vpop.f32.mrb[10].mxu0 }
 0x13d   :  { %v3081_v47 = vpop.f32.mrb[11].mxu0 }
 0x155   :  { %v3055_v49 = vpop.f32.mrb[12].mxu1 }
 0x156   :  { %v3056_v50 = vpop.f32.mrb[13].mxu1 }
 0x157   :  { %v3057_v51 = vadd.f32 %v3056_v50, %v3055_v49  ;;  %v3058_v52 = vpop.f32.mrb[14].mxu1 }
 0x158   :  { %v3059_v14 = vpop.f32.mrb[15].mxu1 }
 0x159   :  { %v2053_v53 = vadd.f32 %v3057_v51, %v2013_v40  ;;  %v2927_v40 = vld [vmem:[#allocation2] ss:$0 sm:$0xff] }
 0x15a   :  { %v3121_v55 = vpop.f32.mrb[12].mxu0 }
 0x15b   :  { %v2093_v54 = vadd.f32 %v3079_v45, %v2053_v53  ;;  %v3122_v56 = vpop.f32.mrb[13].mxu0 }
 0x15c   :  { %v3123_v57 = vadd.f32 %v3122_v56, %v3121_v55  ;;  %v3124_v58 = vpop.f32.mrb[14].mxu0 }
 0x15d   :  { %v3125_v59 = vpop.f32.mrb[15].mxu0 }
 0x175   :  { %v3099_v60 = vpop.f32.mrb[16].mxu1 }
 0x176   :  { %v3100_v61 = vpop.f32.mrb[17].mxu1 }
 0x177   :  { %v3101_v62 = vadd.f32 %v3100_v61, %v3099_v60  ;;  %v3102_v63 = vpop.f32.mrb[18].mxu1 }
 0x178   :  { %v3103_v0 = vpop.f32.mrb[19].mxu1 }
 0x179   :  { %v2133_v1 = vadd.f32 %v3101_v62, %v2093_v54 }
 0x17a   :  { %v3165_v3 = vpop.f32.mrb[16].mxu0 }
 0x17b   :  { %v2173_v2 = vadd.f32 %v3123_v57, %v2133_v1  ;;  %v3166_v4 = vpop.f32.mrb[17].mxu0 }
 0x17c   :  { %v3167_v5 = vadd.f32 %v3166_v4, %v3165_v3  ;;  %v3168_v6 = vpop.f32.mrb[18].mxu0 }
 0x17d   :  { %v3169_v7 = vpop.f32.mrb[19].mxu0 }
 0x195   :  { %v3143_v8 = vpop.f32.mrb[20].mxu1 }
 0x196   :  { %v3144_v9 = vpop.f32.mrb[21].mxu1 }
 0x197   :  { %v3145_v10 = vadd.f32 %v3144_v9, %v3143_v8  ;;  %v3146_v11 = vpop.f32.mrb[22].mxu1 }
 0x198   :  { %v3147_v12 = vpop.f32.mrb[23].mxu1 }
 0x199   :  { %v2213_v13 = vadd.f32 %v3145_v10, %v2173_v2 }
 0x19a   :  { %v2332_v16 = vpop.f32.mrb[20].mxu0 }
 0x19b   :  { %v2253_v15 = vadd.f32 %v3167_v5, %v2213_v13  ;;  %v3241_v17 = vpop.f32.mrb[21].mxu0 }
 0x19c   :  { %v2335_v18 = vpop.f32.mrb[22].mxu0 }
 0x19d   :  { %v3242_v19 = vpop.f32.mrb[23].mxu0 }
 0x1b5   :  { %v3187_v20 = vpop.f32.mrb[24].mxu1 }
 0x1b6   :  { %v3188_v22 = vpop.f32.mrb[25].mxu1 }
 0x1b7   :  { %v3189_v23 = vadd.f32 %v3188_v22, %v3187_v20  ;;  %v3190_v24 = vpop.f32.mrb[26].mxu1 }
 0x1b8   :  { %v3191_v25 = vpop.f32.mrb[27].mxu1 }
 0x1b9   :  { %v2293_v26 = vadd.f32 %v3189_v23, %v2253_v15 }
 0x1bb   :  { %v2333_v27 = vadd.f32 %v2332_v16, %v2293_v26 }
 0x1bd   :  { %v2338_v28 = vmax.f32 %v2333_v27, 0.0 }
 0x1bf   :  { %3276 = vmatmul.mubr.f32.vlgmr.msra.gmra.mrb[28].mxu1 %v2338_v28 }
 0x1f0   :  { %v2538_v29 = vpop.f32.mrb[24].mxu0 }
 0x1f1   :  { %v2540_v30 = vpop.f32.mrb[25].mxu0  ;;  %3281 = vmatmul.mubr.msk.f32.vlgmr.msra.gmra.mrb[26].mxu0 %vm2544_vm3, %v2538_v29 }
 0x1f2   :  { %3285 = vmatprep.mubr.msk.f32.mxu0 %vm3558_vm0, %v3557_v48  ;;  %3284 = vmatpush3.msk.msra.mxu0 %vm2468_vm1, %v2542_v31 }
 0x292   :  { %v2428_v34 = vpop.f32.mrb[28].mxu1 }
 0x293   :  { %v2429_v35 = vadd.f32 %v2919_v33, %v2428_v34  ;;  %v3277_v36 = vpop.f32.mrb[29].mxu1 }
 0x295   :  { %v2432_v37 = vmax.f32 %v2429_v35, 0.0 }
 0x297   :  { %3286 = vmatmul.mubr.msk.f32.vlgmr.msra.gmra.mrb[28].mxu0 %vm2544_vm3, %v2432_v37 }
 0x2c4   :  { %v2617_v48 = vpop.f32.mrb[26].mxu0 }
 0x2c5   :  { %v3282_v38 = vpop.f32.mrb[27].mxu0 }
 0x36a   :  { %v2693_v39 = vpop.f32.mrb[28].mxu0 }
 0x36b   :  { %v2694_v41 = vadd.f32 %v2693_v39, %v2617_v48  ;;  %v3287_v21 = vpop.f32.mrb[29].mxu0 }
 0x36d   :  { %v2704_v42 = vadd.f32 %v2927_v40, %v2694_v41 }
 0x36f   :  { %v2928_v43 = vmul.f32 -1.442695, %v2704_v42 }
 0x371   :  { %3552 = vpow2.f32 %v2928_v43 }
 0x37b   :  { %v3553_v44 = vpop.eup %3552 }
 0x37c   :  { %v2708_v45 = vadd.f32 1.0, %v3553_v44 }
 0x37e   :  { %3554 = vrcp.f32 %v2708_v45 }
 0x388   :  { %v3555_v46 = vpop.eup %3554 }
 0x389   :  { %2712 = vst.msk [vmem:[%s4473_s10] sm:$0x3] %vm2711_vm4, %v3555_v46 }

</bundles_post_ra>
